<compile_context>
chip_gen: v7x
topology: tpu7x:2x2x1
jax: 0.10.0
libtpu: 0.0.40
codegen_flags: <defaults>
</compile_context>

<pallas_src>
import jax
import jax.numpy as jnp
from jax import lax
from jax.experimental import pallas as pl
from jax.experimental.pallas import tpu as pltpu

EPS = 1e-5
VMEM_LIMIT = 48 * 1024 * 1024   # explicit cap (v5e default scoped VMEM is 16 MiB)
VMEM_BUDGET = 20 * 1024 * 1024  # planning budget when choosing the batch block


def _round_up(x, m):
    return (x + m - 1) // m * m


def _pick_batch_block(N, H, W, Ci, Co):
    """Largest divisor of N whose per-step VMEM working set fits the budget.

    Lane/sublane padding is accounted conservatively (minor dim -> 128,
    second-minor -> 8) so the estimate never undershoots the real footprint.
    TODO(synk): for very large H*W (v7x, 64 MiB/TC) tile over rows of H with a
    1-row halo instead of whole images.
    """
    ci = _round_up(Ci, 128)
    co = _round_up(Co, 128)

    def step_bytes(b):
        f = 4
        x_blk = 2 * b * H * _round_up(W, 8) * ci * f          # double-buffered in
        y_blk = 2 * b * H * _round_up(W, 8) * co * f          # double-buffered out
        pad = b * (H + 2) * _round_up(W + 2, 8) * ci * f      # persistent pad scratch
        wts = 2 * 9 * _round_up(Ci, 8) * co * f               # (double-buffered) weights
        acc = b * H * W * co * f                              # live accumulator
        st = 2 * 8 * co * f
        return x_blk + y_blk + pad + wts + acc + st

    best = 1
    for b in range(1, N + 1):
        if N % b == 0 and step_bytes(b) <= VMEM_BUDGET:
            best = b
    return best


def _make_conv_kernel(pre_affine: bool):
    """3x3 conv (pad=1) over a (B_blk, H, W, Ci) block.

    The conv is 9 direct shifted-window accumulate matmuls (K = Ci each) from
    a zero-halo padded VMEM scratch -- no im2col buffer.  If `pre_affine`, a
    folded-BatchNorm affine + ReLU is applied to the input block first
    (BN1+ReLU feeding conv2).  Also emits one-pass BN partial stats."""

    def kernel(x_ref, w_ref, pk_ref, y_ref, st_ref, pad_ref):
        B, H, W, Ci = x_ref.shape
        Co = y_ref.shape[3]

        xin = x_ref[...]                                     # (B, H, W, Ci)
        if pre_affine:
            scale = pk_ref[0:1, :]                           # (1, Co)
            shift = pk_ref[1:2, :]
            bias = pk_ref[2:3, :]
            xin = jnp.maximum(xin * scale + shift, 0.0)      # BN + ReLU, one FMA
        else:
            bias = pk_ref[0:1, :]

        # Zero the 1-pixel halo only on the first grid step: the scratch
        # persists across steps and the interior store below never touches the
        # halo, so it stays zero.  (Saves the masked halo column stores every
        # step.)  Requires sequential grid semantics -> "arbitrary" below.
        @pl.when(pl.program_id(0) == 0)
        def _():
            pad_ref[:, 0:1, :, :] = jnp.zeros((B, 1, W + 2, Ci), jnp.float32)
            pad_ref[:, H + 1:H + 2, :, :] = jnp.zeros((B, 1, W + 2, Ci), jnp.float32)
            pad_ref[:, 1:H + 1, 0:1, :] = jnp.zeros((B, H, 1, Ci), jnp.float32)
            pad_ref[:, 1:H + 1, W + 1:W + 2, :] = jnp.zeros((B, H, 1, Ci), jnp.float32)

        pad_ref[:, 1:H + 1, 1:W + 1, :] = xin

        # 9 shifted-window accumulate matmuls.  No col_ref: each window feeds
        # the MXU directly.
        # TODO(synk): on v6e/v7x pair taps into K=2*Ci pushes for full MXU depth.
        acc = None
        for t in range(9):
            kh, kw = divmod(t, 3)
            win = pad_ref[:, kh:kh + H, kw:kw + W, :].reshape(B * H * W, Ci)
            d = jnp.dot(win, w_ref[t], preferred_element_type=jnp.float32)
            acc = d if acc is None else acc + d
        y = acc + bias                                       # (B*H*W, Co)

        y_ref[...] = y.reshape(B, H, W, Co)

        # one-pass BatchNorm partial statistics (sum, sum of squares)
        # TODO(synk): switch to a two-pass / Welford reduction at very large N*H*W.
        st_ref[0:1, 0:1, :] = jnp.sum(y, axis=0, keepdims=True).reshape(1, 1, Co)
        st_ref[0:1, 1:2, :] = jnp.sum(y * y, axis=0, keepdims=True).reshape(1, 1, Co)

    return kernel


def _conv_pass(x, w_taps, pack, pre_affine, b_blk):
    """One conv block pass, gridded over the batch dimension (B_blk images/step)."""
    N, H, W, Ci = x.shape
    _, _, Co = w_taps.shape
    PK = pack.shape[0]
    G = N // b_blk
    kernel = _make_conv_kernel(pre_affine)
    # TODO(synk): mark the weight/pack specs single-buffered (pl.Buffered(1));
    # their index_map is constant so double-buffering them only costs VMEM.
    return pl.pallas_call(
        kernel,
        grid=(G,),
        in_specs=[
            pl.BlockSpec((b_blk, H, W, Ci), lambda n: (n, 0, 0, 0)),
            pl.BlockSpec((9, Ci, Co), lambda n: (0, 0, 0)),   # per-tap weights
            pl.BlockSpec((PK, Co), lambda n: (0, 0)),         # packed per-channel params
        ],
        out_specs=[
            pl.BlockSpec((b_blk, H, W, Co), lambda n: (n, 0, 0, 0)),
            pl.BlockSpec((1, 2, Co), lambda n: (n, 0, 0)),
        ],
        out_shape=[
            jax.ShapeDtypeStruct((N, H, W, Co), jnp.float32),
            jax.ShapeDtypeStruct((G, 2, Co), jnp.float32),
        ],
        scratch_shapes=[
            pltpu.VMEM((b_blk, H + 2, W + 2, Ci), jnp.float32),  # zero-halo padded tile
        ],
        compiler_params=pltpu.CompilerParams(
            # "arbitrary": grid steps run in order so the zero-halo scratch
            # initialized at step 0 stays valid (measured parity with
            # "parallel" on single-TC chips).
            dimension_semantics=("arbitrary",),
            vmem_limit_bytes=VMEM_LIMIT),
    )(x, w_taps, pack)


def _bn_relu_kernel(y_ref, pk_ref, o_ref):
    o_ref[...] = jnp.maximum(y_ref[...] * pk_ref[0:1, :] + pk_ref[1:2, :], 0.0)


def _bn_relu_pass(y, pack, b_blk):
    N, H, W, Co = y.shape
    return pl.pallas_call(
        _bn_relu_kernel,
        grid=(N // b_blk,),
        in_specs=[pl.BlockSpec((b_blk, H, W, Co), lambda n: (n, 0, 0, 0)),
                  pl.BlockSpec((2, Co), lambda n: (0, 0))],
        out_specs=pl.BlockSpec((b_blk, H, W, Co), lambda n: (n, 0, 0, 0)),
        out_shape=jax.ShapeDtypeStruct((N, H, W, Co), jnp.float32),
        input_output_aliases={0: 0},   # reuse y2's HBM buffer for the output
        compiler_params=pltpu.CompilerParams(
            dimension_semantics=("parallel",),
            vmem_limit_bytes=VMEM_LIMIT),
    )(y, pack)


@jax.jit
def double_conv(x_nchw, params):
    """x_nchw: (N, Cin, H, W) float32.  Returns (N, Cout, H, W) float32."""
    w1, b1, g1, be1, w2, b2, g2, be2 = params
    N, Cin, H, W = x_nchw.shape
    Cout = w1.shape[0]

    # TODO(synk): keep the surrounding model NHWC end-to-end so these boundary
    # transposes (needed only for PyTorch NCHW parity) leave the hot path.
    x_nhwc = jnp.transpose(x_nchw, (0, 2, 3, 1))

    # Conv weights -> (tap, Ci, Co) for the per-tap accumulate matmuls.
    w1_taps = jnp.transpose(w1, (2, 3, 1, 0)).reshape(9, Cin, Cout)
    w2_taps = jnp.transpose(w2, (2, 3, 1, 0)).reshape(9, Cout, Cout)

    cnt = jnp.float32(N * H * W)

    def fold_bn(stats, gamma, beta):
        s = jnp.sum(stats, axis=0)                          # (2, Co)
        mean = s[0] / cnt
        var = jnp.maximum(s[1] / cnt - mean * mean, 0.0)    # biased (training-mode) var
        scale = gamma * lax.rsqrt(var + EPS)
        return scale, beta - mean * scale

    # pass 1: conv1 + bias -> y1 (real Cout channels in HBM), partial stats
    bb1 = _pick_batch_block(N, H, W, Cin, Cout)
    y1, st1 = _conv_pass(x_nhwc, w1_taps, b1.reshape(1, Cout), False, bb1)
    scale1, shift1 = fold_bn(st1, g1, be1)

    # pass 2: BN1+ReLU + conv2 + bias -> y2, partial stats
    bb2 = _pick_batch_block(N, H, W, Cout, Cout)
    y2, st2 = _conv_pass(y1, w2_taps,
                         jnp.stack([scale1, shift1, b2], axis=0), True, bb2)
    scale2, shift2 = fold_bn(st2, g2, be2)

    # pass 3: BN2 + ReLU (aliases y2's buffer)
    out_nhwc = _bn_relu_pass(y2, jnp.stack([scale2, shift2], axis=0), bb2)

    return jnp.transpose(out_nhwc, (0, 3, 1, 2))


def double_conv_reference(x_nchw, params):
    """Pure-JAX f32 reference (NCHW conv + training-mode BN) for validation."""
    w1, b1, g1, be1, w2, b2, g2, be2 = params

    def block(x, w, b, g, be):
        y = lax.conv_general_dilated(
            x, w, window_strides=(1, 1), padding=((1, 1), (1, 1)),
            dimension_numbers=("NCHW", "OIHW", "NCHW"))
        y = y + b[None, :, None, None]
        mean = jnp.mean(y, axis=(0, 2, 3), keepdims=True)
        var = jnp.mean((y - mean) ** 2, axis=(0, 2, 3), keepdims=True)
        y = (y - mean) * lax.rsqrt(var + EPS)
        y = y * g[None, :, None, None] + be[None, :, None, None]
        return jnp.maximum(y, 0.0)

    h = block(x_nchw, w1, b1, g1, be1)
    return block(h, w2, b2, g2, be2)


def init_params(key, in_channels, out_channels):
    ks = jax.random.split(key, 6)
    w1 = jax.random.normal(ks[0], (out_channels, in_channels, 3, 3), jnp.float32) * 0.1
    b1 = jax.random.normal(ks[1], (out_channels,), jnp.float32) * 0.1
    g1 = 1.0 + 0.1 * jax.random.normal(ks[2], (out_channels,), jnp.float32)
    be1 = 0.1 * jax.random.normal(ks[3], (out_channels,), jnp.float32)
    w2 = jax.random.normal(ks[4], (out_channels, out_channels, 3, 3), jnp.float32) * 0.1
    b2 = jax.random.normal(ks[5], (out_channels,), jnp.float32) * 0.1
    g2 = jnp.ones((out_channels,), jnp.float32)
    be2 = jnp.zeros((out_channels,), jnp.float32)
    return (w1, b1, g1, be1, w2, b2, g2, be2)


if __name__ == "__main__":
    key = jax.random.PRNGKey(0)
    kx, kp = jax.random.split(key)

    N, Cin, Cout, H, W = 2, 4, 8, 16, 16
    x = jax.random.normal(kx, (N, Cin, H, W), jnp.float32)
    params = init_params(kp, Cin, Cout)

    out = jax.block_until_ready(double_conv(x, params))
    ref = jax.block_until_ready(double_conv_reference(x, params))

    assert out.shape == (N, Cout, H, W), out.shape
    err = float(jnp.max(jnp.abs(out - ref)))
    assert err < 1e-3, err
    print("KERNEL_OK")
</pallas_src>

<mosaic_0001>
module attributes {stable_mosaic.version = 11 : i64} {
  func.func @kernel(%arg0: i32, %arg1: memref<2x16x16x4xf32, #tpu.memory_space<vmem>>, %arg2: memref<9x4x8xf32, #tpu.memory_space<vmem>>, %arg3: memref<1x8xf32, #tpu.memory_space<vmem>>, %arg4: memref<2x16x16x8xf32, #tpu.memory_space<vmem>>, %arg5: memref<1x2x8xf32, #tpu.memory_space<vmem>>, %arg6: memref<2x18x18x4xf32, #tpu.memory_space<vmem>>) attributes {dimension_semantics = [#tpu.dimension_semantics<arbitrary>], iteration_bounds = array<i64: 1>, scalar_prefetch = 0 : i64, scratch_operands = 1 : i64, tpu.core_type = #tpu.core_type<tc>, window_params = [{transform_indices = @transform_0, window_bounds = array<i64: 2, 16, 16, 4>}, {pipeline_mode = #tpu.pipeline_mode<synchronous>, transform_indices = @transform_1, window_bounds = array<i64: 9, 4, 8>}, {pipeline_mode = #tpu.pipeline_mode<synchronous>, transform_indices = @transform_2, window_bounds = array<i64: 1, 8>}, {transform_indices = @transform_3, window_bounds = array<i64: 2, 16, 16, 8>}, {transform_indices = @transform_4, window_bounds = array<i64: 1, 2, 8>}]} {
    %c0 = arith.constant 0 : index
    %c0_0 = arith.constant 0 : index
    %c0_1 = arith.constant 0 : index
    %c0_2 = arith.constant 0 : index
    %0 = vector.load %arg1[%c0, %c0_0, %c0_1, %c0_2] : memref<2x16x16x4xf32, #tpu.memory_space<vmem>>, vector<2x16x16x4xf32>
    %c0_3 = arith.constant 0 : index
    %c0_4 = arith.constant 0 : index
    %1 = vector.load %arg3[%c0_3, %c0_4] : memref<1x8xf32, #tpu.memory_space<vmem>>, vector<1x8xf32>
    %c0_i32 = arith.constant 0 : i32
    %2 = arith.cmpi eq, %arg0, %c0_i32 : i32
    %3 = arith.extui %2 : i1 to i32
    %c0_i32_5 = arith.constant 0 : i32
    %4 = arith.cmpi ne, %3, %c0_i32_5 : i32
    scf.if %4 {
      %cst_85 = arith.constant 0.000000e+00 : f32
      %72 = vector.broadcast %cst_85 : f32 to vector<2x1x18x4xf32>
      %c0_86 = arith.constant 0 : index
      %c0_87 = arith.constant 0 : index
      %c0_88 = arith.constant 0 : index
      %c0_89 = arith.constant 0 : index
      %73 = vector.load %arg6[%c0_86, %c0_87, %c0_88, %c0_89] : memref<2x18x18x4xf32, #tpu.memory_space<vmem>>, vector<2x1x18x4xf32>
      tpu.vector_store %arg6[%c0_86, %c0_87, %c0_88, %c0_89], %72 {strides = array<i32>} : memref<2x18x18x4xf32, #tpu.memory_space<vmem>>, vector<2x1x18x4xf32>,
      %cst_90 = arith.constant 0.000000e+00 : f32
      %74 = vector.broadcast %cst_90 : f32 to vector<2x1x18x4xf32>
      %c0_91 = arith.constant 0 : index
      %c17 = arith.constant 17 : index
      %c0_92 = arith.constant 0 : index
      %c0_93 = arith.constant 0 : index
      %75 = vector.load %arg6[%c0_91, %c17, %c0_92, %c0_93] : memref<2x18x18x4xf32, #tpu.memory_space<vmem>>, vector<2x1x18x4xf32>
      tpu.vector_store %arg6[%c0_91, %c17, %c0_92, %c0_93], %74 {strides = array<i32>} : memref<2x18x18x4xf32, #tpu.memory_space<vmem>>, vector<2x1x18x4xf32>,
      %cst_94 = arith.constant 0.000000e+00 : f32
      %76 = vector.broadcast %cst_94 : f32 to vector<2x16x1x4xf32>
      %c0_95 = arith.constant 0 : index
      %c1_96 = arith.constant 1 : index
      %c0_97 = arith.constant 0 : index
      %c0_98 = arith.constant 0 : index
      %77 = vector.load %arg6[%c0_95, %c1_96, %c0_97, %c0_98] : memref<2x18x18x4xf32, #tpu.memory_space<vmem>>, vector<2x16x1x4xf32>
      tpu.vector_store %arg6[%c0_95, %c1_96, %c0_97, %c0_98], %76 {strides = array<i32>} : memref<2x18x18x4xf32, #tpu.memory_space<vmem>>, vector<2x16x1x4xf32>,
      %cst_99 = arith.constant 0.000000e+00 : f32
      %78 = vector.broadcast %cst_99 : f32 to vector<2x16x1x4xf32>
      %c0_100 = arith.constant 0 : index
      %c1_101 = arith.constant 1 : index
      %c17_102 = arith.constant 17 : index
      %c0_103 = arith.constant 0 : index
      %79 = vector.load %arg6[%c0_100, %c1_101, %c17_102, %c0_103] : memref<2x18x18x4xf32, #tpu.memory_space<vmem>>, vector<2x16x1x4xf32>
      tpu.vector_store %arg6[%c0_100, %c1_101, %c17_102, %c0_103], %78 {strides = array<i32>} : memref<2x18x18x4xf32, #tpu.memory_space<vmem>>, vector<2x16x1x4xf32>,
    } else {
    }
    %c0_6 = arith.constant 0 : index
    %c1 = arith.constant 1 : index
    %c1_7 = arith.constant 1 : index
    %c0_8 = arith.constant 0 : index
    %5 = vector.load %arg6[%c0_6, %c1, %c1_7, %c0_8] : memref<2x18x18x4xf32, #tpu.memory_space<vmem>>, vector<2x16x16x4xf32>
    tpu.vector_store %arg6[%c0_6, %c1, %c1_7, %c0_8], %0 {strides = array<i32>} : memref<2x18x18x4xf32, #tpu.memory_space<vmem>>, vector<2x16x16x4xf32>,
    %c0_9 = arith.constant 0 : index
    %c0_10 = arith.constant 0 : index
    %c0_11 = arith.constant 0 : index
    %c0_12 = arith.constant 0 : index
    %6 = vector.load %arg6[%c0_9, %c0_10, %c0_11, %c0_12] : memref<2x18x18x4xf32, #tpu.memory_space<vmem>>, vector<2x16x16x4xf32>
    %7 = vector.shape_cast %6 : vector<2x16x16x4xf32> to vector<512x4xf32>
    %c0_13 = arith.constant 0 : index
    %c0_14 = arith.constant 0 : index
    %c0_15 = arith.constant 0 : index
    %8 = vector.load %arg2[%c0_13, %c0_14, %c0_15] : memref<9x4x8xf32, #tpu.memory_space<vmem>>, vector<1x4x8xf32>
    %9 = vector.shape_cast %8 : vector<1x4x8xf32> to vector<4x8xf32>
    %cst = arith.constant dense<0.000000e+00> : vector<512x8xf32>
    %10 = tpu.matmul %7, %9, %cst {dimension_numbers = #tpu.dot_dimension_numbers<[1], [0], [0], [1], [0, 0, 1, 1], [], []>} : vector<512x4xf32>, vector<4x8xf32>, vector<512x8xf32> -> vector<512x8xf32>
    %c0_16 = arith.constant 0 : index
    %c0_17 = arith.constant 0 : index
    %c1_18 = arith.constant 1 : index
    %c0_19 = arith.constant 0 : index
    %11 = vector.load %arg6[%c0_16, %c0_17, %c1_18, %c0_19] : memref<2x18x18x4xf32, #tpu.memory_space<vmem>>, vector<2x16x16x4xf32>
    %12 = vector.shape_cast %11 : vector<2x16x16x4xf32> to vector<512x4xf32>
    %c1_20 = arith.constant 1 : index
    %c0_21 = arith.constant 0 : index
    %c0_22 = arith.constant 0 : index
    %13 = vector.load %arg2[%c1_20, %c0_21, %c0_22] : memref<9x4x8xf32, #tpu.memory_space<vmem>>, vector<1x4x8xf32>
    %14 = vector.shape_cast %13 : vector<1x4x8xf32> to vector<4x8xf32>
    %cst_23 = arith.constant dense<0.000000e+00> : vector<512x8xf32>
    %15 = tpu.matmul %12, %14, %cst_23 {dimension_numbers = #tpu.dot_dimension_numbers<[1], [0], [0], [1], [0, 0, 1, 1], [], []>} : vector<512x4xf32>, vector<4x8xf32>, vector<512x8xf32> -> vector<512x8xf32>
    %16 = arith.addf %10, %15 : vector<512x8xf32>
    %c0_24 = arith.constant 0 : index
    %c0_25 = arith.constant 0 : index
    %c2 = arith.constant 2 : index
    %c0_26 = arith.constant 0 : index
    %17 = vector.load %arg6[%c0_24, %c0_25, %c2, %c0_26] : memref<2x18x18x4xf32, #tpu.memory_space<vmem>>, vector<2x16x16x4xf32>
    %18 = vector.shape_cast %17 : vector<2x16x16x4xf32> to vector<512x4xf32>
    %c2_27 = arith.constant 2 : index
    %c0_28 = arith.constant 0 : index
    %c0_29 = arith.constant 0 : index
    %19 = vector.load %arg2[%c2_27, %c0_28, %c0_29] : memref<9x4x8xf32, #tpu.memory_space<vmem>>, vector<1x4x8xf32>
    %20 = vector.shape_cast %19 : vector<1x4x8xf32> to vector<4x8xf32>
    %cst_30 = arith.constant dense<0.000000e+00> : vector<512x8xf32>
    %21 = tpu.matmul %18, %20, %cst_30 {dimension_numbers = #tpu.dot_dimension_numbers<[1], [0], [0], [1], [0, 0, 1, 1], [], []>} : vector<512x4xf32>, vector<4x8xf32>, vector<512x8xf32> -> vector<512x8xf32>
    %22 = arith.addf %16, %21 : vector<512x8xf32>
    %c0_31 = arith.constant 0 : index
    %c1_32 = arith.constant 1 : index
    %c0_33 = arith.constant 0 : index
    %c0_34 = arith.constant 0 : index
    %23 = vector.load %arg6[%c0_31, %c1_32, %c0_33, %c0_34] : memref<2x18x18x4xf32, #tpu.memory_space<vmem>>, vector<2x16x16x4xf32>
    %24 = vector.shape_cast %23 : vector<2x16x16x4xf32> to vector<512x4xf32>
    %c3 = arith.constant 3 : index
    %c0_35 = arith.constant 0 : index
    %c0_36 = arith.constant 0 : index
    %25 = vector.load %arg2[%c3, %c0_35, %c0_36] : memref<9x4x8xf32, #tpu.memory_space<vmem>>, vector<1x4x8xf32>
    %26 = vector.shape_cast %25 : vector<1x4x8xf32> to vector<4x8xf32>
    %cst_37 = arith.constant dense<0.000000e+00> : vector<512x8xf32>
    %27 = tpu.matmul %24, %26, %cst_37 {dimension_numbers = #tpu.dot_dimension_numbers<[1], [0], [0], [1], [0, 0, 1, 1], [], []>} : vector<512x4xf32>, vector<4x8xf32>, vector<512x8xf32> -> vector<512x8xf32>
    %28 = arith.addf %22, %27 : vector<512x8xf32>
    %c0_38 = arith.constant 0 : index
    %c1_39 = arith.constant 1 : index
    %c1_40 = arith.constant 1 : index
    %c0_41 = arith.constant 0 : index
    %29 = vector.load %arg6[%c0_38, %c1_39, %c1_40, %c0_41] : memref<2x18x18x4xf32, #tpu.memory_space<vmem>>, vector<2x16x16x4xf32>
    %30 = vector.shape_cast %29 : vector<2x16x16x4xf32> to vector<512x4xf32>
    %c4 = arith.constant 4 : index
    %c0_42 = arith.constant 0 : index
    %c0_43 = arith.constant 0 : index
    %31 = vector.load %arg2[%c4, %c0_42, %c0_43] : memref<9x4x8xf32, #tpu.memory_space<vmem>>, vector<1x4x8xf32>
    %32 = vector.shape_cast %31 : vector<1x4x8xf32> to vector<4x8xf32>
    %cst_44 = arith.constant dense<0.000000e+00> : vector<512x8xf32>
    %33 = tpu.matmul %30, %32, %cst_44 {dimension_numbers = #tpu.dot_dimension_numbers<[1], [0], [0], [1], [0, 0, 1, 1], [], []>} : vector<512x4xf32>, vector<4x8xf32>, vector<512x8xf32> -> vector<512x8xf32>
    %34 = arith.addf %28, %33 : vector<512x8xf32>
    %c0_45 = arith.constant 0 : index
    %c1_46 = arith.constant 1 : index
    %c2_47 = arith.constant 2 : index
    %c0_48 = arith.constant 0 : index
    %35 = vector.load %arg6[%c0_45, %c1_46, %c2_47, %c0_48] : memref<2x18x18x4xf32, #tpu.memory_space<vmem>>, vector<2x16x16x4xf32>
    %36 = vector.shape_cast %35 : vector<2x16x16x4xf32> to vector<512x4xf32>
    %c5 = arith.constant 5 : index
    %c0_49 = arith.constant 0 : index
    %c0_50 = arith.constant 0 : index
    %37 = vector.load %arg2[%c5, %c0_49, %c0_50] : memref<9x4x8xf32, #tpu.memory_space<vmem>>, vector<1x4x8xf32>
    %38 = vector.shape_cast %37 : vector<1x4x8xf32> to vector<4x8xf32>
    %cst_51 = arith.constant dense<0.000000e+00> : vector<512x8xf32>
    %39 = tpu.matmul %36, %38, %cst_51 {dimension_numbers = #tpu.dot_dimension_numbers<[1], [0], [0], [1], [0, 0, 1, 1], [], []>} : vector<512x4xf32>, vector<4x8xf32>, vector<512x8xf32> -> vector<512x8xf32>
    %40 = arith.addf %34, %39 : vector<512x8xf32>
    %c0_52 = arith.constant 0 : index
    %c2_53 = arith.constant 2 : index
    %c0_54 = arith.constant 0 : index
    %c0_55 = arith.constant 0 : index
    %41 = vector.load %arg6[%c0_52, %c2_53, %c0_54, %c0_55] : memref<2x18x18x4xf32, #tpu.memory_space<vmem>>, vector<2x16x16x4xf32>
    %42 = vector.shape_cast %41 : vector<2x16x16x4xf32> to vector<512x4xf32>
    %c6 = arith.constant 6 : index
    %c0_56 = arith.constant 0 : index
    %c0_57 = arith.constant 0 : index
    %43 = vector.load %arg2[%c6, %c0_56, %c0_57] : memref<9x4x8xf32, #tpu.memory_space<vmem>>, vector<1x4x8xf32>
    %44 = vector.shape_cast %43 : vector<1x4x8xf32> to vector<4x8xf32>
    %cst_58 = arith.constant dense<0.000000e+00> : vector<512x8xf32>
    %45 = tpu.matmul %42, %44, %cst_58 {dimension_numbers = #tpu.dot_dimension_numbers<[1], [0], [0], [1], [0, 0, 1, 1], [], []>} : vector<512x4xf32>, vector<4x8xf32>, vector<512x8xf32> -> vector<512x8xf32>
    %46 = arith.addf %40, %45 : vector<512x8xf32>
    %c0_59 = arith.constant 0 : index
    %c2_60 = arith.constant 2 : index
    %c1_61 = arith.constant 1 : index
    %c0_62 = arith.constant 0 : index
    %47 = vector.load %arg6[%c0_59, %c2_60, %c1_61, %c0_62] : memref<2x18x18x4xf32, #tpu.memory_space<vmem>>, vector<2x16x16x4xf32>
    %48 = vector.shape_cast %47 : vector<2x16x16x4xf32> to vector<512x4xf32>
    %c7 = arith.constant 7 : index
    %c0_63 = arith.constant 0 : index
    %c0_64 = arith.constant 0 : index
    %49 = vector.load %arg2[%c7, %c0_63, %c0_64] : memref<9x4x8xf32, #tpu.memory_space<vmem>>, vector<1x4x8xf32>
    %50 = vector.shape_cast %49 : vector<1x4x8xf32> to vector<4x8xf32>
    %cst_65 = arith.constant dense<0.000000e+00> : vector<512x8xf32>
    %51 = tpu.matmul %48, %50, %cst_65 {dimension_numbers = #tpu.dot_dimension_numbers<[1], [0], [0], [1], [0, 0, 1, 1], [], []>} : vector<512x4xf32>, vector<4x8xf32>, vector<512x8xf32> -> vector<512x8xf32>
    %52 = arith.addf %46, %51 : vector<512x8xf32>
    %c0_66 = arith.constant 0 : index
    %c2_67 = arith.constant 2 : index
    %c2_68 = arith.constant 2 : index
    %c0_69 = arith.constant 0 : index
    %53 = vector.load %arg6[%c0_66, %c2_67, %c2_68, %c0_69] : memref<2x18x18x4xf32, #tpu.memory_space<vmem>>, vector<2x16x16x4xf32>
    %54 = vector.shape_cast %53 : vector<2x16x16x4xf32> to vector<512x4xf32>
    %c8 = arith.constant 8 : index
    %c0_70 = arith.constant 0 : index
    %c0_71 = arith.constant 0 : index
    %55 = vector.load %arg2[%c8, %c0_70, %c0_71] : memref<9x4x8xf32, #tpu.memory_space<vmem>>, vector<1x4x8xf32>
    %56 = vector.shape_cast %55 : vector<1x4x8xf32> to vector<4x8xf32>
    %cst_72 = arith.constant dense<0.000000e+00> : vector<512x8xf32>
    %57 = tpu.matmul %54, %56, %cst_72 {dimension_numbers = #tpu.dot_dimension_numbers<[1], [0], [0], [1], [0, 0, 1, 1], [], []>} : vector<512x4xf32>, vector<4x8xf32>, vector<512x8xf32> -> vector<512x8xf32>
    %58 = arith.addf %52, %57 : vector<512x8xf32>
    %59 = vector.broadcast %1 : vector<1x8xf32> to vector<512x8xf32>
    %60 = arith.addf %58, %59 : vector<512x8xf32>
    %61 = vector.shape_cast %60 : vector<512x8xf32> to vector<2x16x16x8xf32>
    %c0_73 = arith.constant 0 : index
    %c0_74 = arith.constant 0 : index
    %c0_75 = arith.constant 0 : index
    %c0_76 = arith.constant 0 : index
    %62 = vector.load %arg4[%c0_73, %c0_74, %c0_75, %c0_76] : memref<2x16x16x8xf32, #tpu.memory_space<vmem>>, vector<2x16x16x8xf32>
    tpu.vector_store %arg4[%c0_73, %c0_74, %c0_75, %c0_76], %61 {strides = array<i32>} : memref<2x16x16x8xf32, #tpu.memory_space<vmem>>, vector<2x16x16x8xf32>,
    %cst_77 = arith.constant dense<0.000000e+00> : vector<8xf32>
    %63 = vector.multi_reduction <add>, %60, %cst_77 [0] : vector<512x8xf32> to vector<8xf32>
    %64 = vector.shape_cast %63 : vector<8xf32> to vector<1x8xf32>
    %65 = vector.shape_cast %64 : vector<1x8xf32> to vector<1x1x8xf32>
    %c0_78 = arith.constant 0 : index
    %c0_79 = arith.constant 0 : index
    %c0_80 = arith.constant 0 : index
    %66 = vector.load %arg5[%c0_78, %c0_79, %c0_80] : memref<1x2x8xf32, #tpu.memory_space<vmem>>, vector<1x1x8xf32>
    tpu.vector_store %arg5[%c0_78, %c0_79, %c0_80], %65 {strides = array<i32>} : memref<1x2x8xf32, #tpu.memory_space<vmem>>, vector<1x1x8xf32>,
    %67 = arith.mulf %60, %60 : vector<512x8xf32>
    %cst_81 = arith.constant dense<0.000000e+00> : vector<8xf32>
    %68 = vector.multi_reduction <add>, %67, %cst_81 [0] : vector<512x8xf32> to vector<8xf32>
    %69 = vector.shape_cast %68 : vector<8xf32> to vector<1x8xf32>
    %70 = vector.shape_cast %69 : vector<1x8xf32> to vector<1x1x8xf32>
    %c0_82 = arith.constant 0 : index
    %c1_83 = arith.constant 1 : index
    %c0_84 = arith.constant 0 : index
    %71 = vector.load %arg5[%c0_82, %c1_83, %c0_84] : memref<1x2x8xf32, #tpu.memory_space<vmem>>, vector<1x1x8xf32>
    tpu.vector_store %arg5[%c0_82, %c1_83, %c0_84], %70 {strides = array<i32>} : memref<1x2x8xf32, #tpu.memory_space<vmem>>, vector<1x1x8xf32>,
    return
  }
  func.func @transform_0(%arg0: i32) -> (i32, i32, i32, i32) {
    %c0_i32 = arith.constant 0 : i32
    %c0_i32_0 = arith.constant 0 : i32
    %c0_i32_1 = arith.constant 0 : i32
    %c0_i32_2 = arith.constant 0 : i32
    return %arg0, %c0_i32, %c0_i32_0, %c0_i32_1 : i32, i32, i32, i32
  }
  func.func @transform_1(%arg0: i32) -> (i32, i32, i32) {
    %c0_i32 = arith.constant 0 : i32
    %c0_i32_0 = arith.constant 0 : i32
    %c0_i32_1 = arith.constant 0 : i32
    %c0_i32_2 = arith.constant 0 : i32
    return %c0_i32, %c0_i32_0, %c0_i32_1 : i32, i32, i32
  }
  func.func @transform_2(%arg0: i32) -> (i32, i32) {
    %c0_i32 = arith.constant 0 : i32
    %c0_i32_0 = arith.constant 0 : i32
    %c0_i32_1 = arith.constant 0 : i32
    return %c0_i32, %c0_i32_0 : i32, i32
  }
  func.func @transform_3(%arg0: i32) -> (i32, i32, i32, i32) {
    %c0_i32 = arith.constant 0 : i32
    %c0_i32_0 = arith.constant 0 : i32
    %c0_i32_1 = arith.constant 0 : i32
    %c0_i32_2 = arith.constant 0 : i32
    return %arg0, %c0_i32, %c0_i32_0, %c0_i32_1 : i32, i32, i32, i32
  }
  func.func @transform_4(%arg0: i32) -> (i32, i32, i32) {
    %c0_i32 = arith.constant 0 : i32
    %c0_i32_0 = arith.constant 0 : i32
    %c0_i32_1 = arith.constant 0 : i32
    return %arg0, %c0_i32, %c0_i32_0 : i32, i32, i32
  }
}

module attributes {stable_mosaic.version = 11 : i64} {
  func.func @_bn_relu_kernel(%arg0: i32, %arg1: memref<2x16x16x8xf32, #tpu.memory_space<vmem>>, %arg2: memref<2x8xf32, #tpu.memory_space<vmem>>, %arg3: memref<2x16x16x8xf32, #tpu.memory_space<vmem>>) attributes {dimension_semantics = [#tpu.dimension_semantics<parallel>], iteration_bounds = array<i64: 1>, scalar_prefetch = 0 : i64, scratch_operands = 0 : i64, tpu.core_type = #tpu.core_type<tc>, window_params = [{transform_indices = @transform_0, window_bounds = array<i64: 2, 16, 16, 8>}, {pipeline_mode = #tpu.pipeline_mode<synchronous>, transform_indices = @transform_1, window_bounds = array<i64: 2, 8>}, {transform_indices = @transform_2, window_bounds = array<i64: 2, 16, 16, 8>}]} {
    %c0 = arith.constant 0 : index
    %c0_0 = arith.constant 0 : index
    %c0_1 = arith.constant 0 : index
    %c0_2 = arith.constant 0 : index
    %0 = vector.load %arg1[%c0, %c0_0, %c0_1, %c0_2] : memref<2x16x16x8xf32, #tpu.memory_space<vmem>>, vector<2x16x16x8xf32>
    %c0_3 = arith.constant 0 : index
    %c0_4 = arith.constant 0 : index
    %1 = vector.load %arg2[%c0_3, %c0_4] : memref<2x8xf32, #tpu.memory_space<vmem>>, vector<1x8xf32>
    %2 = vector.shape_cast %1 : vector<1x8xf32> to vector<1x1x1x8xf32>
    %3 = vector.broadcast %2 : vector<1x1x1x8xf32> to vector<2x16x16x8xf32>
    %4 = arith.mulf %0, %3 : vector<2x16x16x8xf32>
    %c1 = arith.constant 1 : index
    %c0_5 = arith.constant 0 : index
    %5 = vector.load %arg2[%c1, %c0_5] : memref<2x8xf32, #tpu.memory_space<vmem>>, vector<1x8xf32>
    %6 = vector.shape_cast %5 : vector<1x8xf32> to vector<1x1x1x8xf32>
    %7 = vector.broadcast %6 : vector<1x1x1x8xf32> to vector<2x16x16x8xf32>
    %8 = arith.addf %4, %7 : vector<2x16x16x8xf32>
    %cst = arith.constant 0.000000e+00 : f32
    %9 = vector.broadcast %cst : f32 to vector<2x16x16x8xf32>
    %10 = arith.maximumf %8, %9 : vector<2x16x16x8xf32>
    %c0_6 = arith.constant 0 : index
    %c0_7 = arith.constant 0 : index
    %c0_8 = arith.constant 0 : index
    %c0_9 = arith.constant 0 : index
    %11 = vector.load %arg3[%c0_6, %c0_7, %c0_8, %c0_9] : memref<2x16x16x8xf32, #tpu.memory_space<vmem>>, vector<2x16x16x8xf32>
    tpu.vector_store %arg3[%c0_6, %c0_7, %c0_8, %c0_9], %10 {strides = array<i32>} : memref<2x16x16x8xf32, #tpu.memory_space<vmem>>, vector<2x16x16x8xf32>,
    return
  }
  func.func @transform_0(%arg0: i32) -> (i32, i32, i32, i32) {
    %c0_i32 = arith.constant 0 : i32
    %c0_i32_0 = arith.constant 0 : i32
    %c0_i32_1 = arith.constant 0 : i32
    %c0_i32_2 = arith.constant 0 : i32
    return %arg0, %c0_i32, %c0_i32_0, %c0_i32_1 : i32, i32, i32, i32
  }
  func.func @transform_1(%arg0: i32) -> (i32, i32) {
    %c0_i32 = arith.constant 0 : i32
    %c0_i32_0 = arith.constant 0 : i32
    %c0_i32_1 = arith.constant 0 : i32
    return %c0_i32, %c0_i32_0 : i32, i32
  }
  func.func @transform_2(%arg0: i32) -> (i32, i32, i32, i32) {
    %c0_i32 = arith.constant 0 : i32
    %c0_i32_0 = arith.constant 0 : i32
    %c0_i32_1 = arith.constant 0 : i32
    %c0_i32_2 = arith.constant 0 : i32
    return %arg0, %c0_i32, %c0_i32_0, %c0_i32_1 : i32, i32, i32, i32
  }
}

module attributes {stable_mosaic.version = 11 : i64} {
  func.func @kernel(%arg0: i32, %arg1: memref<2x16x16x8xf32, #tpu.memory_space<vmem>>, %arg2: memref<9x8x8xf32, #tpu.memory_space<vmem>>, %arg3: memref<3x8xf32, #tpu.memory_space<vmem>>, %arg4: memref<2x16x16x8xf32, #tpu.memory_space<vmem>>, %arg5: memref<1x2x8xf32, #tpu.memory_space<vmem>>, %arg6: memref<2x18x18x8xf32, #tpu.memory_space<vmem>>) attributes {dimension_semantics = [#tpu.dimension_semantics<arbitrary>], iteration_bounds = array<i64: 1>, scalar_prefetch = 0 : i64, scratch_operands = 1 : i64, tpu.core_type = #tpu.core_type<tc>, window_params = [{transform_indices = @transform_0, window_bounds = array<i64: 2, 16, 16, 8>}, {pipeline_mode = #tpu.pipeline_mode<synchronous>, transform_indices = @transform_1, window_bounds = array<i64: 9, 8, 8>}, {pipeline_mode = #tpu.pipeline_mode<synchronous>, transform_indices = @transform_2, window_bounds = array<i64: 3, 8>}, {transform_indices = @transform_3, window_bounds = array<i64: 2, 16, 16, 8>}, {transform_indices = @transform_4, window_bounds = array<i64: 1, 2, 8>}]} {
    %c0 = arith.constant 0 : index
    %c0_0 = arith.constant 0 : index
    %c0_1 = arith.constant 0 : index
    %c0_2 = arith.constant 0 : index
    %0 = vector.load %arg1[%c0, %c0_0, %c0_1, %c0_2] : memref<2x16x16x8xf32, #tpu.memory_space<vmem>>, vector<2x16x16x8xf32>
    %c0_3 = arith.constant 0 : index
    %c0_4 = arith.constant 0 : index
    %1 = vector.load %arg3[%c0_3, %c0_4] : memref<3x8xf32, #tpu.memory_space<vmem>>, vector<1x8xf32>
    %c1 = arith.constant 1 : index
    %c0_5 = arith.constant 0 : index
    %2 = vector.load %arg3[%c1, %c0_5] : memref<3x8xf32, #tpu.memory_space<vmem>>, vector<1x8xf32>
    %c2 = arith.constant 2 : index
    %c0_6 = arith.constant 0 : index
    %3 = vector.load %arg3[%c2, %c0_6] : memref<3x8xf32, #tpu.memory_space<vmem>>, vector<1x8xf32>
    %4 = vector.shape_cast %1 : vector<1x8xf32> to vector<1x1x1x8xf32>
    %5 = vector.broadcast %4 : vector<1x1x1x8xf32> to vector<2x16x16x8xf32>
    %6 = arith.mulf %0, %5 : vector<2x16x16x8xf32>
    %7 = vector.shape_cast %2 : vector<1x8xf32> to vector<1x1x1x8xf32>
    %8 = vector.broadcast %7 : vector<1x1x1x8xf32> to vector<2x16x16x8xf32>
    %9 = arith.addf %6, %8 : vector<2x16x16x8xf32>
    %cst = arith.constant 0.000000e+00 : f32
    %10 = vector.broadcast %cst : f32 to vector<2x16x16x8xf32>
    %11 = arith.maximumf %9, %10 : vector<2x16x16x8xf32>
    %c0_i32 = arith.constant 0 : i32
    %12 = arith.cmpi eq, %arg0, %c0_i32 : i32
    %13 = arith.extui %12 : i1 to i32
    %c0_i32_7 = arith.constant 0 : i32
    %14 = arith.cmpi ne, %13, %c0_i32_7 : i32
    scf.if %14 {
      %cst_90 = arith.constant 0.000000e+00 : f32
      %82 = vector.broadcast %cst_90 : f32 to vector<2x1x18x8xf32>
      %c0_91 = arith.constant 0 : index
      %c0_92 = arith.constant 0 : index
      %c0_93 = arith.constant 0 : index
      %c0_94 = arith.constant 0 : index
      %83 = vector.load %arg6[%c0_91, %c0_92, %c0_93, %c0_94] : memref<2x18x18x8xf32, #tpu.memory_space<vmem>>, vector<2x1x18x8xf32>
      tpu.vector_store %arg6[%c0_91, %c0_92, %c0_93, %c0_94], %82 {strides = array<i32>} : memref<2x18x18x8xf32, #tpu.memory_space<vmem>>, vector<2x1x18x8xf32>,
      %cst_95 = arith.constant 0.000000e+00 : f32
      %84 = vector.broadcast %cst_95 : f32 to vector<2x1x18x8xf32>
      %c0_96 = arith.constant 0 : index
      %c17 = arith.constant 17 : index
      %c0_97 = arith.constant 0 : index
      %c0_98 = arith.constant 0 : index
      %85 = vector.load %arg6[%c0_96, %c17, %c0_97, %c0_98] : memref<2x18x18x8xf32, #tpu.memory_space<vmem>>, vector<2x1x18x8xf32>
      tpu.vector_store %arg6[%c0_96, %c17, %c0_97, %c0_98], %84 {strides = array<i32>} : memref<2x18x18x8xf32, #tpu.memory_space<vmem>>, vector<2x1x18x8xf32>,
      %cst_99 = arith.constant 0.000000e+00 : f32
      %86 = vector.broadcast %cst_99 : f32 to vector<2x16x1x8xf32>
      %c0_100 = arith.constant 0 : index
      %c1_101 = arith.constant 1 : index
      %c0_102 = arith.constant 0 : index
      %c0_103 = arith.constant 0 : index
      %87 = vector.load %arg6[%c0_100, %c1_101, %c0_102, %c0_103] : memref<2x18x18x8xf32, #tpu.memory_space<vmem>>, vector<2x16x1x8xf32>
      tpu.vector_store %arg6[%c0_100, %c1_101, %c0_102, %c0_103], %86 {strides = array<i32>} : memref<2x18x18x8xf32, #tpu.memory_space<vmem>>, vector<2x16x1x8xf32>,
      %cst_104 = arith.constant 0.000000e+00 : f32
      %88 = vector.broadcast %cst_104 : f32 to vector<2x16x1x8xf32>
      %c0_105 = arith.constant 0 : index
      %c1_106 = arith.constant 1 : index
      %c17_107 = arith.constant 17 : index
      %c0_108 = arith.constant 0 : index
      %89 = vector.load %arg6[%c0_105, %c1_106, %c17_107, %c0_108] : memref<2x18x18x8xf32, #tpu.memory_space<vmem>>, vector<2x16x1x8xf32>
      tpu.vector_store %arg6[%c0_105, %c1_106, %c17_107, %c0_108], %88 {strides = array<i32>} : memref<2x18x18x8xf32, #tpu.memory_space<vmem>>, vector<2x16x1x8xf32>,
    } else {
    }
    %c0_8 = arith.constant 0 : index
    %c1_9 = arith.constant 1 : index
    %c1_10 = arith.constant 1 : index
    %c0_11 = arith.constant 0 : index
    %15 = vector.load %arg6[%c0_8, %c1_9, %c1_10, %c0_11] : memref<2x18x18x8xf32, #tpu.memory_space<vmem>>, vector<2x16x16x8xf32>
    tpu.vector_store %arg6[%c0_8, %c1_9, %c1_10, %c0_11], %11 {strides = array<i32>} : memref<2x18x18x8xf32, #tpu.memory_space<vmem>>, vector<2x16x16x8xf32>,
    %c0_12 = arith.constant 0 : index
    %c0_13 = arith.constant 0 : index
    %c0_14 = arith.constant 0 : index
    %c0_15 = arith.constant 0 : index
    %16 = vector.load %arg6[%c0_12, %c0_13, %c0_14, %c0_15] : memref<2x18x18x8xf32, #tpu.memory_space<vmem>>, vector<2x16x16x8xf32>
    %17 = vector.shape_cast %16 : vector<2x16x16x8xf32> to vector<512x8xf32>
    %c0_16 = arith.constant 0 : index
    %c0_17 = arith.constant 0 : index
    %c0_18 = arith.constant 0 : index
    %18 = vector.load %arg2[%c0_16, %c0_17, %c0_18] : memref<9x8x8xf32, #tpu.memory_space<vmem>>, vector<1x8x8xf32>
    %19 = vector.shape_cast %18 : vector<1x8x8xf32> to vector<8x8xf32>
    %cst_19 = arith.constant dense<0.000000e+00> : vector<512x8xf32>
    %20 = tpu.matmul %17, %19, %cst_19 {dimension_numbers = #tpu.dot_dimension_numbers<[1], [0], [0], [1], [0, 0, 1, 1], [], []>} : vector<512x8xf32>, vector<8x8xf32>, vector<512x8xf32> -> vector<512x8xf32>
    %c0_20 = arith.constant 0 : index
    %c0_21 = arith.constant 0 : index
    %c1_22 = arith.constant 1 : index
    %c0_23 = arith.constant 0 : index
    %21 = vector.load %arg6[%c0_20, %c0_21, %c1_22, %c0_23] : memref<2x18x18x8xf32, #tpu.memory_space<vmem>>, vector<2x16x16x8xf32>
    %22 = vector.shape_cast %21 : vector<2x16x16x8xf32> to vector<512x8xf32>
    %c1_24 = arith.constant 1 : index
    %c0_25 = arith.constant 0 : index
    %c0_26 = arith.constant 0 : index
    %23 = vector.load %arg2[%c1_24, %c0_25, %c0_26] : memref<9x8x8xf32, #tpu.memory_space<vmem>>, vector<1x8x8xf32>
    %24 = vector.shape_cast %23 : vector<1x8x8xf32> to vector<8x8xf32>
    %cst_27 = arith.constant dense<0.000000e+00> : vector<512x8xf32>
    %25 = tpu.matmul %22, %24, %cst_27 {dimension_numbers = #tpu.dot_dimension_numbers<[1], [0], [0], [1], [0, 0, 1, 1], [], []>} : vector<512x8xf32>, vector<8x8xf32>, vector<512x8xf32> -> vector<512x8xf32>
    %26 = arith.addf %20, %25 : vector<512x8xf32>
    %c0_28 = arith.constant 0 : index
    %c0_29 = arith.constant 0 : index
    %c2_30 = arith.constant 2 : index
    %c0_31 = arith.constant 0 : index
    %27 = vector.load %arg6[%c0_28, %c0_29, %c2_30, %c0_31] : memref<2x18x18x8xf32, #tpu.memory_space<vmem>>, vector<2x16x16x8xf32>
    %28 = vector.shape_cast %27 : vector<2x16x16x8xf32> to vector<512x8xf32>
    %c2_32 = arith.constant 2 : index
    %c0_33 = arith.constant 0 : index
    %c0_34 = arith.constant 0 : index
    %29 = vector.load %arg2[%c2_32, %c0_33, %c0_34] : memref<9x8x8xf32, #tpu.memory_space<vmem>>, vector<1x8x8xf32>
    %30 = vector.shape_cast %29 : vector<1x8x8xf32> to vector<8x8xf32>
    %cst_35 = arith.constant dense<0.000000e+00> : vector<512x8xf32>
    %31 = tpu.matmul %28, %30, %cst_35 {dimension_numbers = #tpu.dot_dimension_numbers<[1], [0], [0], [1], [0, 0, 1, 1], [], []>} : vector<512x8xf32>, vector<8x8xf32>, vector<512x8xf32> -> vector<512x8xf32>
    %32 = arith.addf %26, %31 : vector<512x8xf32>
    %c0_36 = arith.constant 0 : index
    %c1_37 = arith.constant 1 : index
    %c0_38 = arith.constant 0 : index
    %c0_39 = arith.constant 0 : index
    %33 = vector.load %arg6[%c0_36, %c1_37, %c0_38, %c0_39] : memref<2x18x18x8xf32, #tpu.memory_space<vmem>>, vector<2x16x16x8xf32>
    %34 = vector.shape_cast %33 : vector<2x16x16x8xf32> to vector<512x8xf32>
    %c3 = arith.constant 3 : index
    %c0_40 = arith.constant 0 : index
    %c0_41 = arith.constant 0 : index
    %35 = vector.load %arg2[%c3, %c0_40, %c0_41] : memref<9x8x8xf32, #tpu.memory_space<vmem>>, vector<1x8x8xf32>
    %36 = vector.shape_cast %35 : vector<1x8x8xf32> to vector<8x8xf32>
    %cst_42 = arith.constant dense<0.000000e+00> : vector<512x8xf32>
    %37 = tpu.matmul %34, %36, %cst_42 {dimension_numbers = #tpu.dot_dimension_numbers<[1], [0], [0], [1], [0, 0, 1, 1], [], []>} : vector<512x8xf32>, vector<8x8xf32>, vector<512x8xf32> -> vector<512x8xf32>
    %38 = arith.addf %32, %37 : vector<512x8xf32>
    %c0_43 = arith.constant 0 : index
    %c1_44 = arith.constant 1 : index
    %c1_45 = arith.constant 1 : index
    %c0_46 = arith.constant 0 : index
    %39 = vector.load %arg6[%c0_43, %c1_44, %c1_45, %c0_46] : memref<2x18x18x8xf32, #tpu.memory_space<vmem>>, vector<2x16x16x8xf32>
    %40 = vector.shape_cast %39 : vector<2x16x16x8xf32> to vector<512x8xf32>
    %c4 = arith.constant 4 : index
    %c0_47 = arith.constant 0 : index
    %c0_48 = arith.constant 0 : index
    %41 = vector.load %arg2[%c4, %c0_47, %c0_48] : memref<9x8x8xf32, #tpu.memory_space<vmem>>, vector<1x8x8xf32>
    %42 = vector.shape_cast %41 : vector<1x8x8xf32> to vector<8x8xf32>
    %cst_49 = arith.constant dense<0.000000e+00> : vector<512x8xf32>
    %43 = tpu.matmul %40, %42, %cst_49 {dimension_numbers = #tpu.dot_dimension_numbers<[1], [0], [0], [1], [0, 0, 1, 1], [], []>} : vector<512x8xf32>, vector<8x8xf32>, vector<512x8xf32> -> vector<512x8xf32>
    %44 = arith.addf %38, %43 : vector<512x8xf32>
    %c0_50 = arith.constant 0 : index
    %c1_51 = arith.constant 1 : index
    %c2_52 = arith.constant 2 : index
    %c0_53 = arith.constant 0 : index
    %45 = vector.load %arg6[%c0_50, %c1_51, %c2_52, %c0_53] : memref<2x18x18x8xf32, #tpu.memory_space<vmem>>, vector<2x16x16x8xf32>
    %46 = vector.shape_cast %45 : vector<2x16x16x8xf32> to vector<512x8xf32>
    %c5 = arith.constant 5 : index
    %c0_54 = arith.constant 0 : index
    %c0_55 = arith.constant 0 : index
    %47 = vector.load %arg2[%c5, %c0_54, %c0_55] : memref<9x8x8xf32, #tpu.memory_space<vmem>>, vector<1x8x8xf32>
    %48 = vector.shape_cast %47 : vector<1x8x8xf32> to vector<8x8xf32>
    %cst_56 = arith.constant dense<0.000000e+00> : vector<512x8xf32>
    %49 = tpu.matmul %46, %48, %cst_56 {dimension_numbers = #tpu.dot_dimension_numbers<[1], [0], [0], [1], [0, 0, 1, 1], [], []>} : vector<512x8xf32>, vector<8x8xf32>, vector<512x8xf32> -> vector<512x8xf32>
    %50 = arith.addf %44, %49 : vector<512x8xf32>
    %c0_57 = arith.constant 0 : index
    %c2_58 = arith.constant 2 : index
    %c0_59 = arith.constant 0 : index
    %c0_60 = arith.constant 0 : index
    %51 = vector.load %arg6[%c0_57, %c2_58, %c0_59, %c0_60] : memref<2x18x18x8xf32, #tpu.memory_space<vmem>>, vector<2x16x16x8xf32>
    %52 = vector.shape_cast %51 : vector<2x16x16x8xf32> to vector<512x8xf32>
    %c6 = arith.constant 6 : index
    %c0_61 = arith.constant 0 : index
    %c0_62 = arith.constant 0 : index
    %53 = vector.load %arg2[%c6, %c0_61, %c0_62] : memref<9x8x8xf32, #tpu.memory_space<vmem>>, vector<1x8x8xf32>
    %54 = vector.shape_cast %53 : vector<1x8x8xf32> to vector<8x8xf32>
    %cst_63 = arith.constant dense<0.000000e+00> : vector<512x8xf32>
    %55 = tpu.matmul %52, %54, %cst_63 {dimension_numbers = #tpu.dot_dimension_numbers<[1], [0], [0], [1], [0, 0, 1, 1], [], []>} : vector<512x8xf32>, vector<8x8xf32>, vector<512x8xf32> -> vector<512x8xf32>
    %56 = arith.addf %50, %55 : vector<512x8xf32>
    %c0_64 = arith.constant 0 : index
    %c2_65 = arith.constant 2 : index
    %c1_66 = arith.constant 1 : index
    %c0_67 = arith.constant 0 : index
    %57 = vector.load %arg6[%c0_64, %c2_65, %c1_66, %c0_67] : memref<2x18x18x8xf32, #tpu.memory_space<vmem>>, vector<2x16x16x8xf32>
    %58 = vector.shape_cast %57 : vector<2x16x16x8xf32> to vector<512x8xf32>
    %c7 = arith.constant 7 : index
    %c0_68 = arith.constant 0 : index
    %c0_69 = arith.constant 0 : index
    %59 = vector.load %arg2[%c7, %c0_68, %c0_69] : memref<9x8x8xf32, #tpu.memory_space<vmem>>, vector<1x8x8xf32>
    %60 = vector.shape_cast %59 : vector<1x8x8xf32> to vector<8x8xf32>
    %cst_70 = arith.constant dense<0.000000e+00> : vector<512x8xf32>
    %61 = tpu.matmul %58, %60, %cst_70 {dimension_numbers = #tpu.dot_dimension_numbers<[1], [0], [0], [1], [0, 0, 1, 1], [], []>} : vector<512x8xf32>, vector<8x8xf32>, vector<512x8xf32> -> vector<512x8xf32>
    %62 = arith.addf %56, %61 : vector<512x8xf32>
    %c0_71 = arith.constant 0 : index
    %c2_72 = arith.constant 2 : index
    %c2_73 = arith.constant 2 : index
    %c0_74 = arith.constant 0 : index
    %63 = vector.load %arg6[%c0_71, %c2_72, %c2_73, %c0_74] : memref<2x18x18x8xf32, #tpu.memory_space<vmem>>, vector<2x16x16x8xf32>
    %64 = vector.shape_cast %63 : vector<2x16x16x8xf32> to vector<512x8xf32>
    %c8 = arith.constant 8 : index
    %c0_75 = arith.constant 0 : index
    %c0_76 = arith.constant 0 : index
    %65 = vector.load %arg2[%c8, %c0_75, %c0_76] : memref<9x8x8xf32, #tpu.memory_space<vmem>>, vector<1x8x8xf32>
    %66 = vector.shape_cast %65 : vector<1x8x8xf32> to vector<8x8xf32>
    %cst_77 = arith.constant dense<0.000000e+00> : vector<512x8xf32>
    %67 = tpu.matmul %64, %66, %cst_77 {dimension_numbers = #tpu.dot_dimension_numbers<[1], [0], [0], [1], [0, 0, 1, 1], [], []>} : vector<512x8xf32>, vector<8x8xf32>, vector<512x8xf32> -> vector<512x8xf32>
    %68 = arith.addf %62, %67 : vector<512x8xf32>
    %69 = vector.broadcast %3 : vector<1x8xf32> to vector<512x8xf32>
    %70 = arith.addf %68, %69 : vector<512x8xf32>
    %71 = vector.shape_cast %70 : vector<512x8xf32> to vector<2x16x16x8xf32>
    %c0_78 = arith.constant 0 : index
    %c0_79 = arith.constant 0 : index
    %c0_80 = arith.constant 0 : index
    %c0_81 = arith.constant 0 : index
    %72 = vector.load %arg4[%c0_78, %c0_79, %c0_80, %c0_81] : memref<2x16x16x8xf32, #tpu.memory_space<vmem>>, vector<2x16x16x8xf32>
    tpu.vector_store %arg4[%c0_78, %c0_79, %c0_80, %c0_81], %71 {strides = array<i32>} : memref<2x16x16x8xf32, #tpu.memory_space<vmem>>, vector<2x16x16x8xf32>,
    %cst_82 = arith.constant dense<0.000000e+00> : vector<8xf32>
    %73 = vector.multi_reduction <add>, %70, %cst_82 [0] : vector<512x8xf32> to vector<8xf32>
    %74 = vector.shape_cast %73 : vector<8xf32> to vector<1x8xf32>
    %75 = vector.shape_cast %74 : vector<1x8xf32> to vector<1x1x8xf32>
    %c0_83 = arith.constant 0 : index
    %c0_84 = arith.constant 0 : index
    %c0_85 = arith.constant 0 : index
    %76 = vector.load %arg5[%c0_83, %c0_84, %c0_85] : memref<1x2x8xf32, #tpu.memory_space<vmem>>, vector<1x1x8xf32>
    tpu.vector_store %arg5[%c0_83, %c0_84, %c0_85], %75 {strides = array<i32>} : memref<1x2x8xf32, #tpu.memory_space<vmem>>, vector<1x1x8xf32>,
    %77 = arith.mulf %70, %70 : vector<512x8xf32>
    %cst_86 = arith.constant dense<0.000000e+00> : vector<8xf32>
    %78 = vector.multi_reduction <add>, %77, %cst_86 [0] : vector<512x8xf32> to vector<8xf32>
    %79 = vector.shape_cast %78 : vector<8xf32> to vector<1x8xf32>
    %80 = vector.shape_cast %79 : vector<1x8xf32> to vector<1x1x8xf32>
    %c0_87 = arith.constant 0 : index
    %c1_88 = arith.constant 1 : index
    %c0_89 = arith.constant 0 : index
    %81 = vector.load %arg5[%c0_87, %c1_88, %c0_89] : memref<1x2x8xf32, #tpu.memory_space<vmem>>, vector<1x1x8xf32>
    tpu.vector_store %arg5[%c0_87, %c1_88, %c0_89], %80 {strides = array<i32>} : memref<1x2x8xf32, #tpu.memory_space<vmem>>, vector<1x1x8xf32>,
    return
  }
  func.func @transform_0(%arg0: i32) -> (i32, i32, i32, i32) {
    %c0_i32 = arith.constant 0 : i32
    %c0_i32_0 = arith.constant 0 : i32
    %c0_i32_1 = arith.constant 0 : i32
    %c0_i32_2 = arith.constant 0 : i32
    return %arg0, %c0_i32, %c0_i32_0, %c0_i32_1 : i32, i32, i32, i32
  }
  func.func @transform_1(%arg0: i32) -> (i32, i32, i32) {
    %c0_i32 = arith.constant 0 : i32
    %c0_i32_0 = arith.constant 0 : i32
    %c0_i32_1 = arith.constant 0 : i32
    %c0_i32_2 = arith.constant 0 : i32
    return %c0_i32, %c0_i32_0, %c0_i32_1 : i32, i32, i32
  }
  func.func @transform_2(%arg0: i32) -> (i32, i32) {
    %c0_i32 = arith.constant 0 : i32
    %c0_i32_0 = arith.constant 0 : i32
    %c0_i32_1 = arith.constant 0 : i32
    return %c0_i32, %c0_i32_0 : i32, i32
  }
  func.func @transform_3(%arg0: i32) -> (i32, i32, i32, i32) {
    %c0_i32 = arith.constant 0 : i32
    %c0_i32_0 = arith.constant 0 : i32
    %c0_i32_1 = arith.constant 0 : i32
    %c0_i32_2 = arith.constant 0 : i32
    return %arg0, %c0_i32, %c0_i32_0, %c0_i32_1 : i32, i32, i32, i32
  }
  func.func @transform_4(%arg0: i32) -> (i32, i32, i32) {
    %c0_i32 = arith.constant 0 : i32
    %c0_i32_0 = arith.constant 0 : i32
    %c0_i32_1 = arith.constant 0 : i32
    return %arg0, %c0_i32, %c0_i32_0 : i32, i32, i32
  }
}

</mosaic_0001>

<bundles_post_ra>
// kernel: double_conv.5
= control target key start
LH: loop header
LB: loop body
LE: loop exit
PB: predicated region body
PF: predicated region fallthrough
CT: control target
= control target key end

     0   :  { %vm277_vm0 = vcmask 64512   ;;  %s949_s0 = inlined_call_operand.vmem [shape: f32[2,16,16,8], index: 0, kind: input, shape index: {}, may-alias: {0,2}]   ;;  %s950_s1 = inlined_call_operand.vmem [shape: f32[2,8], index: 1, kind: input, shape index: {}]   ;;  %s951_s2 = inlined_call_operand.vmem [shape: f32[2,16,16,8], index: 2, kind: output, shape index: {}, may-alias: {0,2}]  }
   0x1   :  { %v11_v0 = vld [vmem:[%s949_s0] sm:$0xff]  ;;  %v12_v4 = vld [vmem:[%s949_s0 + $0x8] sm:$0xff]  ;;  %v13_v5 = vld [vmem:[%s949_s0 + $0x10] sm:$0xff] }
   0x2   :  { %v369_v1 = vld [vmem:[%s950_s1] ss:$0 sm:$0xff]  ;;  %v374_v2 = vld [vmem:[%s950_s1 + $0x1] ss:$0 sm:$0xff]  ;;  %v14_v6 = vld [vmem:[%s949_s0 + $0x18] sm:$0xff] }
   0x3   :  { %v80_v3 = vmul.f32 %v369_v1, %v11_v0  ;;  %v81_v7 = vmul.f32 %v369_v1, %v12_v4  ;;  %v82_v8 = vmul.f32 %v369_v1, %v13_v5  ;;  %v83_v9 = vmul.f32 %v369_v1, %v14_v6  ;;  %v15_v10 = vld [vmem:[%s949_s0 + $0x20] sm:$0xff]  ;;  %v16_v11 = vld [vmem:[%s949_s0 + $0x28] sm:$0xff]  ;;  %v17_v12 = vld [vmem:[%s949_s0 + $0x30] sm:$0xff] }
   0x4   :  { %v84_v14 = vmul.f32 %v369_v1, %v15_v10  ;;  %v85_v15 = vmul.f32 %v369_v1, %v16_v11  ;;  %v86_v16 = vmul.f32 %v369_v1, %v17_v12  ;;  %v18_v17 = vld [vmem:[%s949_s0 + $0x38] sm:$0xff]  ;;  %v19_v22 = vld [vmem:[%s949_s0 + $0x40] sm:$0xff]  ;;  %v20_v27 = vld [vmem:[%s949_s0 + $0x48] sm:$0xff] }
   0x5   :  { %v149_v13 = vadd.f32 %v374_v2, %v80_v3  ;;  %v150_v18 = vadd.f32 %v374_v2, %v81_v7  ;;  %v151_v19 = vadd.f32 %v374_v2, %v82_v8  ;;  %v152_v20 = vadd.f32 %v374_v2, %v83_v9  ;;  %v21_v28 = vld [vmem:[%s949_s0 + $0x50] sm:$0xff]  ;;  %v22_v29 = vld [vmem:[%s949_s0 + $0x58] sm:$0xff]  ;;  %v23_v34 = vld [vmem:[%s949_s0 + $0x60] sm:$0xff] }
   0x6   :  { %v87_v21 = vmul.f32 %v369_v1, %v18_v17  ;;  %v153_v24 = vadd.f32 %v374_v2, %v84_v14  ;;  %v154_v25 = vadd.f32 %v374_v2, %v85_v15  ;;  %v155_v26 = vadd.f32 %v374_v2, %v86_v16  ;;  %v24_v35 = vld [vmem:[%s949_s0 + $0x68] sm:$0xff]  ;;  %v25_v36 = vld [vmem:[%s949_s0 + $0x70] sm:$0xff] }
   0x7   :  { %v213_v23 = vmax.f32 %v149_v13, 0.0  ;;  %v214_v30 = vmax.f32 %v150_v18, 0.0  ;;  %v215_v31 = vmax.f32 %v151_v19, 0.0  ;;  %v216_v32 = vmax.f32 %v152_v20, 0.0 }
   0x8   :  { %v156_v33 = vadd.f32 %v374_v2, %v87_v21  ;;  %v217_v37 = vmax.f32 %v153_v24, 0.0  ;;  %v218_v38 = vmax.f32 %v154_v25, 0.0  ;;  %v219_v39 = vmax.f32 %v155_v26, 0.0 }
   0x9   :  { %278 = vst.msk [vmem:[%s951_s2] sm:$0xff] %vm277_vm0, %v213_v23  ;;  %v88_v40 = vmul.f32 %v369_v1, %v19_v22  ;;  %v89_v43 = vmul.f32 %v369_v1, %v20_v27  ;;  %v90_v44 = vmul.f32 %v369_v1, %v21_v28  ;;  %v91_v45 = vmul.f32 %v369_v1, %v22_v29 }
   0xa   :  { %v220_v42 = vmax.f32 %v156_v33, 0.0  ;;  %v92_v47 = vmul.f32 %v369_v1, %v23_v34  ;;  %v93_v48 = vmul.f32 %v369_v1, %v24_v35  ;;  %v94_v49 = vmul.f32 %v369_v1, %v25_v36 }
   0xb   :  { %v157_v46 = vadd.f32 %v374_v2, %v88_v40  ;;  %v158_v50 = vadd.f32 %v374_v2, %v89_v43  ;;  %v159_v51 = vadd.f32 %v374_v2, %v90_v44  ;;  %v160_v52 = vadd.f32 %v374_v2, %v91_v45 }
   0xc   :  { %v161_v56 = vadd.f32 %v374_v2, %v92_v47  ;;  %v162_v57 = vadd.f32 %v374_v2, %v93_v48  ;;  %v163_v58 = vadd.f32 %v374_v2, %v94_v49 }
   0xd   :  { %v221_v55 = vmax.f32 %v157_v46, 0.0  ;;  %v222_v62 = vmax.f32 %v158_v50, 0.0  ;;  %v223_v63 = vmax.f32 %v159_v51, 0.0  ;;  %v224_v0 = vmax.f32 %v160_v52, 0.0 }
   0xe   :  { %v225_v7 = vmax.f32 %v161_v56, 0.0  ;;  %v226_v8 = vmax.f32 %v162_v57, 0.0  ;;  %v227_v9 = vmax.f32 %v163_v58, 0.0 }
  0x10   :  { %v26_v41 = vld [vmem:[%s949_s0 + $0x78] sm:$0xff] }
  0x11   :  { %279 = vst.msk [vmem:[%s951_s2 + $0x8] sm:$0xff] %vm277_vm0, %v214_v30  ;;  %280 = vst.msk [vmem:[%s951_s2 + $0x10] sm:$0xff] %vm277_vm0, %v215_v31  ;;  %v95_v53 = vmul.f32 %v369_v1, %v26_v41 }
  0x12   :  { %281 = vst.msk [vmem:[%s951_s2 + $0x18] sm:$0xff] %vm277_vm0, %v216_v32  ;;  %282 = vst.msk [vmem:[%s951_s2 + $0x20] sm:$0xff] %vm277_vm0, %v217_v37 }
  0x13   :  { %283 = vst.msk [vmem:[%s951_s2 + $0x28] sm:$0xff] %vm277_vm0, %v218_v38  ;;  %284 = vst.msk [vmem:[%s951_s2 + $0x30] sm:$0xff] %vm277_vm0, %v219_v39  ;;  %v164_v3 = vadd.f32 %v374_v2, %v95_v53 }
  0x14   :  { %285 = vst.msk [vmem:[%s951_s2 + $0x38] sm:$0xff] %vm277_vm0, %v220_v42 }
  0x15   :  { %v228_v12 = vmax.f32 %v164_v3, 0.0 }
  0x1b   :  { %v27_v54 = vld [vmem:[%s949_s0 + $0x80] sm:$0xff]  ;;  %v28_v59 = vld [vmem:[%s949_s0 + $0x88] sm:$0xff]  ;;  %v29_v60 = vld [vmem:[%s949_s0 + $0x90] sm:$0xff] }
  0x1c   :  { %v30_v61 = vld [vmem:[%s949_s0 + $0x98] sm:$0xff]  ;;  %v31_v4 = vld [vmem:[%s949_s0 + $0xa0] sm:$0xff]  ;;  %v32_v5 = vld [vmem:[%s949_s0 + $0xa8] sm:$0xff]  ;;  %v96_v10 = vmul.f32 %v369_v1, %v27_v54  ;;  %v97_v13 = vmul.f32 %v369_v1, %v28_v59  ;;  %v98_v14 = vmul.f32 %v369_v1, %v29_v60 }
  0x1d   :  { %v33_v6 = vld [vmem:[%s949_s0 + $0xb0] sm:$0xff]  ;;  %v99_v15 = vmul.f32 %v369_v1, %v30_v61  ;;  %v100_v17 = vmul.f32 %v369_v1, %v31_v4  ;;  %v101_v18 = vmul.f32 %v369_v1, %v32_v5 }
  0x1e   :  { %286 = vst.msk [vmem:[%s951_s2 + $0x40] sm:$0xff] %vm277_vm0, %v221_v55  ;;  %v165_v16 = vadd.f32 %v374_v2, %v96_v10  ;;  %v102_v19 = vmul.f32 %v369_v1, %v33_v6  ;;  %v166_v20 = vadd.f32 %v374_v2, %v97_v13  ;;  %v167_v21 = vadd.f32 %v374_v2, %v98_v14 }
  0x1f   :  { %v168_v22 = vadd.f32 %v374_v2, %v99_v15  ;;  %v169_v26 = vadd.f32 %v374_v2, %v100_v17  ;;  %v170_v27 = vadd.f32 %v374_v2, %v101_v18 }
  0x20   :  { %v229_v25 = vmax.f32 %v165_v16, 0.0  ;;  %v171_v28 = vadd.f32 %v374_v2, %v102_v19  ;;  %v230_v32 = vmax.f32 %v166_v20, 0.0  ;;  %v231_v33 = vmax.f32 %v167_v21, 0.0 }
  0x21   :  { %v232_v34 = vmax.f32 %v168_v22, 0.0  ;;  %v233_v39 = vmax.f32 %v169_v26, 0.0  ;;  %v234_v40 = vmax.f32 %v170_v27, 0.0 }
  0x22   :  { %v235_v41 = vmax.f32 %v171_v28, 0.0 }
  0x25   :  { %v34_v11 = vld [vmem:[%s949_s0 + $0xb8] sm:$0xff] }
  0x26   :  { %287 = vst.msk [vmem:[%s951_s2 + $0x48] sm:$0xff] %vm277_vm0, %v222_v62  ;;  %288 = vst.msk [vmem:[%s951_s2 + $0x50] sm:$0xff] %vm277_vm0, %v223_v63  ;;  %v103_v23 = vmul.f32 %v369_v1, %v34_v11 }
  0x27   :  { %289 = vst.msk [vmem:[%s951_s2 + $0x58] sm:$0xff] %vm277_vm0, %v224_v0  ;;  %290 = vst.msk [vmem:[%s951_s2 + $0x60] sm:$0xff] %vm277_vm0, %v225_v7 }
  0x28   :  { %291 = vst.msk [vmem:[%s951_s2 + $0x68] sm:$0xff] %vm277_vm0, %v226_v8  ;;  %292 = vst.msk [vmem:[%s951_s2 + $0x70] sm:$0xff] %vm277_vm0, %v227_v9  ;;  %v172_v35 = vadd.f32 %v374_v2, %v103_v23 }
  0x29   :  { %293 = vst.msk [vmem:[%s951_s2 + $0x78] sm:$0xff] %vm277_vm0, %v228_v12 }
  0x2a   :  { %v236_v44 = vmax.f32 %v172_v35, 0.0 }
  0x30   :  { %v35_v24 = vld [vmem:[%s949_s0 + $0xc0] sm:$0xff]  ;;  %v36_v29 = vld [vmem:[%s949_s0 + $0xc8] sm:$0xff]  ;;  %v37_v30 = vld [vmem:[%s949_s0 + $0xd0] sm:$0xff] }
  0x31   :  { %v38_v31 = vld [vmem:[%s949_s0 + $0xd8] sm:$0xff]  ;;  %v39_v36 = vld [vmem:[%s949_s0 + $0xe0] sm:$0xff]  ;;  %v40_v37 = vld [vmem:[%s949_s0 + $0xe8] sm:$0xff]  ;;  %v104_v42 = vmul.f32 %v369_v1, %v35_v24  ;;  %v105_v45 = vmul.f32 %v369_v1, %v36_v29  ;;  %v106_v46 = vmul.f32 %v369_v1, %v37_v30 }
  0x32   :  { %v41_v38 = vld [vmem:[%s949_s0 + $0xf0] sm:$0xff]  ;;  %v107_v47 = vmul.f32 %v369_v1, %v38_v31  ;;  %v108_v49 = vmul.f32 %v369_v1, %v39_v36  ;;  %v109_v50 = vmul.f32 %v369_v1, %v40_v37 }
  0x33   :  { %294 = vst.msk [vmem:[%s951_s2 + $0x80] sm:$0xff] %vm277_vm0, %v229_v25  ;;  %v173_v48 = vadd.f32 %v374_v2, %v104_v42  ;;  %v110_v51 = vmul.f32 %v369_v1, %v41_v38  ;;  %v174_v52 = vadd.f32 %v374_v2, %v105_v45  ;;  %v175_v53 = vadd.f32 %v374_v2, %v106_v46 }
  0x34   :  { %v176_v54 = vadd.f32 %v374_v2, %v107_v47  ;;  %v177_v58 = vadd.f32 %v374_v2, %v108_v49  ;;  %v178_v59 = vadd.f32 %v374_v2, %v109_v50 }
  0x35   :  { %v237_v57 = vmax.f32 %v173_v48, 0.0  ;;  %v179_v60 = vadd.f32 %v374_v2, %v110_v51  ;;  %v238_v0 = vmax.f32 %v174_v52, 0.0  ;;  %v239_v3 = vmax.f32 %v175_v53, 0.0 }
  0x36   :  { %v240_v4 = vmax.f32 %v176_v54, 0.0  ;;  %v241_v9 = vmax.f32 %v177_v58, 0.0  ;;  %v242_v10 = vmax.f32 %v178_v59, 0.0 }
  0x37   :  { %v243_v11 = vmax.f32 %v179_v60, 0.0 }
  0x3a   :  { %v42_v43 = vld [vmem:[%s949_s0 + $0xf8] sm:$0xff] }
  0x3b   :  { %295 = vst.msk [vmem:[%s951_s2 + $0x88] sm:$0xff] %vm277_vm0, %v230_v32  ;;  %296 = vst.msk [vmem:[%s951_s2 + $0x90] sm:$0xff] %vm277_vm0, %v231_v33  ;;  %v111_v55 = vmul.f32 %v369_v1, %v42_v43 }
  0x3c   :  { %297 = vst.msk [vmem:[%s951_s2 + $0x98] sm:$0xff] %vm277_vm0, %v232_v34  ;;  %298 = vst.msk [vmem:[%s951_s2 + $0xa0] sm:$0xff] %vm277_vm0, %v233_v39 }
  0x3d   :  { %299 = vst.msk [vmem:[%s951_s2 + $0xa8] sm:$0xff] %vm277_vm0, %v234_v40  ;;  %300 = vst.msk [vmem:[%s951_s2 + $0xb0] sm:$0xff] %vm277_vm0, %v235_v41  ;;  %v180_v5 = vadd.f32 %v374_v2, %v111_v55 }
  0x3e   :  { %301 = vst.msk [vmem:[%s951_s2 + $0xb8] sm:$0xff] %vm277_vm0, %v236_v44 }
  0x3f   :  { %v244_v14 = vmax.f32 %v180_v5, 0.0 }
  0x45   :  { %v43_v56 = vld [vmem:[%s949_s0 + $0x100] sm:$0xff]  ;;  %v44_v61 = vld [vmem:[%s949_s0 + $0x108] sm:$0xff]  ;;  %v45_v62 = vld [vmem:[%s949_s0 + $0x110] sm:$0xff] }
  0x46   :  { %v46_v63 = vld [vmem:[%s949_s0 + $0x118] sm:$0xff]  ;;  %v47_v6 = vld [vmem:[%s949_s0 + $0x120] sm:$0xff]  ;;  %v48_v7 = vld [vmem:[%s949_s0 + $0x128] sm:$0xff]  ;;  %v112_v12 = vmul.f32 %v369_v1, %v43_v56  ;;  %v113_v15 = vmul.f32 %v369_v1, %v44_v61  ;;  %v114_v16 = vmul.f32 %v369_v1, %v45_v62 }
  0x47   :  { %v49_v8 = vld [vmem:[%s949_s0 + $0x130] sm:$0xff]  ;;  %v115_v17 = vmul.f32 %v369_v1, %v46_v63  ;;  %v116_v19 = vmul.f32 %v369_v1, %v47_v6  ;;  %v117_v20 = vmul.f32 %v369_v1, %v48_v7 }
  0x48   :  { %302 = vst.msk [vmem:[%s951_s2 + $0xc0] sm:$0xff] %vm277_vm0, %v237_v57  ;;  %v181_v18 = vadd.f32 %v374_v2, %v112_v12  ;;  %v118_v21 = vmul.f32 %v369_v1, %v49_v8  ;;  %v182_v22 = vadd.f32 %v374_v2, %v113_v15  ;;  %v183_v23 = vadd.f32 %v374_v2, %v114_v16 }
  0x49   :  { %v184_v24 = vadd.f32 %v374_v2, %v115_v17  ;;  %v185_v28 = vadd.f32 %v374_v2, %v116_v19  ;;  %v186_v29 = vadd.f32 %v374_v2, %v117_v20 }
  0x4a   :  { %v245_v27 = vmax.f32 %v181_v18, 0.0  ;;  %v187_v30 = vadd.f32 %v374_v2, %v118_v21  ;;  %v246_v34 = vmax.f32 %v182_v22, 0.0  ;;  %v247_v35 = vmax.f32 %v183_v23, 0.0 }
  0x4b   :  { %v248_v36 = vmax.f32 %v184_v24, 0.0  ;;  %v249_v41 = vmax.f32 %v185_v28, 0.0  ;;  %v250_v42 = vmax.f32 %v186_v29, 0.0 }
  0x4c   :  { %v251_v43 = vmax.f32 %v187_v30, 0.0 }
  0x4f   :  { %v50_v13 = vld [vmem:[%s949_s0 + $0x138] sm:$0xff] }
  0x50   :  { %303 = vst.msk [vmem:[%s951_s2 + $0xc8] sm:$0xff] %vm277_vm0, %v238_v0  ;;  %304 = vst.msk [vmem:[%s951_s2 + $0xd0] sm:$0xff] %vm277_vm0, %v239_v3  ;;  %v119_v25 = vmul.f32 %v369_v1, %v50_v13 }
  0x51   :  { %305 = vst.msk [vmem:[%s951_s2 + $0xd8] sm:$0xff] %vm277_vm0, %v240_v4  ;;  %306 = vst.msk [vmem:[%s951_s2 + $0xe0] sm:$0xff] %vm277_vm0, %v241_v9 }
  0x52   :  { %307 = vst.msk [vmem:[%s951_s2 + $0xe8] sm:$0xff] %vm277_vm0, %v242_v10  ;;  %308 = vst.msk [vmem:[%s951_s2 + $0xf0] sm:$0xff] %vm277_vm0, %v243_v11  ;;  %v188_v37 = vadd.f32 %v374_v2, %v119_v25 }
  0x53   :  { %309 = vst.msk [vmem:[%s951_s2 + $0xf8] sm:$0xff] %vm277_vm0, %v244_v14 }
  0x54   :  { %v252_v46 = vmax.f32 %v188_v37, 0.0 }
  0x5a   :  { %v51_v26 = vld [vmem:[%s949_s0 + $0x140] sm:$0xff]  ;;  %v52_v31 = vld [vmem:[%s949_s0 + $0x148] sm:$0xff]  ;;  %v53_v32 = vld [vmem:[%s949_s0 + $0x150] sm:$0xff] }
  0x5b   :  { %v54_v33 = vld [vmem:[%s949_s0 + $0x158] sm:$0xff]  ;;  %v55_v38 = vld [vmem:[%s949_s0 + $0x160] sm:$0xff]  ;;  %v56_v39 = vld [vmem:[%s949_s0 + $0x168] sm:$0xff]  ;;  %v120_v44 = vmul.f32 %v369_v1, %v51_v26  ;;  %v121_v47 = vmul.f32 %v369_v1, %v52_v31  ;;  %v122_v48 = vmul.f32 %v369_v1, %v53_v32 }
  0x5c   :  { %v57_v40 = vld [vmem:[%s949_s0 + $0x170] sm:$0xff]  ;;  %v123_v49 = vmul.f32 %v369_v1, %v54_v33  ;;  %v124_v51 = vmul.f32 %v369_v1, %v55_v38  ;;  %v125_v52 = vmul.f32 %v369_v1, %v56_v39 }
  0x5d   :  { %310 = vst.msk [vmem:[%s951_s2 + $0x100] sm:$0xff] %vm277_vm0, %v245_v27  ;;  %v189_v50 = vadd.f32 %v374_v2, %v120_v44  ;;  %v126_v53 = vmul.f32 %v369_v1, %v57_v40  ;;  %v190_v54 = vadd.f32 %v374_v2, %v121_v47  ;;  %v191_v55 = vadd.f32 %v374_v2, %v122_v48 }
  0x5e   :  { %v192_v56 = vadd.f32 %v374_v2, %v123_v49  ;;  %v193_v60 = vadd.f32 %v374_v2, %v124_v51  ;;  %v194_v61 = vadd.f32 %v374_v2, %v125_v52 }
  0x5f   :  { %v253_v59 = vmax.f32 %v189_v50, 0.0  ;;  %v195_v62 = vadd.f32 %v374_v2, %v126_v53  ;;  %v254_v4 = vmax.f32 %v190_v54, 0.0  ;;  %v255_v5 = vmax.f32 %v191_v55, 0.0 }
  0x60   :  { %v256_v6 = vmax.f32 %v192_v56, 0.0  ;;  %v257_v11 = vmax.f32 %v193_v60, 0.0  ;;  %v258_v12 = vmax.f32 %v194_v61, 0.0 }
  0x61   :  { %v259_v13 = vmax.f32 %v195_v62, 0.0 }
  0x64   :  { %v58_v45 = vld [vmem:[%s949_s0 + $0x178] sm:$0xff] }
  0x65   :  { %311 = vst.msk [vmem:[%s951_s2 + $0x108] sm:$0xff] %vm277_vm0, %v246_v34  ;;  %312 = vst.msk [vmem:[%s951_s2 + $0x110] sm:$0xff] %vm277_vm0, %v247_v35  ;;  %v127_v57 = vmul.f32 %v369_v1, %v58_v45 }
  0x66   :  { %313 = vst.msk [vmem:[%s951_s2 + $0x118] sm:$0xff] %vm277_vm0, %v248_v36  ;;  %314 = vst.msk [vmem:[%s951_s2 + $0x120] sm:$0xff] %vm277_vm0, %v249_v41 }
  0x67   :  { %315 = vst.msk [vmem:[%s951_s2 + $0x128] sm:$0xff] %vm277_vm0, %v250_v42  ;;  %316 = vst.msk [vmem:[%s951_s2 + $0x130] sm:$0xff] %vm277_vm0, %v251_v43  ;;  %v196_v7 = vadd.f32 %v374_v2, %v127_v57 }
  0x68   :  { %317 = vst.msk [vmem:[%s951_s2 + $0x138] sm:$0xff] %vm277_vm0, %v252_v46 }
  0x69   :  { %v260_v16 = vmax.f32 %v196_v7, 0.0 }
  0x6f   :  { %v59_v58 = vld [vmem:[%s949_s0 + $0x180] sm:$0xff]  ;;  %v60_v63 = vld [vmem:[%s949_s0 + $0x188] sm:$0xff]  ;;  %v61_v0 = vld [vmem:[%s949_s0 + $0x190] sm:$0xff] }
  0x70   :  { %v62_v3 = vld [vmem:[%s949_s0 + $0x198] sm:$0xff]  ;;  %v63_v8 = vld [vmem:[%s949_s0 + $0x1a0] sm:$0xff]  ;;  %v64_v9 = vld [vmem:[%s949_s0 + $0x1a8] sm:$0xff]  ;;  %v128_v14 = vmul.f32 %v369_v1, %v59_v58  ;;  %v129_v17 = vmul.f32 %v369_v1, %v60_v63  ;;  %v130_v18 = vmul.f32 %v369_v1, %v61_v0 }
  0x71   :  { %v65_v10 = vld [vmem:[%s949_s0 + $0x1b0] sm:$0xff]  ;;  %v131_v19 = vmul.f32 %v369_v1, %v62_v3  ;;  %v132_v21 = vmul.f32 %v369_v1, %v63_v8  ;;  %v133_v22 = vmul.f32 %v369_v1, %v64_v9 }
  0x72   :  { %318 = vst.msk [vmem:[%s951_s2 + $0x140] sm:$0xff] %vm277_vm0, %v253_v59  ;;  %v197_v20 = vadd.f32 %v374_v2, %v128_v14  ;;  %v134_v23 = vmul.f32 %v369_v1, %v65_v10  ;;  %v198_v24 = vadd.f32 %v374_v2, %v129_v17  ;;  %v199_v25 = vadd.f32 %v374_v2, %v130_v18 }
  0x73   :  { %v200_v26 = vadd.f32 %v374_v2, %v131_v19  ;;  %v201_v30 = vadd.f32 %v374_v2, %v132_v21  ;;  %v202_v31 = vadd.f32 %v374_v2, %v133_v22 }
  0x74   :  { %v261_v29 = vmax.f32 %v197_v20, 0.0  ;;  %v203_v32 = vadd.f32 %v374_v2, %v134_v23  ;;  %v262_v36 = vmax.f32 %v198_v24, 0.0  ;;  %v263_v37 = vmax.f32 %v199_v25, 0.0 }
  0x75   :  { %v264_v38 = vmax.f32 %v200_v26, 0.0  ;;  %v265_v43 = vmax.f32 %v201_v30, 0.0  ;;  %v266_v44 = vmax.f32 %v202_v31, 0.0 }
  0x76   :  { %v267_v45 = vmax.f32 %v203_v32, 0.0 }
  0x79   :  { %v66_v15 = vld [vmem:[%s949_s0 + $0x1b8] sm:$0xff] }
  0x7a   :  { %319 = vst.msk [vmem:[%s951_s2 + $0x148] sm:$0xff] %vm277_vm0, %v254_v4  ;;  %320 = vst.msk [vmem:[%s951_s2 + $0x150] sm:$0xff] %vm277_vm0, %v255_v5  ;;  %v135_v27 = vmul.f32 %v369_v1, %v66_v15 }
  0x7b   :  { %321 = vst.msk [vmem:[%s951_s2 + $0x158] sm:$0xff] %vm277_vm0, %v256_v6  ;;  %322 = vst.msk [vmem:[%s951_s2 + $0x160] sm:$0xff] %vm277_vm0, %v257_v11 }
  0x7c   :  { %323 = vst.msk [vmem:[%s951_s2 + $0x168] sm:$0xff] %vm277_vm0, %v258_v12  ;;  %324 = vst.msk [vmem:[%s951_s2 + $0x170] sm:$0xff] %vm277_vm0, %v259_v13  ;;  %v204_v39 = vadd.f32 %v374_v2, %v135_v27 }
  0x7d   :  { %325 = vst.msk [vmem:[%s951_s2 + $0x178] sm:$0xff] %vm277_vm0, %v260_v16 }
  0x7e   :  { %v268_v48 = vmax.f32 %v204_v39, 0.0 }
  0x84   :  { %v67_v28 = vld [vmem:[%s949_s0 + $0x1c0] sm:$0xff]  ;;  %v68_v33 = vld [vmem:[%s949_s0 + $0x1c8] sm:$0xff]  ;;  %v69_v34 = vld [vmem:[%s949_s0 + $0x1d0] sm:$0xff] }
  0x85   :  { %v70_v35 = vld [vmem:[%s949_s0 + $0x1d8] sm:$0xff]  ;;  %v71_v40 = vld [vmem:[%s949_s0 + $0x1e0] sm:$0xff]  ;;  %v72_v41 = vld [vmem:[%s949_s0 + $0x1e8] sm:$0xff]  ;;  %v136_v46 = vmul.f32 %v369_v1, %v67_v28  ;;  %v137_v49 = vmul.f32 %v369_v1, %v68_v33  ;;  %v138_v50 = vmul.f32 %v369_v1, %v69_v34 }
  0x86   :  { %v73_v42 = vld [vmem:[%s949_s0 + $0x1f0] sm:$0xff]  ;;  %v139_v51 = vmul.f32 %v369_v1, %v70_v35  ;;  %v140_v53 = vmul.f32 %v369_v1, %v71_v40  ;;  %v141_v54 = vmul.f32 %v369_v1, %v72_v41 }
  0x87   :  { %326 = vst.msk [vmem:[%s951_s2 + $0x180] sm:$0xff] %vm277_vm0, %v261_v29  ;;  %v205_v52 = vadd.f32 %v374_v2, %v136_v46  ;;  %v142_v55 = vmul.f32 %v369_v1, %v73_v42  ;;  %v206_v56 = vadd.f32 %v374_v2, %v137_v49  ;;  %v207_v57 = vadd.f32 %v374_v2, %v138_v50 }
  0x88   :  { %v208_v58 = vadd.f32 %v374_v2, %v139_v51  ;;  %v209_v61 = vadd.f32 %v374_v2, %v140_v53  ;;  %v210_v62 = vadd.f32 %v374_v2, %v141_v54 }
  0x89   :  { %v269_v60 = vmax.f32 %v205_v52, 0.0  ;;  %v211_v63 = vadd.f32 %v374_v2, %v142_v55  ;;  %v270_v0 = vmax.f32 %v206_v56, 0.0  ;;  %v271_v3 = vmax.f32 %v207_v57, 0.0 }
  0x8a   :  { %v272_v4 = vmax.f32 %v208_v58, 0.0  ;;  %v273_v6 = vmax.f32 %v209_v61, 0.0  ;;  %v274_v7 = vmax.f32 %v210_v62, 0.0 }
  0x8e   :  { %v74_v47 = vld [vmem:[%s949_s0 + $0x1f8] sm:$0xff] }
  0x8f   :  { %327 = vst.msk [vmem:[%s951_s2 + $0x188] sm:$0xff] %vm277_vm0, %v262_v36  ;;  %328 = vst.msk [vmem:[%s951_s2 + $0x190] sm:$0xff] %vm277_vm0, %v263_v37  ;;  %v143_v59 = vmul.f32 %v369_v1, %v74_v47  ;;  %v275_v1 = vmax.f32 %v211_v63, 0.0 }
  0x90   :  { %329 = vst.msk [vmem:[%s951_s2 + $0x198] sm:$0xff] %vm277_vm0, %v264_v38  ;;  %330 = vst.msk [vmem:[%s951_s2 + $0x1a0] sm:$0xff] %vm277_vm0, %v265_v43 }
  0x91   :  { %331 = vst.msk [vmem:[%s951_s2 + $0x1a8] sm:$0xff] %vm277_vm0, %v266_v44  ;;  %332 = vst.msk [vmem:[%s951_s2 + $0x1b0] sm:$0xff] %vm277_vm0, %v267_v45  ;;  %v212_v5 = vadd.f32 %v374_v2, %v143_v59 }
  0x92   :  { %333 = vst.msk [vmem:[%s951_s2 + $0x1b8] sm:$0xff] %vm277_vm0, %v268_v48  ;;  %334 = vst.msk [vmem:[%s951_s2 + $0x1c0] sm:$0xff] %vm277_vm0, %v269_v60 }
  0x93   :  { %335 = vst.msk [vmem:[%s951_s2 + $0x1c8] sm:$0xff] %vm277_vm0, %v270_v0  ;;  %336 = vst.msk [vmem:[%s951_s2 + $0x1d0] sm:$0xff] %vm277_vm0, %v271_v3  ;;  %v276_v2 = vmax.f32 %v212_v5, 0.0 }
  0x94   :  { %337 = vst.msk [vmem:[%s951_s2 + $0x1d8] sm:$0xff] %vm277_vm0, %v272_v4  ;;  %338 = vst.msk [vmem:[%s951_s2 + $0x1e0] sm:$0xff] %vm277_vm0, %v273_v6 }
  0x95   :  { %339 = vst.msk [vmem:[%s951_s2 + $0x1e8] sm:$0xff] %vm277_vm0, %v274_v7  ;;  %340 = vst.msk [vmem:[%s951_s2 + $0x1f0] sm:$0xff] %vm277_vm0, %v275_v1 }
  0x96   :  { %341 = vst.msk [vmem:[%s951_s2 + $0x1f8] sm:$0xff] %vm277_vm0, %v276_v2 }

// kernel: double_conv.3
= control target key start
LH: loop header
LB: loop body
LE: loop exit
PB: predicated region body
PF: predicated region fallthrough
CT: control target
= control target key end

     0   :  { %vm555_vm0 = vcmask 1043456   ;;  %vm85_vm1 = vcmask 31744   ;;  %vm88_vm2 = vcmask 25600   ;;  %v9549_v2 = vmov 0.0   ;;  %s11820_s1 = inlined_call_operand.vmem [shape: f32[9,4,8], index: 1, kind: input, shape index: {}]   ;;  %s11821_s0 = inlined_call_operand.vmem [shape: f32[2,16,16,4], index: 0, kind: input, shape index: {}]   ;;  %s11822_s2 = inlined_call_operand.vmem [shape: f32[1,8], index: 2, kind: input, shape index: {}]   ;;  %s11823_s3 = inlined_call_operand.vmem [shape: f32[2,16,16,8], index: 3, kind: output, shape index: {0}]   ;;  %s11824_s4 = inlined_call_operand.vmem [shape: f32[1,2,8], index: 4, kind: output, shape index: {1}]  }
   0x1   :  { %v6971_v0 = vld [vmem:[%s11820_s1 + $0x4] sm:$0xf]  ;;  %v7234_v1 = vld [vmem:[%s11820_s1 + $0x10] sm:$0xf]  ;;  %86 = vst.msk [vmem:[#allocation2] sm:$0xff] %vm85_vm1, %v9549_v2  ;;  %87 = vst.msk [vmem:[#allocation2 + $0x8] sm:$0xff] %vm85_vm1, %v9549_v2 }
   0x2   :  { %90 = vst.msk [vmem:[#allocation2 + $0x1b0] sm:$0xff] %vm85_vm1, %v9549_v2  ;;  %91 = vst.msk [vmem:[#allocation2 + $0x1b8] sm:$0xff] %vm85_vm1, %v9549_v2  ;;  %v9608_v3 = vld [vmem:[%s11820_s1] sm:$0xf]  ;;  %8150 = vmatprep.subr.msk.mxu1 %vm555_vm0, %v6971_v0  ;;  %8542 = vmatprep.subr.msk.mxu0 %vm555_vm0, %v7234_v1  ;;  %v9618_v5 = vld [vmem:[%s11820_s1 + $0x14] sm:$0xf] }
   0x3   :  { %94 = vst.msk [vmem:[#allocation2 + $0x198] sm:$0xff] %vm85_vm1, %v9549_v2  ;;  %95 = vst.msk [vmem:[#allocation2 + $0x1a0] sm:$0xff] %vm85_vm1, %v9549_v2  ;;  %v16_v4 = vld [vmem:[%s11821_s0] sm:$0xff]  ;;  %v17_v6 = vld [vmem:[%s11821_s0 + $0x8] sm:$0xff]  ;;  %vm101_vm3 = vcmask 24576   ;;  %8151 = vmatpush3.msk.msra.mxu1 %vm555_vm0, %v6971_v0  ;;  %8543 = vmatpush3.msk.msra.mxu0 %vm555_vm0, %v7234_v1  ;;  %vm6565_vm4 = vcmask 64512  }
   0x4   :  { %97 = vst.msk [vmem:[#allocation2 + $0x348] sm:$0xff] %vm85_vm1, %v9549_v2  ;;  %98 = vst.msk [vmem:[#allocation2 + $0x350] sm:$0xff] %vm85_vm1, %v9549_v2  ;;  %v9630_v7 = vld [vmem:[%s11821_s0 + $0x10] sm:$0xff]  ;;  %v9635_v8 = vld [vmem:[%s11821_s0 + $0x18] sm:$0xff]  ;;  %8248 = vmatprep.subr.msk.mxu1 %vm555_vm0, %v9608_v3  ;;  %8640 = vmatprep.subr.msk.mxu0 %vm555_vm0, %v9618_v5  ;;  %vm6763_vm5 = vcmask 57344  }
   0x5   :  { %89 = vst.msk [vmem:[#allocation2 + $0x10] sm:$0x3] %vm88_vm2, %v9549_v2  ;;  %92 = vst.msk [vmem:[#allocation2 + $0x1c0] sm:$0x3] %vm88_vm2, %v9549_v2  ;;  %v9640_v9 = vld [vmem:[%s11821_s0 + $0x20] sm:$0xff]  ;;  %v21_v10 = vld [vmem:[%s11821_s0 + $0x28] sm:$0xff] }
   0x6   :  { %96 = vst.msk [vmem:[#allocation2 + $0x1a8] sm:$0x3] %vm88_vm2, %v9549_v2  ;;  %99 = vst.msk [vmem:[#allocation2 + $0x358] sm:$0x3] %vm88_vm2, %v9549_v2  ;;  %v22_v11 = vld [vmem:[%s11821_s0 + $0x30] sm:$0xff]  ;;  %v23_v12 = vld [vmem:[%s11821_s0 + $0x38] sm:$0xff] }
   0x7   :  { %168 = vst.msk [vmem:[#allocation2 + $0x19] sm:$0xff] %vm85_vm1, %v16_v4  ;;  %169 = vst.msk [vmem:[#allocation2 + $0x21] sm:$0xff] %vm85_vm1, %v17_v6  ;;  %v24_v13 = vld [vmem:[%s11821_s0 + $0x40] sm:$0xff]  ;;  %v25_v14 = vld [vmem:[%s11821_s0 + $0x48] sm:$0xff] }
   0x8   :  { %134 = vst.msk [vmem:[#allocation2 + $0x29] sm:$0x1] %vm101_vm3, %v9549_v2  ;;  %102 = vst.msk [vmem:[#allocation2 + $0x18] sm:$0x1] %vm101_vm3, %v9549_v2  ;;  %v26_v15 = vld [vmem:[%s11821_s0 + $0x50] sm:$0xff]  ;;  %v27_v16 = vld [vmem:[%s11821_s0 + $0x58] sm:$0xff] }
   0x9   :  { %103 = vst.msk [vmem:[#allocation2 + $0x30] sm:$0x1] %vm101_vm3, %v9549_v2  ;;  %104 = vst.msk [vmem:[#allocation2 + $0x48] sm:$0x1] %vm101_vm3, %v9549_v2  ;;  %v28_v17 = vld [vmem:[%s11821_s0 + $0x60] sm:$0xff]  ;;  %v29_v18 = vld [vmem:[%s11821_s0 + $0x68] sm:$0xff] }
   0xa   :  { %105 = vst.msk [vmem:[#allocation2 + $0x60] sm:$0x1] %vm101_vm3, %v9549_v2  ;;  %106 = vst.msk [vmem:[#allocation2 + $0x78] sm:$0x1] %vm101_vm3, %v9549_v2  ;;  %v30_v19 = vld [vmem:[%s11821_s0 + $0x70] sm:$0xff]  ;;  %v31_v20 = vld [vmem:[%s11821_s0 + $0x78] sm:$0xff] }
   0xb   :  { %107 = vst.msk [vmem:[#allocation2 + $0x90] sm:$0x1] %vm101_vm3, %v9549_v2  ;;  %108 = vst.msk [vmem:[#allocation2 + $0xa8] sm:$0x1] %vm101_vm3, %v9549_v2  ;;  %v32_v21 = vld [vmem:[%s11821_s0 + $0x80] sm:$0xff]  ;;  %v33_v24 = vld [vmem:[%s11821_s0 + $0x88] sm:$0xff] }
   0xc   :  { %109 = vst.msk [vmem:[#allocation2 + $0xc0] sm:$0x1] %vm101_vm3, %v9549_v2  ;;  %110 = vst.msk [vmem:[#allocation2 + $0xd8] sm:$0x1] %vm101_vm3, %v9549_v2  ;;  %v297_v22 = vld [vmem:[#allocation2 + $0x1] sm:$0xff]  ;;  %v298_v23 = vld [vmem:[#allocation2 + $0x9] sm:$0xff] }
   0xd   :  { %111 = vst.msk [vmem:[#allocation2 + $0xf0] sm:$0x1] %vm101_vm3, %v9549_v2  ;;  %112 = vst.msk [vmem:[#allocation2 + $0x108] sm:$0x1] %vm101_vm3, %v9549_v2  ;;  %8152 = vmatprep.mubr.msk.f32.mxu1 %vm85_vm1, %v297_v22  ;;  %v34_v25 = vld [vmem:[%s11821_s0 + $0x90] sm:$0xff]  ;;  %v35_v26 = vld [vmem:[%s11821_s0 + $0x98] sm:$0xff] }
   0xe   :  { %113 = vst.msk [vmem:[#allocation2 + $0x120] sm:$0x1] %vm101_vm3, %v9549_v2  ;;  %114 = vst.msk [vmem:[#allocation2 + $0x138] sm:$0x1] %vm101_vm3, %v9549_v2  ;;  %v36_v27 = vld [vmem:[%s11821_s0 + $0xa0] sm:$0xff]  ;;  %8153 = vmatmul.mubr.msk.f32.vlgmr.msra.gmra.mrb[0].mxu1 %vm85_vm1, %v298_v23  ;;  %v37_v30 = vld [vmem:[%s11821_s0 + $0xa8] sm:$0xff] }
   0xf   :  { %115 = vst.msk [vmem:[#allocation2 + $0x150] sm:$0x1] %vm101_vm3, %v9549_v2  ;;  %116 = vst.msk [vmem:[#allocation2 + $0x168] sm:$0x1] %vm101_vm3, %v9549_v2  ;;  %v2944_v28 = vld [vmem:[#allocation2 + $0x19] sm:$0xff]  ;;  %v2945_v29 = vld [vmem:[#allocation2 + $0x21] sm:$0xff]  ;;  %8249 = vmatpush3.msk.msra.mxu1 %vm555_vm0, %v9608_v3 }
  0x10   :  { %117 = vst.msk [vmem:[#allocation2 + $0x180] sm:$0x1] %vm101_vm3, %v9549_v2  ;;  %118 = vst.msk [vmem:[#allocation2 + $0x1c8] sm:$0x1] %vm101_vm3, %v9549_v2  ;;  %8544 = vmatprep.mubr.msk.f32.mxu0 %vm85_vm1, %v2944_v28  ;;  %8155 = vmatprep.mubr.msk.f32.mxu1 %vm85_vm1, %v2944_v28  ;;  %v38_v34 = vld [vmem:[%s11821_s0 + $0xb0] sm:$0xff]  ;;  %v39_v35 = vld [vmem:[%s11821_s0 + $0xb8] sm:$0xff] }
  0x11   :  { %119 = vst.msk [vmem:[#allocation2 + $0x1e0] sm:$0x1] %vm101_vm3, %v9549_v2  ;;  %120 = vst.msk [vmem:[#allocation2 + $0x1f8] sm:$0x1] %vm101_vm3, %v9549_v2  ;;  %8545 = vmatmul.mubr.msk.f32.vlgmr.msra.gmra.mrb[0].mxu0 %vm85_vm1, %v2945_v29  ;;  %v40_v38 = vld [vmem:[%s11821_s0 + $0xc0] sm:$0xff]  ;;  %v41_v39 = vld [vmem:[%s11821_s0 + $0xc8] sm:$0xff] }
  0x12   :  { %121 = vst.msk [vmem:[#allocation2 + $0x210] sm:$0x1] %vm101_vm3, %v9549_v2  ;;  %122 = vst.msk [vmem:[#allocation2 + $0x228] sm:$0x1] %vm101_vm3, %v9549_v2  ;;  %8641 = vmatpush3.msk.msra.mxu0 %vm555_vm0, %v9618_v5  ;;  %8156 = vmatmul.mubr.msk.f32.gmra.mrb[2].mxu1 %vm85_vm1, %v2945_v29  ;;  %v42_v40 = vld [vmem:[%s11821_s0 + $0xd0] sm:$0xff]  ;;  %v43_v41 = vld [vmem:[%s11821_s0 + $0xd8] sm:$0xff] }
  0x13   :  { %123 = vst.msk [vmem:[#allocation2 + $0x240] sm:$0x1] %vm101_vm3, %v9549_v2  ;;  %124 = vst.msk [vmem:[#allocation2 + $0x258] sm:$0x1] %vm101_vm3, %v9549_v2  ;;  %v44_v42 = vld [vmem:[%s11821_s0 + $0xe0] sm:$0xff]  ;;  %v45_v43 = vld [vmem:[%s11821_s0 + $0xe8] sm:$0xff] }
  0x14   :  { %125 = vst.msk [vmem:[#allocation2 + $0x270] sm:$0x1] %vm101_vm3, %v9549_v2  ;;  %126 = vst.msk [vmem:[#allocation2 + $0x288] sm:$0x1] %vm101_vm3, %v9549_v2  ;;  %v46_v44 = vld [vmem:[%s11821_s0 + $0xf0] sm:$0xff]  ;;  %v47_v45 = vld [vmem:[%s11821_s0 + $0xf8] sm:$0xff] }
  0x15   :  { %127 = vst.msk [vmem:[#allocation2 + $0x2a0] sm:$0x1] %vm101_vm3, %v9549_v2  ;;  %128 = vst.msk [vmem:[#allocation2 + $0x2b8] sm:$0x1] %vm101_vm3, %v9549_v2  ;;  %v9910_v48 = vld [vmem:[%s11820_s1 + $0x18] sm:$0xf] }
  0x16   :  { %129 = vst.msk [vmem:[#allocation2 + $0x2d0] sm:$0x1] %vm101_vm3, %v9549_v2  ;;  %130 = vst.msk [vmem:[#allocation2 + $0x2e8] sm:$0x1] %vm101_vm3, %v9549_v2  ;;  %v48_v49 = vld [vmem:[%s11821_s0 + $0x100] sm:$0xff]  ;;  %8738 = vmatprep.subr.msk.mxu0 %vm555_vm0, %v9910_v48  ;;  %v49_v50 = vld [vmem:[%s11821_s0 + $0x108] sm:$0xff] }
  0x17   :  { %131 = vst.msk [vmem:[#allocation2 + $0x300] sm:$0x1] %vm101_vm3, %v9549_v2  ;;  %132 = vst.msk [vmem:[#allocation2 + $0x318] sm:$0x1] %vm101_vm3, %v9549_v2  ;;  %v50_v51 = vld [vmem:[%s11821_s0 + $0x110] sm:$0xff]  ;;  %v51_v53 = vld [vmem:[%s11821_s0 + $0x118] sm:$0xff] }
  0x18   :  { %133 = vst.msk [vmem:[#allocation2 + $0x330] sm:$0x1] %vm101_vm3, %v9549_v2  ;;  %135 = vst.msk [vmem:[#allocation2 + $0x41] sm:$0x1] %vm101_vm3, %v9549_v2  ;;  %v52_v55 = vld [vmem:[%s11821_s0 + $0x120] sm:$0xff]  ;;  %v53_v57 = vld [vmem:[%s11821_s0 + $0x128] sm:$0xff] }
  0x19   :  { %136 = vst.msk [vmem:[#allocation2 + $0x59] sm:$0x1] %vm101_vm3, %v9549_v2  ;;  %137 = vst.msk [vmem:[#allocation2 + $0x71] sm:$0x1] %vm101_vm3, %v9549_v2  ;;  %v54_v59 = vld [vmem:[%s11821_s0 + $0x130] sm:$0xff]  ;;  %v55_v60 = vld [vmem:[%s11821_s0 + $0x138] sm:$0xff] }
  0x1a   :  { %138 = vst.msk [vmem:[#allocation2 + $0x89] sm:$0x1] %vm101_vm3, %v9549_v2  ;;  %139 = vst.msk [vmem:[#allocation2 + $0xa1] sm:$0x1] %vm101_vm3, %v9549_v2  ;;  %v56_v61 = vld [vmem:[%s11821_s0 + $0x140] sm:$0xff]  ;;  %v57_v62 = vld [vmem:[%s11821_s0 + $0x148] sm:$0xff] }
  0x1b   :  { %140 = vst.msk [vmem:[#allocation2 + $0xb9] sm:$0x1] %vm101_vm3, %v9549_v2  ;;  %141 = vst.msk [vmem:[#allocation2 + $0xd1] sm:$0x1] %vm101_vm3, %v9549_v2  ;;  %v58_v1 = vld [vmem:[%s11821_s0 + $0x150] sm:$0xff]  ;;  %v60_v3 = vld [vmem:[%s11821_s0 + $0x160] sm:$0xff] }
  0x1c   :  { %142 = vst.msk [vmem:[#allocation2 + $0xe9] sm:$0x1] %vm101_vm3, %v9549_v2  ;;  %143 = vst.msk [vmem:[#allocation2 + $0x101] sm:$0x1] %vm101_vm3, %v9549_v2  ;;  %v61_v4 = vld [vmem:[%s11821_s0 + $0x168] sm:$0xff]  ;;  %v62_v6 = vld [vmem:[%s11821_s0 + $0x170] sm:$0xff] }
  0x1d   :  { %144 = vst.msk [vmem:[#allocation2 + $0x119] sm:$0x1] %vm101_vm3, %v9549_v2  ;;  %145 = vst.msk [vmem:[#allocation2 + $0x131] sm:$0x1] %vm101_vm3, %v9549_v2  ;;  %v73_v22 = vld [vmem:[%s11821_s0 + $0x1c8] sm:$0xff] }
  0x1e   :  { %146 = vst.msk [vmem:[#allocation2 + $0x149] sm:$0x1] %vm101_vm3, %v9549_v2  ;;  %147 = vst.msk [vmem:[#allocation2 + $0x161] sm:$0x1] %vm101_vm3, %v9549_v2  ;;  %v77_v28 = vld [vmem:[%s11821_s0 + $0x1e8] sm:$0xff] }
  0x1f   :  { %148 = vst.msk [vmem:[#allocation2 + $0x179] sm:$0x1] %vm101_vm3, %v9549_v2  ;;  %149 = vst.msk [vmem:[#allocation2 + $0x191] sm:$0x1] %vm101_vm3, %v9549_v2 }
  0x20   :  { %150 = vst.msk [vmem:[#allocation2 + $0x1d9] sm:$0x1] %vm101_vm3, %v9549_v2  ;;  %151 = vst.msk [vmem:[#allocation2 + $0x1f1] sm:$0x1] %vm101_vm3, %v9549_v2 }
  0x21   :  { %152 = vst.msk [vmem:[#allocation2 + $0x209] sm:$0x1] %vm101_vm3, %v9549_v2  ;;  %153 = vst.msk [vmem:[#allocation2 + $0x221] sm:$0x1] %vm101_vm3, %v9549_v2 }
  0x22   :  { %154 = vst.msk [vmem:[#allocation2 + $0x239] sm:$0x1] %vm101_vm3, %v9549_v2  ;;  %155 = vst.msk [vmem:[#allocation2 + $0x251] sm:$0x1] %vm101_vm3, %v9549_v2 }
  0x23   :  { %156 = vst.msk [vmem:[#allocation2 + $0x269] sm:$0x1] %vm101_vm3, %v9549_v2  ;;  %157 = vst.msk [vmem:[#allocation2 + $0x281] sm:$0x1] %vm101_vm3, %v9549_v2 }
  0x24   :  { %158 = vst.msk [vmem:[#allocation2 + $0x299] sm:$0x1] %vm101_vm3, %v9549_v2  ;;  %159 = vst.msk [vmem:[#allocation2 + $0x2b1] sm:$0x1] %vm101_vm3, %v9549_v2 }
  0x25   :  { %160 = vst.msk [vmem:[#allocation2 + $0x2c9] sm:$0x1] %vm101_vm3, %v9549_v2  ;;  %161 = vst.msk [vmem:[#allocation2 + $0x2e1] sm:$0x1] %vm101_vm3, %v9549_v2 }
  0x26   :  { %162 = vst.msk [vmem:[#allocation2 + $0x2f9] sm:$0x1] %vm101_vm3, %v9549_v2  ;;  %163 = vst.msk [vmem:[#allocation2 + $0x311] sm:$0x1] %vm101_vm3, %v9549_v2 }
  0x27   :  { %164 = vst.msk [vmem:[#allocation2 + $0x329] sm:$0x1] %vm101_vm3, %v9549_v2  ;;  %165 = vst.msk [vmem:[#allocation2 + $0x341] sm:$0x1] %vm101_vm3, %v9549_v2  ;;  %v59_v2 = vld [vmem:[%s11821_s0 + $0x158] sm:$0xff] }
  0x28   :  { %170 = vst.msk [vmem:[#allocation2 + $0x31] sm:$0xff] %vm85_vm1, %v9630_v7  ;;  %171 = vst.msk [vmem:[#allocation2 + $0x39] sm:$0xff] %vm85_vm1, %v9635_v8  ;;  %v63_v7 = vld [vmem:[%s11821_s0 + $0x178] sm:$0xff] }
  0x29   :  { %172 = vst.msk [vmem:[#allocation2 + $0x49] sm:$0xff] %vm85_vm1, %v9640_v9  ;;  %173 = vst.msk [vmem:[#allocation2 + $0x51] sm:$0xff] %vm85_vm1, %v21_v10  ;;  %v64_v9 = vld [vmem:[%s11821_s0 + $0x180] sm:$0xff]  ;;  %v65_v10 = vld [vmem:[%s11821_s0 + $0x188] sm:$0xff] }
  0x2a   :  { %174 = vst.msk [vmem:[#allocation2 + $0x61] sm:$0xff] %vm85_vm1, %v22_v11  ;;  %175 = vst.msk [vmem:[#allocation2 + $0x69] sm:$0xff] %vm85_vm1, %v23_v12  ;;  %v66_v12 = vld [vmem:[%s11821_s0 + $0x190] sm:$0xff] }
  0x2b   :  { %176 = vst.msk [vmem:[#allocation2 + $0x79] sm:$0xff] %vm85_vm1, %v24_v13  ;;  %177 = vst.msk [vmem:[#allocation2 + $0x81] sm:$0xff] %vm85_vm1, %v25_v14  ;;  %v67_v13 = vld [vmem:[%s11821_s0 + $0x198] sm:$0xff] }
  0x2c   :  { %178 = vst.msk [vmem:[#allocation2 + $0x91] sm:$0xff] %vm85_vm1, %v26_v15  ;;  %179 = vst.msk [vmem:[#allocation2 + $0x99] sm:$0xff] %vm85_vm1, %v27_v16  ;;  %v68_v15 = vld [vmem:[%s11821_s0 + $0x1a0] sm:$0xff]  ;;  %v69_v16 = vld [vmem:[%s11821_s0 + $0x1a8] sm:$0xff] }
  0x2d   :  { %180 = vst.msk [vmem:[#allocation2 + $0xa9] sm:$0xff] %vm85_vm1, %v28_v17  ;;  %181 = vst.msk [vmem:[#allocation2 + $0xb1] sm:$0xff] %vm85_vm1, %v29_v18 }
  0x2e   :  { %182 = vst.msk [vmem:[#allocation2 + $0xc1] sm:$0xff] %vm85_vm1, %v30_v19  ;;  %183 = vst.msk [vmem:[#allocation2 + $0xc9] sm:$0xff] %vm85_vm1, %v31_v20  ;;  %v70_v19 = vld [vmem:[%s11821_s0 + $0x1b0] sm:$0xff]  ;;  %v71_v20 = vld [vmem:[%s11821_s0 + $0x1b8] sm:$0xff] }
  0x2f   :  { %184 = vst.msk [vmem:[#allocation2 + $0xd9] sm:$0xff] %vm85_vm1, %v32_v21  ;;  %185 = vst.msk [vmem:[#allocation2 + $0xe1] sm:$0xff] %vm85_vm1, %v33_v24  ;;  %v2946_v31 = vld [vmem:[#allocation2 + $0x31] sm:$0xff]  ;;  %v2947_v32 = vld [vmem:[#allocation2 + $0x39] sm:$0xff] }
  0x30   :  { %186 = vst.msk [vmem:[#allocation2 + $0xf1] sm:$0xff] %vm85_vm1, %v34_v25  ;;  %187 = vst.msk [vmem:[#allocation2 + $0xf9] sm:$0xff] %vm85_vm1, %v35_v26  ;;  %8547 = vmatprep.mubr.msk.f32.mxu0 %vm85_vm1, %v2946_v31  ;;  %v2948_v33 = vld [vmem:[#allocation2 + $0x49] sm:$0xff]  ;;  %8158 = vmatprep.mubr.msk.f32.mxu1 %vm85_vm1, %v2946_v31  ;;  %v2949_v36 = vld [vmem:[#allocation2 + $0x51] sm:$0xff] }
  0x31   :  { %188 = vst.msk [vmem:[#allocation2 + $0x109] sm:$0xff] %vm85_vm1, %v36_v27  ;;  %189 = vst.msk [vmem:[#allocation2 + $0x111] sm:$0xff] %vm85_vm1, %v37_v30  ;;  %8548 = vmatmul.mubr.msk.f32.gmra.mrb[2].mxu0 %vm85_vm1, %v2947_v32  ;;  %8159 = vmatmul.mubr.msk.f32.gmra.mrb[4].mxu1 %vm85_vm1, %v2947_v32  ;;  %v2950_v37 = vld [vmem:[#allocation2 + $0x61] sm:$0xff]  ;;  %v2951_v46 = vld [vmem:[#allocation2 + $0x69] sm:$0xff] }
  0x32   :  { %8550 = vmatprep.mubr.msk.f32.mxu0 %vm85_vm1, %v2948_v33  ;;  %190 = vst.msk [vmem:[#allocation2 + $0x121] sm:$0xff] %vm85_vm1, %v38_v34  ;;  %191 = vst.msk [vmem:[#allocation2 + $0x129] sm:$0xff] %vm85_vm1, %v39_v35  ;;  %8161 = vmatprep.mubr.msk.f32.mxu1 %vm85_vm1, %v2948_v33  ;;  %v2952_v47 = vld [vmem:[#allocation2 + $0x79] sm:$0xff]  ;;  %v2953_v52 = vld [vmem:[#allocation2 + $0x81] sm:$0xff] }
  0x33   :  { %192 = vst.msk [vmem:[#allocation2 + $0x139] sm:$0xff] %vm85_vm1, %v40_v38  ;;  %193 = vst.msk [vmem:[#allocation2 + $0x141] sm:$0xff] %vm85_vm1, %v41_v39  ;;  %v2954_v54 = vld [vmem:[#allocation2 + $0x91] sm:$0xff]  ;;  %v2955_v56 = vld [vmem:[#allocation2 + $0x99] sm:$0xff] }
  0x34   :  { %194 = vst.msk [vmem:[#allocation2 + $0x151] sm:$0xff] %vm85_vm1, %v42_v40  ;;  %195 = vst.msk [vmem:[#allocation2 + $0x159] sm:$0xff] %vm85_vm1, %v43_v41  ;;  %v2956_v58 = vld [vmem:[#allocation2 + $0xa9] sm:$0xff]  ;;  %v2957_v63 = vld [vmem:[#allocation2 + $0xb1] sm:$0xff] }
  0x35   :  { %8551 = vmatmul.mubr.msk.f32.gmra.mrb[4].mxu0 %vm85_vm1, %v2949_v36  ;;  %196 = vst.msk [vmem:[#allocation2 + $0x169] sm:$0xff] %vm85_vm1, %v44_v42  ;;  %197 = vst.msk [vmem:[#allocation2 + $0x171] sm:$0xff] %vm85_vm1, %v45_v43  ;;  %8162 = vmatmul.mubr.msk.f32.gmra.mrb[6].mxu1 %vm85_vm1, %v2949_v36  ;;  %v2958_v0 = vld [vmem:[#allocation2 + $0xc1] sm:$0xff]  ;;  %v2959_v5 = vld [vmem:[#allocation2 + $0xc9] sm:$0xff] }
  0x36   :  { %8553 = vmatprep.mubr.msk.f32.mxu0 %vm85_vm1, %v2950_v37  ;;  %198 = vst.msk [vmem:[#allocation2 + $0x181] sm:$0xff] %vm85_vm1, %v46_v44  ;;  %199 = vst.msk [vmem:[#allocation2 + $0x189] sm:$0xff] %vm85_vm1, %v47_v45  ;;  %8164 = vmatprep.mubr.msk.f32.mxu1 %vm85_vm1, %v2950_v37  ;;  %v2960_v8 = vld [vmem:[#allocation2 + $0xd9] sm:$0xff]  ;;  %v2961_v11 = vld [vmem:[#allocation2 + $0xe1] sm:$0xff] }
  0x37   :  { %200 = vst.msk [vmem:[#allocation2 + $0x1c9] sm:$0xff] %vm85_vm1, %v48_v49  ;;  %201 = vst.msk [vmem:[#allocation2 + $0x1d1] sm:$0xff] %vm85_vm1, %v49_v50  ;;  %v2962_v14 = vld [vmem:[#allocation2 + $0xf1] sm:$0xff]  ;;  %v2963_v17 = vld [vmem:[#allocation2 + $0xf9] sm:$0xff] }
  0x38   :  { %202 = vst.msk [vmem:[#allocation2 + $0x1e1] sm:$0xff] %vm85_vm1, %v50_v51  ;;  %203 = vst.msk [vmem:[#allocation2 + $0x1e9] sm:$0xff] %vm85_vm1, %v51_v53  ;;  %v2964_v18 = vld [vmem:[#allocation2 + $0x109] sm:$0xff]  ;;  %v72_v21 = vld [vmem:[%s11821_s0 + $0x1c0] sm:$0xff] }
  0x39   :  { %8554 = vmatmul.mubr.msk.f32.gmra.mrb[6].mxu0 %vm85_vm1, %v2951_v46  ;;  %8165 = vmatmul.mubr.msk.f32.gmra.mrb[8].mxu1 %vm85_vm1, %v2951_v46  ;;  %204 = vst.msk [vmem:[#allocation2 + $0x1f9] sm:$0xff] %vm85_vm1, %v52_v55  ;;  %205 = vst.msk [vmem:[#allocation2 + $0x201] sm:$0xff] %vm85_vm1, %v53_v57  ;;  %v2965_v23 = vld [vmem:[#allocation2 + $0x111] sm:$0xff]  ;;  %v2966_v24 = vld [vmem:[#allocation2 + $0x121] sm:$0xff] }
  0x3a   :  { %8556 = vmatprep.mubr.msk.f32.mxu0 %vm85_vm1, %v2952_v47  ;;  %8167 = vmatprep.mubr.msk.f32.mxu1 %vm85_vm1, %v2952_v47  ;;  %206 = vst.msk [vmem:[#allocation2 + $0x211] sm:$0xff] %vm85_vm1, %v54_v59  ;;  %207 = vst.msk [vmem:[#allocation2 + $0x219] sm:$0xff] %vm85_vm1, %v55_v60  ;;  %v74_v25 = vld [vmem:[%s11821_s0 + $0x1d0] sm:$0xff]  ;;  %v75_v26 = vld [vmem:[%s11821_s0 + $0x1d8] sm:$0xff] }
  0x3b   :  { %208 = vst.msk [vmem:[#allocation2 + $0x229] sm:$0xff] %vm85_vm1, %v56_v61  ;;  %209 = vst.msk [vmem:[#allocation2 + $0x231] sm:$0xff] %vm85_vm1, %v57_v62  ;;  %v76_v27 = vld [vmem:[%s11821_s0 + $0x1e0] sm:$0xff]  ;;  %v2967_v29 = vld [vmem:[#allocation2 + $0x129] sm:$0xff] }
  0x3c   :  { %210 = vst.msk [vmem:[#allocation2 + $0x241] sm:$0xff] %vm85_vm1, %v58_v1  ;;  %211 = vst.msk [vmem:[#allocation2 + $0x249] sm:$0xff] %vm85_vm1, %v59_v2  ;;  %v2968_v30 = vld [vmem:[#allocation2 + $0x139] sm:$0xff]  ;;  %v10069_v31 = vld [vmem:[%s11820_s1 + $0x8] sm:$0xf] }
  0x3d   :  { %8557 = vmatmul.mubr.msk.f32.gmra.mrb[8].mxu0 %vm85_vm1, %v2953_v52  ;;  %8168 = vmatmul.mubr.msk.f32.gmra.mrb[10].mxu1 %vm85_vm1, %v2953_v52  ;;  %212 = vst.msk [vmem:[#allocation2 + $0x259] sm:$0xff] %vm85_vm1, %v60_v3  ;;  %213 = vst.msk [vmem:[#allocation2 + $0x261] sm:$0xff] %vm85_vm1, %v61_v4  ;;  %v2969_v32 = vld [vmem:[#allocation2 + $0x141] sm:$0xff]  ;;  %v2970_v33 = vld [vmem:[#allocation2 + $0x151] sm:$0xff] }
  0x3e   :  { %8559 = vmatprep.mubr.msk.f32.mxu0 %vm85_vm1, %v2954_v54  ;;  %8170 = vmatprep.mubr.msk.f32.mxu1 %vm85_vm1, %v2954_v54  ;;  %214 = vst.msk [vmem:[#allocation2 + $0x271] sm:$0xff] %vm85_vm1, %v62_v6  ;;  %215 = vst.msk [vmem:[#allocation2 + $0x279] sm:$0xff] %vm85_vm1, %v63_v7  ;;  %v2971_v34 = vld [vmem:[#allocation2 + $0x159] sm:$0xff]  ;;  %v2972_v35 = vld [vmem:[#allocation2 + $0x169] sm:$0xff] }
  0x3f   :  { %216 = vst.msk [vmem:[#allocation2 + $0x289] sm:$0xff] %vm85_vm1, %v64_v9  ;;  %217 = vst.msk [vmem:[#allocation2 + $0x291] sm:$0xff] %vm85_vm1, %v65_v10  ;;  %8346 = vmatprep.subr.msk.mxu1 %vm555_vm0, %v10069_v31  ;;  %v2973_v36 = vld [vmem:[#allocation2 + $0x171] sm:$0xff]  ;;  %v2974_v37 = vld [vmem:[#allocation2 + $0x181] sm:$0xff] }
  0x40   :  { %218 = vst.msk [vmem:[#allocation2 + $0x2a1] sm:$0xff] %vm85_vm1, %v66_v12  ;;  %219 = vst.msk [vmem:[#allocation2 + $0x2a9] sm:$0xff] %vm85_vm1, %v67_v13  ;;  %v329_v38 = vld [vmem:[#allocation2 + $0x1b1] sm:$0xff]  ;;  %v2975_v39 = vld [vmem:[#allocation2 + $0x189] sm:$0xff] }
  0x41   :  { %8560 = vmatmul.mubr.msk.f32.gmra.mrb[10].mxu0 %vm85_vm1, %v2955_v56  ;;  %8171 = vmatmul.mubr.msk.f32.gmra.mrb[12].mxu1 %vm85_vm1, %v2955_v56  ;;  %220 = vst.msk [vmem:[#allocation2 + $0x2b9] sm:$0xff] %vm85_vm1, %v68_v15  ;;  %221 = vst.msk [vmem:[#allocation2 + $0x2c1] sm:$0xff] %vm85_vm1, %v69_v16  ;;  %v3654_v40 = vld [vmem:[#allocation2 + $0x1a] sm:$0xff]  ;;  %v331_v42 = vld [vmem:[#allocation2 + $0x1c9] sm:$0xff] }
  0x42   :  { %8562 = vmatprep.mubr.msk.f32.mxu0 %vm85_vm1, %v2956_v58  ;;  %8173 = vmatprep.mubr.msk.f32.mxu1 %vm85_vm1, %v2956_v58  ;;  %222 = vst.msk [vmem:[#allocation2 + $0x2d1] sm:$0xff] %vm85_vm1, %v70_v19  ;;  %223 = vst.msk [vmem:[#allocation2 + $0x2d9] sm:$0xff] %vm85_vm1, %v71_v20  ;;  %v330_v41 = vld [vmem:[#allocation2 + $0x1b9] sm:$0xff]  ;;  %v3655_v43 = vld [vmem:[#allocation2 + $0x22] sm:$0xff] }
  0x43   :  { %224 = vst.msk [vmem:[#allocation2 + $0x2e9] sm:$0xff] %vm85_vm1, %v72_v21  ;;  %225 = vst.msk [vmem:[#allocation2 + $0x2f1] sm:$0xff] %vm85_vm1, %v73_v22  ;;  %v10093_v44 = vld [vmem:[#allocation2 + $0x32] sm:$0xff]  ;;  %v333_v46 = vld [vmem:[#allocation2 + $0x1e1] sm:$0xff] }
  0x44   :  { %226 = vst.msk [vmem:[#allocation2 + $0x301] sm:$0xff] %vm85_vm1, %v74_v25  ;;  %227 = vst.msk [vmem:[#allocation2 + $0x309] sm:$0xff] %vm85_vm1, %v75_v26  ;;  %v332_v45 = vld [vmem:[#allocation2 + $0x1d1] sm:$0xff]  ;;  %v10101_v47 = vld [vmem:[#allocation2 + $0x3a] sm:$0xff] }
  0x45   :  { %8563 = vmatmul.mubr.msk.f32.gmra.mrb[12].mxu0 %vm85_vm1, %v2957_v63  ;;  %8174 = vmatmul.mubr.msk.f32.gmra.mrb[14].mxu1 %vm85_vm1, %v2957_v63  ;;  %228 = vst.msk [vmem:[#allocation2 + $0x319] sm:$0xff] %vm85_vm1, %v76_v27  ;;  %229 = vst.msk [vmem:[#allocation2 + $0x321] sm:$0xff] %vm85_vm1, %v77_v28  ;;  %v78_v49 = vld [vmem:[%s11821_s0 + $0x1f0] sm:$0xff]  ;;  %v79_v50 = vld [vmem:[%s11821_s0 + $0x1f8] sm:$0xff] }
  0x46   :  { %8565 = vmatprep.mubr.msk.f32.mxu0 %vm85_vm1, %v2958_v0  ;;  %8176 = vmatprep.mubr.msk.f32.mxu1 %vm85_vm1, %v2958_v0  ;;  %v10110_v51 = vld [vmem:[#allocation2 + $0x4a] sm:$0xff]  ;;  %230 = vst.msk [vmem:[#allocation2 + $0x331] sm:$0xff] %vm85_vm1, %v78_v49  ;;  %231 = vst.msk [vmem:[#allocation2 + $0x339] sm:$0xff] %vm85_vm1, %v79_v50  ;;  %v335_v53 = vld [vmem:[#allocation2 + $0x1f9] sm:$0xff] }
  0x47   :  { %v334_v52 = vld [vmem:[#allocation2 + $0x1e9] sm:$0xff]  ;;  %v10126_v54 = vld [vmem:[#allocation2 + $0x52] sm:$0xff]  ;;  %v336_v56 = vld [vmem:[#allocation2 + $0x201] sm:$0xff] }
  0x48   :  { %v10129_v55 = vld [vmem:[#allocation2 + $0x62] sm:$0xff]  ;;  %v337_v57 = vld [vmem:[#allocation2 + $0x211] sm:$0xff]  ;;  %v10139_v59 = vld [vmem:[#allocation2 + $0x7a] sm:$0xff] }
  0x49   :  { %8566 = vmatmul.mubr.msk.f32.gmra.mrb[14].mxu0 %vm85_vm1, %v2959_v5  ;;  %8177 = vmatmul.mubr.msk.f32.gmra.mrb[16].mxu1 %vm85_vm1, %v2959_v5  ;;  %v10136_v58 = vld [vmem:[#allocation2 + $0x6a] sm:$0xff]  ;;  %v338_v60 = vld [vmem:[#allocation2 + $0x219] sm:$0xff]  ;;  %v10146_v62 = vld [vmem:[#allocation2 + $0x82] sm:$0xff] }
  0x4a   :  { %8568 = vmatprep.mubr.msk.f32.mxu0 %vm85_vm1, %v2960_v8  ;;  %8179 = vmatprep.mubr.msk.f32.mxu1 %vm85_vm1, %v2960_v8  ;;  %v339_v61 = vld [vmem:[#allocation2 + $0x229] sm:$0xff]  ;;  %v10149_v63 = vld [vmem:[#allocation2 + $0x92] sm:$0xff]  ;;  %v341_v1 = vld [vmem:[#allocation2 + $0x241] sm:$0xff] }
  0x4b   :  { %v340_v0 = vld [vmem:[#allocation2 + $0x231] sm:$0xff]  ;;  %v10156_v2 = vld [vmem:[#allocation2 + $0x9a] sm:$0xff]  ;;  %v342_v4 = vld [vmem:[#allocation2 + $0x249] sm:$0xff] }
  0x4c   :  { %v10159_v3 = vld [vmem:[#allocation2 + $0xaa] sm:$0xff]  ;;  %v343_v5 = vld [vmem:[#allocation2 + $0x259] sm:$0xff]  ;;  %v10169_v7 = vld [vmem:[#allocation2 + $0xc2] sm:$0xff] }
  0x4d   :  { %8569 = vmatmul.mubr.msk.f32.gmra.mrb[16].mxu0 %vm85_vm1, %v2961_v11  ;;  %8180 = vmatmul.mubr.msk.f32.gmra.mrb[18].mxu1 %vm85_vm1, %v2961_v11  ;;  %v10166_v6 = vld [vmem:[#allocation2 + $0xb2] sm:$0xff]  ;;  %v344_v8 = vld [vmem:[#allocation2 + $0x261] sm:$0xff]  ;;  %v10176_v10 = vld [vmem:[#allocation2 + $0xca] sm:$0xff] }
  0x4e   :  { %8571 = vmatprep.mubr.msk.f32.mxu0 %vm85_vm1, %v2962_v14  ;;  %8182 = vmatprep.mubr.msk.f32.mxu1 %vm85_vm1, %v2962_v14  ;;  %v345_v9 = vld [vmem:[#allocation2 + $0x271] sm:$0xff]  ;;  %v10179_v11 = vld [vmem:[#allocation2 + $0xda] sm:$0xff]  ;;  %v347_v13 = vld [vmem:[#allocation2 + $0x289] sm:$0xff] }
  0x4f   :  { %v346_v12 = vld [vmem:[#allocation2 + $0x279] sm:$0xff]  ;;  %v10186_v14 = vld [vmem:[#allocation2 + $0xe2] sm:$0xff]  ;;  %v348_v16 = vld [vmem:[#allocation2 + $0x291] sm:$0xff] }
  0x50   :  { %v10189_v15 = vld [vmem:[#allocation2 + $0xf2] sm:$0xff]  ;;  %v10199_v19 = vld [vmem:[#allocation2 + $0x10a] sm:$0xff]  ;;  %v10219_v27 = vld [vmem:[#allocation2 + $0x13a] sm:$0xff] }
  0x51   :  { %8572 = vmatmul.mubr.msk.f32.gmra.mrb[18].mxu0 %vm85_vm1, %v2963_v17  ;;  %8183 = vmatmul.mubr.msk.f32.gmra.mrb[20].mxu1 %vm85_vm1, %v2963_v17  ;;  %v349_v17 = vld [vmem:[#allocation2 + $0x2a1] sm:$0xff]  ;;  %v350_v20 = vld [vmem:[#allocation2 + $0x2a9] sm:$0xff]  ;;  %v351_v21 = vld [vmem:[#allocation2 + $0x2b9] sm:$0xff] }
  0x52   :  { %8574 = vmatprep.mubr.msk.f32.mxu0 %vm85_vm1, %v2964_v18  ;;  %8185 = vmatprep.mubr.msk.f32.mxu1 %vm85_vm1, %v2964_v18  ;;  %v10196_v18 = vld [vmem:[#allocation2 + $0xfa] sm:$0xff]  ;;  %v10206_v22 = vld [vmem:[#allocation2 + $0x112] sm:$0xff]  ;;  %v10216_v26 = vld [vmem:[#allocation2 + $0x12a] sm:$0xff] }
  0x53   :  { %v353_v25 = vld [vmem:[#allocation2 + $0x2d1] sm:$0xff]  ;;  %v354_v28 = vld [vmem:[#allocation2 + $0x2d9] sm:$0xff] }
  0x54   :  { %v234_v49 = vld [vmem:[#allocation2 + $0x18] sm:$0xff] }
  0x55   :  { %8575 = vmatmul.mubr.msk.f32.gmra.mrb[20].mxu0 %vm85_vm1, %v2965_v23  ;;  %8186 = vmatmul.mubr.msk.f32.gmra.mrb[22].mxu1 %vm85_vm1, %v2965_v23  ;;  %v10209_v23 = vld [vmem:[#allocation2 + $0x122] sm:$0xff]  ;;  %v10260_v50 = vld [vmem:[#allocation2 + $0x1d2] sm:$0xff] }
  0x56   :  { %8577 = vmatprep.mubr.msk.f32.mxu0 %vm85_vm1, %v2966_v24  ;;  %8188 = vmatprep.mubr.msk.f32.mxu1 %vm85_vm1, %v2966_v24  ;;  %v352_v24 = vld [vmem:[#allocation2 + $0x2c1] sm:$0xff]  ;;  %11863 = vst [vmem:[#allocation4_spill] sm:$0xff] %v10260_v50 }
  0x59   :  { %8578 = vmatmul.mubr.msk.f32.gmra.mrb[22].mxu0 %vm85_vm1, %v2967_v29  ;;  %8189 = vmatmul.mubr.msk.f32.gmra.mrb[24].mxu1 %vm85_vm1, %v2967_v29  ;;  %v355_v29 = vld [vmem:[#allocation2 + $0x2e9] sm:$0xff] }
  0x5a   :  { %8580 = vmatprep.mubr.msk.f32.mxu0 %vm85_vm1, %v2968_v30  ;;  %8191 = vmatprep.mubr.msk.f32.mxu1 %vm85_vm1, %v2968_v30  ;;  %v10226_v30 = vld [vmem:[#allocation2 + $0x142] sm:$0xff] }
  0x5d   :  { %8581 = vmatmul.mubr.msk.f32.gmra.mrb[24].mxu0 %vm85_vm1, %v2969_v32  ;;  %8192 = vmatmul.mubr.msk.f32.gmra.mrb[26].mxu1 %vm85_vm1, %v2969_v32  ;;  %v10229_v32 = vld [vmem:[#allocation2 + $0x152] sm:$0xff] }
  0x5e   :  { %8583 = vmatprep.mubr.msk.f32.mxu0 %vm85_vm1, %v2970_v33  ;;  %8194 = vmatprep.mubr.msk.f32.mxu1 %vm85_vm1, %v2970_v33  ;;  %v356_v33 = vld [vmem:[#allocation2 + $0x2f1] sm:$0xff] }
  0x61   :  { %8584 = vmatmul.mubr.msk.f32.gmra.mrb[26].mxu0 %vm85_vm1, %v2971_v34  ;;  %8195 = vmatmul.mubr.msk.f32.gmra.mrb[28].mxu1 %vm85_vm1, %v2971_v34  ;;  %v357_v34 = vld [vmem:[#allocation2 + $0x301] sm:$0xff] }
  0x62   :  { %8586 = vmatprep.mubr.msk.f32.mxu0 %vm85_vm1, %v2972_v35  ;;  %8197 = vmatprep.mubr.msk.f32.mxu1 %vm85_vm1, %v2972_v35  ;;  %v10236_v35 = vld [vmem:[#allocation2 + $0x15a] sm:$0xff] }
  0x65   :  { %8587 = vmatmul.mubr.msk.f32.gmra.mrb[28].mxu0 %vm85_vm1, %v2973_v36  ;;  %8198 = vmatmul.mubr.msk.f32.gmra.mrb[30].mxu1 %vm85_vm1, %v2973_v36  ;;  %v10239_v36 = vld [vmem:[#allocation2 + $0x16a] sm:$0xff] }
  0x66   :  { %8589 = vmatprep.mubr.msk.f32.mxu0 %vm85_vm1, %v2974_v37  ;;  %8200 = vmatprep.mubr.msk.f32.mxu1 %vm85_vm1, %v329_v38  ;;  %v358_v37 = vld [vmem:[#allocation2 + $0x309] sm:$0xff]  ;;  %v359_v38 = vld [vmem:[#allocation2 + $0x319] sm:$0xff] }
  0x69   :  { %8590 = vmatmul.mubr.msk.f32.gmra.mrb[30].mxu0 %vm85_vm1, %v2975_v39  ;;  %8201 = vmatmul.mubr.msk.f32.gmra.mrb[32].mxu1 %vm85_vm1, %v330_v41  ;;  %v10246_v39 = vld [vmem:[#allocation2 + $0x172] sm:$0xff]  ;;  %v360_v41 = vld [vmem:[#allocation2 + $0x321] sm:$0xff] }
  0x6a   :  { %8642 = vmatprep.mubr.msk.f32.mxu0 %vm85_vm1, %v3654_v40  ;;  %8203 = vmatprep.mubr.msk.f32.mxu1 %vm85_vm1, %v331_v42  ;;  %v3684_v40 = vld [vmem:[#allocation2 + $0x182] sm:$0xff] }
  0x6b   :  { %v232_v42 = vld [vmem:[#allocation2] sm:$0xff] }
  0x6d   :  { %8643 = vmatmul.mubr.msk.f32.vlgmr.msra.gmra.mrb[0].mxu0 %vm85_vm1, %v3655_v43  ;;  %8204 = vmatmul.mubr.msk.f32.gmra.mrb[34].mxu1 %vm85_vm1, %v332_v45  ;;  %v3685_v43 = vld [vmem:[#allocation2 + $0x18a] sm:$0xff] }
  0x6e   :  { %8739 = vmatpush3.msk.msra.mxu0 %vm555_vm0, %v9910_v48  ;;  %8645 = vmatprep.mubr.msk.f32.mxu0 %vm85_vm1, %v10093_v44  ;;  %v10117_v48 = vld [vmem:[%s11820_s1 + $0x1c] sm:$0xf]  ;;  %v10254_v45 = vld [vmem:[#allocation2 + $0x1ca] sm:$0xff] }
  0x6f   :  { %8206 = vmatprep.mubr.msk.f32.mxu1 %vm85_vm1, %v333_v46  ;;  %8836 = vmatprep.subr.msk.mxu0 %vm555_vm0, %v10117_v48  ;;  %11862 = vst [vmem:[#allocation3_spill] sm:$0xff] %v10254_v45  ;;  %v233_v46 = vld [vmem:[#allocation2 + $0x8] sm:$0xff] }
  0x71   :  { %8646 = vmatmul.mubr.msk.f32.gmra.mrb[2].mxu0 %vm85_vm1, %v10101_v47  ;;  %8207 = vmatmul.mubr.msk.f32.gmra.mrb[36].mxu1 %vm85_vm1, %v334_v52  ;;  %v10263_v52 = vld [vmem:[#allocation2 + $0x1e2] sm:$0xff] }
  0x72   :  { %8648 = vmatprep.mubr.msk.f32.mxu0 %vm85_vm1, %v10110_v51  ;;  %8209 = vmatprep.mubr.msk.f32.mxu1 %vm85_vm1, %v335_v53  ;;  %11864 = vst [vmem:[#allocation5_spill] sm:$0xff] %v10263_v52  ;;  %v10268_v53 = vld [vmem:[%s11820_s1 + $0xc] sm:$0xf] }
  0x75   :  { %8649 = vmatmul.mubr.msk.f32.gmra.mrb[4].mxu0 %vm85_vm1, %v10126_v54  ;;  %8210 = vmatmul.mubr.msk.f32.gmra.mrb[38].mxu1 %vm85_vm1, %v336_v56  ;;  %v235_v56 = vld [vmem:[#allocation2 + $0x20] sm:$0xff] }
  0x76   :  { %8651 = vmatprep.mubr.msk.f32.mxu0 %vm85_vm1, %v10129_v55  ;;  %8212 = vmatprep.mubr.msk.f32.mxu1 %vm85_vm1, %v337_v57  ;;  %v10275_v57 = vld [vmem:[#allocation2 + $0x30] sm:$0xff] }
  0x79   :  { %8652 = vmatmul.mubr.msk.f32.gmra.mrb[6].mxu0 %vm85_vm1, %v10136_v58  ;;  %8213 = vmatmul.mubr.msk.f32.gmra.mrb[40].mxu1 %vm85_vm1, %v338_v60  ;;  %v10281_v60 = vld [vmem:[#allocation2 + $0x1ea] sm:$0xff] }
  0x7a   :  { %8654 = vmatprep.mubr.msk.f32.mxu0 %vm85_vm1, %v10139_v59  ;;  %8215 = vmatprep.mubr.msk.f32.mxu1 %vm85_vm1, %v339_v61  ;;  %11865 = vst [vmem:[#allocation6_spill] sm:$0xff] %v10281_v60  ;;  %v10284_v61 = vld [vmem:[#allocation2 + $0x1fa] sm:$0xff] }
  0x7b   :  { %11866 = vst [vmem:[#allocation7_spill] sm:$0xff] %v10284_v61 }
  0x7d   :  { %8655 = vmatmul.mubr.msk.f32.gmra.mrb[8].mxu0 %vm85_vm1, %v10146_v62  ;;  %8216 = vmatmul.mubr.msk.f32.gmra.mrb[42].mxu1 %vm85_vm1, %v340_v0  ;;  %v10292_v0 = vld [vmem:[#allocation2 + $0x48] sm:$0xff] }
  0x7e   :  { %8657 = vmatprep.mubr.msk.f32.mxu0 %vm85_vm1, %v10149_v63  ;;  %8218 = vmatprep.mubr.msk.f32.mxu1 %vm85_vm1, %v341_v1  ;;  %v10296_v1 = vld [vmem:[#allocation2 + $0x202] sm:$0xff] }
  0x7f   :  { %11867 = vst [vmem:[#allocation8_spill] sm:$0xff] %v10296_v1 }
  0x81   :  { %8658 = vmatmul.mubr.msk.f32.gmra.mrb[10].mxu0 %vm85_vm1, %v10156_v2  ;;  %8219 = vmatmul.mubr.msk.f32.gmra.mrb[44].mxu1 %vm85_vm1, %v342_v4  ;;  %v10300_v4 = vld [vmem:[#allocation2 + $0x212] sm:$0xff] }
  0x82   :  { %8660 = vmatprep.mubr.msk.f32.mxu0 %vm85_vm1, %v10159_v3  ;;  %8221 = vmatprep.mubr.msk.f32.mxu1 %vm85_vm1, %v343_v5  ;;  %11868 = vst [vmem:[#allocation9_spill] sm:$0xff] %v10300_v4  ;;  %v10304_v5 = vld [vmem:[#allocation2 + $0x50] sm:$0xff] }
  0x85   :  { %8661 = vmatmul.mubr.msk.f32.gmra.mrb[12].mxu0 %vm85_vm1, %v10166_v6  ;;  %8222 = vmatmul.mubr.msk.f32.gmra.mrb[46].mxu1 %vm85_vm1, %v344_v8  ;;  %v10308_v8 = vld [vmem:[#allocation2 + $0x60] sm:$0xff] }
  0x86   :  { %8663 = vmatprep.mubr.msk.f32.mxu0 %vm85_vm1, %v10169_v7  ;;  %8224 = vmatprep.mubr.msk.f32.mxu1 %vm85_vm1, %v345_v9  ;;  %v10312_v9 = vld [vmem:[#allocation2 + $0x21a] sm:$0xff] }
  0x87   :  { %11869 = vst [vmem:[#allocation10_spill] sm:$0xff] %v10312_v9 }
  0x89   :  { %8664 = vmatmul.mubr.msk.f32.gmra.mrb[14].mxu0 %vm85_vm1, %v10176_v10  ;;  %8225 = vmatmul.mubr.msk.f32.gmra.mrb[48].mxu1 %vm85_vm1, %v346_v12  ;;  %v10316_v12 = vld [vmem:[#allocation2 + $0x22a] sm:$0xff] }
  0x8a   :  { %8666 = vmatprep.mubr.msk.f32.mxu0 %vm85_vm1, %v10179_v11  ;;  %8227 = vmatprep.mubr.msk.f32.mxu1 %vm85_vm1, %v347_v13  ;;  %11870 = vst [vmem:[#allocation11_spill] sm:$0xff] %v10316_v12  ;;  %v10320_v13 = vld [vmem:[#allocation2 + $0x68] sm:$0xff] }
  0x8d   :  { %8667 = vmatmul.mubr.msk.f32.gmra.mrb[16].mxu0 %vm85_vm1, %v10186_v14  ;;  %8228 = vmatmul.mubr.msk.f32.gmra.mrb[50].mxu1 %vm85_vm1, %v348_v16  ;;  %v10324_v16 = vld [vmem:[#allocation2 + $0x78] sm:$0xff] }
  0x8e   :  { %8669 = vmatprep.mubr.msk.f32.mxu0 %vm85_vm1, %v10189_v15  ;;  %8230 = vmatprep.mubr.msk.f32.mxu1 %vm85_vm1, %v349_v17  ;;  %v10328_v17 = vld [vmem:[#allocation2 + $0x232] sm:$0xff] }
  0x8f   :  { %11871 = vst [vmem:[#allocation12_spill] sm:$0xff] %v10328_v17 }
  0x91   :  { %8670 = vmatmul.mubr.msk.f32.gmra.mrb[18].mxu0 %vm85_vm1, %v10196_v18  ;;  %8231 = vmatmul.mubr.msk.f32.gmra.mrb[52].mxu1 %vm85_vm1, %v350_v20  ;;  %v10332_v20 = vld [vmem:[#allocation2 + $0x242] sm:$0xff] }
  0x92   :  { %8672 = vmatprep.mubr.msk.f32.mxu0 %vm85_vm1, %v10199_v19  ;;  %8233 = vmatprep.mubr.msk.f32.mxu1 %vm85_vm1, %v351_v21  ;;  %11872 = vst [vmem:[#allocation13_spill] sm:$0xff] %v10332_v20  ;;  %v10336_v21 = vld [vmem:[#allocation2 + $0x80] sm:$0xff] }
  0x95   :  { %8673 = vmatmul.mubr.msk.f32.gmra.mrb[20].mxu0 %vm85_vm1, %v10206_v22  ;;  %8234 = vmatmul.mubr.msk.f32.gmra.mrb[54].mxu1 %vm85_vm1, %v352_v24  ;;  %v10340_v24 = vld [vmem:[#allocation2 + $0x90] sm:$0xff] }
  0x96   :  { %8675 = vmatprep.mubr.msk.f32.mxu0 %vm85_vm1, %v10209_v23  ;;  %8236 = vmatprep.mubr.msk.f32.mxu1 %vm85_vm1, %v353_v25  ;;  %v10344_v25 = vld [vmem:[#allocation2 + $0x24a] sm:$0xff] }
  0x97   :  { %11873 = vst [vmem:[#allocation14_spill] sm:$0xff] %v10344_v25 }
  0x99   :  { %8676 = vmatmul.mubr.msk.f32.gmra.mrb[22].mxu0 %vm85_vm1, %v10216_v26  ;;  %8237 = vmatmul.mubr.msk.f32.gmra.mrb[56].mxu1 %vm85_vm1, %v354_v28  ;;  %v10348_v28 = vld [vmem:[#allocation2 + $0x25a] sm:$0xff] }
  0x9a   :  { %8678 = vmatprep.mubr.msk.f32.mxu0 %vm85_vm1, %v10219_v27  ;;  %8239 = vmatprep.mubr.msk.f32.mxu1 %vm85_vm1, %v355_v29  ;;  %11874 = vst [vmem:[#allocation15_spill] sm:$0xff] %v10348_v28  ;;  %v10352_v29 = vld [vmem:[#allocation2 + $0x98] sm:$0xff] }
  0x9d   :  { %8679 = vmatmul.mubr.msk.f32.gmra.mrb[24].mxu0 %vm85_vm1, %v10226_v30  ;;  %8240 = vmatmul.mubr.msk.f32.gmra.mrb[58].mxu1 %vm85_vm1, %v356_v33  ;;  %v10356_v33 = vld [vmem:[#allocation2 + $0xa8] sm:$0xff] }
  0x9e   :  { %8681 = vmatprep.mubr.msk.f32.mxu0 %vm85_vm1, %v10229_v32  ;;  %8242 = vmatprep.mubr.msk.f32.mxu1 %vm85_vm1, %v357_v34  ;;  %v10360_v34 = vld [vmem:[#allocation2 + $0x262] sm:$0xff] }
  0x9f   :  { %11875 = vst [vmem:[#allocation16_spill] sm:$0xff] %v10360_v34 }
  0xa1   :  { %8682 = vmatmul.mubr.msk.f32.gmra.mrb[26].mxu0 %vm85_vm1, %v10236_v35  ;;  %8243 = vmatmul.mubr.msk.f32.gmra.mrb[60].mxu1 %vm85_vm1, %v358_v37  ;;  %v10364_v37 = vld [vmem:[#allocation2 + $0x272] sm:$0xff] }
  0xa2   :  { %8684 = vmatprep.mubr.msk.f32.mxu0 %vm85_vm1, %v10239_v36  ;;  %8245 = vmatprep.mubr.msk.f32.mxu1 %vm85_vm1, %v359_v38  ;;  %11876 = vst [vmem:[#allocation17_spill] sm:$0xff] %v10364_v37  ;;  %v10368_v38 = vld [vmem:[#allocation2 + $0xb0] sm:$0xff] }
  0xa5   :  { %8685 = vmatmul.mubr.msk.f32.gmra.mrb[28].mxu0 %vm85_vm1, %v10246_v39  ;;  %8246 = vmatmul.mubr.msk.f32.gmra.mrb[62].mxu1 %vm85_vm1, %v360_v41  ;;  %v10376_v41 = vld [vmem:[#allocation2 + $0x27a] sm:$0xff] }
  0xa6   :  { %8687 = vmatprep.mubr.msk.f32.mxu0 %vm85_vm1, %v3684_v40  ;;  %8250 = vmatprep.mubr.msk.f32.mxu1 %vm85_vm1, %v232_v42  ;;  %v10372_v40 = vld [vmem:[#allocation2 + $0xc0] sm:$0xff]  ;;  %11877 = vst [vmem:[#allocation18_spill] sm:$0xff] %v10376_v41  ;;  %v10380_v42 = vld [vmem:[#allocation2 + $0x28a] sm:$0xff] }
  0xa7   :  { %11878 = vst [vmem:[#allocation19_spill] sm:$0xff] %v10380_v42 }
  0xa9   :  { %8688 = vmatmul.mubr.msk.f32.gmra.mrb[30].mxu0 %vm85_vm1, %v3685_v43  ;;  %8251 = vmatmul.mubr.msk.f32.vlgmr.msra.gmra.mrb[0].mxu1 %vm85_vm1, %v233_v46  ;;  %v10384_v43 = vld [vmem:[#allocation2 + $0xc8] sm:$0xff]  ;;  %v10388_v46 = vld [vmem:[#allocation2 + $0xd8] sm:$0xff] }
  0xaa   :  { %8690 = vmatprep.mubr.msk.f32.mxu0 %vm85_vm1, %v10254_v45  ;;  %8347 = vmatpush3.msk.msra.mxu1 %vm555_vm0, %v10069_v31  ;;  %v10288_v31 = vld [vmem:[#allocation2 + $0x38] sm:$0xff]  ;;  %v10503_v45 = vld [vmem:[#allocation2 + $0x1c8] sm:$0xff] }
  0xab   :  { %8253 = vmatprep.mubr.msk.f32.mxu1 %vm85_vm1, %v234_v49  ;;  %8444 = vmatprep.subr.msk.mxu1 %vm555_vm0, %v10268_v53  ;;  %v10392_v49 = vld [vmem:[#allocation2 + $0x292] sm:$0xff]  ;;  %11892 = vst [vmem:[#allocation33_spill] sm:$0xff] %v10503_v45 }
  0xac   :  { %11879 = vst [vmem:[#allocation20_spill] sm:$0xff] %v10392_v49 }
  0xad   :  { %8691 = vmatmul.mubr.msk.f32.gmra.mrb[32].mxu0 %vm85_vm1, %v10260_v50  ;;  %8254 = vmatmul.mubr.msk.f32.gmra.mrb[2].mxu1 %vm85_vm1, %v235_v56  ;;  %v10396_v56 = vld [vmem:[#allocation2 + $0x2a2] sm:$0xff]  ;;  %v3717_v50 = vld [vmem:[#allocation2 + $0x33a] sm:$0xff] }
  0xae   :  { %8693 = vmatprep.mubr.msk.f32.mxu0 %vm85_vm1, %v10263_v52  ;;  %8256 = vmatprep.mubr.msk.f32.mxu1 %vm85_vm1, %v10275_v57  ;;  %11880 = vst [vmem:[#allocation21_spill] sm:$0xff] %v10396_v56  ;;  %v10494_v52 = vld [vmem:[#allocation2 + $0x170] sm:$0xff] }
  0xb1   :  { %8694 = vmatmul.mubr.msk.f32.gmra.mrb[34].mxu0 %vm85_vm1, %v10281_v60  ;;  %8257 = vmatmul.mubr.msk.f32.gmra.mrb[4].mxu1 %vm85_vm1, %v10288_v31  ;;  %v3716_v60 = vld [vmem:[#allocation2 + $0x332] sm:$0xff] }
  0xb2   :  { %8696 = vmatprep.mubr.msk.f32.mxu0 %vm85_vm1, %v10284_v61  ;;  %8259 = vmatprep.mubr.msk.f32.mxu1 %vm85_vm1, %v10292_v0  ;;  %v10480_v61 = vld [vmem:[#allocation2 + $0x158] sm:$0xff] }
  0xb5   :  { %8697 = vmatmul.mubr.msk.f32.gmra.mrb[36].mxu0 %vm85_vm1, %v10296_v1  ;;  %8260 = vmatmul.mubr.msk.f32.gmra.mrb[6].mxu1 %vm85_vm1, %v10304_v5  ;;  %v10476_v1 = vld [vmem:[#allocation2 + $0x31a] sm:$0xff] }
  0xb6   :  { %8699 = vmatprep.mubr.msk.f32.mxu0 %vm85_vm1, %v10300_v4  ;;  %8262 = vmatprep.mubr.msk.f32.mxu1 %vm85_vm1, %v10308_v8  ;;  %v10464_v4 = vld [vmem:[#allocation2 + $0x140] sm:$0xff]  ;;  %11890 = vst [vmem:[#allocation31_spill] sm:$0xff] %v10476_v1 }
  0xb9   :  { %8700 = vmatmul.mubr.msk.f32.gmra.mrb[38].mxu0 %vm85_vm1, %v10312_v9  ;;  %8263 = vmatmul.mubr.msk.f32.gmra.mrb[8].mxu1 %vm85_vm1, %v10320_v13  ;;  %v10460_v9 = vld [vmem:[#allocation2 + $0x302] sm:$0xff] }
  0xba   :  { %8702 = vmatprep.mubr.msk.f32.mxu0 %vm85_vm1, %v10316_v12  ;;  %8265 = vmatprep.mubr.msk.f32.mxu1 %vm85_vm1, %v10324_v16  ;;  %v10448_v12 = vld [vmem:[#allocation2 + $0x128] sm:$0xff]  ;;  %11888 = vst [vmem:[#allocation29_spill] sm:$0xff] %v10460_v9 }
  0xbd   :  { %8703 = vmatmul.mubr.msk.f32.gmra.mrb[40].mxu0 %vm85_vm1, %v10328_v17  ;;  %8266 = vmatmul.mubr.msk.f32.gmra.mrb[10].mxu1 %vm85_vm1, %v10336_v21  ;;  %v10444_v17 = vld [vmem:[#allocation2 + $0x2ea] sm:$0xff] }
  0xbe   :  { %8705 = vmatprep.mubr.msk.f32.mxu0 %vm85_vm1, %v10332_v20  ;;  %8268 = vmatprep.mubr.msk.f32.mxu1 %vm85_vm1, %v10340_v24  ;;  %v10432_v20 = vld [vmem:[#allocation2 + $0x110] sm:$0xff]  ;;  %11886 = vst [vmem:[#allocation27_spill] sm:$0xff] %v10444_v17 }
  0xc1   :  { %8706 = vmatmul.mubr.msk.f32.gmra.mrb[42].mxu0 %vm85_vm1, %v10344_v25  ;;  %8269 = vmatmul.mubr.msk.f32.gmra.mrb[12].mxu1 %vm85_vm1, %v10352_v29  ;;  %v10428_v25 = vld [vmem:[#allocation2 + $0x2d2] sm:$0xff] }
  0xc2   :  { %8708 = vmatprep.mubr.msk.f32.mxu0 %vm85_vm1, %v10348_v28  ;;  %8271 = vmatprep.mubr.msk.f32.mxu1 %vm85_vm1, %v10356_v33  ;;  %v10416_v28 = vld [vmem:[#allocation2 + $0xf8] sm:$0xff]  ;;  %11884 = vst [vmem:[#allocation25_spill] sm:$0xff] %v10428_v25 }
  0xc5   :  { %8709 = vmatmul.mubr.msk.f32.gmra.mrb[44].mxu0 %vm85_vm1, %v10360_v34  ;;  %8272 = vmatmul.mubr.msk.f32.gmra.mrb[14].mxu1 %vm85_vm1, %v10368_v38  ;;  %v10412_v34 = vld [vmem:[#allocation2 + $0x2ba] sm:$0xff] }
  0xc6   :  { %8711 = vmatprep.mubr.msk.f32.mxu0 %vm85_vm1, %v10364_v37  ;;  %8274 = vmatprep.mubr.msk.f32.mxu1 %vm85_vm1, %v10372_v40  ;;  %v10400_v37 = vld [vmem:[#allocation2 + $0xe0] sm:$0xff]  ;;  %11882 = vst [vmem:[#allocation23_spill] sm:$0xff] %v10412_v34 }
  0xc9   :  { %8712 = vmatmul.mubr.msk.f32.gmra.mrb[46].mxu0 %vm85_vm1, %v10376_v41  ;;  %8275 = vmatmul.mubr.msk.f32.gmra.mrb[16].mxu1 %vm85_vm1, %v10384_v43  ;;  %v10404_v41 = vld [vmem:[#allocation2 + $0xf0] sm:$0xff] }
  0xca   :  { %8714 = vmatprep.mubr.msk.f32.mxu0 %vm85_vm1, %v10380_v42  ;;  %8277 = vmatprep.mubr.msk.f32.mxu1 %vm85_vm1, %v10388_v46  ;;  %v10408_v42 = vld [vmem:[#allocation2 + $0x2aa] sm:$0xff] }
  0xcb   :  { %11881 = vst [vmem:[#allocation22_spill] sm:$0xff] %v10408_v42 }
  0xcd   :  { %8715 = vmatmul.mubr.msk.f32.gmra.mrb[48].mxu0 %vm85_vm1, %v10392_v49  ;;  %8278 = vmatmul.mubr.msk.f32.gmra.mrb[18].mxu1 %vm85_vm1, %v10400_v37  ;;  %v10420_v49 = vld [vmem:[#allocation2 + $0x108] sm:$0xff] }
  0xce   :  { %8717 = vmatprep.mubr.msk.f32.mxu0 %vm85_vm1, %v10396_v56  ;;  %8280 = vmatprep.mubr.msk.f32.mxu1 %vm85_vm1, %v10404_v41  ;;  %v10424_v56 = vld [vmem:[#allocation2 + $0x2c2] sm:$0xff] }
  0xcf   :  { %11883 = vst [vmem:[#allocation24_spill] sm:$0xff] %v10424_v56 }
  0xd1   :  { %8718 = vmatmul.mubr.msk.f32.gmra.mrb[50].mxu0 %vm85_vm1, %v10408_v42  ;;  %8281 = vmatmul.mubr.msk.f32.gmra.mrb[20].mxu1 %vm85_vm1, %v10416_v28  ;;  %v10436_v42 = vld [vmem:[#allocation2 + $0x120] sm:$0xff] }
  0xd2   :  { %8720 = vmatprep.mubr.msk.f32.mxu0 %vm85_vm1, %v10412_v34  ;;  %8283 = vmatprep.mubr.msk.f32.mxu1 %vm85_vm1, %v10420_v49  ;;  %v10440_v34 = vld [vmem:[#allocation2 + $0x2da] sm:$0xff] }
  0xd3   :  { %11885 = vst [vmem:[#allocation26_spill] sm:$0xff] %v10440_v34 }
  0xd5   :  { %8721 = vmatmul.mubr.msk.f32.gmra.mrb[52].mxu0 %vm85_vm1, %v10424_v56  ;;  %8284 = vmatmul.mubr.msk.f32.gmra.mrb[22].mxu1 %vm85_vm1, %v10432_v20  ;;  %v10452_v56 = vld [vmem:[#allocation2 + $0x138] sm:$0xff] }
  0xd6   :  { %8723 = vmatprep.mubr.msk.f32.mxu0 %vm85_vm1, %v10428_v25  ;;  %8286 = vmatprep.mubr.msk.f32.mxu1 %vm85_vm1, %v10436_v42  ;;  %v10456_v25 = vld [vmem:[#allocation2 + $0x2f2] sm:$0xff] }
  0xd7   :  { %11887 = vst [vmem:[#allocation28_spill] sm:$0xff] %v10456_v25 }
  0xd9   :  { %8724 = vmatmul.mubr.msk.f32.gmra.mrb[54].mxu0 %vm85_vm1, %v10440_v34  ;;  %8287 = vmatmul.mubr.msk.f32.gmra.mrb[24].mxu1 %vm85_vm1, %v10448_v12  ;;  %v10468_v34 = vld [vmem:[#allocation2 + $0x150] sm:$0xff] }
  0xda   :  { %8726 = vmatprep.mubr.msk.f32.mxu0 %vm85_vm1, %v10444_v17  ;;  %8289 = vmatprep.mubr.msk.f32.mxu1 %vm85_vm1, %v10452_v56  ;;  %v10472_v17 = vld [vmem:[#allocation2 + $0x30a] sm:$0xff] }
  0xdb   :  { %11889 = vst [vmem:[#allocation30_spill] sm:$0xff] %v10472_v17 }
  0xdd   :  { %8727 = vmatmul.mubr.msk.f32.gmra.mrb[56].mxu0 %vm85_vm1, %v10456_v25  ;;  %8290 = vmatmul.mubr.msk.f32.gmra.mrb[26].mxu1 %vm85_vm1, %v10464_v4  ;;  %v10484_v25 = vld [vmem:[#allocation2 + $0x168] sm:$0xff] }
  0xde   :  { %8729 = vmatprep.mubr.msk.f32.mxu0 %vm85_vm1, %v10460_v9  ;;  %8292 = vmatprep.mubr.msk.f32.mxu1 %vm85_vm1, %v10468_v34  ;;  %v10488_v9 = vld [vmem:[#allocation2 + $0x322] sm:$0xff] }
  0xdf   :  { %11891 = vst [vmem:[#allocation32_spill] sm:$0xff] %v10488_v9 }
  0xe1   :  { %8730 = vmatmul.mubr.msk.f32.gmra.mrb[58].mxu0 %vm85_vm1, %v10472_v17  ;;  %8293 = vmatmul.mubr.msk.f32.gmra.mrb[28].mxu1 %vm85_vm1, %v10480_v61  ;;  %v264_v17 = vld [vmem:[#allocation2 + $0x1b0] sm:$0xff] }
  0xe2   :  { %8732 = vmatprep.mubr.msk.f32.mxu0 %vm85_vm1, %v10476_v1  ;;  %8295 = vmatprep.mubr.msk.f32.mxu1 %vm85_vm1, %v10484_v25  ;;  %v265_v1 = vld [vmem:[#allocation2 + $0x1b8] sm:$0xff] }
  0xe5   :  { %8733 = vmatmul.mubr.msk.f32.gmra.mrb[60].mxu0 %vm85_vm1, %v10488_v9  ;;  %8296 = vmatmul.mubr.msk.f32.gmra.mrb[30].mxu1 %vm85_vm1, %v10494_v52  ;;  %v10515_v9 = vld [vmem:[%s11820_s1 + $0x20] sm:$0xf] }
  0xe6   :  { %8735 = vmatprep.mubr.msk.f32.mxu0 %vm85_vm1, %v3716_v60  ;;  %8298 = vmatprep.mubr.msk.f32.mxu1 %vm85_vm1, %v264_v17  ;;  %v10510_v60 = vld [vmem:[#allocation2 + $0x1d0] sm:$0xff]  ;;  %v10583_v17 = vld [vmem:[#allocation2 + $0x258] sm:$0xff] }
  0xe7   :  { %11893 = vst [vmem:[#allocation34_spill] sm:$0xff] %v10510_v60 }
  0xe9   :  { %8736 = vmatmul.mubr.msk.f32.gmra.mrb[62].mxu0 %vm85_vm1, %v3717_v50  ;;  %8299 = vmatmul.mubr.msk.f32.gmra.mrb[32].mxu1 %vm85_vm1, %v265_v1  ;;  %v10519_v50 = vld [vmem:[#allocation2 + $0x1e0] sm:$0xff]  ;;  %v10555_v1 = vld [vmem:[#allocation2 + $0x218] sm:$0xff] }
  0xea   :  { %8740 = vmatprep.mubr.msk.f32.mxu0 %vm85_vm1, %v10275_v57  ;;  %8301 = vmatprep.mubr.msk.f32.mxu1 %vm85_vm1, %v10503_v45  ;;  %v10531_v57 = vld [vmem:[#allocation2 + $0x1e8] sm:$0xff] }
  0xeb   :  { %v1525_v45 = vld [vmem:[#allocation2 + $0xa] sm:$0xff] }
  0xed   :  { %8741 = vmatmul.mubr.msk.f32.vlgmr.msra.gmra.mrb[0].mxu0 %vm85_vm1, %v10288_v31  ;;  %8302 = vmatmul.mubr.msk.f32.gmra.mrb[34].mxu1 %vm85_vm1, %v10510_v60  ;;  %v10535_v31 = vld [vmem:[#allocation2 + $0x1f8] sm:$0xff]  ;;  %v4396_v60 = vld [vmem:[#allocation2 + $0x1a0] sm:$0xff] }
  0xee   :  { %8837 = vmatpush3.msk.msra.mxu0 %vm555_vm0, %v10117_v48  ;;  %8743 = vmatprep.mubr.msk.f32.mxu0 %vm85_vm1, %v10292_v0  ;;  %v10543_v48 = vld [vmem:[#allocation2 + $0x200] sm:$0xff]  ;;  %v10547_v0 = vld [vmem:[#allocation2 + $0x210] sm:$0xff] }
  0xef   :  { %8934 = vmatprep.subr.msk.mxu0 %vm555_vm0, %v10515_v9  ;;  %8304 = vmatprep.mubr.msk.f32.mxu1 %vm85_vm1, %v10519_v50 }
  0xf1   :  { %8744 = vmatmul.mubr.msk.f32.gmra.mrb[2].mxu0 %vm85_vm1, %v10304_v5  ;;  %8305 = vmatmul.mubr.msk.f32.gmra.mrb[36].mxu1 %vm85_vm1, %v10531_v57  ;;  %v10559_v5 = vld [vmem:[#allocation2 + $0x228] sm:$0xff] }
  0xf2   :  { %8746 = vmatprep.mubr.msk.f32.mxu0 %vm85_vm1, %v10308_v8  ;;  %8307 = vmatprep.mubr.msk.f32.mxu1 %vm85_vm1, %v10535_v31  ;;  %v10567_v8 = vld [vmem:[#allocation2 + $0x230] sm:$0xff] }
  0xf5   :  { %8747 = vmatmul.mubr.msk.f32.gmra.mrb[4].mxu0 %vm85_vm1, %v10320_v13  ;;  %8308 = vmatmul.mubr.msk.f32.gmra.mrb[38].mxu1 %vm85_vm1, %v10543_v48  ;;  %v10571_v13 = vld [vmem:[#allocation2 + $0x240] sm:$0xff] }
  0xf6   :  { %8749 = vmatprep.mubr.msk.f32.mxu0 %vm85_vm1, %v10324_v16  ;;  %8310 = vmatprep.mubr.msk.f32.mxu1 %vm85_vm1, %v10547_v0  ;;  %v10579_v16 = vld [vmem:[#allocation2 + $0x248] sm:$0xff] }
  0xf9   :  { %8750 = vmatmul.mubr.msk.f32.gmra.mrb[6].mxu0 %vm85_vm1, %v10336_v21  ;;  %8311 = vmatmul.mubr.msk.f32.gmra.mrb[40].mxu1 %vm85_vm1, %v10555_v1  ;;  %v10591_v21 = vld [vmem:[#allocation2 + $0x260] sm:$0xff] }
  0xfa   :  { %8752 = vmatprep.mubr.msk.f32.mxu0 %vm85_vm1, %v10340_v24  ;;  %8313 = vmatprep.mubr.msk.f32.mxu1 %vm85_vm1, %v10559_v5  ;;  %v10595_v24 = vld [vmem:[#allocation2 + $0x270] sm:$0xff] }
  0xfd   :  { %8753 = vmatmul.mubr.msk.f32.gmra.mrb[8].mxu0 %vm85_vm1, %v10352_v29  ;;  %8314 = vmatmul.mubr.msk.f32.gmra.mrb[42].mxu1 %vm85_vm1, %v10567_v8  ;;  %v10603_v29 = vld [vmem:[#allocation2 + $0x278] sm:$0xff] }
  0xfe   :  { %8755 = vmatprep.mubr.msk.f32.mxu0 %vm85_vm1, %v10356_v33  ;;  %8316 = vmatprep.mubr.msk.f32.mxu1 %vm85_vm1, %v10571_v13  ;;  %v10607_v33 = vld [vmem:[#allocation2 + $0x288] sm:$0xff] }
 0x101   :  { %8756 = vmatmul.mubr.msk.f32.gmra.mrb[10].mxu0 %vm85_vm1, %v10368_v38  ;;  %8317 = vmatmul.mubr.msk.f32.gmra.mrb[44].mxu1 %vm85_vm1, %v10579_v16  ;;  %v10615_v38 = vld [vmem:[#allocation2 + $0x290] sm:$0xff] }
 0x102   :  { %8758 = vmatprep.mubr.msk.f32.mxu0 %vm85_vm1, %v10372_v40  ;;  %8319 = vmatprep.mubr.msk.f32.mxu1 %vm85_vm1, %v10583_v17  ;;  %v10619_v40 = vld [vmem:[#allocation2 + $0x2a0] sm:$0xff] }
 0x105   :  { %8759 = vmatmul.mubr.msk.f32.gmra.mrb[12].mxu0 %vm85_vm1, %v10384_v43  ;;  %8320 = vmatmul.mubr.msk.f32.gmra.mrb[46].mxu1 %vm85_vm1, %v10591_v21  ;;  %v10643_v43 = vld [vmem:[#allocation2 + $0x2d0] sm:$0xff] }
 0x106   :  { %8761 = vmatprep.mubr.msk.f32.mxu0 %vm85_vm1, %v10388_v46  ;;  %8322 = vmatprep.mubr.msk.f32.mxu1 %vm85_vm1, %v10595_v24  ;;  %v10667_v46 = vld [vmem:[#allocation2 + $0x300] sm:$0xff] }
 0x109   :  { %8762 = vmatmul.mubr.msk.f32.gmra.mrb[14].mxu0 %vm85_vm1, %v10400_v37  ;;  %8323 = vmatmul.mubr.msk.f32.gmra.mrb[48].mxu1 %vm85_vm1, %v10603_v29  ;;  %v10627_v37 = vld [vmem:[#allocation2 + $0x2a8] sm:$0xff] }
 0x10a   :  { %8764 = vmatprep.mubr.msk.f32.mxu0 %vm85_vm1, %v10404_v41  ;;  %8325 = vmatprep.mubr.msk.f32.mxu1 %vm85_vm1, %v10607_v33  ;;  %v10631_v41 = vld [vmem:[#allocation2 + $0x2b8] sm:$0xff] }
 0x10d   :  { %8765 = vmatmul.mubr.msk.f32.gmra.mrb[16].mxu0 %vm85_vm1, %v10416_v28  ;;  %8326 = vmatmul.mubr.msk.f32.gmra.mrb[50].mxu1 %vm85_vm1, %v10615_v38  ;;  %v10639_v28 = vld [vmem:[#allocation2 + $0x2c0] sm:$0xff] }
 0x10e   :  { %8767 = vmatprep.mubr.msk.f32.mxu0 %vm85_vm1, %v10420_v49  ;;  %8328 = vmatprep.mubr.msk.f32.mxu1 %vm85_vm1, %v10619_v40  ;;  %v10681_v49 = vld [vmem:[#allocation2 + $0x318] sm:$0xff] }
 0x111   :  { %8768 = vmatmul.mubr.msk.f32.gmra.mrb[18].mxu0 %vm85_vm1, %v10432_v20  ;;  %8329 = vmatmul.mubr.msk.f32.gmra.mrb[52].mxu1 %vm85_vm1, %v10627_v37  ;;  %v10651_v20 = vld [vmem:[#allocation2 + $0x2d8] sm:$0xff] }
 0x112   :  { %8770 = vmatprep.mubr.msk.f32.mxu0 %vm85_vm1, %v10436_v42  ;;  %8331 = vmatprep.mubr.msk.f32.mxu1 %vm85_vm1, %v10631_v41  ;;  %v10655_v42 = vld [vmem:[#allocation2 + $0x2e8] sm:$0xff] }
 0x115   :  { %8771 = vmatmul.mubr.msk.f32.gmra.mrb[20].mxu0 %vm85_vm1, %v10448_v12  ;;  %8332 = vmatmul.mubr.msk.f32.gmra.mrb[54].mxu1 %vm85_vm1, %v10639_v28  ;;  %v10663_v12 = vld [vmem:[#allocation2 + $0x2f0] sm:$0xff] }
 0x116   :  { %8773 = vmatprep.mubr.msk.f32.mxu0 %vm85_vm1, %v10452_v56  ;;  %8334 = vmatprep.mubr.msk.f32.mxu1 %vm85_vm1, %v10643_v43  ;;  %v10691_v56 = vld [vmem:[#allocation2 + $0x320] sm:$0xff] }
 0x119   :  { %8774 = vmatmul.mubr.msk.f32.gmra.mrb[22].mxu0 %vm85_vm1, %v10464_v4  ;;  %8335 = vmatmul.mubr.msk.f32.gmra.mrb[56].mxu1 %vm85_vm1, %v10651_v20  ;;  %v10673_v4 = vld [vmem:[#allocation2 + $0x180] sm:$0xff] }
 0x11a   :  { %8776 = vmatprep.mubr.msk.f32.mxu0 %vm85_vm1, %v10468_v34  ;;  %8337 = vmatprep.mubr.msk.f32.mxu1 %vm85_vm1, %v10655_v42  ;;  %11894 = vst [vmem:[#allocation35_spill] sm:$0xff] %v10673_v4  ;;  %v10677_v34 = vld [vmem:[#allocation2 + $0x308] sm:$0xff] }
 0x11d   :  { %8777 = vmatmul.mubr.msk.f32.gmra.mrb[24].mxu0 %vm85_vm1, %v10480_v61  ;;  %8338 = vmatmul.mubr.msk.f32.gmra.mrb[58].mxu1 %vm85_vm1, %v10663_v12  ;;  %v10685_v61 = vld [vmem:[#allocation2 + $0x188] sm:$0xff] }
 0x11e   :  { %8779 = vmatprep.mubr.msk.f32.mxu0 %vm85_vm1, %v10484_v25  ;;  %8340 = vmatprep.mubr.msk.f32.mxu1 %vm85_vm1, %v10667_v46  ;;  %v4395_v25 = vld [vmem:[#allocation2 + $0x198] sm:$0xff] }
 0x121   :  { %8780 = vmatmul.mubr.msk.f32.gmra.mrb[26].mxu0 %vm85_vm1, %v10494_v52  ;;  %8341 = vmatmul.mubr.msk.f32.gmra.mrb[60].mxu1 %vm85_vm1, %v10677_v34  ;;  %v1524_v52 = vld [vmem:[#allocation2 + $0x2] sm:$0xff] }
 0x122   :  { %8782 = vmatprep.mubr.msk.f32.mxu0 %vm85_vm1, %v10673_v4  ;;  %8343 = vmatprep.mubr.msk.f32.mxu1 %vm85_vm1, %v10681_v49  ;;  %v1526_v4 = vld [vmem:[#allocation2 + $0x1a] sm:$0xff] }
 0x125   :  { %8783 = vmatmul.mubr.msk.f32.gmra.mrb[28].mxu0 %vm85_vm1, %v10685_v61  ;;  %8344 = vmatmul.mubr.msk.f32.gmra.mrb[62].mxu1 %vm85_vm1, %v10691_v56 }
 0x126   :  { %8785 = vmatprep.mubr.msk.f32.mxu0 %vm85_vm1, %v4395_v25  ;;  %8348 = vmatprep.mubr.msk.f32.mxu1 %vm85_vm1, %v1524_v52  ;;  %v1527_v25 = vld [vmem:[#allocation2 + $0x22] sm:$0xff]  ;;  %v10711_v52 = vld [vmem:[%s11820_s1 + $0x10] sm:$0xf] }
 0x129   :  { %8786 = vmatmul.mubr.msk.f32.gmra.mrb[30].mxu0 %vm85_vm1, %v4396_v60  ;;  %8349 = vmatmul.mubr.msk.f32.vlgmr.msra.gmra.mrb[0].mxu1 %vm85_vm1, %v1525_v45  ;;  %v5087_v45 = vld [vmem:[#allocation2 + $0xc1] sm:$0xff]  ;;  %v11906_v60 = vld [vmem:[#allocation14_spill] sm:$0xff] }
 0x12a   :  { %8788 = vmatprep.mubr.msk.f32.mxu0 %vm85_vm1, %v10519_v50  ;;  %8445 = vmatpush3.msk.msra.mxu1 %vm555_vm0, %v10268_v53  ;;  %v11905_v53 = vld [vmem:[#allocation13_spill] sm:$0xff] }
 0x12b   :  { %8351 = vmatprep.mubr.msk.f32.mxu1 %vm85_vm1, %v1526_v4  ;;  %9032 = vmatprep.subr.msk.mxu1 %vm555_vm0, %v10711_v52  ;;  %v5089_v4 = vld [vmem:[#allocation2 + $0xd9] sm:$0xff] }
 0x12d   :  { %8789 = vmatmul.mubr.msk.f32.gmra.mrb[32].mxu0 %vm85_vm1, %v10531_v57  ;;  %8352 = vmatmul.mubr.msk.f32.gmra.mrb[2].mxu1 %vm85_vm1, %v1527_v25  ;;  %v11907_v25 = vld [vmem:[#allocation15_spill] sm:$0xff] }
 0x12e   :  { %8791 = vmatprep.mubr.msk.f32.mxu0 %vm85_vm1, %v10535_v31  ;;  %8354 = vmatprep.mubr.msk.f32.mxu1 %vm85_vm1, %v10093_v44  ;;  %v10814_v44 = vld [vmem:[#allocation2 + $0x330] sm:$0xff] }
 0x131   :  { %8792 = vmatmul.mubr.msk.f32.gmra.mrb[34].mxu0 %vm85_vm1, %v10543_v48  ;;  %8355 = vmatmul.mubr.msk.f32.gmra.mrb[4].mxu1 %vm85_vm1, %v10101_v47  ;;  %v10822_v47 = vld [vmem:[#allocation2 + $0x338] sm:$0xff] }
 0x132   :  { %8794 = vmatprep.mubr.msk.f32.mxu0 %vm85_vm1, %v10547_v0  ;;  %8357 = vmatprep.mubr.msk.f32.mxu1 %vm85_vm1, %v10110_v51  ;;  %v4427_v51 = vld [vmem:[#allocation2 + $0x348] sm:$0xff] }
 0x135   :  { %8795 = vmatmul.mubr.msk.f32.gmra.mrb[36].mxu0 %vm85_vm1, %v10555_v1  ;;  %8358 = vmatmul.mubr.msk.f32.gmra.mrb[6].mxu1 %vm85_vm1, %v10126_v54  ;;  %v1556_v54 = vld [vmem:[#allocation2 + $0x1b2] sm:$0xff] }
 0x136   :  { %8797 = vmatprep.mubr.msk.f32.mxu0 %vm85_vm1, %v10559_v5  ;;  %8360 = vmatprep.mubr.msk.f32.mxu1 %vm85_vm1, %v10129_v55  ;;  %v4428_v55 = vld [vmem:[#allocation2 + $0x350] sm:$0xff] }
 0x139   :  { %8798 = vmatmul.mubr.msk.f32.gmra.mrb[38].mxu0 %vm85_vm1, %v10567_v8  ;;  %8361 = vmatmul.mubr.msk.f32.gmra.mrb[8].mxu1 %vm85_vm1, %v10136_v58  ;;  %v5075_v58 = vld [vmem:[#allocation2 + $0x31] sm:$0xff] }
 0x13a   :  { %8800 = vmatprep.mubr.msk.f32.mxu0 %vm85_vm1, %v10571_v13  ;;  %8363 = vmatprep.mubr.msk.f32.mxu1 %vm85_vm1, %v10139_v59  ;;  %v1557_v59 = vld [vmem:[#allocation2 + $0x1ba] sm:$0xff] }
 0x13d   :  { %8801 = vmatmul.mubr.msk.f32.gmra.mrb[40].mxu0 %vm85_vm1, %v10579_v16  ;;  %8364 = vmatmul.mubr.msk.f32.gmra.mrb[10].mxu1 %vm85_vm1, %v10146_v62  ;;  %v5076_v62 = vld [vmem:[#allocation2 + $0x39] sm:$0xff] }
 0x13e   :  { %8803 = vmatprep.mubr.msk.f32.mxu0 %vm85_vm1, %v10583_v17  ;;  %8366 = vmatprep.mubr.msk.f32.mxu1 %vm85_vm1, %v10149_v63  ;;  %v5077_v63 = vld [vmem:[#allocation2 + $0x49] sm:$0xff] }
 0x141   :  { %8804 = vmatmul.mubr.msk.f32.gmra.mrb[42].mxu0 %vm85_vm1, %v10591_v21  ;;  %8367 = vmatmul.mubr.msk.f32.gmra.mrb[12].mxu1 %vm85_vm1, %v10156_v2  ;;  %v11895_v2 = vld [vmem:[#allocation3_spill] sm:$0xff] }
 0x142   :  { %8806 = vmatprep.mubr.msk.f32.mxu0 %vm85_vm1, %v10595_v24  ;;  %8369 = vmatprep.mubr.msk.f32.mxu1 %vm85_vm1, %v10159_v3  ;;  %v5078_v3 = vld [vmem:[#allocation2 + $0x51] sm:$0xff] }
 0x145   :  { %8807 = vmatmul.mubr.msk.f32.gmra.mrb[44].mxu0 %vm85_vm1, %v10603_v29  ;;  %8370 = vmatmul.mubr.msk.f32.gmra.mrb[14].mxu1 %vm85_vm1, %v10166_v6  ;;  %v11896_v6 = vld [vmem:[#allocation4_spill] sm:$0xff] }
 0x146   :  { %8809 = vmatprep.mubr.msk.f32.mxu0 %vm85_vm1, %v10607_v33  ;;  %8372 = vmatprep.mubr.msk.f32.mxu1 %vm85_vm1, %v10169_v7  ;;  %v5079_v7 = vld [vmem:[#allocation2 + $0x61] sm:$0xff] }
 0x149   :  { %8810 = vmatmul.mubr.msk.f32.gmra.mrb[46].mxu0 %vm85_vm1, %v10615_v38  ;;  %8373 = vmatmul.mubr.msk.f32.gmra.mrb[16].mxu1 %vm85_vm1, %v10176_v10  ;;  %v11897_v10 = vld [vmem:[#allocation5_spill] sm:$0xff] }
 0x14a   :  { %8812 = vmatprep.mubr.msk.f32.mxu0 %vm85_vm1, %v10619_v40  ;;  %8375 = vmatprep.mubr.msk.f32.mxu1 %vm85_vm1, %v10179_v11  ;;  %v5080_v11 = vld [vmem:[#allocation2 + $0x69] sm:$0xff] }
 0x14d   :  { %8813 = vmatmul.mubr.msk.f32.gmra.mrb[48].mxu0 %vm85_vm1, %v10627_v37  ;;  %8376 = vmatmul.mubr.msk.f32.gmra.mrb[18].mxu1 %vm85_vm1, %v10186_v14  ;;  %v11898_v14 = vld [vmem:[#allocation6_spill] sm:$0xff] }
 0x14e   :  { %8815 = vmatprep.mubr.msk.f32.mxu0 %vm85_vm1, %v10631_v41  ;;  %8378 = vmatprep.mubr.msk.f32.mxu1 %vm85_vm1, %v10189_v15  ;;  %v5081_v15 = vld [vmem:[#allocation2 + $0x79] sm:$0xff] }
 0x151   :  { %8816 = vmatmul.mubr.msk.f32.gmra.mrb[50].mxu0 %vm85_vm1, %v10639_v28  ;;  %8379 = vmatmul.mubr.msk.f32.gmra.mrb[20].mxu1 %vm85_vm1, %v10196_v18  ;;  %v11899_v18 = vld [vmem:[#allocation7_spill] sm:$0xff] }
 0x152   :  { %8818 = vmatprep.mubr.msk.f32.mxu0 %vm85_vm1, %v10643_v43  ;;  %8381 = vmatprep.mubr.msk.f32.mxu1 %vm85_vm1, %v10199_v19  ;;  %v5082_v19 = vld [vmem:[#allocation2 + $0x81] sm:$0xff] }
 0x155   :  { %8819 = vmatmul.mubr.msk.f32.gmra.mrb[52].mxu0 %vm85_vm1, %v10651_v20  ;;  %8382 = vmatmul.mubr.msk.f32.gmra.mrb[22].mxu1 %vm85_vm1, %v10206_v22  ;;  %v11900_v22 = vld [vmem:[#allocation8_spill] sm:$0xff] }
 0x156   :  { %8821 = vmatprep.mubr.msk.f32.mxu0 %vm85_vm1, %v10655_v42  ;;  %8384 = vmatprep.mubr.msk.f32.mxu1 %vm85_vm1, %v10209_v23  ;;  %v5083_v23 = vld [vmem:[#allocation2 + $0x91] sm:$0xff] }
 0x159   :  { %8822 = vmatmul.mubr.msk.f32.gmra.mrb[54].mxu0 %vm85_vm1, %v10663_v12  ;;  %8385 = vmatmul.mubr.msk.f32.gmra.mrb[24].mxu1 %vm85_vm1, %v10216_v26  ;;  %v11901_v26 = vld [vmem:[#allocation9_spill] sm:$0xff] }
 0x15a   :  { %8824 = vmatprep.mubr.msk.f32.mxu0 %vm85_vm1, %v10667_v46  ;;  %8387 = vmatprep.mubr.msk.f32.mxu1 %vm85_vm1, %v10219_v27  ;;  %v5084_v27 = vld [vmem:[#allocation2 + $0x99] sm:$0xff] }
 0x15d   :  { %8825 = vmatmul.mubr.msk.f32.gmra.mrb[56].mxu0 %vm85_vm1, %v10677_v34  ;;  %8388 = vmatmul.mubr.msk.f32.gmra.mrb[26].mxu1 %vm85_vm1, %v10226_v30  ;;  %v11902_v30 = vld [vmem:[#allocation10_spill] sm:$0xff] }
 0x15e   :  { %8827 = vmatprep.mubr.msk.f32.mxu0 %vm85_vm1, %v10681_v49  ;;  %8390 = vmatprep.mubr.msk.f32.mxu1 %vm85_vm1, %v10229_v32  ;;  %v5085_v32 = vld [vmem:[#allocation2 + $0xa9] sm:$0xff] }
 0x161   :  { %8828 = vmatmul.mubr.msk.f32.gmra.mrb[58].mxu0 %vm85_vm1, %v10691_v56  ;;  %8391 = vmatmul.mubr.msk.f32.gmra.mrb[28].mxu1 %vm85_vm1, %v10236_v35  ;;  %v11903_v35 = vld [vmem:[#allocation11_spill] sm:$0xff] }
 0x162   :  { %8830 = vmatprep.mubr.msk.f32.mxu0 %vm85_vm1, %v10814_v44  ;;  %8393 = vmatprep.mubr.msk.f32.mxu1 %vm85_vm1, %v10239_v36  ;;  %v5086_v36 = vld [vmem:[#allocation2 + $0xb1] sm:$0xff] }
 0x165   :  { %8831 = vmatmul.mubr.msk.f32.gmra.mrb[60].mxu0 %vm85_vm1, %v10822_v47  ;;  %8394 = vmatmul.mubr.msk.f32.gmra.mrb[30].mxu1 %vm85_vm1, %v10246_v39  ;;  %v11904_v39 = vld [vmem:[#allocation12_spill] sm:$0xff] }
 0x166   :  { %8833 = vmatprep.mubr.msk.f32.mxu0 %vm85_vm1, %v4427_v51  ;;  %8396 = vmatprep.mubr.msk.f32.mxu1 %vm85_vm1, %v1556_v54  ;;  %v5090_v51 = vld [vmem:[#allocation2 + $0xe1] sm:$0xff] }
 0x167   :  { %v11908_v54 = vld [vmem:[#allocation16_spill] sm:$0xff] }
 0x169   :  { %8834 = vmatmul.mubr.msk.f32.gmra.mrb[62].mxu0 %vm85_vm1, %v4428_v55  ;;  %8397 = vmatmul.mubr.msk.f32.gmra.mrb[32].mxu1 %vm85_vm1, %v1557_v59  ;;  %v5091_v55 = vld [vmem:[#allocation2 + $0xf1] sm:$0xff]  ;;  %v5092_v59 = vld [vmem:[#allocation2 + $0xf9] sm:$0xff] }
 0x16a   :  { %8838 = vmatprep.mubr.msk.f32.mxu0 %vm85_vm1, %v5075_v58  ;;  %8399 = vmatprep.mubr.msk.f32.mxu1 %vm85_vm1, %v11895_v2  ;;  %v11909_v58 = vld [vmem:[#allocation17_spill] sm:$0xff]  ;;  %v11911_v2 = vld [vmem:[#allocation19_spill] sm:$0xff] }
 0x16d   :  { %8839 = vmatmul.mubr.msk.f32.vlgmr.msra.gmra.mrb[0].mxu0 %vm85_vm1, %v5076_v62  ;;  %8400 = vmatmul.mubr.msk.f32.gmra.mrb[34].mxu1 %vm85_vm1, %v11896_v6  ;;  %v11910_v62 = vld [vmem:[#allocation18_spill] sm:$0xff]  ;;  %v11912_v6 = vld [vmem:[#allocation20_spill] sm:$0xff] }
 0x16e   :  { %8935 = vmatpush3.msk.msra.mxu0 %vm555_vm0, %v10515_v9  ;;  %8841 = vmatprep.mubr.msk.f32.mxu0 %vm85_vm1, %v5077_v63  ;;  %v5088_v9 = vld [vmem:[#allocation2 + $0xc9] sm:$0xff] }
 0x16f   :  { %8402 = vmatprep.mubr.msk.f32.mxu1 %vm85_vm1, %v11897_v10  ;;  %v5093_v63 = vld [vmem:[#allocation2 + $0x109] sm:$0xff] }
 0x170   :  { %v11913_v10 = vld [vmem:[#allocation21_spill] sm:$0xff] }
 0x171   :  { %8842 = vmatmul.mubr.msk.f32.gmra.mrb[2].mxu0 %vm85_vm1, %v5078_v3  ;;  %8403 = vmatmul.mubr.msk.f32.gmra.mrb[36].mxu1 %vm85_vm1, %v11898_v14  ;;  %v5094_v3 = vld [vmem:[#allocation2 + $0x111] sm:$0xff] }
 0x172   :  { %8844 = vmatprep.mubr.msk.f32.mxu0 %vm85_vm1, %v5079_v7  ;;  %8405 = vmatprep.mubr.msk.f32.mxu1 %vm85_vm1, %v11899_v18  ;;  %v5095_v7 = vld [vmem:[#allocation2 + $0x121] sm:$0xff]  ;;  %v11914_v14 = vld [vmem:[#allocation22_spill] sm:$0xff] }
 0x173   :  { %v11915_v18 = vld [vmem:[#allocation23_spill] sm:$0xff] }
 0x175   :  { %8845 = vmatmul.mubr.msk.f32.gmra.mrb[4].mxu0 %vm85_vm1, %v5080_v11  ;;  %8406 = vmatmul.mubr.msk.f32.gmra.mrb[38].mxu1 %vm85_vm1, %v11900_v22  ;;  %v5096_v11 = vld [vmem:[#allocation2 + $0x129] sm:$0xff] }
 0x176   :  { %8847 = vmatprep.mubr.msk.f32.mxu0 %vm85_vm1, %v5081_v15  ;;  %8408 = vmatprep.mubr.msk.f32.mxu1 %vm85_vm1, %v11901_v26  ;;  %v5097_v15 = vld [vmem:[#allocation2 + $0x139] sm:$0xff]  ;;  %v11916_v22 = vld [vmem:[#allocation24_spill] sm:$0xff]  ;;  %v11917_v26 = vld [vmem:[#allocation25_spill] sm:$0xff] }
 0x179   :  { %8848 = vmatmul.mubr.msk.f32.gmra.mrb[6].mxu0 %vm85_vm1, %v5082_v19  ;;  %8409 = vmatmul.mubr.msk.f32.gmra.mrb[40].mxu1 %vm85_vm1, %v11902_v30  ;;  %v5098_v19 = vld [vmem:[#allocation2 + $0x141] sm:$0xff]  ;;  %v11918_v30 = vld [vmem:[#allocation26_spill] sm:$0xff] }
 0x17a   :  { %8850 = vmatprep.mubr.msk.f32.mxu0 %vm85_vm1, %v5083_v23  ;;  %8411 = vmatprep.mubr.msk.f32.mxu1 %vm85_vm1, %v11903_v35  ;;  %v5099_v23 = vld [vmem:[#allocation2 + $0x151] sm:$0xff]  ;;  %v11919_v35 = vld [vmem:[#allocation27_spill] sm:$0xff] }
 0x17d   :  { %8851 = vmatmul.mubr.msk.f32.gmra.mrb[8].mxu0 %vm85_vm1, %v5084_v27  ;;  %8412 = vmatmul.mubr.msk.f32.gmra.mrb[42].mxu1 %vm85_vm1, %v11904_v39  ;;  %v5100_v27 = vld [vmem:[#allocation2 + $0x159] sm:$0xff]  ;;  %v11920_v39 = vld [vmem:[#allocation28_spill] sm:$0xff] }
 0x17e   :  { %8853 = vmatprep.mubr.msk.f32.mxu0 %vm85_vm1, %v5085_v32  ;;  %8414 = vmatprep.mubr.msk.f32.mxu1 %vm85_vm1, %v11905_v53  ;;  %v5101_v32 = vld [vmem:[#allocation2 + $0x169] sm:$0xff] }
 0x17f   :  { %v11921_v53 = vld [vmem:[#allocation29_spill] sm:$0xff] }
 0x181   :  { %8854 = vmatmul.mubr.msk.f32.gmra.mrb[10].mxu0 %vm85_vm1, %v5086_v36  ;;  %8415 = vmatmul.mubr.msk.f32.gmra.mrb[44].mxu1 %vm85_vm1, %v11906_v60  ;;  %v5102_v36 = vld [vmem:[#allocation2 + $0x171] sm:$0xff] }
 0x182   :  { %8856 = vmatprep.mubr.msk.f32.mxu0 %vm85_vm1, %v5087_v45  ;;  %8417 = vmatprep.mubr.msk.f32.mxu1 %vm85_vm1, %v11907_v25  ;;  %v5103_v45 = vld [vmem:[#allocation2 + $0x181] sm:$0xff]  ;;  %v11922_v60 = vld [vmem:[#allocation30_spill] sm:$0xff] }
 0x183   :  { %v11923_v25 = vld [vmem:[#allocation31_spill] sm:$0xff] }
 0x185   :  { %8857 = vmatmul.mubr.msk.f32.gmra.mrb[12].mxu0 %vm85_vm1, %v5088_v9  ;;  %8418 = vmatmul.mubr.msk.f32.gmra.mrb[46].mxu1 %vm85_vm1, %v11908_v54  ;;  %v5104_v9 = vld [vmem:[#allocation2 + $0x189] sm:$0xff]  ;;  %v5106_v54 = vld [vmem:[#allocation2 + $0x1a1] sm:$0xff] }
 0x186   :  { %8859 = vmatprep.mubr.msk.f32.mxu0 %vm85_vm1, %v5089_v4  ;;  %8420 = vmatprep.mubr.msk.f32.mxu1 %vm85_vm1, %v11909_v58  ;;  %v5105_v4 = vld [vmem:[#allocation2 + $0x199] sm:$0xff]  ;;  %v10929_v58 = vld [vmem:[#allocation2 + $0x1e1] sm:$0xff] }
 0x189   :  { %8860 = vmatmul.mubr.msk.f32.gmra.mrb[14].mxu0 %vm85_vm1, %v5090_v51  ;;  %8421 = vmatmul.mubr.msk.f32.gmra.mrb[48].mxu1 %vm85_vm1, %v11910_v62  ;;  %v2234_v51 = vld [vmem:[#allocation2 + $0x18] sm:$0xff]  ;;  %v2236_v62 = vld [vmem:[#allocation2 + $0x30] sm:$0xff] }
 0x18a   :  { %8862 = vmatprep.mubr.msk.f32.mxu0 %vm85_vm1, %v5091_v55  ;;  %8423 = vmatprep.mubr.msk.f32.mxu1 %vm85_vm1, %v11911_v2  ;;  %v11924_v55 = vld [vmem:[#allocation32_spill] sm:$0xff]  ;;  %v10938_v2 = vld [vmem:[#allocation2 + $0x1f9] sm:$0xff] }
 0x18d   :  { %8863 = vmatmul.mubr.msk.f32.gmra.mrb[16].mxu0 %vm85_vm1, %v5092_v59  ;;  %8424 = vmatmul.mubr.msk.f32.gmra.mrb[50].mxu1 %vm85_vm1, %v11912_v6  ;;  %v2235_v59 = vld [vmem:[#allocation2 + $0x20] sm:$0xff]  ;;  %v2238_v6 = vld [vmem:[#allocation2 + $0x48] sm:$0xff] }
 0x18e   :  { %8865 = vmatprep.mubr.msk.f32.mxu0 %vm85_vm1, %v5093_v63  ;;  %8426 = vmatprep.mubr.msk.f32.mxu1 %vm85_vm1, %v11913_v10  ;;  %v10935_v63 = vld [vmem:[#allocation2 + $0x1e9] sm:$0xff]  ;;  %v10950_v10 = vld [vmem:[#allocation2 + $0x211] sm:$0xff] }
 0x191   :  { %8866 = vmatmul.mubr.msk.f32.gmra.mrb[18].mxu0 %vm85_vm1, %v5094_v3  ;;  %8427 = vmatmul.mubr.msk.f32.gmra.mrb[52].mxu1 %vm85_vm1, %v11914_v14  ;;  %v2237_v3 = vld [vmem:[#allocation2 + $0x38] sm:$0xff] }
 0x192   :  { %8868 = vmatprep.mubr.msk.f32.mxu0 %vm85_vm1, %v5095_v7  ;;  %8429 = vmatprep.mubr.msk.f32.mxu1 %vm85_vm1, %v11915_v18  ;;  %v10947_v7 = vld [vmem:[#allocation2 + $0x201] sm:$0xff]  ;;  %v10957_v14 = vld [vmem:[#allocation2 + $0x219] sm:$0xff] }
 0x193   :  { %v2241_v18 = vld [vmem:[#allocation2 + $0x68] sm:$0xff] }
 0x195   :  { %8869 = vmatmul.mubr.msk.f32.gmra.mrb[20].mxu0 %vm85_vm1, %v5096_v11  ;;  %8430 = vmatmul.mubr.msk.f32.gmra.mrb[54].mxu1 %vm85_vm1, %v11916_v22  ;;  %v2239_v11 = vld [vmem:[#allocation2 + $0x50] sm:$0xff] }
 0x196   :  { %8871 = vmatprep.mubr.msk.f32.mxu0 %vm85_vm1, %v5097_v15  ;;  %8432 = vmatprep.mubr.msk.f32.mxu1 %vm85_vm1, %v11917_v26  ;;  %v10960_v15 = vld [vmem:[#allocation2 + $0x229] sm:$0xff]  ;;  %v10967_v22 = vld [vmem:[#allocation2 + $0x231] sm:$0xff]  ;;  %v2243_v26 = vld [vmem:[#allocation2 + $0x80] sm:$0xff] }
 0x199   :  { %8872 = vmatmul.mubr.msk.f32.gmra.mrb[22].mxu0 %vm85_vm1, %v5098_v19  ;;  %8433 = vmatmul.mubr.msk.f32.gmra.mrb[56].mxu1 %vm85_vm1, %v11918_v30  ;;  %v2242_v19 = vld [vmem:[#allocation2 + $0x78] sm:$0xff]  ;;  %v10977_v30 = vld [vmem:[#allocation2 + $0x249] sm:$0xff] }
 0x19a   :  { %8874 = vmatprep.mubr.msk.f32.mxu0 %vm85_vm1, %v5099_v23  ;;  %8435 = vmatprep.mubr.msk.f32.mxu1 %vm85_vm1, %v11919_v35  ;;  %v10970_v23 = vld [vmem:[#allocation2 + $0x241] sm:$0xff]  ;;  %v2245_v35 = vld [vmem:[#allocation2 + $0x98] sm:$0xff] }
 0x19d   :  { %8875 = vmatmul.mubr.msk.f32.gmra.mrb[24].mxu0 %vm85_vm1, %v5100_v27  ;;  %8436 = vmatmul.mubr.msk.f32.gmra.mrb[58].mxu1 %vm85_vm1, %v11920_v39  ;;  %v2244_v27 = vld [vmem:[#allocation2 + $0x90] sm:$0xff]  ;;  %v10987_v39 = vld [vmem:[#allocation2 + $0x261] sm:$0xff] }
 0x19e   :  { %8877 = vmatprep.mubr.msk.f32.mxu0 %vm85_vm1, %v5101_v32  ;;  %8438 = vmatprep.mubr.msk.f32.mxu1 %vm85_vm1, %v11921_v53  ;;  %v10980_v32 = vld [vmem:[#allocation2 + $0x259] sm:$0xff]  ;;  %v2247_v53 = vld [vmem:[#allocation2 + $0xb0] sm:$0xff] }
 0x1a1   :  { %8878 = vmatmul.mubr.msk.f32.gmra.mrb[26].mxu0 %vm85_vm1, %v5102_v36  ;;  %8439 = vmatmul.mubr.msk.f32.gmra.mrb[60].mxu1 %vm85_vm1, %v11922_v60  ;;  %v2246_v36 = vld [vmem:[#allocation2 + $0xa8] sm:$0xff]  ;;  %v10997_v60 = vld [vmem:[#allocation2 + $0x279] sm:$0xff] }
 0x1a2   :  { %8880 = vmatprep.mubr.msk.f32.mxu0 %vm85_vm1, %v5103_v45  ;;  %8441 = vmatprep.mubr.msk.f32.mxu1 %vm85_vm1, %v11923_v25  ;;  %v10990_v45 = vld [vmem:[#allocation2 + $0x271] sm:$0xff]  ;;  %v2249_v25 = vld [vmem:[#allocation2 + $0xc8] sm:$0xff] }
 0x1a5   :  { %8881 = vmatmul.mubr.msk.f32.gmra.mrb[28].mxu0 %vm85_vm1, %v5104_v9  ;;  %8442 = vmatmul.mubr.msk.f32.gmra.mrb[62].mxu1 %vm85_vm1, %v11924_v55  ;;  %v2248_v9 = vld [vmem:[#allocation2 + $0xc0] sm:$0xff] }
 0x1a6   :  { %8883 = vmatprep.mubr.msk.f32.mxu0 %vm85_vm1, %v5105_v4  ;;  %8446 = vmatprep.mubr.msk.f32.mxu1 %vm85_vm1, %v2234_v51  ;;  %v11000_v4 = vld [vmem:[#allocation2 + $0x289] sm:$0xff]  ;;  %v2250_v51 = vld [vmem:[#allocation2 + $0xd8] sm:$0xff]  ;;  %v11010_v55 = vld [vmem:[#allocation2 + $0x2a1] sm:$0xff] }
 0x1a9   :  { %8884 = vmatmul.mubr.msk.f32.gmra.mrb[30].mxu0 %vm85_vm1, %v5106_v54  ;;  %8447 = vmatmul.mubr.msk.f32.vlgmr.msra.gmra.mrb[0].mxu1 %vm85_vm1, %v2235_v59  ;;  %v11007_v54 = vld [vmem:[#allocation2 + $0x291] sm:$0xff]  ;;  %v2251_v59 = vld [vmem:[#allocation2 + $0xe0] sm:$0xff] }
 0x1aa   :  { %8886 = vmatprep.mubr.msk.f32.mxu0 %vm85_vm1, %v10929_v58  ;;  %9033 = vmatpush3.msk.msra.mxu1 %vm555_vm0, %v10711_v52  ;;  %v2240_v52 = vld [vmem:[#allocation2 + $0x60] sm:$0xff] }
 0x1ab   :  { %8449 = vmatprep.mubr.msk.f32.mxu1 %vm85_vm1, %v2236_v62  ;;  %v2252_v62 = vld [vmem:[#allocation2 + $0xf0] sm:$0xff] }
 0x1ad   :  { %8887 = vmatmul.mubr.msk.f32.gmra.mrb[32].mxu0 %vm85_vm1, %v10935_v63  ;;  %8450 = vmatmul.mubr.msk.f32.gmra.mrb[2].mxu1 %vm85_vm1, %v2237_v3  ;;  %v11017_v3 = vld [vmem:[#allocation2 + $0x2a9] sm:$0xff] }
 0x1ae   :  { %8889 = vmatprep.mubr.msk.f32.mxu0 %vm85_vm1, %v10938_v2  ;;  %8452 = vmatprep.mubr.msk.f32.mxu1 %vm85_vm1, %v2238_v6  ;;  %v11020_v6 = vld [vmem:[#allocation2 + $0x2b9] sm:$0xff] }
 0x1b1   :  { %8890 = vmatmul.mubr.msk.f32.gmra.mrb[34].mxu0 %vm85_vm1, %v10947_v7  ;;  %8453 = vmatmul.mubr.msk.f32.gmra.mrb[4].mxu1 %vm85_vm1, %v2239_v11  ;;  %v2253_v11 = vld [vmem:[#allocation2 + $0xf8] sm:$0xff] }
 0x1b2   :  { %8892 = vmatprep.mubr.msk.f32.mxu0 %vm85_vm1, %v10950_v10  ;;  %8455 = vmatprep.mubr.msk.f32.mxu1 %vm85_vm1, %v2240_v52  ;;  %v2254_v52 = vld [vmem:[#allocation2 + $0x108] sm:$0xff] }
 0x1b5   :  { %8893 = vmatmul.mubr.msk.f32.gmra.mrb[36].mxu0 %vm85_vm1, %v10957_v14  ;;  %8456 = vmatmul.mubr.msk.f32.gmra.mrb[6].mxu1 %vm85_vm1, %v2241_v18  ;;  %v11027_v18 = vld [vmem:[#allocation2 + $0x2c1] sm:$0xff] }
 0x1b6   :  { %8895 = vmatprep.mubr.msk.f32.mxu0 %vm85_vm1, %v10960_v15  ;;  %8458 = vmatprep.mubr.msk.f32.mxu1 %vm85_vm1, %v2242_v19  ;;  %v11030_v19 = vld [vmem:[#allocation2 + $0x2d1] sm:$0xff] }
 0x1b9   :  { %8896 = vmatmul.mubr.msk.f32.gmra.mrb[38].mxu0 %vm85_vm1, %v10967_v22  ;;  %8459 = vmatmul.mubr.msk.f32.gmra.mrb[8].mxu1 %vm85_vm1, %v2243_v26  ;;  %v2255_v26 = vld [vmem:[#allocation2 + $0x110] sm:$0xff] }
 0x1ba   :  { %8898 = vmatprep.mubr.msk.f32.mxu0 %vm85_vm1, %v10970_v23  ;;  %8461 = vmatprep.mubr.msk.f32.mxu1 %vm85_vm1, %v2244_v27  ;;  %v2256_v27 = vld [vmem:[#allocation2 + $0x120] sm:$0xff] }
 0x1bd   :  { %8899 = vmatmul.mubr.msk.f32.gmra.mrb[40].mxu0 %vm85_vm1, %v10977_v30  ;;  %8462 = vmatmul.mubr.msk.f32.gmra.mrb[10].mxu1 %vm85_vm1, %v2245_v35  ;;  %v11037_v35 = vld [vmem:[#allocation2 + $0x2d9] sm:$0xff] }
 0x1be   :  { %8901 = vmatprep.mubr.msk.f32.mxu0 %vm85_vm1, %v10980_v32  ;;  %8464 = vmatprep.mubr.msk.f32.mxu1 %vm85_vm1, %v2246_v36  ;;  %v11040_v36 = vld [vmem:[#allocation2 + $0x2e9] sm:$0xff] }
 0x1c1   :  { %8902 = vmatmul.mubr.msk.f32.gmra.mrb[42].mxu0 %vm85_vm1, %v10987_v39  ;;  %8465 = vmatmul.mubr.msk.f32.gmra.mrb[12].mxu1 %vm85_vm1, %v2247_v53  ;;  %v2257_v53 = vld [vmem:[#allocation2 + $0x128] sm:$0xff] }
 0x1c2   :  { %8904 = vmatprep.mubr.msk.f32.mxu0 %vm85_vm1, %v10990_v45  ;;  %8467 = vmatprep.mubr.msk.f32.mxu1 %vm85_vm1, %v2248_v9  ;;  %v2258_v9 = vld [vmem:[#allocation2 + $0x138] sm:$0xff] }
 0x1c5   :  { %8905 = vmatmul.mubr.msk.f32.gmra.mrb[44].mxu0 %vm85_vm1, %v10997_v60  ;;  %8468 = vmatmul.mubr.msk.f32.gmra.mrb[14].mxu1 %vm85_vm1, %v2249_v25  ;;  %v11047_v25 = vld [vmem:[#allocation2 + $0x2f1] sm:$0xff] }
 0x1c6   :  { %8907 = vmatprep.mubr.msk.f32.mxu0 %vm85_vm1, %v11000_v4  ;;  %8470 = vmatprep.mubr.msk.f32.mxu1 %vm85_vm1, %v2250_v51  ;;  %v11050_v51 = vld [vmem:[#allocation2 + $0x301] sm:$0xff] }
 0x1c9   :  { %8908 = vmatmul.mubr.msk.f32.gmra.mrb[46].mxu0 %vm85_vm1, %v11007_v54  ;;  %8471 = vmatmul.mubr.msk.f32.gmra.mrb[16].mxu1 %vm85_vm1, %v2251_v59  ;;  %v2259_v59 = vld [vmem:[#allocation2 + $0x140] sm:$0xff] }
 0x1ca   :  { %8910 = vmatprep.mubr.msk.f32.mxu0 %vm85_vm1, %v11010_v55  ;;  %8473 = vmatprep.mubr.msk.f32.mxu1 %vm85_vm1, %v2252_v62  ;;  %v2260_v62 = vld [vmem:[#allocation2 + $0x150] sm:$0xff] }
 0x1cd   :  { %8911 = vmatmul.mubr.msk.f32.gmra.mrb[48].mxu0 %vm85_vm1, %v11017_v3  ;;  %8474 = vmatmul.mubr.msk.f32.gmra.mrb[18].mxu1 %vm85_vm1, %v2253_v11  ;;  %v11057_v11 = vld [vmem:[#allocation2 + $0x309] sm:$0xff] }
 0x1ce   :  { %8913 = vmatprep.mubr.msk.f32.mxu0 %vm85_vm1, %v11020_v6  ;;  %8476 = vmatprep.mubr.msk.f32.mxu1 %vm85_vm1, %v2254_v52  ;;  %11925 = vst [vmem:[#allocation3_spill] sm:$0xff] %v11057_v11  ;;  %v11060_v52 = vld [vmem:[#allocation2 + $0x319] sm:$0xff] }
 0x1cf   :  { %11926 = vst [vmem:[#allocation4_spill] sm:$0xff] %v11060_v52 }
 0x1d1   :  { %8914 = vmatmul.mubr.msk.f32.gmra.mrb[50].mxu0 %vm85_vm1, %v11027_v18  ;;  %8477 = vmatmul.mubr.msk.f32.gmra.mrb[20].mxu1 %vm85_vm1, %v2255_v26  ;;  %v2261_v26 = vld [vmem:[#allocation2 + $0x158] sm:$0xff] }
 0x1d2   :  { %8916 = vmatprep.mubr.msk.f32.mxu0 %vm85_vm1, %v11030_v19  ;;  %8479 = vmatprep.mubr.msk.f32.mxu1 %vm85_vm1, %v2256_v27  ;;  %v2262_v27 = vld [vmem:[#allocation2 + $0x168] sm:$0xff] }
 0x1d5   :  { %8917 = vmatmul.mubr.msk.f32.gmra.mrb[52].mxu0 %vm85_vm1, %v11037_v35  ;;  %8480 = vmatmul.mubr.msk.f32.gmra.mrb[22].mxu1 %vm85_vm1, %v2257_v53  ;;  %v11067_v53 = vld [vmem:[#allocation2 + $0x321] sm:$0xff] }
 0x1d6   :  { %8919 = vmatprep.mubr.msk.f32.mxu0 %vm85_vm1, %v11040_v36  ;;  %8482 = vmatprep.mubr.msk.f32.mxu1 %vm85_vm1, %v2258_v9  ;;  %11927 = vst [vmem:[#allocation5_spill] sm:$0xff] %v11067_v53  ;;  %v11070_v9 = vld [vmem:[#allocation2 + $0x331] sm:$0xff] }
 0x1d7   :  { %11928 = vst [vmem:[#allocation6_spill] sm:$0xff] %v11070_v9 }
 0x1d9   :  { %8920 = vmatmul.mubr.msk.f32.gmra.mrb[54].mxu0 %vm85_vm1, %v11047_v25  ;;  %8483 = vmatmul.mubr.msk.f32.gmra.mrb[24].mxu1 %vm85_vm1, %v2259_v59  ;;  %v2263_v59 = vld [vmem:[#allocation2 + $0x170] sm:$0xff] }
 0x1da   :  { %8922 = vmatprep.mubr.msk.f32.mxu0 %vm85_vm1, %v11050_v51  ;;  %8485 = vmatprep.mubr.msk.f32.mxu1 %vm85_vm1, %v2260_v62  ;;  %v11077_v62 = vld [vmem:[#allocation2 + $0x339] sm:$0xff] }
 0x1dd   :  { %8923 = vmatmul.mubr.msk.f32.gmra.mrb[56].mxu0 %vm85_vm1, %v11057_v11  ;;  %8486 = vmatmul.mubr.msk.f32.gmra.mrb[26].mxu1 %vm85_vm1, %v2261_v26  ;;  %v11929_v11 = vld [vmem:[#allocation35_spill] sm:$0xff]  ;;  %v5138_v26 = vld [vmem:[#allocation2 + $0x351] sm:$0xff] }
 0x1de   :  { %8925 = vmatprep.mubr.msk.f32.mxu0 %vm85_vm1, %v11060_v52  ;;  %8488 = vmatprep.mubr.msk.f32.mxu1 %vm85_vm1, %v2262_v27  ;;  %v5137_v52 = vld [vmem:[#allocation2 + $0x349] sm:$0xff]  ;;  %v5785_v27 = vld [vmem:[#allocation2 + $0x32] sm:$0xff] }
 0x1e1   :  { %8926 = vmatmul.mubr.msk.f32.gmra.mrb[58].mxu0 %vm85_vm1, %v11067_v53  ;;  %8489 = vmatmul.mubr.msk.f32.gmra.mrb[28].mxu1 %vm85_vm1, %v2263_v59  ;;  %v11930_v53 = vld [vmem:[#allocation33_spill] sm:$0xff]  ;;  %v5786_v59 = vld [vmem:[#allocation2 + $0x3a] sm:$0xff] }
 0x1e2   :  { %8928 = vmatprep.mubr.msk.f32.mxu0 %vm85_vm1, %v11070_v9  ;;  %8491 = vmatprep.mubr.msk.f32.mxu1 %vm85_vm1, %v11929_v11  ;;  %v11931_v9 = vld [vmem:[#allocation34_spill] sm:$0xff]  ;;  %v5787_v11 = vld [vmem:[#allocation2 + $0x4a] sm:$0xff] }
 0x1e5   :  { %8929 = vmatmul.mubr.msk.f32.gmra.mrb[60].mxu0 %vm85_vm1, %v11077_v62  ;;  %8492 = vmatmul.mubr.msk.f32.gmra.mrb[30].mxu1 %vm85_vm1, %v10685_v61  ;;  %v5788_v61 = vld [vmem:[#allocation2 + $0x52] sm:$0xff] }
 0x1e6   :  { %8931 = vmatprep.mubr.msk.f32.mxu0 %vm85_vm1, %v5137_v52  ;;  %8494 = vmatprep.mubr.msk.f32.mxu1 %vm85_vm1, %v11930_v53  ;;  %v5789_v52 = vld [vmem:[#allocation2 + $0x62] sm:$0xff]  ;;  %v5790_v53 = vld [vmem:[#allocation2 + $0x6a] sm:$0xff] }
 0x1e9   :  { %8932 = vmatmul.mubr.msk.f32.gmra.mrb[62].mxu0 %vm85_vm1, %v5138_v26  ;;  %8495 = vmatmul.mubr.msk.f32.gmra.mrb[32].mxu1 %vm85_vm1, %v11931_v9  ;;  %v2976_v9 = vld [vmem:[#allocation2 + $0x1c9] sm:$0xff]  ;;  %v2977_v26 = vld [vmem:[#allocation2 + $0x1d1] sm:$0xff] }
 0x1ea   :  { %8936 = vmatprep.mubr.msk.f32.mxu0 %vm85_vm1, %v5785_v27  ;;  %8497 = vmatprep.mubr.msk.f32.mxu1 %vm85_vm1, %v10519_v50  ;;  %v5791_v50 = vld [vmem:[#allocation2 + $0x7a] sm:$0xff]  ;;  %v5821_v27 = vld [vmem:[#allocation2 + $0x212] sm:$0xff] }
 0x1ed   :  { %8937 = vmatmul.mubr.msk.f32.vlgmr.msra.gmra.mrb[0].mxu0 %vm85_vm1, %v5786_v59  ;;  %8498 = vmatmul.mubr.msk.f32.gmra.mrb[34].mxu1 %vm85_vm1, %v10531_v57  ;;  %v5792_v57 = vld [vmem:[#allocation2 + $0x82] sm:$0xff]  ;;  %v5822_v59 = vld [vmem:[#allocation2 + $0x21a] sm:$0xff] }
 0x1ee   :  { %8939 = vmatprep.mubr.msk.f32.mxu0 %vm85_vm1, %v5787_v11  ;;  %8500 = vmatprep.mubr.msk.f32.mxu1 %vm85_vm1, %v10535_v31  ;;  %v5793_v31 = vld [vmem:[#allocation2 + $0x92] sm:$0xff]  ;;  %v11932_v11 = vld [vmem:[#allocation3_spill] sm:$0xff] }
 0x1f1   :  { %8940 = vmatmul.mubr.msk.f32.gmra.mrb[2].mxu0 %vm85_vm1, %v5788_v61  ;;  %8501 = vmatmul.mubr.msk.f32.gmra.mrb[36].mxu1 %vm85_vm1, %v10543_v48  ;;  %v5794_v48 = vld [vmem:[#allocation2 + $0x9a] sm:$0xff]  ;;  %v11933_v61 = vld [vmem:[#allocation4_spill] sm:$0xff] }
 0x1f2   :  { %8942 = vmatprep.mubr.msk.f32.mxu0 %vm85_vm1, %v5789_v52  ;;  %8503 = vmatprep.mubr.msk.f32.mxu1 %vm85_vm1, %v10547_v0  ;;  %v5795_v0 = vld [vmem:[#allocation2 + $0xaa] sm:$0xff] }
 0x1f3   :  { %v11934_v52 = vld [vmem:[#allocation5_spill] sm:$0xff] }
 0x1f5   :  { %8943 = vmatmul.mubr.msk.f32.gmra.mrb[4].mxu0 %vm85_vm1, %v5790_v53  ;;  %8504 = vmatmul.mubr.msk.f32.gmra.mrb[38].mxu1 %vm85_vm1, %v10555_v1  ;;  %v5796_v1 = vld [vmem:[#allocation2 + $0xb2] sm:$0xff] }
 0x1f6   :  { %8945 = vmatprep.mubr.msk.f32.mxu0 %vm85_vm1, %v5791_v50  ;;  %8506 = vmatprep.mubr.msk.f32.mxu1 %vm85_vm1, %v10559_v5  ;;  %v5797_v5 = vld [vmem:[#allocation2 + $0xc2] sm:$0xff]  ;;  %v11935_v53 = vld [vmem:[#allocation6_spill] sm:$0xff] }
 0x1f7   :  { %v5848_v50 = vld [vmem:[#allocation2 + $0x352] sm:$0xff] }
 0x1f9   :  { %8946 = vmatmul.mubr.msk.f32.gmra.mrb[6].mxu0 %vm85_vm1, %v5792_v57  ;;  %8507 = vmatmul.mubr.msk.f32.gmra.mrb[40].mxu1 %vm85_vm1, %v10567_v8  ;;  %v5798_v8 = vld [vmem:[#allocation2 + $0xca] sm:$0xff] }
 0x1fa   :  { %8948 = vmatprep.mubr.msk.f32.mxu0 %vm85_vm1, %v5793_v31  ;;  %8509 = vmatprep.mubr.msk.f32.mxu1 %vm85_vm1, %v10571_v13  ;;  %v5799_v13 = vld [vmem:[#allocation2 + $0xda] sm:$0xff] }
 0x1fd   :  { %8949 = vmatmul.mubr.msk.f32.gmra.mrb[8].mxu0 %vm85_vm1, %v5794_v48  ;;  %8510 = vmatmul.mubr.msk.f32.gmra.mrb[42].mxu1 %vm85_vm1, %v10579_v16  ;;  %v5800_v16 = vld [vmem:[#allocation2 + $0xe2] sm:$0xff] }
 0x1fe   :  { %8951 = vmatprep.mubr.msk.f32.mxu0 %vm85_vm1, %v5795_v0  ;;  %8512 = vmatprep.mubr.msk.f32.mxu1 %vm85_vm1, %v10583_v17  ;;  %v5801_v17 = vld [vmem:[#allocation2 + $0xf2] sm:$0xff] }
 0x201   :  { %8952 = vmatmul.mubr.msk.f32.gmra.mrb[10].mxu0 %vm85_vm1, %v5796_v1  ;;  %8513 = vmatmul.mubr.msk.f32.gmra.mrb[44].mxu1 %vm85_vm1, %v10591_v21  ;;  %v5802_v21 = vld [vmem:[#allocation2 + $0xfa] sm:$0xff] }
 0x202   :  { %8954 = vmatprep.mubr.msk.f32.mxu0 %vm85_vm1, %v5797_v5  ;;  %8515 = vmatprep.mubr.msk.f32.mxu1 %vm85_vm1, %v10595_v24  ;;  %v5803_v24 = vld [vmem:[#allocation2 + $0x10a] sm:$0xff] }
 0x205   :  { %8955 = vmatmul.mubr.msk.f32.gmra.mrb[12].mxu0 %vm85_vm1, %v5798_v8  ;;  %8516 = vmatmul.mubr.msk.f32.gmra.mrb[46].mxu1 %vm85_vm1, %v10603_v29  ;;  %v5804_v29 = vld [vmem:[#allocation2 + $0x112] sm:$0xff] }
 0x206   :  { %8957 = vmatprep.mubr.msk.f32.mxu0 %vm85_vm1, %v5799_v13  ;;  %8518 = vmatprep.mubr.msk.f32.mxu1 %vm85_vm1, %v10607_v33  ;;  %v5805_v33 = vld [vmem:[#allocation2 + $0x122] sm:$0xff] }
 0x209   :  { %8958 = vmatmul.mubr.msk.f32.gmra.mrb[14].mxu0 %vm85_vm1, %v5800_v16  ;;  %8519 = vmatmul.mubr.msk.f32.gmra.mrb[48].mxu1 %vm85_vm1, %v10615_v38  ;;  %v5806_v38 = vld [vmem:[#allocation2 + $0x12a] sm:$0xff] }
 0x20a   :  { %8960 = vmatprep.mubr.msk.f32.mxu0 %vm85_vm1, %v5801_v17  ;;  %8521 = vmatprep.mubr.msk.f32.mxu1 %vm85_vm1, %v10619_v40  ;;  %v5807_v40 = vld [vmem:[#allocation2 + $0x13a] sm:$0xff] }
 0x20d   :  { %8961 = vmatmul.mubr.msk.f32.gmra.mrb[16].mxu0 %vm85_vm1, %v5802_v21  ;;  %8522 = vmatmul.mubr.msk.f32.gmra.mrb[50].mxu1 %vm85_vm1, %v10627_v37  ;;  %v5808_v37 = vld [vmem:[#allocation2 + $0x142] sm:$0xff] }
 0x20e   :  { %8963 = vmatprep.mubr.msk.f32.mxu0 %vm85_vm1, %v5803_v24  ;;  %8524 = vmatprep.mubr.msk.f32.mxu1 %vm85_vm1, %v10631_v41  ;;  %v5809_v41 = vld [vmem:[#allocation2 + $0x152] sm:$0xff] }
 0x211   :  { %8964 = vmatmul.mubr.msk.f32.gmra.mrb[18].mxu0 %vm85_vm1, %v5804_v29  ;;  %8525 = vmatmul.mubr.msk.f32.gmra.mrb[52].mxu1 %vm85_vm1, %v10639_v28  ;;  %v5810_v28 = vld [vmem:[#allocation2 + $0x15a] sm:$0xff] }
 0x212   :  { %8966 = vmatprep.mubr.msk.f32.mxu0 %vm85_vm1, %v5805_v33  ;;  %8527 = vmatprep.mubr.msk.f32.mxu1 %vm85_vm1, %v10643_v43  ;;  %v5811_v43 = vld [vmem:[#allocation2 + $0x16a] sm:$0xff] }
 0x215   :  { %8967 = vmatmul.mubr.msk.f32.gmra.mrb[20].mxu0 %vm85_vm1, %v5806_v38  ;;  %8528 = vmatmul.mubr.msk.f32.gmra.mrb[54].mxu1 %vm85_vm1, %v10651_v20  ;;  %v5812_v20 = vld [vmem:[#allocation2 + $0x172] sm:$0xff] }
 0x216   :  { %8969 = vmatprep.mubr.msk.f32.mxu0 %vm85_vm1, %v5807_v40  ;;  %8530 = vmatprep.mubr.msk.f32.mxu1 %vm85_vm1, %v10655_v42  ;;  %v5813_v42 = vld [vmem:[#allocation2 + $0x182] sm:$0xff] }
 0x219   :  { %8970 = vmatmul.mubr.msk.f32.gmra.mrb[22].mxu0 %vm85_vm1, %v5808_v37  ;;  %8531 = vmatmul.mubr.msk.f32.gmra.mrb[56].mxu1 %vm85_vm1, %v10663_v12  ;;  %v5814_v12 = vld [vmem:[#allocation2 + $0x18a] sm:$0xff] }
 0x21a   :  { %8972 = vmatprep.mubr.msk.f32.mxu0 %vm85_vm1, %v5809_v41  ;;  %8533 = vmatprep.mubr.msk.f32.mxu1 %vm85_vm1, %v10667_v46  ;;  %v5815_v46 = vld [vmem:[#allocation2 + $0x19a] sm:$0xff] }
 0x21d   :  { %8973 = vmatmul.mubr.msk.f32.gmra.mrb[24].mxu0 %vm85_vm1, %v5810_v28  ;;  %8534 = vmatmul.mubr.msk.f32.gmra.mrb[58].mxu1 %vm85_vm1, %v10677_v34  ;;  %v5816_v34 = vld [vmem:[#allocation2 + $0x1a2] sm:$0xff] }
 0x21e   :  { %8975 = vmatprep.mubr.msk.f32.mxu0 %vm85_vm1, %v5811_v43  ;;  %8536 = vmatprep.mubr.msk.f32.mxu1 %vm85_vm1, %v10681_v49  ;;  %v5817_v49 = vld [vmem:[#allocation2 + $0x1e2] sm:$0xff] }
 0x221   :  { %8976 = vmatmul.mubr.msk.f32.gmra.mrb[26].mxu0 %vm85_vm1, %v5812_v20  ;;  %8537 = vmatmul.mubr.msk.f32.gmra.mrb[60].mxu1 %vm85_vm1, %v10691_v56  ;;  %v5818_v56 = vld [vmem:[#allocation2 + $0x1ea] sm:$0xff] }
 0x222   :  { %8978 = vmatprep.mubr.msk.f32.mxu0 %vm85_vm1, %v5813_v42  ;;  %8539 = vmatprep.mubr.msk.f32.mxu1 %vm85_vm1, %v10814_v44  ;;  %v5819_v44 = vld [vmem:[#allocation2 + $0x1fa] sm:$0xff] }
 0x225   :  { %8979 = vmatmul.mubr.msk.f32.gmra.mrb[28].mxu0 %vm85_vm1, %v5814_v12  ;;  %8540 = vmatmul.mubr.msk.f32.gmra.mrb[62].mxu1 %vm85_vm1, %v10822_v47  ;;  %v5820_v47 = vld [vmem:[#allocation2 + $0x202] sm:$0xff] }
 0x226   :  { %8981 = vmatprep.mubr.msk.f32.mxu0 %vm85_vm1, %v5815_v46  ;;  %8592 = vmatprep.mubr.msk.f32.mxu1 %vm85_vm1, %v2976_v9 }
 0x229   :  { %8982 = vmatmul.mubr.msk.f32.gmra.mrb[30].mxu0 %vm85_vm1, %v5816_v34  ;;  %8593 = vmatmul.mubr.msk.f32.vlgmr.msra.gmra.mrb[32].mxu1 %vm85_vm1, %v2977_v26 }
 0x22a   :  { %8984 = vmatprep.mubr.msk.f32.mxu0 %vm85_vm1, %v5817_v49  ;;  %8595 = vmatprep.mubr.msk.f32.mxu1 %vm85_vm1, %v10929_v58  ;;  %v5823_v58 = vld [vmem:[#allocation2 + $0x22a] sm:$0xff] }
 0x22d   :  { %8985 = vmatmul.mubr.msk.f32.gmra.mrb[32].mxu0 %vm85_vm1, %v5818_v56  ;;  %8596 = vmatmul.mubr.msk.f32.gmra.mrb[34].mxu1 %vm85_vm1, %v10935_v63  ;;  %v5824_v63 = vld [vmem:[#allocation2 + $0x232] sm:$0xff] }
 0x22e   :  { %8987 = vmatprep.mubr.msk.f32.mxu0 %vm85_vm1, %v5819_v44  ;;  %8598 = vmatprep.mubr.msk.f32.mxu1 %vm85_vm1, %v10938_v2  ;;  %v5825_v2 = vld [vmem:[#allocation2 + $0x242] sm:$0xff] }
 0x231   :  { %8988 = vmatmul.mubr.msk.f32.gmra.mrb[34].mxu0 %vm85_vm1, %v5820_v47  ;;  %8599 = vmatmul.mubr.msk.f32.gmra.mrb[36].mxu1 %vm85_vm1, %v10947_v7  ;;  %v5826_v7 = vld [vmem:[#allocation2 + $0x24a] sm:$0xff] }
 0x232   :  { %8990 = vmatprep.mubr.msk.f32.mxu0 %vm85_vm1, %v5821_v27  ;;  %8601 = vmatprep.mubr.msk.f32.mxu1 %vm85_vm1, %v10950_v10  ;;  %v5827_v10 = vld [vmem:[#allocation2 + $0x25a] sm:$0xff] }
 0x233   :  { %v11333_v27 = vld [vmem:[%s11822_s2] ss:$0 sm:$0xff] }
 0x235   :  { %8991 = vmatmul.mubr.msk.f32.gmra.mrb[36].mxu0 %vm85_vm1, %v5822_v59  ;;  %8602 = vmatmul.mubr.msk.f32.gmra.mrb[38].mxu1 %vm85_vm1, %v10957_v14  ;;  %v5828_v14 = vld [vmem:[#allocation2 + $0x262] sm:$0xff] }
 0x236   :  { %8993 = vmatprep.mubr.msk.f32.mxu0 %vm85_vm1, %v5823_v58  ;;  %8604 = vmatprep.mubr.msk.f32.mxu1 %vm85_vm1, %v10960_v15  ;;  %v5829_v15 = vld [vmem:[#allocation2 + $0x272] sm:$0xff] }
 0x239   :  { %8994 = vmatmul.mubr.msk.f32.gmra.mrb[38].mxu0 %vm85_vm1, %v5824_v63  ;;  %8605 = vmatmul.mubr.msk.f32.gmra.mrb[40].mxu1 %vm85_vm1, %v10967_v22  ;;  %v5830_v22 = vld [vmem:[#allocation2 + $0x27a] sm:$0xff] }
 0x23a   :  { %8996 = vmatprep.mubr.msk.f32.mxu0 %vm85_vm1, %v5825_v2  ;;  %8607 = vmatprep.mubr.msk.f32.mxu1 %vm85_vm1, %v10970_v23  ;;  %v5831_v23 = vld [vmem:[#allocation2 + $0x28a] sm:$0xff] }
 0x23d   :  { %8997 = vmatmul.mubr.msk.f32.gmra.mrb[40].mxu0 %vm85_vm1, %v5826_v7  ;;  %8608 = vmatmul.mubr.msk.f32.gmra.mrb[42].mxu1 %vm85_vm1, %v10977_v30  ;;  %v5832_v30 = vld [vmem:[#allocation2 + $0x292] sm:$0xff] }
 0x23e   :  { %8999 = vmatprep.mubr.msk.f32.mxu0 %vm85_vm1, %v5827_v10  ;;  %8610 = vmatprep.mubr.msk.f32.mxu1 %vm85_vm1, %v10980_v32  ;;  %v5833_v32 = vld [vmem:[#allocation2 + $0x2a2] sm:$0xff] }
 0x241   :  { %9000 = vmatmul.mubr.msk.f32.gmra.mrb[42].mxu0 %vm85_vm1, %v5828_v14  ;;  %8611 = vmatmul.mubr.msk.f32.gmra.mrb[44].mxu1 %vm85_vm1, %v10987_v39  ;;  %v5834_v39 = vld [vmem:[#allocation2 + $0x2aa] sm:$0xff] }
 0x242   :  { %9002 = vmatprep.mubr.msk.f32.mxu0 %vm85_vm1, %v5829_v15  ;;  %8613 = vmatprep.mubr.msk.f32.mxu1 %vm85_vm1, %v10990_v45  ;;  %v5835_v45 = vld [vmem:[#allocation2 + $0x2ba] sm:$0xff] }
 0x245   :  { %9003 = vmatmul.mubr.msk.f32.gmra.mrb[44].mxu0 %vm85_vm1, %v5830_v22  ;;  %8614 = vmatmul.mubr.msk.f32.gmra.mrb[46].mxu1 %vm85_vm1, %v10997_v60  ;;  %v5836_v60 = vld [vmem:[#allocation2 + $0x2c2] sm:$0xff] }
 0x246   :  { %9005 = vmatprep.mubr.msk.f32.mxu0 %vm85_vm1, %v5831_v23  ;;  %8616 = vmatprep.mubr.msk.f32.mxu1 %vm85_vm1, %v11000_v4  ;;  %v5837_v4 = vld [vmem:[#allocation2 + $0x2d2] sm:$0xff] }
 0x249   :  { %9006 = vmatmul.mubr.msk.f32.gmra.mrb[46].mxu0 %vm85_vm1, %v5832_v30  ;;  %8617 = vmatmul.mubr.msk.f32.gmra.mrb[48].mxu1 %vm85_vm1, %v11007_v54  ;;  %v5838_v54 = vld [vmem:[#allocation2 + $0x2da] sm:$0xff] }
 0x24a   :  { %9008 = vmatprep.mubr.msk.f32.mxu0 %vm85_vm1, %v5833_v32  ;;  %8619 = vmatprep.mubr.msk.f32.mxu1 %vm85_vm1, %v11010_v55  ;;  %v5839_v55 = vld [vmem:[#allocation2 + $0x2ea] sm:$0xff] }
 0x24d   :  { %9009 = vmatmul.mubr.msk.f32.gmra.mrb[48].mxu0 %vm85_vm1, %v5834_v39  ;;  %8620 = vmatmul.mubr.msk.f32.gmra.mrb[50].mxu1 %vm85_vm1, %v11017_v3  ;;  %v5840_v3 = vld [vmem:[#allocation2 + $0x2f2] sm:$0xff] }
 0x24e   :  { %9011 = vmatprep.mubr.msk.f32.mxu0 %vm85_vm1, %v5835_v45  ;;  %8622 = vmatprep.mubr.msk.f32.mxu1 %vm85_vm1, %v11020_v6  ;;  %v5841_v6 = vld [vmem:[#allocation2 + $0x302] sm:$0xff] }
 0x251   :  { %9012 = vmatmul.mubr.msk.f32.gmra.mrb[50].mxu0 %vm85_vm1, %v5836_v60  ;;  %8623 = vmatmul.mubr.msk.f32.gmra.mrb[52].mxu1 %vm85_vm1, %v11027_v18  ;;  %v5842_v18 = vld [vmem:[#allocation2 + $0x30a] sm:$0xff] }
 0x252   :  { %9014 = vmatprep.mubr.msk.f32.mxu0 %vm85_vm1, %v5837_v4  ;;  %8625 = vmatprep.mubr.msk.f32.mxu1 %vm85_vm1, %v11030_v19  ;;  %v5843_v19 = vld [vmem:[#allocation2 + $0x31a] sm:$0xff] }
 0x255   :  { %9015 = vmatmul.mubr.msk.f32.gmra.mrb[52].mxu0 %vm85_vm1, %v5838_v54  ;;  %8626 = vmatmul.mubr.msk.f32.gmra.mrb[54].mxu1 %vm85_vm1, %v11037_v35  ;;  %v5844_v35 = vld [vmem:[#allocation2 + $0x322] sm:$0xff] }
 0x256   :  { %9017 = vmatprep.mubr.msk.f32.mxu0 %vm85_vm1, %v5839_v55  ;;  %8628 = vmatprep.mubr.msk.f32.mxu1 %vm85_vm1, %v11040_v36  ;;  %v5845_v36 = vld [vmem:[#allocation2 + $0x332] sm:$0xff] }
 0x259   :  { %9018 = vmatmul.mubr.msk.f32.gmra.mrb[54].mxu0 %vm85_vm1, %v5840_v3  ;;  %8629 = vmatmul.mubr.msk.f32.gmra.mrb[56].mxu1 %vm85_vm1, %v11047_v25  ;;  %v5846_v25 = vld [vmem:[#allocation2 + $0x33a] sm:$0xff] }
 0x25a   :  { %9020 = vmatprep.mubr.msk.f32.mxu0 %vm85_vm1, %v5841_v6  ;;  %8631 = vmatprep.mubr.msk.f32.mxu1 %vm85_vm1, %v11050_v51  ;;  %v5847_v51 = vld [vmem:[#allocation2 + $0x34a] sm:$0xff] }
 0x25d   :  { %9021 = vmatmul.mubr.msk.f32.gmra.mrb[56].mxu0 %vm85_vm1, %v5842_v18  ;;  %8632 = vmatmul.mubr.msk.f32.gmra.mrb[58].mxu1 %vm85_vm1, %v11932_v11 }
 0x25e   :  { %9023 = vmatprep.mubr.msk.f32.mxu0 %vm85_vm1, %v5843_v19  ;;  %8634 = vmatprep.mubr.msk.f32.mxu1 %vm85_vm1, %v11933_v61 }
 0x261   :  { %9024 = vmatmul.mubr.msk.f32.gmra.mrb[58].mxu0 %vm85_vm1, %v5844_v35  ;;  %8635 = vmatmul.mubr.msk.f32.gmra.mrb[60].mxu1 %vm85_vm1, %v11934_v52 }
 0x262   :  { %9026 = vmatprep.mubr.msk.f32.mxu0 %vm85_vm1, %v5845_v36  ;;  %8637 = vmatprep.mubr.msk.f32.mxu1 %vm85_vm1, %v11935_v53 }
 0x265   :  { %9027 = vmatmul.mubr.msk.f32.gmra.mrb[60].mxu0 %vm85_vm1, %v5846_v25  ;;  %8638 = vmatmul.mubr.msk.f32.gmra.mrb[62].mxu1 %vm85_vm1, %v11077_v62 }
 0x266   :  { %9029 = vmatprep.mubr.msk.f32.mxu0 %vm85_vm1, %v5847_v51 }
 0x269   :  { %9030 = vmatmul.mubr.msk.f32.gmra.mrb[62].mxu0 %vm85_vm1, %v5848_v50 }
 0x27c   :  { %v8448_v57 = vpop.f32.mrb[0].mxu1 }
 0x27d   :  { %v2561_v31 = vpop.f32.mrb[1].mxu1 }
 0x280   :  { %v8451_v48 = vpop.f32.mrb[2].mxu1 }
 0x281   :  { %v2571_v0 = vpop.f32.mrb[3].mxu1 }
 0x284   :  { %v8454_v1 = vpop.f32.mrb[4].mxu1 }
 0x285   :  { %v2581_v5 = vpop.f32.mrb[5].mxu1 }
 0x288   :  { %v11278_v8 = vpop.f32.mrb[6].mxu1 }
 0x289   :  { %v11280_v13 = vpop.f32.mrb[7].mxu1 }
 0x28c   :  { %v11282_v16 = vpop.f32.mrb[8].mxu1 }
 0x28d   :  { %v11284_v17 = vpop.f32.mrb[9].mxu1 }
 0x290   :  { %v11286_v21 = vpop.f32.mrb[10].mxu1 }
 0x291   :  { %v11288_v24 = vpop.f32.mrb[11].mxu1 }
 0x294   :  { %v11290_v62 = vpop.f32.mrb[12].mxu1 }
 0x295   :  { %v11292_v29 = vpop.f32.mrb[13].mxu1 }
 0x298   :  { %v11294_v33 = vpop.f32.mrb[14].mxu1 }
 0x299   :  { %v11296_v38 = vpop.f32.mrb[15].mxu1 }
 0x29c   :  { %v11298_v40 = vpop.f32.mrb[16].mxu1 }
 0x29d   :  { %v11300_v37 = vpop.f32.mrb[17].mxu1 }
 0x2a0   :  { %v11302_v41 = vpop.f32.mrb[18].mxu1 }
 0x2a1   :  { %v11304_v28 = vpop.f32.mrb[19].mxu1 }
 0x2a4   :  { %v11306_v43 = vpop.f32.mrb[20].mxu1 }
 0x2a5   :  { %v11308_v20 = vpop.f32.mrb[21].mxu1 }
 0x2a8   :  { %v11310_v42 = vpop.f32.mrb[22].mxu1 }
 0x2a9   :  { %v11312_v12 = vpop.f32.mrb[23].mxu1 }
 0x2ac   :  { %v11314_v46 = vpop.f32.mrb[24].mxu1 }
 0x2ad   :  { %v11316_v9 = vpop.f32.mrb[25].mxu1 }
 0x2b0   :  { %v11318_v34 = vpop.f32.mrb[26].mxu1 }
 0x2b1   :  { %v11320_v49 = vpop.f32.mrb[27].mxu1 }
 0x2b4   :  { %v11322_v26 = vpop.f32.mrb[28].mxu1 }
 0x2b5   :  { %v11324_v56 = vpop.f32.mrb[29].mxu1 }
 0x2b8   :  { %v11326_v44 = vpop.f32.mrb[30].mxu1 }
 0x2b9   :  { %v11328_v47 = vpop.f32.mrb[31].mxu1 }
 0x2c0   :  { %v8938_v59 = vpop.f32.mrb[0].mxu0 }
 0x2c1   :  { %v9034_v58 = vadd.f32 %v8938_v59, %v8448_v57  ;;  %v6112_v63 = vpop.f32.mrb[1].mxu0 }
 0x2c2   :  { %v9035_v2 = vadd.f32 %v6112_v63, %v2561_v31 }
 0x2c3   :  { %v6502_v7 = vadd.f32 %v9034_v58, %v11333_v27 }
 0x2c4   :  { %v6501_v10 = vadd.f32 %v9035_v2, %v11333_v27  ;;  %v8941_v14 = vpop.f32.mrb[2].mxu0 }
 0x2c5   :  { %6567 = vst.msk [vmem:[%s11823_s3 + $0x8] sm:$0xff] %vm6565_vm4, %v6502_v7  ;;  %v6631_v15 = vsel %vm6565_vm4, %v6502_v7, 0.0  ;;  %v6766_v22 = vmul.f32 %v6502_v7, %v6502_v7  ;;  %v9036_v23 = vadd.f32 %v8941_v14, %v8451_v48  ;;  %v6122_v30 = vpop.f32.mrb[3].mxu0 }
 0x2c6   :  { %6566 = vst.msk [vmem:[%s11823_s3] sm:$0xff] %vm6565_vm4, %v6501_v10  ;;  %v6630_v32 = vsel %vm6565_vm4, %v6501_v10, 0.0  ;;  %v6765_v39 = vmul.f32 %v6501_v10, %v6501_v10  ;;  %v9037_v45 = vadd.f32 %v6122_v30, %v2571_v0 }
 0x2c7   :  { %v6830_v60 = vsel %vm6565_vm4, %v6766_v22, 0.0  ;;  %v6632_v4 = vadd.f32 %v6631_v15, %v6630_v32  ;;  %v6504_v54 = vadd.f32 %v9036_v23, %v11333_v27 }
 0x2c8   :  { %v6829_v55 = vsel %vm6565_vm4, %v6765_v39, 0.0  ;;  %v6503_v3 = vadd.f32 %v9037_v45, %v11333_v27  ;;  %v8944_v6 = vpop.f32.mrb[4].mxu0 }
 0x2c9   :  { %v6831_v18 = vadd.f32 %v6830_v60, %v6829_v55  ;;  %6569 = vst.msk [vmem:[%s11823_s3 + $0x18] sm:$0xff] %vm6565_vm4, %v6504_v54  ;;  %v6768_v19 = vmul.f32 %v6504_v54, %v6504_v54  ;;  %v9038_v35 = vadd.f32 %v8944_v6, %v8454_v1  ;;  %v6132_v11 = vpop.f32.mrb[5].mxu0  ;;  %v6635_v53 = vsel %vm6565_vm4, %v6504_v54, 0.0 }
 0x2ca   :  { %6568 = vst.msk [vmem:[%s11823_s3 + $0x10] sm:$0xff] %vm6565_vm4, %v6503_v3  ;;  %v6633_v36 = vsel %vm6565_vm4, %v6503_v3, 0.0  ;;  %v6767_v61 = vmul.f32 %v6503_v3, %v6503_v3  ;;  %v9039_v25 = vadd.f32 %v6132_v11, %v2581_v5 }
 0x2cb   :  { %v6634_v52 = vadd.f32 %v6633_v36, %v6632_v4  ;;  %v6506_v51 = vadd.f32 %v9038_v35, %v11333_v27  ;;  %v6834_v48 = vsel %vm6565_vm4, %v6768_v19, 0.0 }
 0x2cc   :  { %v6832_v50 = vsel %vm6565_vm4, %v6767_v61, 0.0  ;;  %v6505_v57 = vadd.f32 %v9039_v25, %v11333_v27  ;;  %v8947_v31 = vpop.f32.mrb[6].mxu0 }
 0x2cd   :  { %v6833_v0 = vadd.f32 %v6832_v50, %v6831_v18  ;;  %6571 = vst.msk [vmem:[%s11823_s3 + $0x28] sm:$0xff] %vm6565_vm4, %v6506_v51  ;;  %v6770_v1 = vmul.f32 %v6506_v51, %v6506_v51  ;;  %v6636_v5 = vadd.f32 %v6635_v53, %v6634_v52  ;;  %v6142_v59 = vpop.f32.mrb[7].mxu0  ;;  %v9040_v2 = vadd.f32 %v8947_v31, %v11278_v8 }
 0x2ce   :  { %6570 = vst.msk [vmem:[%s11823_s3 + $0x20] sm:$0xff] %vm6565_vm4, %v6505_v57  ;;  %v6637_v58 = vsel %vm6565_vm4, %v6505_v57, 0.0  ;;  %v6769_v63 = vmul.f32 %v6505_v57, %v6505_v57  ;;  %v9041_v7 = vadd.f32 %v6142_v59, %v11280_v13  ;;  %v6639_v15 = vsel %vm6565_vm4, %v6506_v51, 0.0 }
 0x2cf   :  { %v6638_v10 = vadd.f32 %v6637_v58, %v6636_v5  ;;  %v6835_v14 = vadd.f32 %v6834_v48, %v6833_v0  ;;  %v6508_v23 = vadd.f32 %v9040_v2, %v11333_v27  ;;  %v6838_v8 = vsel %vm6565_vm4, %v6770_v1, 0.0 }
 0x2d0   :  { %v6836_v22 = vsel %vm6565_vm4, %v6769_v63, 0.0  ;;  %v6507_v30 = vadd.f32 %v9041_v7, %v11333_v27  ;;  %v8950_v32 = vpop.f32.mrb[8].mxu0 }
 0x2d1   :  { %v6837_v39 = vadd.f32 %v6836_v22, %v6835_v14  ;;  %v6640_v45 = vadd.f32 %v6639_v15, %v6638_v10  ;;  %v9042_v60 = vadd.f32 %v8950_v32, %v11282_v16  ;;  %v6152_v4 = vpop.f32.mrb[9].mxu0  ;;  %6573 = vst.msk [vmem:[%s11823_s3 + $0x38] sm:$0xff] %vm6565_vm4, %v6508_v23  ;;  %v6772_v13 = vmul.f32 %v6508_v23, %v6508_v23 }
 0x2d2   :  { %6572 = vst.msk [vmem:[%s11823_s3 + $0x30] sm:$0xff] %vm6565_vm4, %v6507_v30  ;;  %v6641_v54 = vsel %vm6565_vm4, %v6507_v30, 0.0  ;;  %v6771_v55 = vmul.f32 %v6507_v30, %v6507_v30  ;;  %v9043_v18 = vadd.f32 %v6152_v4, %v11284_v17  ;;  %v6643_v11 = vsel %vm6565_vm4, %v6508_v23, 0.0 }
 0x2d3   :  { %v6642_v3 = vadd.f32 %v6641_v54, %v6640_v45  ;;  %v6839_v6 = vadd.f32 %v6838_v8, %v6837_v39  ;;  %v6510_v16 = vadd.f32 %v9042_v60, %v11333_v27  ;;  %v6842_v36 = vsel %vm6565_vm4, %v6772_v13, 0.0 }
 0x2d4   :  { %v6840_v19 = vsel %vm6565_vm4, %v6771_v55, 0.0  ;;  %v8953_v35 = vpop.f32.mrb[10].mxu0  ;;  %v6509_v25 = vadd.f32 %v9043_v18, %v11333_v27 }
 0x2d5   :  { %v6841_v61 = vadd.f32 %v6840_v19, %v6839_v6  ;;  %6575 = vst.msk [vmem:[%s11823_s3 + $0x48] sm:$0xff] %vm6565_vm4, %v6510_v16  ;;  %v6162_v52 = vpop.f32.mrb[11].mxu0  ;;  %v6774_v51 = vmul.f32 %v6510_v16, %v6510_v16  ;;  %v6644_v53 = vadd.f32 %v6643_v11, %v6642_v3  ;;  %v9044_v17 = vadd.f32 %v8953_v35, %v11286_v21 }
 0x2d6   :  { %v9045_v50 = vadd.f32 %v6162_v52, %v11288_v24  ;;  %6574 = vst.msk [vmem:[%s11823_s3 + $0x40] sm:$0xff] %vm6565_vm4, %v6509_v25  ;;  %v6645_v57 = vsel %vm6565_vm4, %v6509_v25, 0.0  ;;  %v6773_v31 = vmul.f32 %v6509_v25, %v6509_v25  ;;  %v6647_v58 = vsel %vm6565_vm4, %v6510_v16, 0.0 }
 0x2d7   :  { %v6843_v48 = vadd.f32 %v6842_v36, %v6841_v61  ;;  %v6646_v0 = vadd.f32 %v6645_v57, %v6644_v53  ;;  %v6512_v1 = vadd.f32 %v9044_v17, %v11333_v27  ;;  %v6846_v2 = vsel %vm6565_vm4, %v6774_v51, 0.0 }
 0x2d8   :  { %v6511_v5 = vadd.f32 %v9045_v50, %v11333_v27  ;;  %v8956_v59 = vpop.f32.mrb[12].mxu0  ;;  %v6844_v21 = vsel %vm6565_vm4, %v6773_v31, 0.0 }
 0x2d9   :  { %v9046_v24 = vadd.f32 %v8956_v59, %v11290_v62  ;;  %v6172_v63 = vpop.f32.mrb[13].mxu0  ;;  %v6845_v7 = vadd.f32 %v6844_v21, %v6843_v48  ;;  %6577 = vst.msk [vmem:[%s11823_s3 + $0x58] sm:$0xff] %vm6565_vm4, %v6512_v1  ;;  %v6776_v10 = vmul.f32 %v6512_v1, %v6512_v1  ;;  %v6648_v14 = vadd.f32 %v6647_v58, %v6646_v0 }
 0x2da   :  { %6576 = vst.msk [vmem:[%s11823_s3 + $0x50] sm:$0xff] %vm6565_vm4, %v6511_v5  ;;  %v6649_v15 = vsel %vm6565_vm4, %v6511_v5, 0.0  ;;  %v6775_v22 = vmul.f32 %v6511_v5, %v6511_v5  ;;  %v9047_v23 = vadd.f32 %v6172_v63, %v11292_v29  ;;  %v6651_v45 = vsel %vm6565_vm4, %v6512_v1, 0.0 }
 0x2db   :  { %v6514_v62 = vadd.f32 %v9046_v24, %v11333_v27  ;;  %v6650_v30 = vadd.f32 %v6649_v15, %v6648_v14  ;;  %v6847_v32 = vadd.f32 %v6846_v2, %v6845_v7  ;;  %v6850_v6 = vsel %vm6565_vm4, %v6776_v10, 0.0 }
 0x2dc   :  { %v8959_v39 = vpop.f32.mrb[14].mxu0  ;;  %v6848_v60 = vsel %vm6565_vm4, %v6775_v22, 0.0  ;;  %v6513_v8 = vadd.f32 %v9047_v23, %v11333_v27 }
 0x2dd   :  { %6579 = vst.msk [vmem:[%s11823_s3 + $0x68] sm:$0xff] %vm6565_vm4, %v6514_v62  ;;  %v6778_v4 = vmul.f32 %v6514_v62, %v6514_v62  ;;  %v6182_v13 = vpop.f32.mrb[15].mxu0  ;;  %v6849_v54 = vadd.f32 %v6848_v60, %v6847_v32  ;;  %v6652_v55 = vadd.f32 %v6651_v45, %v6650_v30  ;;  %v9048_v29 = vadd.f32 %v8959_v39, %v11294_v33 }
 0x2de   :  { %v9049_v3 = vadd.f32 %v6182_v13, %v11296_v38  ;;  %6578 = vst.msk [vmem:[%s11823_s3 + $0x60] sm:$0xff] %vm6565_vm4, %v6513_v8  ;;  %v6653_v16 = vsel %vm6565_vm4, %v6513_v8, 0.0  ;;  %v6777_v18 = vmul.f32 %v6513_v8, %v6513_v8  ;;  %v6655_v33 = vsel %vm6565_vm4, %v6514_v62, 0.0 }
 0x2df   :  { %v6654_v19 = vadd.f32 %v6653_v16, %v6652_v55  ;;  %v6851_v35 = vadd.f32 %v6850_v6, %v6849_v54  ;;  %v6516_v11 = vadd.f32 %v9048_v29, %v11333_v27  ;;  %v6854_v51 = vsel %vm6565_vm4, %v6778_v4, 0.0 }
 0x2e0   :  { %v6515_v36 = vadd.f32 %v9049_v3, %v11333_v27  ;;  %v8962_v61 = vpop.f32.mrb[16].mxu0  ;;  %v6852_v38 = vsel %vm6565_vm4, %v6777_v18, 0.0 }
 0x2e1   :  { %v9050_v25 = vadd.f32 %v8962_v61, %v11298_v40  ;;  %v6192_v52 = vpop.f32.mrb[17].mxu0  ;;  %v6853_v53 = vadd.f32 %v6852_v38, %v6851_v35  ;;  %6581 = vst.msk [vmem:[%s11823_s3 + $0x78] sm:$0xff] %vm6565_vm4, %v6516_v11  ;;  %v6780_v17 = vmul.f32 %v6516_v11, %v6516_v11  ;;  %v6656_v50 = vadd.f32 %v6655_v33, %v6654_v19 }
 0x2e2   :  { %6580 = vst.msk [vmem:[%s11823_s3 + $0x70] sm:$0xff] %vm6565_vm4, %v6515_v36  ;;  %v6657_v57 = vsel %vm6565_vm4, %v6515_v36, 0.0  ;;  %v6779_v31 = vmul.f32 %v6515_v36, %v6515_v36  ;;  %v9051_v48 = vadd.f32 %v6192_v52, %v11300_v37  ;;  %v6659_v59 = vsel %vm6565_vm4, %v6516_v11, 0.0 }
 0x2e3   :  { %v6518_v40 = vadd.f32 %v9050_v25, %v11333_v27  ;;  %v6658_v0 = vadd.f32 %v6657_v57, %v6656_v50  ;;  %v6855_v1 = vadd.f32 %v6854_v51, %v6853_v53  ;;  %v6858_v14 = vsel %vm6565_vm4, %v6780_v17, 0.0 }
 0x2e4   :  { %v8965_v5 = vpop.f32.mrb[18].mxu0  ;;  %v6856_v58 = vsel %vm6565_vm4, %v6779_v31, 0.0  ;;  %v6517_v24 = vadd.f32 %v9051_v48, %v11333_v27 }
 0x2e5   :  { %6583 = vst.msk [vmem:[%s11823_s3 + $0x88] sm:$0xff] %vm6565_vm4, %v6518_v40  ;;  %v6782_v21 = vmul.f32 %v6518_v40, %v6518_v40  ;;  %v6202_v63 = vpop.f32.mrb[19].mxu0  ;;  %v6857_v2 = vadd.f32 %v6856_v58, %v6855_v1  ;;  %v6660_v7 = vadd.f32 %v6659_v59, %v6658_v0  ;;  %v9052_v37 = vadd.f32 %v8965_v5, %v11302_v41 }
 0x2e6   :  { %v9053_v10 = vadd.f32 %v6202_v63, %v11304_v28  ;;  %6582 = vst.msk [vmem:[%s11823_s3 + $0x80] sm:$0xff] %vm6565_vm4, %v6517_v24  ;;  %v6661_v15 = vsel %vm6565_vm4, %v6517_v24, 0.0  ;;  %v6781_v22 = vmul.f32 %v6517_v24, %v6517_v24  ;;  %v6663_v41 = vsel %vm6565_vm4, %v6518_v40, 0.0 }
 0x2e7   :  { %v6662_v62 = vadd.f32 %v6661_v15, %v6660_v7  ;;  %v6859_v23 = vadd.f32 %v6858_v14, %v6857_v2  ;;  %v6520_v30 = vadd.f32 %v9052_v37, %v11333_v27  ;;  %v6862_v4 = vsel %vm6565_vm4, %v6782_v21, 0.0 }
 0x2e8   :  { %v6519_v32 = vadd.f32 %v9053_v10, %v11333_v27  ;;  %v8968_v39 = vpop.f32.mrb[20].mxu0  ;;  %v6860_v28 = vsel %vm6565_vm4, %v6781_v22, 0.0 }
 0x2e9   :  { %v9054_v45 = vadd.f32 %v8968_v39, %v11306_v43  ;;  %v6212_v60 = vpop.f32.mrb[21].mxu0  ;;  %v6861_v8 = vadd.f32 %v6860_v28, %v6859_v23  ;;  %6585 = vst.msk [vmem:[%s11823_s3 + $0x98] sm:$0xff] %vm6565_vm4, %v6520_v30  ;;  %v6784_v13 = vmul.f32 %v6520_v30, %v6520_v30  ;;  %v6664_v54 = vadd.f32 %v6663_v41, %v6662_v62 }
 0x2ea   :  { %6584 = vst.msk [vmem:[%s11823_s3 + $0x90] sm:$0xff] %vm6565_vm4, %v6519_v32  ;;  %v6665_v55 = vsel %vm6565_vm4, %v6519_v32, 0.0  ;;  %v6783_v29 = vmul.f32 %v6519_v32, %v6519_v32  ;;  %v9055_v3 = vadd.f32 %v6212_v60, %v11308_v20  ;;  %v6667_v19 = vsel %vm6565_vm4, %v6520_v30, 0.0 }
 0x2eb   :  { %v6522_v43 = vadd.f32 %v9054_v45, %v11333_v27  ;;  %v6666_v6 = vadd.f32 %v6665_v55, %v6664_v54  ;;  %v6863_v16 = vadd.f32 %v6862_v4, %v6861_v8  ;;  %v6866_v52 = vsel %vm6565_vm4, %v6784_v13, 0.0 }
 0x2ec   :  { %v8971_v18 = vpop.f32.mrb[22].mxu0  ;;  %v6864_v35 = vsel %vm6565_vm4, %v6783_v29, 0.0  ;;  %v6521_v36 = vadd.f32 %v9055_v3, %v11333_v27 }
 0x2ed   :  { %6587 = vst.msk [vmem:[%s11823_s3 + $0xa8] sm:$0xff] %vm6565_vm4, %v6522_v43  ;;  %v6786_v11 = vmul.f32 %v6522_v43, %v6522_v43  ;;  %v6222_v61 = vpop.f32.mrb[23].mxu0  ;;  %v6865_v33 = vadd.f32 %v6864_v35, %v6863_v16  ;;  %v6668_v38 = vadd.f32 %v6667_v19, %v6666_v6  ;;  %v9056_v20 = vadd.f32 %v8971_v18, %v11310_v42 }
 0x2ee   :  { %v9057_v25 = vadd.f32 %v6222_v61, %v11312_v12  ;;  %6586 = vst.msk [vmem:[%s11823_s3 + $0xa0] sm:$0xff] %vm6565_vm4, %v6521_v36  ;;  %v6669_v51 = vsel %vm6565_vm4, %v6521_v36, 0.0  ;;  %v6785_v53 = vmul.f32 %v6521_v36, %v6521_v36  ;;  %v6671_v42 = vsel %vm6565_vm4, %v6522_v43, 0.0 }
 0x2ef   :  { %v6670_v17 = vadd.f32 %v6669_v51, %v6668_v38  ;;  %v6867_v50 = vadd.f32 %v6866_v52, %v6865_v33  ;;  %v6524_v57 = vadd.f32 %v9056_v20, %v11333_v27  ;;  %v6870_v1 = vsel %vm6565_vm4, %v6786_v11, 0.0 }
 0x2f0   :  { %v6523_v31 = vadd.f32 %v9057_v25, %v11333_v27  ;;  %v8974_v40 = vpop.f32.mrb[24].mxu0  ;;  %v6868_v12 = vsel %vm6565_vm4, %v6785_v53, 0.0 }
 0x2f1   :  { %v9058_v48 = vadd.f32 %v8974_v40, %v11314_v46  ;;  %v6232_v0 = vpop.f32.mrb[25].mxu0  ;;  %v6869_v5 = vadd.f32 %v6868_v12, %v6867_v50  ;;  %6589 = vst.msk [vmem:[%s11823_s3 + $0xb8] sm:$0xff] %vm6565_vm4, %v6524_v57  ;;  %v6788_v59 = vmul.f32 %v6524_v57, %v6524_v57  ;;  %v6672_v58 = vadd.f32 %v6671_v42, %v6670_v17 }
 0x2f2   :  { %6588 = vst.msk [vmem:[%s11823_s3 + $0xb0] sm:$0xff] %vm6565_vm4, %v6523_v31  ;;  %v6673_v21 = vsel %vm6565_vm4, %v6523_v31, 0.0  ;;  %v6787_v24 = vmul.f32 %v6523_v31, %v6523_v31  ;;  %v9059_v63 = vadd.f32 %v6232_v0, %v11316_v9  ;;  %v6675_v10 = vsel %vm6565_vm4, %v6524_v57, 0.0 }
 0x2f3   :  { %v6526_v46 = vadd.f32 %v9058_v48, %v11333_v27  ;;  %v6674_v2 = vadd.f32 %v6673_v21, %v6672_v58  ;;  %v6871_v7 = vadd.f32 %v6870_v1, %v6869_v5  ;;  %v6874_v39 = vsel %vm6565_vm4, %v6788_v59, 0.0 }
 0x2f4   :  { %v8977_v37 = vpop.f32.mrb[26].mxu0  ;;  %v6872_v14 = vsel %vm6565_vm4, %v6787_v24, 0.0  ;;  %v6525_v22 = vadd.f32 %v9059_v63, %v11333_v27 }
 0x2f5   :  { %6591 = vst.msk [vmem:[%s11823_s3 + $0xc8] sm:$0xff] %vm6565_vm4, %v6526_v46  ;;  %v6790_v15 = vmul.f32 %v6526_v46, %v6526_v46  ;;  %v6242_v62 = vpop.f32.mrb[27].mxu0  ;;  %v6873_v23 = vadd.f32 %v6872_v14, %v6871_v7  ;;  %v6676_v30 = vadd.f32 %v6675_v10, %v6674_v2  ;;  %v9060_v9 = vadd.f32 %v8977_v37, %v11318_v34 }
 0x2f6   :  { %v9061_v32 = vadd.f32 %v6242_v62, %v11320_v49  ;;  %6590 = vst.msk [vmem:[%s11823_s3 + $0xc0] sm:$0xff] %vm6565_vm4, %v6525_v22  ;;  %v6677_v41 = vsel %vm6565_vm4, %v6525_v22, 0.0  ;;  %v6789_v28 = vmul.f32 %v6525_v22, %v6525_v22  ;;  %v6679_v34 = vsel %vm6565_vm4, %v6526_v46, 0.0 }
 0x2f7   :  { %v6678_v45 = vadd.f32 %v6677_v41, %v6676_v30  ;;  %v6875_v60 = vadd.f32 %v6874_v39, %v6873_v23  ;;  %v6528_v4 = vadd.f32 %v9060_v9, %v11333_v27  ;;  %v6878_v29 = vsel %vm6565_vm4, %v6790_v15, 0.0 }
 0x2f8   :  { %v6527_v8 = vadd.f32 %v9061_v32, %v11333_v27  ;;  %v8980_v13 = vpop.f32.mrb[28].mxu0  ;;  %v6876_v49 = vsel %vm6565_vm4, %v6789_v28, 0.0 }
 0x2f9   :  { %v9062_v54 = vadd.f32 %v8980_v13, %v11322_v26  ;;  %v6252_v55 = vpop.f32.mrb[29].mxu0  ;;  %v6877_v43 = vadd.f32 %v6876_v49, %v6875_v60  ;;  %6593 = vst.msk [vmem:[%s11823_s3 + $0xd8] sm:$0xff] %vm6565_vm4, %v6528_v4  ;;  %v6792_v3 = vmul.f32 %v6528_v4, %v6528_v4  ;;  %v6680_v6 = vadd.f32 %v6679_v34, %v6678_v45 }
 0x2fa   :  { %6592 = vst.msk [vmem:[%s11823_s3 + $0xd0] sm:$0xff] %vm6565_vm4, %v6527_v8  ;;  %v6681_v16 = vsel %vm6565_vm4, %v6527_v8, 0.0  ;;  %v6791_v18 = vmul.f32 %v6527_v8, %v6527_v8  ;;  %v9063_v19 = vadd.f32 %v6252_v55, %v11324_v56  ;;  %v6683_v61 = vsel %vm6565_vm4, %v6528_v4, 0.0 }
 0x2fb   :  { %v6530_v26 = vadd.f32 %v9062_v54, %v11333_v27  ;;  %v6682_v35 = vadd.f32 %v6681_v16, %v6680_v6  ;;  %v6879_v11 = vadd.f32 %v6878_v29, %v6877_v43  ;;  %v6882_v50 = vsel %vm6565_vm4, %v6792_v3, 0.0 }
 0x2fc   :  { %v8983_v36 = vpop.f32.mrb[30].mxu0  ;;  %v6880_v33 = vsel %vm6565_vm4, %v6791_v18, 0.0  ;;  %v6529_v20 = vadd.f32 %v9063_v19, %v11333_v27  ;;  %v8594_v17 = vpop.f32.mrb[32].mxu1 }
 0x2fd   :  { %6595 = vst.msk [vmem:[%s11823_s3 + $0xe8] sm:$0xff] %vm6565_vm4, %v6530_v26  ;;  %v6794_v38 = vmul.f32 %v6530_v26, %v6530_v26  ;;  %v6262_v25 = vpop.f32.mrb[31].mxu0  ;;  %v6881_v52 = vadd.f32 %v6880_v33, %v6879_v11  ;;  %v6684_v51 = vadd.f32 %v6683_v61, %v6682_v35  ;;  %v9064_v56 = vadd.f32 %v8983_v36, %v11326_v44  ;;  %v3431_v40 = vpop.f32.mrb[33].mxu1 }
 0x2fe   :  { %v9065_v53 = vadd.f32 %v6262_v25, %v11328_v47  ;;  %6594 = vst.msk [vmem:[%s11823_s3 + $0xe0] sm:$0xff] %vm6565_vm4, %v6529_v20  ;;  %v6685_v57 = vsel %vm6565_vm4, %v6529_v20, 0.0  ;;  %v6793_v31 = vmul.f32 %v6529_v20, %v6529_v20  ;;  %v6687_v47 = vsel %vm6565_vm4, %v6530_v26, 0.0 }
 0x2ff   :  { %v6686_v42 = vadd.f32 %v6685_v57, %v6684_v51  ;;  %v6883_v12 = vadd.f32 %v6882_v50, %v6881_v52  ;;  %v6532_v48 = vadd.f32 %v9064_v56, %v11333_v27  ;;  %v6886_v58 = vsel %vm6565_vm4, %v6794_v38, 0.0 }
 0x300   :  { %v6531_v44 = vadd.f32 %v9065_v53, %v11333_v27  ;;  %v8986_v0 = vpop.f32.mrb[32].mxu0  ;;  %v6884_v1 = vsel %vm6565_vm4, %v6793_v31, 0.0  ;;  %v8597_v63 = vpop.f32.mrb[34].mxu1 }
 0x301   :  { %v9066_v5 = vadd.f32 %v8986_v0, %v8594_v17  ;;  %v6272_v59 = vpop.f32.mrb[33].mxu0  ;;  %v6885_v21 = vadd.f32 %v6884_v1, %v6883_v12  ;;  %6597 = vst.msk [vmem:[%s11823_s3 + $0xf8] sm:$0xff] %vm6565_vm4, %v6532_v48  ;;  %v6796_v24 = vmul.f32 %v6532_v48, %v6532_v48  ;;  %v6688_v46 = vadd.f32 %v6687_v47, %v6686_v42  ;;  %v3441_v14 = vpop.f32.mrb[35].mxu1 }
 0x302   :  { %6596 = vst.msk [vmem:[%s11823_s3 + $0xf0] sm:$0xff] %vm6565_vm4, %v6531_v44  ;;  %v6689_v2 = vsel %vm6565_vm4, %v6531_v44, 0.0  ;;  %v6795_v7 = vmul.f32 %v6531_v44, %v6531_v44  ;;  %v9067_v10 = vadd.f32 %v6272_v59, %v3431_v40  ;;  %v6691_v23 = vsel %vm6565_vm4, %v6532_v48, 0.0 }
 0x303   :  { %v6534_v37 = vadd.f32 %v9066_v5, %v11333_v27  ;;  %v6690_v15 = vadd.f32 %v6689_v2, %v6688_v46  ;;  %v6887_v22 = vadd.f32 %v6886_v58, %v6885_v21  ;;  %v6890_v8 = vsel %vm6565_vm4, %v6796_v24, 0.0 }
 0x304   :  { %v8989_v62 = vpop.f32.mrb[34].mxu0  ;;  %v6888_v30 = vsel %vm6565_vm4, %v6795_v7, 0.0  ;;  %v6533_v32 = vadd.f32 %v9067_v10, %v11333_v27  ;;  %v8600_v4 = vpop.f32.mrb[36].mxu1 }
 0x305   :  { %6599 = vst.msk [vmem:[%s11823_s3 + $0x108] sm:$0xff] %vm6565_vm4, %v6534_v37  ;;  %v6798_v9 = vmul.f32 %v6534_v37, %v6534_v37  ;;  %v6282_v39 = vpop.f32.mrb[35].mxu0  ;;  %v6889_v41 = vadd.f32 %v6888_v30, %v6887_v22  ;;  %v6692_v28 = vadd.f32 %v6691_v23, %v6690_v15  ;;  %v9068_v45 = vadd.f32 %v8989_v62, %v8597_v63  ;;  %v3451_v49 = vpop.f32.mrb[37].mxu1 }
 0x306   :  { %v9069_v60 = vadd.f32 %v6282_v39, %v3441_v14  ;;  %6598 = vst.msk [vmem:[%s11823_s3 + $0x100] sm:$0xff] %vm6565_vm4, %v6533_v32  ;;  %v6693_v13 = vsel %vm6565_vm4, %v6533_v32, 0.0  ;;  %v6797_v34 = vmul.f32 %v6533_v32, %v6533_v32  ;;  %v6695_v6 = vsel %vm6565_vm4, %v6534_v37, 0.0 }
 0x307   :  { %v6694_v54 = vadd.f32 %v6693_v13, %v6692_v28  ;;  %v6891_v55 = vadd.f32 %v6890_v8, %v6889_v41  ;;  %v6536_v29 = vadd.f32 %v9068_v45, %v11333_v27  ;;  %v6894_v19 = vsel %vm6565_vm4, %v6798_v9, 0.0 }
 0x308   :  { %v6535_v43 = vadd.f32 %v9069_v60, %v11333_v27  ;;  %v8992_v3 = vpop.f32.mrb[36].mxu0  ;;  %v6892_v16 = vsel %vm6565_vm4, %v6797_v34, 0.0  ;;  %v8603_v61 = vpop.f32.mrb[38].mxu1 }
 0x309   :  { %v9070_v18 = vadd.f32 %v8992_v3, %v8600_v4  ;;  %v6292_v26 = vpop.f32.mrb[37].mxu0  ;;  %v6893_v35 = vadd.f32 %v6892_v16, %v6891_v55  ;;  %6601 = vst.msk [vmem:[%s11823_s3 + $0x118] sm:$0xff] %vm6565_vm4, %v6536_v29  ;;  %v6800_v11 = vmul.f32 %v6536_v29, %v6536_v29  ;;  %v6696_v36 = vadd.f32 %v6695_v6, %v6694_v54  ;;  %v3461_v52 = vpop.f32.mrb[39].mxu1 }
 0x30a   :  { %6600 = vst.msk [vmem:[%s11823_s3 + $0x110] sm:$0xff] %vm6565_vm4, %v6535_v43  ;;  %v6697_v33 = vsel %vm6565_vm4, %v6535_v43, 0.0  ;;  %v6799_v38 = vmul.f32 %v6535_v43, %v6535_v43  ;;  %v9071_v25 = vadd.f32 %v6292_v26, %v3451_v49  ;;  %v6699_v17 = vsel %vm6565_vm4, %v6536_v29, 0.0 }
 0x30b   :  { %v6538_v20 = vadd.f32 %v9070_v18, %v11333_v27  ;;  %v6698_v51 = vadd.f32 %v6697_v33, %v6696_v36  ;;  %v6895_v56 = vadd.f32 %v6894_v19, %v6893_v35  ;;  %v6898_v47 = vsel %vm6565_vm4, %v6800_v11, 0.0 }
 0x30c   :  { %v8995_v53 = vpop.f32.mrb[38].mxu0  ;;  %v6896_v50 = vsel %vm6565_vm4, %v6799_v38, 0.0  ;;  %v6537_v31 = vadd.f32 %v9071_v25, %v11333_v27  ;;  %v8606_v0 = vpop.f32.mrb[40].mxu1 }
 0x30d   :  { %6603 = vst.msk [vmem:[%s11823_s3 + $0x128] sm:$0xff] %vm6565_vm4, %v6538_v20  ;;  %v6802_v57 = vmul.f32 %v6538_v20, %v6538_v20  ;;  %v6302_v40 = vpop.f32.mrb[39].mxu0  ;;  %v6897_v42 = vadd.f32 %v6896_v50, %v6895_v56  ;;  %v6700_v12 = vadd.f32 %v6699_v17, %v6698_v51  ;;  %v9072_v48 = vadd.f32 %v8995_v53, %v8603_v61  ;;  %v3471_v59 = vpop.f32.mrb[41].mxu1 }
 0x30e   :  { %v9073_v44 = vadd.f32 %v6302_v40, %v3461_v52  ;;  %6602 = vst.msk [vmem:[%s11823_s3 + $0x120] sm:$0xff] %vm6565_vm4, %v6537_v31  ;;  %v6701_v1 = vsel %vm6565_vm4, %v6537_v31, 0.0  ;;  %v6801_v5 = vmul.f32 %v6537_v31, %v6537_v31  ;;  %v6703_v2 = vsel %vm6565_vm4, %v6538_v20, 0.0 }
 0x30f   :  { %v6702_v58 = vadd.f32 %v6701_v1, %v6700_v12  ;;  %v6899_v21 = vadd.f32 %v6898_v47, %v6897_v42  ;;  %v6540_v24 = vadd.f32 %v9072_v48, %v11333_v27  ;;  %v6902_v14 = vsel %vm6565_vm4, %v6802_v57, 0.0 }
 0x310   :  { %v6539_v46 = vadd.f32 %v9073_v44, %v11333_v27  ;;  %v8998_v63 = vpop.f32.mrb[40].mxu0  ;;  %v6900_v7 = vsel %vm6565_vm4, %v6801_v5, 0.0  ;;  %v8609_v23 = vpop.f32.mrb[42].mxu1 }
 0x311   :  { %v9074_v37 = vadd.f32 %v8998_v63, %v8606_v0  ;;  %v6312_v10 = vpop.f32.mrb[41].mxu0  ;;  %v6901_v15 = vadd.f32 %v6900_v7, %v6899_v21  ;;  %6605 = vst.msk [vmem:[%s11823_s3 + $0x138] sm:$0xff] %vm6565_vm4, %v6540_v24  ;;  %v6804_v22 = vmul.f32 %v6540_v24, %v6540_v24  ;;  %v6704_v62 = vadd.f32 %v6703_v2, %v6702_v58  ;;  %v3481_v41 = vpop.f32.mrb[43].mxu1 }
 0x312   :  { %6604 = vst.msk [vmem:[%s11823_s3 + $0x130] sm:$0xff] %vm6565_vm4, %v6539_v46  ;;  %v6705_v30 = vsel %vm6565_vm4, %v6539_v46, 0.0  ;;  %v6803_v9 = vmul.f32 %v6539_v46, %v6539_v46  ;;  %v9075_v39 = vadd.f32 %v6312_v10, %v3471_v59  ;;  %v6707_v4 = vsel %vm6565_vm4, %v6540_v24, 0.0 }
 0x313   :  { %v6542_v32 = vadd.f32 %v9074_v37, %v11333_v27  ;;  %v6706_v28 = vadd.f32 %v6705_v30, %v6704_v62  ;;  %v6903_v45 = vadd.f32 %v6902_v14, %v6901_v15  ;;  %v6906_v6 = vsel %vm6565_vm4, %v6804_v22, 0.0 }
 0x314   :  { %v9001_v60 = vpop.f32.mrb[42].mxu0  ;;  %v6904_v8 = vsel %vm6565_vm4, %v6803_v9, 0.0  ;;  %v6541_v34 = vadd.f32 %v9075_v39, %v11333_v27  ;;  %v8612_v3 = vpop.f32.mrb[44].mxu1 }
 0x315   :  { %6607 = vst.msk [vmem:[%s11823_s3 + $0x148] sm:$0xff] %vm6565_vm4, %v6542_v32  ;;  %v6806_v13 = vmul.f32 %v6542_v32, %v6542_v32  ;;  %v6322_v49 = vpop.f32.mrb[43].mxu0  ;;  %v6905_v54 = vadd.f32 %v6904_v8, %v6903_v45  ;;  %v6708_v55 = vadd.f32 %v6707_v4, %v6706_v28  ;;  %v9076_v29 = vadd.f32 %v9001_v60, %v8609_v23  ;;  %v3491_v26 = vpop.f32.mrb[45].mxu1 }
 0x316   :  { %v9077_v43 = vadd.f32 %v6322_v49, %v3481_v41  ;;  %6606 = vst.msk [vmem:[%s11823_s3 + $0x140] sm:$0xff] %vm6565_vm4, %v6541_v34  ;;  %v6709_v16 = vsel %vm6565_vm4, %v6541_v34, 0.0  ;;  %v6805_v18 = vmul.f32 %v6541_v34, %v6541_v34  ;;  %v6711_v33 = vsel %vm6565_vm4, %v6542_v32, 0.0 }
 0x317   :  { %v6710_v19 = vadd.f32 %v6709_v16, %v6708_v55  ;;  %v6907_v35 = vadd.f32 %v6906_v6, %v6905_v54  ;;  %v6544_v11 = vadd.f32 %v9076_v29, %v11333_v27  ;;  %v6910_v52 = vsel %vm6565_vm4, %v6806_v13, 0.0 }
 0x318   :  { %v6543_v36 = vadd.f32 %v9077_v43, %v11333_v27  ;;  %v9004_v61 = vpop.f32.mrb[44].mxu0  ;;  %v6908_v38 = vsel %vm6565_vm4, %v6805_v18, 0.0  ;;  %v8615_v17 = vpop.f32.mrb[46].mxu1 }
 0x319   :  { %v9078_v20 = vadd.f32 %v9004_v61, %v8612_v3  ;;  %v6332_v25 = vpop.f32.mrb[45].mxu0  ;;  %v6909_v51 = vadd.f32 %v6908_v38, %v6907_v35  ;;  %6609 = vst.msk [vmem:[%s11823_s3 + $0x158] sm:$0xff] %vm6565_vm4, %v6544_v11  ;;  %v6808_v56 = vmul.f32 %v6544_v11, %v6544_v11  ;;  %v6712_v53 = vadd.f32 %v6711_v33, %v6710_v19  ;;  %v3501_v42 = vpop.f32.mrb[47].mxu1 }
 0x31a   :  { %6608 = vst.msk [vmem:[%s11823_s3 + $0x150] sm:$0xff] %vm6565_vm4, %v6543_v36  ;;  %v6713_v50 = vsel %vm6565_vm4, %v6543_v36, 0.0  ;;  %v6807_v57 = vmul.f32 %v6543_v36, %v6543_v36  ;;  %v9079_v40 = vadd.f32 %v6332_v25, %v3491_v26  ;;  %v6715_v0 = vsel %vm6565_vm4, %v6544_v11, 0.0 }
 0x31b   :  { %v6546_v31 = vadd.f32 %v9078_v20, %v11333_v27  ;;  %v6714_v12 = vadd.f32 %v6713_v50, %v6712_v53  ;;  %v6911_v48 = vadd.f32 %v6910_v52, %v6909_v51  ;;  %v6914_v2 = vsel %vm6565_vm4, %v6808_v56, 0.0 }
 0x31c   :  { %v9007_v44 = vpop.f32.mrb[46].mxu0  ;;  %v6912_v47 = vsel %vm6565_vm4, %v6807_v57, 0.0  ;;  %v6545_v5 = vadd.f32 %v9079_v40, %v11333_v27  ;;  %v8618_v63 = vpop.f32.mrb[48].mxu1 }
 0x31d   :  { %6611 = vst.msk [vmem:[%s11823_s3 + $0x168] sm:$0xff] %vm6565_vm4, %v6546_v31  ;;  %v6810_v1 = vmul.f32 %v6546_v31, %v6546_v31  ;;  %v6342_v59 = vpop.f32.mrb[47].mxu0  ;;  %v6913_v58 = vadd.f32 %v6912_v47, %v6911_v48  ;;  %v6716_v21 = vadd.f32 %v6715_v0, %v6714_v12  ;;  %v9080_v24 = vadd.f32 %v9007_v44, %v8615_v17  ;;  %v3511_v10 = vpop.f32.mrb[49].mxu1 }
 0x31e   :  { %v9081_v46 = vadd.f32 %v6342_v59, %v3501_v42  ;;  %6610 = vst.msk [vmem:[%s11823_s3 + $0x160] sm:$0xff] %vm6565_vm4, %v6545_v5  ;;  %v6717_v7 = vsel %vm6565_vm4, %v6545_v5, 0.0  ;;  %v6809_v37 = vmul.f32 %v6545_v5, %v6545_v5  ;;  %v6719_v30 = vsel %vm6565_vm4, %v6546_v31, 0.0 }
 0x31f   :  { %v6718_v14 = vadd.f32 %v6717_v7, %v6716_v21  ;;  %v6915_v15 = vadd.f32 %v6914_v2, %v6913_v58  ;;  %v6548_v22 = vadd.f32 %v9080_v24, %v11333_v27  ;;  %v6918_v41 = vsel %vm6565_vm4, %v6810_v1, 0.0 }
 0x320   :  { %v6547_v62 = vadd.f32 %v9081_v46, %v11333_v27  ;;  %v9010_v23 = vpop.f32.mrb[48].mxu0  ;;  %v6916_v9 = vsel %vm6565_vm4, %v6809_v37, 0.0  ;;  %v8621_v4 = vpop.f32.mrb[50].mxu1 }
 0x321   :  { %v9082_v32 = vadd.f32 %v9010_v23, %v8618_v63  ;;  %v6352_v39 = vpop.f32.mrb[49].mxu0  ;;  %v6917_v28 = vadd.f32 %v6916_v9, %v6915_v15  ;;  %6613 = vst.msk [vmem:[%s11823_s3 + $0x178] sm:$0xff] %vm6565_vm4, %v6548_v22  ;;  %v6812_v45 = vmul.f32 %v6548_v22, %v6548_v22  ;;  %v6720_v60 = vadd.f32 %v6719_v30, %v6718_v14  ;;  %v3521_v54 = vpop.f32.mrb[51].mxu1 }
 0x322   :  { %6612 = vst.msk [vmem:[%s11823_s3 + $0x170] sm:$0xff] %vm6565_vm4, %v6547_v62  ;;  %v6721_v8 = vsel %vm6565_vm4, %v6547_v62, 0.0  ;;  %v6811_v13 = vmul.f32 %v6547_v62, %v6547_v62  ;;  %v9083_v49 = vadd.f32 %v6352_v39, %v3511_v10  ;;  %v6723_v3 = vsel %vm6565_vm4, %v6548_v22, 0.0 }
 0x323   :  { %v6550_v34 = vadd.f32 %v9082_v32, %v11333_v27  ;;  %v6722_v55 = vadd.f32 %v6721_v8, %v6720_v60  ;;  %v6919_v29 = vadd.f32 %v6918_v41, %v6917_v28  ;;  %v6922_v33 = vsel %vm6565_vm4, %v6812_v45, 0.0  ;;  %v11740_v60 = vld [vmem:[%s11822_s2] ss:$0 sm:$0xff] }
 0x324   :  { %v9013_v43 = vpop.f32.mrb[50].mxu0  ;;  %v6920_v6 = vsel %vm6565_vm4, %v6811_v13, 0.0  ;;  %v6549_v18 = vadd.f32 %v9083_v49, %v11333_v27  ;;  %v8624_v61 = vpop.f32.mrb[52].mxu1 }
 0x325   :  { %6615 = vst.msk [vmem:[%s11823_s3 + $0x188] sm:$0xff] %vm6565_vm4, %v6550_v34  ;;  %v6814_v16 = vmul.f32 %v6550_v34, %v6550_v34  ;;  %v6362_v26 = vpop.f32.mrb[51].mxu0  ;;  %v6921_v19 = vadd.f32 %v6920_v6, %v6919_v29  ;;  %v6724_v35 = vadd.f32 %v6723_v3, %v6722_v55  ;;  %v9084_v11 = vadd.f32 %v9013_v43, %v8621_v4  ;;  %v3531_v25 = vpop.f32.mrb[53].mxu1 }
 0x326   :  { %v9085_v36 = vadd.f32 %v6362_v26, %v3521_v54  ;;  %6614 = vst.msk [vmem:[%s11823_s3 + $0x180] sm:$0xff] %vm6565_vm4, %v6549_v18  ;;  %v6725_v38 = vsel %vm6565_vm4, %v6549_v18, 0.0  ;;  %v6813_v20 = vmul.f32 %v6549_v18, %v6549_v18  ;;  %v6727_v50 = vsel %vm6565_vm4, %v6550_v34, 0.0 }
 0x327   :  { %v6726_v52 = vadd.f32 %v6725_v38, %v6724_v35  ;;  %v6923_v51 = vadd.f32 %v6922_v33, %v6921_v19  ;;  %v6552_v56 = vadd.f32 %v9084_v11, %v11333_v27  ;;  %v6926_v42 = vsel %vm6565_vm4, %v6814_v16, 0.0 }
 0x328   :  { %v6551_v53 = vadd.f32 %v9085_v36, %v11333_v27  ;;  %v9016_v17 = vpop.f32.mrb[52].mxu0  ;;  %v6924_v57 = vsel %vm6565_vm4, %v6813_v20, 0.0  ;;  %v8627_v0 = vpop.f32.mrb[54].mxu1 }
 0x329   :  { %v9086_v31 = vadd.f32 %v9016_v17, %v8624_v61  ;;  %v6372_v40 = vpop.f32.mrb[53].mxu0  ;;  %v6925_v12 = vadd.f32 %v6924_v57, %v6923_v51  ;;  %6617 = vst.msk [vmem:[%s11823_s3 + $0x198] sm:$0xff] %vm6565_vm4, %v6552_v56  ;;  %v6816_v48 = vmul.f32 %v6552_v56, %v6552_v56  ;;  %v6728_v44 = vadd.f32 %v6727_v50, %v6726_v52  ;;  %v3541_v58 = vpop.f32.mrb[55].mxu1 }
 0x32a   :  { %6616 = vst.msk [vmem:[%s11823_s3 + $0x190] sm:$0xff] %vm6565_vm4, %v6551_v53  ;;  %v6729_v47 = vsel %vm6565_vm4, %v6551_v53, 0.0  ;;  %v6815_v1 = vmul.f32 %v6551_v53, %v6551_v53  ;;  %v9087_v59 = vadd.f32 %v6372_v40, %v3531_v25  ;;  %v6731_v63 = vsel %vm6565_vm4, %v6552_v56, 0.0 }
 0x32b   :  { %v6554_v5 = vadd.f32 %v9086_v31, %v11333_v27  ;;  %v6730_v21 = vadd.f32 %v6729_v47, %v6728_v44  ;;  %v6927_v24 = vadd.f32 %v6926_v42, %v6925_v12  ;;  %v6930_v30 = vsel %vm6565_vm4, %v6816_v48, 0.0 }
 0x32c   :  { %v9019_v46 = vpop.f32.mrb[54].mxu0  ;;  %v6928_v2 = vsel %vm6565_vm4, %v6815_v1, 0.0  ;;  %v6553_v37 = vadd.f32 %v9087_v59, %v11333_v27  ;;  %v8630_v23 = vpop.f32.mrb[56].mxu1 }
 0x32d   :  { %6619 = vst.msk [vmem:[%s11823_s3 + $0x1a8] sm:$0xff] %vm6565_vm4, %v6554_v5  ;;  %v6818_v7 = vmul.f32 %v6554_v5, %v6554_v5  ;;  %v6382_v10 = vpop.f32.mrb[55].mxu0  ;;  %v6929_v14 = vadd.f32 %v6928_v2, %v6927_v24  ;;  %v6732_v15 = vadd.f32 %v6731_v63, %v6730_v21  ;;  %v9088_v22 = vadd.f32 %v9019_v46, %v8627_v0  ;;  %v3551_v39 = vpop.f32.mrb[57].mxu1 }
 0x32e   :  { %v9089_v62 = vadd.f32 %v6382_v10, %v3541_v58  ;;  %6618 = vst.msk [vmem:[%s11823_s3 + $0x1a0] sm:$0xff] %vm6565_vm4, %v6553_v37  ;;  %v6733_v9 = vsel %vm6565_vm4, %v6553_v37, 0.0  ;;  %v6817_v32 = vmul.f32 %v6553_v37, %v6553_v37  ;;  %v6735_v13 = vsel %vm6565_vm4, %v6554_v5, 0.0 }
 0x32f   :  { %v6734_v41 = vadd.f32 %v6733_v9, %v6732_v15  ;;  %v6931_v28 = vadd.f32 %v6930_v30, %v6929_v14  ;;  %v6556_v45 = vadd.f32 %v9088_v22, %v11333_v27  ;;  %v6934_v55 = vsel %vm6565_vm4, %v6818_v7, 0.0 }
 0x330   :  { %v6555_v4 = vadd.f32 %v11740_v60, %v9089_v62  ;;  %v9022_v8 = vpop.f32.mrb[56].mxu0  ;;  %v6932_v34 = vsel %vm6565_vm4, %v6817_v32, 0.0  ;;  %v8633_v3 = vpop.f32.mrb[58].mxu1 }
 0x331   :  { %v9090_v49 = vadd.f32 %v9022_v8, %v8630_v23  ;;  %v6392_v54 = vpop.f32.mrb[57].mxu0  ;;  %v6933_v29 = vadd.f32 %v6932_v34, %v6931_v28  ;;  %6621 = vst.msk [vmem:[%s11823_s3 + $0x1b8] sm:$0xff] %vm6565_vm4, %v6556_v45  ;;  %v6820_v27 = vmul.f32 %v6556_v45, %v6556_v45  ;;  %v6736_v43 = vadd.f32 %v6735_v13, %v6734_v41  ;;  %v3561_v19 = vpop.f32.mrb[59].mxu1 }
 0x332   :  { %6620 = vst.msk [vmem:[%s11823_s3 + $0x1b0] sm:$0xff] %vm6565_vm4, %v6555_v4  ;;  %v6737_v6 = vsel %vm6565_vm4, %v6555_v4, 0.0  ;;  %v6819_v16 = vmul.f32 %v6555_v4, %v6555_v4  ;;  %v9091_v26 = vadd.f32 %v6392_v54, %v3551_v39  ;;  %v6739_v61 = vsel %vm6565_vm4, %v6556_v45, 0.0 }
 0x333   :  { %v6558_v18 = vadd.f32 %v11740_v60, %v9090_v49  ;;  %v6738_v35 = vadd.f32 %v6737_v6, %v6736_v43  ;;  %v6935_v11 = vadd.f32 %v6934_v55, %v6933_v29  ;;  %v6938_v50 = vsel %vm6565_vm4, %v6820_v27, 0.0 }
 0x334   :  { %v9025_v36 = vpop.f32.mrb[58].mxu0  ;;  %v6936_v33 = vsel %vm6565_vm4, %v6819_v16, 0.0  ;;  %v6557_v20 = vadd.f32 %v11740_v60, %v9091_v26  ;;  %v8636_v17 = vpop.f32.mrb[60].mxu1 }
 0x335   :  { %6623 = vst.msk [vmem:[%s11823_s3 + $0x1c8] sm:$0xff] %vm6565_vm4, %v6558_v18  ;;  %v6822_v38 = vmul.f32 %v6558_v18, %v6558_v18  ;;  %v6402_v25 = vpop.f32.mrb[59].mxu0  ;;  %v6937_v52 = vadd.f32 %v6936_v33, %v6935_v11  ;;  %v6740_v51 = vadd.f32 %v6739_v61, %v6738_v35  ;;  %v9092_v56 = vadd.f32 %v9025_v36, %v8633_v3  ;;  %v3571_v40 = vpop.f32.mrb[61].mxu1 }
 0x336   :  { %v9093_v53 = vadd.f32 %v6402_v25, %v3561_v19  ;;  %6622 = vst.msk [vmem:[%s11823_s3 + $0x1c0] sm:$0xff] %vm6565_vm4, %v6557_v20  ;;  %v6741_v57 = vsel %vm6565_vm4, %v6557_v20, 0.0  ;;  %v6821_v31 = vmul.f32 %v6557_v20, %v6557_v20  ;;  %v6743_v47 = vsel %vm6565_vm4, %v6558_v18, 0.0 }
 0x337   :  { %v6742_v42 = vadd.f32 %v6741_v57, %v6740_v51  ;;  %v6939_v12 = vadd.f32 %v6938_v50, %v6937_v52  ;;  %v6560_v48 = vadd.f32 %v11740_v60, %v9092_v56  ;;  %v6942_v58 = vsel %vm6565_vm4, %v6822_v38, 0.0 }
 0x338   :  { %v6559_v44 = vadd.f32 %v11740_v60, %v9093_v53  ;;  %v9028_v0 = vpop.f32.mrb[60].mxu0  ;;  %v6940_v1 = vsel %vm6565_vm4, %v6821_v31, 0.0  ;;  %v8639_v63 = vpop.f32.mrb[62].mxu1 }
 0x339   :  { %v9094_v5 = vadd.f32 %v9028_v0, %v8636_v17  ;;  %v6412_v59 = vpop.f32.mrb[61].mxu0  ;;  %v6941_v21 = vadd.f32 %v6940_v1, %v6939_v12  ;;  %6625 = vst.msk [vmem:[%s11823_s3 + $0x1d8] sm:$0xff] %vm6565_vm4, %v6560_v48  ;;  %v6824_v24 = vmul.f32 %v6560_v48, %v6560_v48  ;;  %v6744_v46 = vadd.f32 %v6743_v47, %v6742_v42  ;;  %v3581_v14 = vpop.f32.mrb[63].mxu1 }
 0x33a   :  { %6624 = vst.msk [vmem:[%s11823_s3 + $0x1d0] sm:$0xff] %vm6565_vm4, %v6559_v44  ;;  %v6745_v2 = vsel %vm6565_vm4, %v6559_v44, 0.0  ;;  %v6823_v7 = vmul.f32 %v6559_v44, %v6559_v44  ;;  %v9095_v10 = vadd.f32 %v6412_v59, %v3571_v40  ;;  %v6747_v23 = vsel %vm6565_vm4, %v6560_v48, 0.0 }
 0x33b   :  { %v6562_v37 = vadd.f32 %v11740_v60, %v9094_v5  ;;  %v6746_v15 = vadd.f32 %v6745_v2, %v6744_v46  ;;  %v6943_v22 = vadd.f32 %v6942_v58, %v6941_v21  ;;  %v6946_v4 = vsel %vm6565_vm4, %v6824_v24, 0.0 }
 0x33c   :  { %v9031_v62 = vpop.f32.mrb[62].mxu0  ;;  %v6944_v30 = vsel %vm6565_vm4, %v6823_v7, 0.0  ;;  %v6561_v9 = vadd.f32 %v11740_v60, %v9095_v10 }
 0x33d   :  { %6627 = vst.msk [vmem:[%s11823_s3 + $0x1e8] sm:$0xff] %vm6565_vm4, %v6562_v37  ;;  %v6422_v32 = vpop.f32.mrb[63].mxu0  ;;  %v6945_v39 = vadd.f32 %v6944_v30, %v6943_v22  ;;  %v6748_v41 = vadd.f32 %v6747_v23, %v6746_v15  ;;  %v9096_v28 = vadd.f32 %v9031_v62, %v8639_v63  ;;  %v6826_v8 = vmul.f32 %v6562_v37, %v6562_v37 }
 0x33e   :  { %v9097_v45 = vadd.f32 %v6422_v32, %v3581_v14  ;;  %6626 = vst.msk [vmem:[%s11823_s3 + $0x1e0] sm:$0xff] %vm6565_vm4, %v6561_v9  ;;  %v6749_v13 = vsel %vm6565_vm4, %v6561_v9, 0.0  ;;  %v6825_v34 = vmul.f32 %v6561_v9, %v6561_v9  ;;  %v6751_v27 = vsel %vm6565_vm4, %v6562_v37, 0.0 }
 0x33f   :  { %v6750_v49 = vadd.f32 %v6749_v13, %v6748_v41  ;;  %v6947_v54 = vadd.f32 %v6946_v4, %v6945_v39  ;;  %v6564_v55 = vadd.f32 %v11740_v60, %v9096_v28  ;;  %v6950_v16 = vsel %vm6565_vm4, %v6826_v8, 0.0 }
 0x340   :  { %v6563_v29 = vadd.f32 %v11740_v60, %v9097_v45  ;;  %v6948_v43 = vsel %vm6565_vm4, %v6825_v34, 0.0 }
 0x341   :  { %v6949_v3 = vadd.f32 %v6948_v43, %v6947_v54  ;;  %6629 = vst.msk [vmem:[%s11823_s3 + $0x1f8] sm:$0xff] %vm6565_vm4, %v6564_v55  ;;  %v6752_v6 = vadd.f32 %v6751_v27, %v6750_v49  ;;  %v6828_v18 = vmul.f32 %v6564_v55, %v6564_v55  ;;  %v6755_v11 = vsel %vm6565_vm4, %v6564_v55, 0.0 }
 0x342   :  { %6628 = vst.msk [vmem:[%s11823_s3 + $0x1f0] sm:$0xff] %vm6565_vm4, %v6563_v29  ;;  %v6753_v60 = vsel %vm6565_vm4, %v6563_v29, 0.0  ;;  %v6827_v26 = vmul.f32 %v6563_v29, %v6563_v29 }
 0x343   :  { %v6754_v19 = vadd.f32 %v6753_v60, %v6752_v6  ;;  %v6951_v35 = vadd.f32 %v6950_v16, %v6949_v3  ;;  %v6954_v38 = vsel %vm6565_vm4, %v6828_v18, 0.0 }
 0x344   :  { %v6952_v36 = vsel %vm6565_vm4, %v6827_v26, 0.0 }
 0x345   :  { %v6756_v61 = vadd.f32 %v6755_v11, %v6754_v19  ;;  %v6953_v33 = vadd.f32 %v6952_v36, %v6951_v35 }
 0x347   :  { %v6757_v20 = vrot.slane %v6756_v61, 4  ;;  %v6955_v25 = vadd.f32 %v6954_v38, %v6953_v33 }
 0x349   :  { %v6758_v52 = vadd.f32 %v6757_v20, %v6756_v61  ;;  %v6956_v51 = vrot.slane %v6955_v25, 4 }
 0x34b   :  { %v6759_v56 = vrot.slane %v6758_v52, 2  ;;  %v6957_v53 = vadd.f32 %v6956_v51, %v6955_v25 }
 0x34d   :  { %v6760_v17 = vadd.f32 %v6759_v56, %v6758_v52  ;;  %v6958_v50 = vrot.slane %v6957_v53, 2 }
 0x34f   :  { %v6761_v57 = vrot.slane %v6760_v17, 1  ;;  %v6959_v31 = vadd.f32 %v6958_v50, %v6957_v53 }
 0x351   :  { %v6762_v40 = vadd.f32 %v6761_v57, %v6760_v17  ;;  %v6960_v42 = vrot.slane %v6959_v31, 1 }
 0x353   :  { %6764 = vst.msk [vmem:[%s11824_s4] sm:$0x1] %vm6763_vm5, %v6762_v40  ;;  %v6961_v12 = vadd.f32 %v6960_v42, %v6959_v31 }
 0x355   :  { %6962 = vst.msk [vmem:[%s11824_s4 + $0x1] sm:$0x1] %vm6763_vm5, %v6961_v12 }

// kernel: double_conv.4
= control target key start
LH: loop header
LB: loop body
LE: loop exit
PB: predicated region body
PF: predicated region fallthrough
CT: control target
= control target key end

     0   :  { %vm287_vm0 = vcmask 64512   ;;  %vm290_vm1 = vcmask 58368   ;;  %vm303_vm2 = vcmask 57344   ;;  %v9713_v1 = vmov 0.0   ;;  %s12094_s1 = inlined_call_operand.vmem [shape: f32[9,8,8], index: 1, kind: input, shape index: {}]   ;;  %s12095_s0 = inlined_call_operand.vmem [shape: f32[2,16,16,8], index: 0, kind: input, shape index: {}]   ;;  %s12096_s2 = inlined_call_operand.vmem [shape: f32[3,8], index: 2, kind: input, shape index: {}]   ;;  %s12097_s3 = inlined_call_operand.vmem [shape: f32[2,16,16,8], index: 3, kind: output, shape index: {0}]   ;;  %s12098_s4 = inlined_call_operand.vmem [shape: f32[1,2,8], index: 4, kind: output, shape index: {1}]  }
   0x1   :  { %v9742_v0 = vld [vmem:[%s12094_s1 + $0x8] sm:$0xff]  ;;  %288 = vst.msk [vmem:[#allocation2] sm:$0xff] %vm287_vm0, %v9713_v1  ;;  %289 = vst.msk [vmem:[#allocation2 + $0x8] sm:$0xff] %vm287_vm0, %v9713_v1  ;;  %v9771_v2 = vld [vmem:[%s12094_s1 + $0x20] sm:$0xff] }
   0x2   :  { %292 = vst.msk [vmem:[#allocation2 + $0x1b0] sm:$0xff] %vm287_vm0, %v9713_v1  ;;  %293 = vst.msk [vmem:[#allocation2 + $0x1b8] sm:$0xff] %vm287_vm0, %v9713_v1  ;;  %v9776_v3 = vld [vmem:[%s12095_s0] sm:$0xff]  ;;  %8314 = vmatprep.subr.mxu1 %v9742_v0  ;;  %8706 = vmatprep.subr.mxu0 %v9771_v2  ;;  %v9928_v8 = vld [vmem:[%s12094_s1 + $0x28] sm:$0xff] }
   0x3   :  { %296 = vst.msk [vmem:[#allocation2 + $0x198] sm:$0xff] %vm287_vm0, %v9713_v1  ;;  %297 = vst.msk [vmem:[#allocation2 + $0x1a0] sm:$0xff] %vm287_vm0, %v9713_v1  ;;  %v9911_v4 = vld [vmem:[%s12096_s2] ss:$0 sm:$0xff]  ;;  %v9916_v5 = vld [vmem:[%s12096_s2 + $0x1] ss:$0 sm:$0xff]  ;;  %8315 = vmatpush3.msra.mxu1 %v9742_v0  ;;  %8707 = vmatpush3.msra.mxu0 %v9771_v2 }
   0x4   :  { %299 = vst.msk [vmem:[#allocation2 + $0x348] sm:$0xff] %vm287_vm0, %v9713_v1  ;;  %300 = vst.msk [vmem:[#allocation2 + $0x350] sm:$0xff] %vm287_vm0, %v9713_v1  ;;  %v498_v6 = vld [vmem:[%s12094_s1] sm:$0xff]  ;;  %v87_v7 = vmul.f32 %v9911_v4, %v9776_v3  ;;  %v17_v9 = vld [vmem:[%s12095_s0 + $0x8] sm:$0xff]  ;;  %8804 = vmatprep.subr.mxu0 %v9928_v8 }
   0x5   :  { %291 = vst.msk [vmem:[#allocation2 + $0x10] sm:$0x3] %vm290_vm1, %v9713_v1  ;;  %294 = vst.msk [vmem:[#allocation2 + $0x1c0] sm:$0x3] %vm290_vm1, %v9713_v1  ;;  %v18_v10 = vld [vmem:[%s12095_s0 + $0x10] sm:$0xff]  ;;  %8412 = vmatprep.subr.mxu1 %v498_v6  ;;  %v88_v11 = vmul.f32 %v9911_v4, %v17_v9  ;;  %v19_v13 = vld [vmem:[%s12095_s0 + $0x18] sm:$0xff] }
   0x6   :  { %298 = vst.msk [vmem:[#allocation2 + $0x1a8] sm:$0x3] %vm290_vm1, %v9713_v1  ;;  %301 = vst.msk [vmem:[#allocation2 + $0x358] sm:$0x3] %vm290_vm1, %v9713_v1  ;;  %v89_v12 = vmul.f32 %v9911_v4, %v18_v10  ;;  %v20_v14 = vld [vmem:[%s12095_s0 + $0x20] sm:$0xff]  ;;  %v21_v15 = vld [vmem:[%s12095_s0 + $0x28] sm:$0xff]  ;;  %v155_v16 = vadd.f32 %v9916_v5, %v87_v7  ;;  %v90_v17 = vmul.f32 %v9911_v4, %v19_v13 }
   0x7   :  { %336 = vst.msk [vmem:[#allocation2 + $0x29] sm:$0x1] %vm303_vm2, %v9713_v1  ;;  %304 = vst.msk [vmem:[#allocation2 + $0x18] sm:$0x1] %vm303_vm2, %v9713_v1  ;;  %v91_v18 = vmul.f32 %v9911_v4, %v20_v14  ;;  %v92_v19 = vmul.f32 %v9911_v4, %v21_v15  ;;  %v22_v20 = vld [vmem:[%s12095_s0 + $0x30] sm:$0xff]  ;;  %v23_v21 = vld [vmem:[%s12095_s0 + $0x38] sm:$0xff]  ;;  %v156_v22 = vadd.f32 %v9916_v5, %v88_v11 }
   0x8   :  { %305 = vst.msk [vmem:[#allocation2 + $0x30] sm:$0x1] %vm303_vm2, %v9713_v1  ;;  %306 = vst.msk [vmem:[#allocation2 + $0x48] sm:$0x1] %vm303_vm2, %v9713_v1  ;;  %v157_v23 = vadd.f32 %v9916_v5, %v89_v12  ;;  %v93_v24 = vmul.f32 %v9911_v4, %v22_v20  ;;  %v94_v25 = vmul.f32 %v9911_v4, %v23_v21  ;;  %v24_v26 = vld [vmem:[%s12095_s0 + $0x40] sm:$0xff]  ;;  %v25_v27 = vld [vmem:[%s12095_s0 + $0x48] sm:$0xff] }
   0x9   :  { %307 = vst.msk [vmem:[#allocation2 + $0x60] sm:$0x1] %vm303_vm2, %v9713_v1  ;;  %308 = vst.msk [vmem:[#allocation2 + $0x78] sm:$0x1] %vm303_vm2, %v9713_v1  ;;  %v219_v28 = vmax.f32 %v155_v16, 0.0  ;;  %v158_v29 = vadd.f32 %v9916_v5, %v90_v17  ;;  %v159_v30 = vadd.f32 %v9916_v5, %v91_v18  ;;  %v160_v31 = vadd.f32 %v9916_v5, %v92_v19  ;;  %v26_v32 = vld [vmem:[%s12095_s0 + $0x50] sm:$0xff] }
   0xa   :  { %309 = vst.msk [vmem:[#allocation2 + $0x90] sm:$0x1] %vm303_vm2, %v9713_v1  ;;  %310 = vst.msk [vmem:[#allocation2 + $0xa8] sm:$0x1] %vm303_vm2, %v9713_v1  ;;  %v27_v33 = vld [vmem:[%s12095_s0 + $0x58] sm:$0xff]  ;;  %v28_v34 = vld [vmem:[%s12095_s0 + $0x60] sm:$0xff]  ;;  %v161_v39 = vadd.f32 %v9916_v5, %v93_v24  ;;  %v162_v40 = vadd.f32 %v9916_v5, %v94_v25  ;;  %v95_v45 = vmul.f32 %v9911_v4, %v24_v26 }
   0xb   :  { %311 = vst.msk [vmem:[#allocation2 + $0xc0] sm:$0x1] %vm303_vm2, %v9713_v1  ;;  %312 = vst.msk [vmem:[#allocation2 + $0xd8] sm:$0x1] %vm303_vm2, %v9713_v1  ;;  %v499_v35 = vld [vmem:[#allocation2 + $0x1] sm:$0xff]  ;;  %v220_v37 = vmax.f32 %v156_v22, 0.0  ;;  %v96_v50 = vmul.f32 %v9911_v4, %v25_v27  ;;  %v97_v51 = vmul.f32 %v9911_v4, %v26_v32  ;;  %v98_v53 = vmul.f32 %v9911_v4, %v27_v33 }
   0xc   :  { %313 = vst.msk [vmem:[#allocation2 + $0xf0] sm:$0x1] %vm303_vm2, %v9713_v1  ;;  %314 = vst.msk [vmem:[#allocation2 + $0x108] sm:$0x1] %vm303_vm2, %v9713_v1  ;;  %v500_v36 = vld [vmem:[#allocation2 + $0x9] sm:$0xff]  ;;  %v221_v38 = vmax.f32 %v157_v23, 0.0  ;;  %8316 = vmatprep.mubr.msk.f32.mxu1 %vm287_vm0, %v499_v35  ;;  %v163_v52 = vadd.f32 %v9916_v5, %v95_v45  ;;  %v99_v54 = vmul.f32 %v9911_v4, %v28_v34 }
   0xd   :  { %315 = vst.msk [vmem:[#allocation2 + $0x120] sm:$0x1] %vm303_vm2, %v9713_v1  ;;  %316 = vst.msk [vmem:[#allocation2 + $0x138] sm:$0x1] %vm303_vm2, %v9713_v1  ;;  %v29_v41 = vld [vmem:[%s12095_s0 + $0x68] sm:$0xff]  ;;  %v222_v42 = vmax.f32 %v158_v29, 0.0  ;;  %8317 = vmatmul.mubr.msk.f32.vlgmr.msra.gmra.mrb[0].mxu1 %vm287_vm0, %v500_v36  ;;  %v164_v56 = vadd.f32 %v9916_v5, %v96_v50  ;;  %v165_v57 = vadd.f32 %v9916_v5, %v97_v51 }
   0xe   :  { %317 = vst.msk [vmem:[#allocation2 + $0x150] sm:$0x1] %vm303_vm2, %v9713_v1  ;;  %318 = vst.msk [vmem:[#allocation2 + $0x168] sm:$0x1] %vm303_vm2, %v9713_v1  ;;  %v223_v43 = vmax.f32 %v159_v30, 0.0  ;;  %v224_v44 = vmax.f32 %v160_v31, 0.0  ;;  %8413 = vmatpush3.msra.mxu1 %v498_v6  ;;  %v100_v55 = vmul.f32 %v9911_v4, %v29_v41  ;;  %v166_v62 = vadd.f32 %v9916_v5, %v98_v53 }
   0xf   :  { %319 = vst.msk [vmem:[#allocation2 + $0x180] sm:$0x1] %vm303_vm2, %v9713_v1  ;;  %320 = vst.msk [vmem:[#allocation2 + $0x1c8] sm:$0x1] %vm303_vm2, %v9713_v1  ;;  %v30_v46 = vld [vmem:[%s12095_s0 + $0x70] sm:$0xff]  ;;  %v31_v47 = vld [vmem:[%s12095_s0 + $0x78] sm:$0xff]  ;;  %v167_v63 = vadd.f32 %v9916_v5, %v99_v54 }
  0x10   :  { %321 = vst.msk [vmem:[#allocation2 + $0x1e0] sm:$0x1] %vm303_vm2, %v9713_v1  ;;  %322 = vst.msk [vmem:[#allocation2 + $0x1f8] sm:$0x1] %vm303_vm2, %v9713_v1  ;;  %v225_v48 = vmax.f32 %v161_v39, 0.0  ;;  %v226_v49 = vmax.f32 %v162_v40, 0.0  ;;  %v101_v58 = vmul.f32 %v9911_v4, %v30_v46  ;;  %v102_v59 = vmul.f32 %v9911_v4, %v31_v47 }
  0x11   :  { %323 = vst.msk [vmem:[#allocation2 + $0x210] sm:$0x1] %vm303_vm2, %v9713_v1  ;;  %324 = vst.msk [vmem:[#allocation2 + $0x228] sm:$0x1] %vm303_vm2, %v9713_v1  ;;  %v32_v60 = vld [vmem:[%s12095_s0 + $0x80] sm:$0xff]  ;;  %v227_v61 = vmax.f32 %v163_v52, 0.0  ;;  %v168_v0 = vadd.f32 %v9916_v5, %v100_v55 }
  0x12   :  { %325 = vst.msk [vmem:[#allocation2 + $0x240] sm:$0x1] %vm303_vm2, %v9713_v1  ;;  %326 = vst.msk [vmem:[#allocation2 + $0x258] sm:$0x1] %vm303_vm2, %v9713_v1  ;;  %v34_v2 = vld [vmem:[%s12095_s0 + $0x90] sm:$0xff]  ;;  %v228_v3 = vmax.f32 %v164_v56, 0.0  ;;  %v169_v7 = vadd.f32 %v9916_v5, %v101_v58  ;;  %v170_v9 = vadd.f32 %v9916_v5, %v102_v59  ;;  %v103_v15 = vmul.f32 %v9911_v4, %v32_v60 }
  0x13   :  { %327 = vst.msk [vmem:[#allocation2 + $0x270] sm:$0x1] %vm303_vm2, %v9713_v1  ;;  %328 = vst.msk [vmem:[#allocation2 + $0x288] sm:$0x1] %vm303_vm2, %v9713_v1  ;;  %v229_v6 = vmax.f32 %v165_v57, 0.0  ;;  %v35_v10 = vld [vmem:[%s12095_s0 + $0x98] sm:$0xff]  ;;  %v105_v21 = vmul.f32 %v9911_v4, %v34_v2 }
  0x14   :  { %329 = vst.msk [vmem:[#allocation2 + $0x2a0] sm:$0x1] %vm303_vm2, %v9713_v1  ;;  %330 = vst.msk [vmem:[#allocation2 + $0x2b8] sm:$0x1] %vm303_vm2, %v9713_v1  ;;  %v36_v11 = vld [vmem:[%s12095_s0 + $0xa0] sm:$0xff]  ;;  %v230_v12 = vmax.f32 %v166_v62, 0.0  ;;  %v171_v26 = vadd.f32 %v9916_v5, %v103_v15  ;;  %v106_v27 = vmul.f32 %v9911_v4, %v35_v10 }
  0x15   :  { %331 = vst.msk [vmem:[#allocation2 + $0x2d0] sm:$0x1] %vm303_vm2, %v9713_v1  ;;  %332 = vst.msk [vmem:[#allocation2 + $0x2e8] sm:$0x1] %vm303_vm2, %v9713_v1  ;;  %v231_v13 = vmax.f32 %v167_v63, 0.0  ;;  %v232_v14 = vmax.f32 %v168_v0, 0.0  ;;  %v173_v31 = vadd.f32 %v9916_v5, %v105_v21 }
  0x16   :  { %333 = vst.msk [vmem:[#allocation2 + $0x300] sm:$0x1] %vm303_vm2, %v9713_v1  ;;  %334 = vst.msk [vmem:[#allocation2 + $0x318] sm:$0x1] %vm303_vm2, %v9713_v1  ;;  %v37_v16 = vld [vmem:[%s12095_s0 + $0xa8] sm:$0xff]  ;;  %v233_v18 = vmax.f32 %v169_v7, 0.0  ;;  %v174_v36 = vadd.f32 %v9916_v5, %v106_v27 }
  0x17   :  { %335 = vst.msk [vmem:[#allocation2 + $0x330] sm:$0x1] %vm303_vm2, %v9713_v1  ;;  %337 = vst.msk [vmem:[#allocation2 + $0x41] sm:$0x1] %vm303_vm2, %v9713_v1  ;;  %v234_v19 = vmax.f32 %v170_v9, 0.0  ;;  %v38_v22 = vld [vmem:[%s12095_s0 + $0xb0] sm:$0xff]  ;;  %v108_v32 = vmul.f32 %v9911_v4, %v37_v16 }
  0x18   :  { %338 = vst.msk [vmem:[#allocation2 + $0x59] sm:$0x1] %vm303_vm2, %v9713_v1  ;;  %339 = vst.msk [vmem:[#allocation2 + $0x71] sm:$0x1] %vm303_vm2, %v9713_v1  ;;  %v39_v23 = vld [vmem:[%s12095_s0 + $0xb8] sm:$0xff]  ;;  %v10058_v29 = vld [vmem:[%s12094_s1 + $0x30] sm:$0xff] }
  0x19   :  { %340 = vst.msk [vmem:[#allocation2 + $0x89] sm:$0x1] %vm303_vm2, %v9713_v1  ;;  %341 = vst.msk [vmem:[#allocation2 + $0xa1] sm:$0x1] %vm303_vm2, %v9713_v1  ;;  %v40_v33 = vld [vmem:[%s12095_s0 + $0xc0] sm:$0xff]  ;;  %v235_v35 = vmax.f32 %v171_v26, 0.0 }
  0x1a   :  { %342 = vst.msk [vmem:[#allocation2 + $0xb9] sm:$0x1] %vm303_vm2, %v9713_v1  ;;  %343 = vst.msk [vmem:[#allocation2 + $0xd1] sm:$0x1] %vm303_vm2, %v9713_v1  ;;  %v41_v39 = vld [vmem:[%s12095_s0 + $0xc8] sm:$0xff]  ;;  %v42_v40 = vld [vmem:[%s12095_s0 + $0xd0] sm:$0xff]  ;;  %v111_v50 = vmul.f32 %v9911_v4, %v40_v33 }
  0x1b   :  { %344 = vst.msk [vmem:[#allocation2 + $0xe9] sm:$0x1] %vm303_vm2, %v9713_v1  ;;  %345 = vst.msk [vmem:[#allocation2 + $0x101] sm:$0x1] %vm303_vm2, %v9713_v1  ;;  %v43_v45 = vld [vmem:[%s12095_s0 + $0xd8] sm:$0xff]  ;;  %v44_v46 = vld [vmem:[%s12095_s0 + $0xe0] sm:$0xff]  ;;  %v112_v54 = vmul.f32 %v9911_v4, %v41_v39  ;;  %v113_v55 = vmul.f32 %v9911_v4, %v42_v40 }
  0x1c   :  { %346 = vst.msk [vmem:[#allocation2 + $0x119] sm:$0x1] %vm303_vm2, %v9713_v1  ;;  %347 = vst.msk [vmem:[#allocation2 + $0x131] sm:$0x1] %vm303_vm2, %v9713_v1  ;;  %v238_v47 = vmax.f32 %v174_v36, 0.0  ;;  %v45_v51 = vld [vmem:[%s12095_s0 + $0xe8] sm:$0xff]  ;;  %v179_v59 = vadd.f32 %v9916_v5, %v111_v50  ;;  %v114_v60 = vmul.f32 %v9911_v4, %v43_v45 }
  0x1d   :  { %348 = vst.msk [vmem:[#allocation2 + $0x149] sm:$0x1] %vm303_vm2, %v9713_v1  ;;  %349 = vst.msk [vmem:[#allocation2 + $0x161] sm:$0x1] %vm303_vm2, %v9713_v1  ;;  %v46_v56 = vld [vmem:[%s12095_s0 + $0xf0] sm:$0xff]  ;;  %v47_v62 = vld [vmem:[%s12095_s0 + $0xf8] sm:$0xff]  ;;  %v181_v2 = vadd.f32 %v9916_v5, %v113_v55 }
  0x1e   :  { %350 = vst.msk [vmem:[#allocation2 + $0x179] sm:$0x1] %vm303_vm2, %v9713_v1  ;;  %351 = vst.msk [vmem:[#allocation2 + $0x191] sm:$0x1] %vm303_vm2, %v9713_v1  ;;  %v243_v7 = vmax.f32 %v179_v59, 0.0  ;;  %v182_v9 = vadd.f32 %v9916_v5, %v114_v60  ;;  %v60_v55 = vld [vmem:[%s12095_s0 + $0x160] sm:$0xff] }
  0x1f   :  { %352 = vst.msk [vmem:[#allocation2 + $0x1d9] sm:$0x1] %vm303_vm2, %v9713_v1  ;;  %353 = vst.msk [vmem:[#allocation2 + $0x1f1] sm:$0x1] %vm303_vm2, %v9713_v1  ;;  %v245_v15 = vmax.f32 %v181_v2, 0.0  ;;  %v61_v60 = vld [vmem:[%s12095_s0 + $0x168] sm:$0xff] }
  0x20   :  { %354 = vst.msk [vmem:[#allocation2 + $0x209] sm:$0x1] %vm303_vm2, %v9713_v1  ;;  %355 = vst.msk [vmem:[#allocation2 + $0x221] sm:$0x1] %vm303_vm2, %v9713_v1  ;;  %v246_v21 = vmax.f32 %v182_v9, 0.0  ;;  %v131_v9 = vmul.f32 %v9911_v4, %v60_v55 }
  0x21   :  { %356 = vst.msk [vmem:[#allocation2 + $0x239] sm:$0x1] %vm303_vm2, %v9713_v1  ;;  %357 = vst.msk [vmem:[#allocation2 + $0x251] sm:$0x1] %vm303_vm2, %v9713_v1 }
  0x22   :  { %358 = vst.msk [vmem:[#allocation2 + $0x269] sm:$0x1] %vm303_vm2, %v9713_v1  ;;  %359 = vst.msk [vmem:[#allocation2 + $0x281] sm:$0x1] %vm303_vm2, %v9713_v1 }
  0x23   :  { %360 = vst.msk [vmem:[#allocation2 + $0x299] sm:$0x1] %vm303_vm2, %v9713_v1  ;;  %361 = vst.msk [vmem:[#allocation2 + $0x2b1] sm:$0x1] %vm303_vm2, %v9713_v1 }
  0x24   :  { %362 = vst.msk [vmem:[#allocation2 + $0x2c9] sm:$0x1] %vm303_vm2, %v9713_v1  ;;  %363 = vst.msk [vmem:[#allocation2 + $0x2e1] sm:$0x1] %vm303_vm2, %v9713_v1 }
  0x25   :  { %364 = vst.msk [vmem:[#allocation2 + $0x2f9] sm:$0x1] %vm303_vm2, %v9713_v1  ;;  %365 = vst.msk [vmem:[#allocation2 + $0x311] sm:$0x1] %vm303_vm2, %v9713_v1 }
  0x26   :  { %366 = vst.msk [vmem:[#allocation2 + $0x329] sm:$0x1] %vm303_vm2, %v9713_v1  ;;  %367 = vst.msk [vmem:[#allocation2 + $0x341] sm:$0x1] %vm303_vm2, %v9713_v1  ;;  %v33_v1 = vld [vmem:[%s12095_s0 + $0x88] sm:$0xff] }
  0x27   :  { %370 = vst.msk [vmem:[#allocation2 + $0x19] sm:$0xff] %vm287_vm0, %v219_v28  ;;  %371 = vst.msk [vmem:[#allocation2 + $0x21] sm:$0xff] %vm287_vm0, %v220_v37  ;;  %v104_v20 = vmul.f32 %v9911_v4, %v33_v1  ;;  %v107_v28 = vmul.f32 %v9911_v4, %v36_v11  ;;  %v180_v1 = vadd.f32 %v9916_v5, %v112_v54  ;;  %v59_v54 = vld [vmem:[%s12095_s0 + $0x158] sm:$0xff] }
  0x28   :  { %372 = vst.msk [vmem:[#allocation2 + $0x31] sm:$0xff] %vm287_vm0, %v221_v38  ;;  %373 = vst.msk [vmem:[#allocation2 + $0x39] sm:$0xff] %vm287_vm0, %v222_v42  ;;  %v109_v38 = vmul.f32 %v9911_v4, %v38_v22  ;;  %v237_v42 = vmax.f32 %v173_v31, 0.0  ;;  %v117_v11 = vmul.f32 %v9911_v4, %v46_v56 }
  0x29   :  { %374 = vst.msk [vmem:[#allocation2 + $0x49] sm:$0xff] %vm287_vm0, %v223_v43  ;;  %375 = vst.msk [vmem:[#allocation2 + $0x51] sm:$0xff] %vm287_vm0, %v224_v44  ;;  %v172_v30 = vadd.f32 %v9916_v5, %v104_v20  ;;  %v175_v37 = vadd.f32 %v9916_v5, %v107_v28  ;;  %v176_v43 = vadd.f32 %v9916_v5, %v108_v32  ;;  %v54_v32 = vld [vmem:[%s12095_s0 + $0x130] sm:$0xff] }
  0x2a   :  { %376 = vst.msk [vmem:[#allocation2 + $0x61] sm:$0xff] %vm287_vm0, %v225_v48  ;;  %377 = vst.msk [vmem:[#allocation2 + $0x69] sm:$0xff] %vm287_vm0, %v226_v49  ;;  %v110_v44 = vmul.f32 %v9911_v4, %v39_v23  ;;  %v177_v49 = vadd.f32 %v9916_v5, %v109_v38  ;;  %v185_v23 = vadd.f32 %v9916_v5, %v117_v11 }
  0x2b   :  { %378 = vst.msk [vmem:[#allocation2 + $0x79] sm:$0xff] %vm287_vm0, %v227_v61  ;;  %379 = vst.msk [vmem:[#allocation2 + $0x81] sm:$0xff] %vm287_vm0, %v228_v3  ;;  %v236_v41 = vmax.f32 %v172_v30, 0.0  ;;  %v239_v48 = vmax.f32 %v175_v37, 0.0  ;;  %v240_v52 = vmax.f32 %v176_v43, 0.0  ;;  %v115_v61 = vmul.f32 %v9911_v4, %v44_v46  ;;  %v55_v37 = vld [vmem:[%s12095_s0 + $0x138] sm:$0xff] }
  0x2c   :  { %380 = vst.msk [vmem:[#allocation2 + $0x91] sm:$0xff] %vm287_vm0, %v229_v6  ;;  %381 = vst.msk [vmem:[#allocation2 + $0x99] sm:$0xff] %vm287_vm0, %v230_v12  ;;  %v178_v53 = vadd.f32 %v9916_v5, %v110_v44  ;;  %v241_v58 = vmax.f32 %v177_v49, 0.0  ;;  %v116_v3 = vmul.f32 %v9911_v4, %v45_v51  ;;  %v48_v6 = vld [vmem:[%s12095_s0 + $0x100] sm:$0xff]  ;;  %v49_v12 = vld [vmem:[%s12095_s0 + $0x108] sm:$0xff]  ;;  %v249_v33 = vmax.f32 %v185_v23, 0.0 }
  0x2d   :  { %382 = vst.msk [vmem:[#allocation2 + $0xa9] sm:$0xff] %vm287_vm0, %v231_v13  ;;  %383 = vst.msk [vmem:[#allocation2 + $0xb1] sm:$0xff] %vm287_vm0, %v232_v14  ;;  %v183_v10 = vadd.f32 %v9916_v5, %v115_v61  ;;  %v50_v13 = vld [vmem:[%s12095_s0 + $0x110] sm:$0xff]  ;;  %v244_v14 = vmax.f32 %v180_v1, 0.0  ;;  %v120_v30 = vmul.f32 %v9911_v4, %v49_v12  ;;  %v125_v46 = vmul.f32 %v9911_v4, %v54_v32 }
  0x2e   :  { %v501_v17 = vld [vmem:[#allocation2 + $0x19] sm:$0xff]  ;;  %v502_v24 = vld [vmem:[#allocation2 + $0x21] sm:$0xff]  ;;  %384 = vst.msk [vmem:[#allocation2 + $0xc1] sm:$0xff] %vm287_vm0, %v233_v18  ;;  %385 = vst.msk [vmem:[#allocation2 + $0xc9] sm:$0xff] %vm287_vm0, %v234_v19  ;;  %v242_v0 = vmax.f32 %v178_v53, 0.0  ;;  %v184_v16 = vadd.f32 %v9916_v5, %v116_v3  ;;  %v121_v31 = vmul.f32 %v9911_v4, %v50_v13  ;;  %v126_v53 = vmul.f32 %v9911_v4, %v55_v37 }
  0x2f   :  { %8319 = vmatprep.mubr.msk.f32.mxu1 %vm287_vm0, %v501_v17  ;;  %8708 = vmatprep.mubr.msk.f32.mxu0 %vm287_vm0, %v501_v17  ;;  %v503_v25 = vld [vmem:[#allocation2 + $0x31] sm:$0xff]  ;;  %v504_v34 = vld [vmem:[#allocation2 + $0x39] sm:$0xff]  ;;  %386 = vst.msk [vmem:[#allocation2 + $0xd9] sm:$0xff] %vm287_vm0, %v235_v35  ;;  %387 = vst.msk [vmem:[#allocation2 + $0xe1] sm:$0xff] %vm287_vm0, %v236_v41  ;;  %v118_v17 = vmul.f32 %v9911_v4, %v47_v62  ;;  %v247_v22 = vmax.f32 %v183_v10, 0.0  ;;  %v188_v39 = vadd.f32 %v9916_v5, %v120_v30 }
  0x30   :  { %8320 = vmatmul.mubr.msk.f32.gmra.mrb[2].mxu1 %vm287_vm0, %v502_v24  ;;  %8709 = vmatmul.mubr.msk.f32.vlgmr.msra.gmra.mrb[0].mxu0 %vm287_vm0, %v502_v24  ;;  %388 = vst.msk [vmem:[#allocation2 + $0xf1] sm:$0xff] %vm287_vm0, %v237_v42  ;;  %v506_v57 = vld [vmem:[#allocation2 + $0x51] sm:$0xff]  ;;  %389 = vst.msk [vmem:[#allocation2 + $0xf9] sm:$0xff] %vm287_vm0, %v238_v47  ;;  %v52_v19 = vld [vmem:[%s12095_s0 + $0x120] sm:$0xff]  ;;  %v119_v24 = vmul.f32 %v9911_v4, %v48_v6  ;;  %v248_v27 = vmax.f32 %v184_v16, 0.0  ;;  %v189_v40 = vadd.f32 %v9916_v5, %v121_v31 }
  0x31   :  { %8805 = vmatpush3.msra.mxu0 %v9928_v8  ;;  %8322 = vmatprep.mubr.msk.f32.mxu1 %vm287_vm0, %v503_v25  ;;  %v505_v8 = vld [vmem:[#allocation2 + $0x49] sm:$0xff]  ;;  %390 = vst.msk [vmem:[#allocation2 + $0x109] sm:$0xff] %vm287_vm0, %v239_v48  ;;  %v507_v63 = vld [vmem:[#allocation2 + $0x61] sm:$0xff]  ;;  %391 = vst.msk [vmem:[#allocation2 + $0x111] sm:$0xff] %vm287_vm0, %v240_v52  ;;  %v186_v28 = vadd.f32 %v9916_v5, %v118_v17  ;;  %v123_v36 = vmul.f32 %v9911_v4, %v52_v19  ;;  %v252_v50 = vmax.f32 %v188_v39, 0.0 }
  0x32   :  { %8711 = vmatprep.mubr.msk.f32.mxu0 %vm287_vm0, %v503_v25  ;;  %8902 = vmatprep.subr.mxu0 %v10058_v29  ;;  %392 = vst.msk [vmem:[#allocation2 + $0x121] sm:$0xff] %vm287_vm0, %v241_v58  ;;  %393 = vst.msk [vmem:[#allocation2 + $0x129] sm:$0xff] %vm287_vm0, %v242_v0  ;;  %v51_v18 = vld [vmem:[%s12095_s0 + $0x118] sm:$0xff]  ;;  %v508_v20 = vld [vmem:[#allocation2 + $0x69] sm:$0xff]  ;;  %v253_v51 = vmax.f32 %v189_v40, 0.0  ;;  %v193_v58 = vadd.f32 %v9916_v5, %v125_v46  ;;  %v194_v62 = vadd.f32 %v9916_v5, %v126_v53 }
  0x33   :  { %394 = vst.msk [vmem:[#allocation2 + $0x139] sm:$0xff] %vm287_vm0, %v243_v7  ;;  %v53_v25 = vld [vmem:[%s12095_s0 + $0x128] sm:$0xff]  ;;  %v509_v26 = vld [vmem:[#allocation2 + $0x79] sm:$0xff]  ;;  %395 = vst.msk [vmem:[#allocation2 + $0x141] sm:$0xff] %vm287_vm0, %v244_v14  ;;  %v122_v35 = vmul.f32 %v9911_v4, %v51_v18  ;;  %v250_v38 = vmax.f32 %v186_v28, 0.0  ;;  %v191_v45 = vadd.f32 %v9916_v5, %v123_v36  ;;  %v130_v7 = vmul.f32 %v9911_v4, %v59_v54 }
  0x34   :  { %8323 = vmatmul.mubr.msk.f32.gmra.mrb[4].mxu1 %vm287_vm0, %v504_v34  ;;  %8712 = vmatmul.mubr.msk.f32.gmra.mrb[2].mxu0 %vm287_vm0, %v504_v34  ;;  %396 = vst.msk [vmem:[#allocation2 + $0x151] sm:$0xff] %vm287_vm0, %v245_v15  ;;  %397 = vst.msk [vmem:[#allocation2 + $0x159] sm:$0xff] %vm287_vm0, %v246_v21  ;;  %v187_v34 = vadd.f32 %v9916_v5, %v119_v24  ;;  %v56_v41 = vld [vmem:[%s12095_s0 + $0x140] sm:$0xff]  ;;  %v57_v47 = vld [vmem:[%s12095_s0 + $0x148] sm:$0xff]  ;;  %v257_v3 = vmax.f32 %v193_v58, 0.0  ;;  %v258_v12 = vmax.f32 %v194_v62, 0.0 }
  0x35   :  { %8325 = vmatprep.mubr.msk.f32.mxu1 %vm287_vm0, %v505_v8  ;;  %8714 = vmatprep.mubr.msk.f32.mxu0 %vm287_vm0, %v505_v8  ;;  %398 = vst.msk [vmem:[#allocation2 + $0x169] sm:$0xff] %vm287_vm0, %v247_v22  ;;  %399 = vst.msk [vmem:[#allocation2 + $0x171] sm:$0xff] %vm287_vm0, %v248_v27  ;;  %v124_v8 = vmul.f32 %v9911_v4, %v53_v25  ;;  %v510_v42 = vld [vmem:[#allocation2 + $0x81] sm:$0xff]  ;;  %v190_v44 = vadd.f32 %v9916_v5, %v122_v35  ;;  %v58_v48 = vld [vmem:[%s12095_s0 + $0x150] sm:$0xff] }
  0x36   :  { %400 = vst.msk [vmem:[#allocation2 + $0x181] sm:$0xff] %vm287_vm0, %v249_v33  ;;  %v251_v43 = vmax.f32 %v187_v34, 0.0  ;;  %v511_v49 = vld [vmem:[#allocation2 + $0x91] sm:$0xff]  ;;  %401 = vst.msk [vmem:[#allocation2 + $0x189] sm:$0xff] %vm287_vm0, %v250_v38  ;;  %v127_v59 = vmul.f32 %v9911_v4, %v56_v41  ;;  %v129_v0 = vmul.f32 %v9911_v4, %v58_v48  ;;  %v512_v2 = vld [vmem:[#allocation2 + $0x99] sm:$0xff]  ;;  %v132_v15 = vmul.f32 %v9911_v4, %v61_v60 }
  0x37   :  { %v192_v52 = vadd.f32 %v9916_v5, %v124_v8  ;;  %v254_v56 = vmax.f32 %v190_v44, 0.0  ;;  %403 = vst.msk [vmem:[#allocation2 + $0x1d1] sm:$0xff] %vm287_vm0, %v252_v50  ;;  %404 = vst.msk [vmem:[#allocation2 + $0x1e1] sm:$0xff] %vm287_vm0, %v253_v51  ;;  %v62_v1 = vld [vmem:[%s12095_s0 + $0x170] sm:$0xff]  ;;  %v63_v10 = vld [vmem:[%s12095_s0 + $0x178] sm:$0xff]  ;;  %v198_v18 = vadd.f32 %v9916_v5, %v130_v7  ;;  %v199_v19 = vadd.f32 %v9916_v5, %v131_v9 }
  0x38   :  { %8326 = vmatmul.mubr.msk.f32.gmra.mrb[6].mxu1 %vm287_vm0, %v506_v57  ;;  %8715 = vmatmul.mubr.msk.f32.gmra.mrb[4].mxu0 %vm287_vm0, %v506_v57  ;;  %402 = vst.msk [vmem:[#allocation2 + $0x1c9] sm:$0xff] %vm287_vm0, %v251_v43  ;;  %v255_v57 = vmax.f32 %v191_v45, 0.0  ;;  %v195_v6 = vadd.f32 %v9916_v5, %v127_v59  ;;  %v513_v11 = vld [vmem:[#allocation2 + $0xa9] sm:$0xff]  ;;  %v197_v14 = vadd.f32 %v9916_v5, %v129_v0  ;;  %v64_v16 = vld [vmem:[%s12095_s0 + $0x180] sm:$0xff]  ;;  %408 = vst.msk [vmem:[#allocation2 + $0x211] sm:$0xff] %vm287_vm0, %v257_v3 }
  0x39   :  { %8328 = vmatprep.mubr.msk.f32.mxu1 %vm287_vm0, %v507_v63  ;;  %8717 = vmatprep.mubr.msk.f32.mxu0 %vm287_vm0, %v507_v63  ;;  %v256_v61 = vmax.f32 %v192_v52, 0.0  ;;  %v128_v63 = vmul.f32 %v9911_v4, %v57_v47  ;;  %405 = vst.msk [vmem:[#allocation2 + $0x1e9] sm:$0xff] %vm287_vm0, %v254_v56  ;;  %v65_v21 = vld [vmem:[%s12095_s0 + $0x188] sm:$0xff]  ;;  %v66_v22 = vld [vmem:[%s12095_s0 + $0x190] sm:$0xff]  ;;  %409 = vst.msk [vmem:[#allocation2 + $0x219] sm:$0xff] %vm287_vm0, %v258_v12  ;;  %v200_v25 = vadd.f32 %v9916_v5, %v132_v15 }
  0x3a   :  { %406 = vst.msk [vmem:[#allocation2 + $0x1f9] sm:$0xff] %vm287_vm0, %v255_v57  ;;  %v259_v17 = vmax.f32 %v195_v6, 0.0  ;;  %v261_v24 = vmax.f32 %v197_v14, 0.0  ;;  %v67_v27 = vld [vmem:[%s12095_s0 + $0x198] sm:$0xff]  ;;  %v262_v30 = vmax.f32 %v198_v18, 0.0  ;;  %v263_v31 = vmax.f32 %v199_v19, 0.0 }
  0x3b   :  { %407 = vst.msk [vmem:[#allocation2 + $0x201] sm:$0xff] %vm287_vm0, %v256_v61  ;;  %v196_v13 = vadd.f32 %v9916_v5, %v128_v63  ;;  %v514_v28 = vld [vmem:[#allocation2 + $0xb1] sm:$0xff]  ;;  %v135_v33 = vmul.f32 %v9911_v4, %v64_v16  ;;  %v68_v34 = vld [vmem:[%s12095_s0 + $0x1a0] sm:$0xff]  ;;  %v264_v36 = vmax.f32 %v200_v25, 0.0  ;;  %v136_v38 = vmul.f32 %v9911_v4, %v65_v21  ;;  %v69_v40 = vld [vmem:[%s12095_s0 + $0x1a8] sm:$0xff] }
  0x3c   :  { %8329 = vmatmul.mubr.msk.f32.gmra.mrb[8].mxu1 %vm287_vm0, %v508_v20  ;;  %8718 = vmatmul.mubr.msk.f32.gmra.mrb[6].mxu0 %vm287_vm0, %v508_v20  ;;  %v133_v20 = vmul.f32 %v9911_v4, %v62_v1  ;;  %410 = vst.msk [vmem:[#allocation2 + $0x229] sm:$0xff] %vm287_vm0, %v259_v17  ;;  %v515_v35 = vld [vmem:[#allocation2 + $0xc1] sm:$0xff]  ;;  %412 = vst.msk [vmem:[#allocation2 + $0x241] sm:$0xff] %vm287_vm0, %v261_v24  ;;  %v137_v39 = vmul.f32 %v9911_v4, %v66_v22  ;;  %v70_v44 = vld [vmem:[%s12095_s0 + $0x1b0] sm:$0xff] }
  0x3d   :  { %8331 = vmatprep.mubr.msk.f32.mxu1 %vm287_vm0, %v509_v26  ;;  %8720 = vmatprep.mubr.msk.f32.mxu0 %vm287_vm0, %v509_v26  ;;  %v260_v23 = vmax.f32 %v196_v13, 0.0  ;;  %v134_v26 = vmul.f32 %v9911_v4, %v63_v10  ;;  %413 = vst.msk [vmem:[#allocation2 + $0x249] sm:$0xff] %vm287_vm0, %v262_v30  ;;  %414 = vst.msk [vmem:[#allocation2 + $0x259] sm:$0xff] %vm287_vm0, %v263_v31  ;;  %v203_v41 = vadd.f32 %v9916_v5, %v135_v33  ;;  %v71_v54 = vld [vmem:[%s12095_s0 + $0x1b8] sm:$0xff]  ;;  %v72_v60 = vld [vmem:[%s12095_s0 + $0x1c0] sm:$0xff] }
  0x3e   :  { %v201_v32 = vadd.f32 %v9916_v5, %v133_v20  ;;  %v139_v43 = vmul.f32 %v9911_v4, %v68_v34  ;;  %415 = vst.msk [vmem:[#allocation2 + $0x261] sm:$0xff] %vm287_vm0, %v264_v36  ;;  %v204_v46 = vadd.f32 %v9916_v5, %v136_v38  ;;  %v205_v47 = vadd.f32 %v9916_v5, %v137_v39  ;;  %v517_v55 = vld [vmem:[#allocation2 + $0xd9] sm:$0xff]  ;;  %v73_v1 = vld [vmem:[%s12095_s0 + $0x1c8] sm:$0xff]  ;;  %v74_v7 = vld [vmem:[%s12095_s0 + $0x1d0] sm:$0xff] }
  0x3f   :  { %411 = vst.msk [vmem:[#allocation2 + $0x231] sm:$0xff] %vm287_vm0, %v260_v23  ;;  %v202_v37 = vadd.f32 %v9916_v5, %v134_v26  ;;  %v140_v48 = vmul.f32 %v9911_v4, %v69_v40  ;;  %v267_v50 = vmax.f32 %v203_v41, 0.0  ;;  %v141_v53 = vmul.f32 %v9911_v4, %v70_v44  ;;  %v518_v9 = vld [vmem:[#allocation2 + $0xe1] sm:$0xff]  ;;  %v75_v13 = vld [vmem:[%s12095_s0 + $0x1d8] sm:$0xff]  ;;  %v10349_v34 = vld [vmem:[%s12094_s1 + $0x10] sm:$0xff] }
  0x40   :  { %8332 = vmatmul.mubr.msk.f32.gmra.mrb[10].mxu1 %vm287_vm0, %v510_v42  ;;  %8721 = vmatmul.mubr.msk.f32.gmra.mrb[8].mxu0 %vm287_vm0, %v510_v42  ;;  %v265_v8 = vmax.f32 %v201_v32, 0.0  ;;  %v138_v42 = vmul.f32 %v9911_v4, %v67_v27  ;;  %v207_v52 = vadd.f32 %v9916_v5, %v139_v43  ;;  %v268_v56 = vmax.f32 %v204_v46, 0.0  ;;  %v519_v14 = vld [vmem:[#allocation2 + $0xf1] sm:$0xff]  ;;  %v76_v20 = vld [vmem:[%s12095_s0 + $0x1e0] sm:$0xff]  ;;  %v77_v24 = vld [vmem:[%s12095_s0 + $0x1e8] sm:$0xff] }
  0x41   :  { %8334 = vmatprep.mubr.msk.f32.mxu1 %vm287_vm0, %v511_v49  ;;  %8723 = vmatprep.mubr.msk.f32.mxu0 %vm287_vm0, %v511_v49  ;;  %v266_v45 = vmax.f32 %v202_v37, 0.0  ;;  %v516_v49 = vld [vmem:[#allocation2 + $0xc9] sm:$0xff]  ;;  %v269_v57 = vmax.f32 %v205_v47, 0.0  ;;  %v208_v58 = vadd.f32 %v9916_v5, %v140_v48  ;;  %v142_v59 = vmul.f32 %v9911_v4, %v71_v54  ;;  %418 = vst.msk [vmem:[#allocation2 + $0x289] sm:$0xff] %vm287_vm0, %v267_v50  ;;  %v520_v25 = vld [vmem:[#allocation2 + $0xf9] sm:$0xff]  ;;  %v523_v37 = vld [vmem:[#allocation2 + $0x121] sm:$0xff] }
  0x42   :  { %416 = vst.msk [vmem:[#allocation2 + $0x271] sm:$0xff] %vm287_vm0, %v265_v8  ;;  %v206_v51 = vadd.f32 %v9916_v5, %v138_v42  ;;  %v271_v62 = vmax.f32 %v207_v52, 0.0  ;;  %v209_v63 = vadd.f32 %v9916_v5, %v141_v53  ;;  %v143_v0 = vmul.f32 %v9911_v4, %v72_v60  ;;  %419 = vst.msk [vmem:[#allocation2 + $0x291] sm:$0xff] %vm287_vm0, %v268_v56  ;;  %v524_v38 = vld [vmem:[#allocation2 + $0x129] sm:$0xff]  ;;  %v525_v39 = vld [vmem:[#allocation2 + $0x139] sm:$0xff] }
  0x43   :  { %417 = vst.msk [vmem:[#allocation2 + $0x279] sm:$0xff] %vm287_vm0, %v266_v45  ;;  %420 = vst.msk [vmem:[#allocation2 + $0x2a1] sm:$0xff] %vm287_vm0, %v269_v57  ;;  %v210_v3 = vadd.f32 %v9916_v5, %v142_v59  ;;  %v144_v6 = vmul.f32 %v9911_v4, %v73_v1  ;;  %v145_v12 = vmul.f32 %v9911_v4, %v74_v7  ;;  %8510 = vmatprep.subr.mxu1 %v10349_v34  ;;  %v526_v40 = vld [vmem:[#allocation2 + $0x141] sm:$0xff]  ;;  %v527_v8 = vld [vmem:[#allocation2 + $0x151] sm:$0xff] }
  0x44   :  { %8335 = vmatmul.mubr.msk.f32.gmra.mrb[12].mxu1 %vm287_vm0, %v512_v2  ;;  %8724 = vmatmul.mubr.msk.f32.gmra.mrb[10].mxu0 %vm287_vm0, %v512_v2  ;;  %v270_v61 = vmax.f32 %v206_v51, 0.0  ;;  %v272_v2 = vmax.f32 %v208_v58, 0.0  ;;  %422 = vst.msk [vmem:[#allocation2 + $0x2b9] sm:$0xff] %vm287_vm0, %v271_v62  ;;  %v273_v10 = vmax.f32 %v209_v63, 0.0  ;;  %v146_v17 = vmul.f32 %v9911_v4, %v75_v13  ;;  %v528_v41 = vld [vmem:[#allocation2 + $0x159] sm:$0xff]  ;;  %v529_v42 = vld [vmem:[#allocation2 + $0x169] sm:$0xff] }
  0x45   :  { %8337 = vmatprep.mubr.msk.f32.mxu1 %vm287_vm0, %v513_v11  ;;  %8726 = vmatprep.mubr.msk.f32.mxu0 %vm287_vm0, %v513_v11  ;;  %v211_v11 = vadd.f32 %v9916_v5, %v143_v0  ;;  %v274_v15 = vmax.f32 %v210_v3, 0.0  ;;  %v212_v16 = vadd.f32 %v9916_v5, %v144_v6  ;;  %v213_v19 = vadd.f32 %v9916_v5, %v145_v12  ;;  %v530_v43 = vld [vmem:[#allocation2 + $0x171] sm:$0xff]  ;;  %v3163_v45 = vld [vmem:[#allocation2 + $0x181] sm:$0xff]  ;;  %v532_v46 = vld [vmem:[#allocation2 + $0x1b9] sm:$0xff] }
  0x46   :  { %421 = vst.msk [vmem:[#allocation2 + $0x2a9] sm:$0xff] %vm287_vm0, %v270_v61  ;;  %423 = vst.msk [vmem:[#allocation2 + $0x2c1] sm:$0xff] %vm287_vm0, %v272_v2  ;;  %v214_v22 = vadd.f32 %v9916_v5, %v146_v17  ;;  %v147_v23 = vmul.f32 %v9911_v4, %v76_v20  ;;  %v148_v27 = vmul.f32 %v9911_v4, %v77_v24  ;;  %v531_v44 = vld [vmem:[#allocation2 + $0x1b1] sm:$0xff]  ;;  %v3164_v47 = vld [vmem:[#allocation2 + $0x189] sm:$0xff] }
  0x47   :  { %424 = vst.msk [vmem:[#allocation2 + $0x2d1] sm:$0xff] %vm287_vm0, %v273_v10  ;;  %v275_v18 = vmax.f32 %v211_v11, 0.0  ;;  %425 = vst.msk [vmem:[#allocation2 + $0x2d9] sm:$0xff] %vm287_vm0, %v274_v15  ;;  %v276_v21 = vmax.f32 %v212_v16, 0.0  ;;  %v277_v26 = vmax.f32 %v213_v19, 0.0  ;;  %v533_v48 = vld [vmem:[#allocation2 + $0x1c9] sm:$0xff] }
  0x48   :  { %8338 = vmatmul.mubr.msk.f32.gmra.mrb[14].mxu1 %vm287_vm0, %v514_v28  ;;  %8727 = vmatmul.mubr.msk.f32.gmra.mrb[12].mxu0 %vm287_vm0, %v514_v28  ;;  %v521_v28 = vld [vmem:[#allocation2 + $0x109] sm:$0xff]  ;;  %v278_v30 = vmax.f32 %v214_v22, 0.0  ;;  %v215_v31 = vadd.f32 %v9916_v5, %v147_v23  ;;  %v216_v32 = vadd.f32 %v9916_v5, %v148_v27  ;;  %v79_v51 = vld [vmem:[%s12095_s0 + $0x1f8] sm:$0xff]  ;;  %v535_v56 = vld [vmem:[#allocation2 + $0x1e1] sm:$0xff] }
  0x49   :  { %8340 = vmatprep.mubr.msk.f32.mxu1 %vm287_vm0, %v515_v35  ;;  %8729 = vmatprep.mubr.msk.f32.mxu0 %vm287_vm0, %v515_v35  ;;  %426 = vst.msk [vmem:[#allocation2 + $0x2e9] sm:$0xff] %vm287_vm0, %v275_v18  ;;  %427 = vst.msk [vmem:[#allocation2 + $0x2f1] sm:$0xff] %vm287_vm0, %v276_v21  ;;  %v522_v35 = vld [vmem:[#allocation2 + $0x111] sm:$0xff]  ;;  %v3841_v53 = vld [vmem:[#allocation2 + $0x22] sm:$0xff] }
  0x4a   :  { %428 = vst.msk [vmem:[#allocation2 + $0x301] sm:$0xff] %vm287_vm0, %v277_v26  ;;  %429 = vst.msk [vmem:[#allocation2 + $0x309] sm:$0xff] %vm287_vm0, %v278_v30  ;;  %v279_v33 = vmax.f32 %v215_v31, 0.0  ;;  %v280_v36 = vmax.f32 %v216_v32, 0.0  ;;  %v78_v50 = vld [vmem:[%s12095_s0 + $0x1f0] sm:$0xff]  ;;  %v10393_v60 = vld [vmem:[%s12094_s1 + $0x38] sm:$0xff] }
  0x4b   :  { %v534_v52 = vld [vmem:[#allocation2 + $0x1d1] sm:$0xff]  ;;  %v149_v54 = vmul.f32 %v9911_v4, %v78_v50  ;;  %v3843_v61 = vld [vmem:[#allocation2 + $0x3a] sm:$0xff]  ;;  %v3846_v3 = vld [vmem:[#allocation2 + $0x62] sm:$0xff] }
  0x4c   :  { %8341 = vmatmul.mubr.msk.f32.gmra.mrb[16].mxu1 %vm287_vm0, %v516_v49  ;;  %8730 = vmatmul.mubr.msk.f32.gmra.mrb[14].mxu0 %vm287_vm0, %v516_v49  ;;  %430 = vst.msk [vmem:[#allocation2 + $0x319] sm:$0xff] %vm287_vm0, %v279_v33  ;;  %431 = vst.msk [vmem:[#allocation2 + $0x321] sm:$0xff] %vm287_vm0, %v280_v36  ;;  %v3840_v49 = vld [vmem:[#allocation2 + $0x1a] sm:$0xff]  ;;  %v3842_v57 = vld [vmem:[#allocation2 + $0x32] sm:$0xff] }
  0x4d   :  { %8343 = vmatprep.mubr.msk.f32.mxu1 %vm287_vm0, %v517_v55  ;;  %8732 = vmatprep.mubr.msk.f32.mxu0 %vm287_vm0, %v517_v55  ;;  %v150_v55 = vmul.f32 %v9911_v4, %v79_v51  ;;  %v217_v58 = vadd.f32 %v9916_v5, %v149_v54  ;;  %v536_v4 = vld [vmem:[#allocation2 + $0x1e9] sm:$0xff]  ;;  %v3845_v1 = vld [vmem:[#allocation2 + $0x52] sm:$0xff]  ;;  %v10413_v10 = vld [vmem:[#allocation2 + $0x7a] sm:$0xff] }
  0x4e   :  { %v3844_v0 = vld [vmem:[#allocation2 + $0x4a] sm:$0xff]  ;;  %v540_v6 = vld [vmem:[#allocation2 + $0x219] sm:$0xff]  ;;  %v10421_v12 = vld [vmem:[#allocation2 + $0x82] sm:$0xff] }
  0x4f   :  { %v218_v59 = vadd.f32 %v9916_v5, %v150_v55  ;;  %v281_v62 = vmax.f32 %v217_v58, 0.0  ;;  %v537_v5 = vld [vmem:[#allocation2 + $0x1f9] sm:$0xff]  ;;  %v539_v2 = vld [vmem:[#allocation2 + $0x211] sm:$0xff]  ;;  %v543_v13 = vld [vmem:[#allocation2 + $0x241] sm:$0xff] }
  0x50   :  { %8344 = vmatmul.mubr.msk.f32.gmra.mrb[18].mxu1 %vm287_vm0, %v518_v9  ;;  %8733 = vmatmul.mubr.msk.f32.gmra.mrb[16].mxu0 %vm287_vm0, %v518_v9  ;;  %v10411_v7 = vld [vmem:[#allocation2 + $0x6a] sm:$0xff]  ;;  %v10431_v16 = vld [vmem:[#allocation2 + $0x9a] sm:$0xff]  ;;  %v10441_v20 = vld [vmem:[#allocation2 + $0xb2] sm:$0xff] }
  0x51   :  { %8346 = vmatprep.mubr.msk.f32.mxu1 %vm287_vm0, %v519_v14  ;;  %8735 = vmatprep.mubr.msk.f32.mxu0 %vm287_vm0, %v519_v14  ;;  %v282_v63 = vmax.f32 %v218_v59, 0.0  ;;  %432 = vst.msk [vmem:[#allocation2 + $0x331] sm:$0xff] %vm287_vm0, %v281_v62  ;;  %v541_v9 = vld [vmem:[#allocation2 + $0x229] sm:$0xff]  ;;  %v542_v11 = vld [vmem:[#allocation2 + $0x231] sm:$0xff]  ;;  %v545_v17 = vld [vmem:[#allocation2 + $0x259] sm:$0xff] }
  0x52   :  { %v10423_v14 = vld [vmem:[#allocation2 + $0x92] sm:$0xff]  ;;  %v544_v15 = vld [vmem:[#allocation2 + $0x249] sm:$0xff]  ;;  %v546_v19 = vld [vmem:[#allocation2 + $0x261] sm:$0xff] }
  0x53   :  { %433 = vst.msk [vmem:[#allocation2 + $0x339] sm:$0xff] %vm287_vm0, %v282_v63  ;;  %v10433_v18 = vld [vmem:[#allocation2 + $0xaa] sm:$0xff]  ;;  %v10443_v22 = vld [vmem:[#allocation2 + $0xc2] sm:$0xff]  ;;  %v548_v23 = vld [vmem:[#allocation2 + $0x279] sm:$0xff] }
  0x54   :  { %8347 = vmatmul.mubr.msk.f32.gmra.mrb[20].mxu1 %vm287_vm0, %v520_v25  ;;  %8736 = vmatmul.mubr.msk.f32.gmra.mrb[18].mxu0 %vm287_vm0, %v520_v25  ;;  %v547_v21 = vld [vmem:[#allocation2 + $0x271] sm:$0xff]  ;;  %v549_v25 = vld [vmem:[#allocation2 + $0x289] sm:$0xff]  ;;  %v10453_v26 = vld [vmem:[#allocation2 + $0xda] sm:$0xff] }
  0x55   :  { %8349 = vmatprep.mubr.msk.f32.mxu1 %vm287_vm0, %v521_v28  ;;  %8738 = vmatprep.mubr.msk.f32.mxu0 %vm287_vm0, %v521_v28  ;;  %v10451_v24 = vld [vmem:[#allocation2 + $0xca] sm:$0xff]  ;;  %v10461_v28 = vld [vmem:[#allocation2 + $0xe2] sm:$0xff]  ;;  %v10463_v31 = vld [vmem:[#allocation2 + $0xf2] sm:$0xff] }
  0x56   :  { %v550_v27 = vld [vmem:[#allocation2 + $0x291] sm:$0xff]  ;;  %v551_v30 = vld [vmem:[#allocation2 + $0x2a1] sm:$0xff]  ;;  %v552_v32 = vld [vmem:[#allocation2 + $0x2a9] sm:$0xff] }
  0x57   :  { %v10471_v33 = vld [vmem:[#allocation2 + $0xfa] sm:$0xff]  ;;  %v10473_v36 = vld [vmem:[#allocation2 + $0x10a] sm:$0xff]  ;;  %v3870_v55 = vld [vmem:[#allocation2 + $0x182] sm:$0xff] }
  0x58   :  { %8350 = vmatmul.mubr.msk.f32.gmra.mrb[22].mxu1 %vm287_vm0, %v522_v35  ;;  %8739 = vmatmul.mubr.msk.f32.gmra.mrb[20].mxu0 %vm287_vm0, %v522_v35  ;;  %v553_v35 = vld [vmem:[#allocation2 + $0x2b9] sm:$0xff]  ;;  %v10513_v51 = vld [vmem:[#allocation2 + $0x16a] sm:$0xff] }
  0x59   :  { %8352 = vmatprep.mubr.msk.f32.mxu1 %vm287_vm0, %v523_v37  ;;  %8741 = vmatprep.mubr.msk.f32.mxu0 %vm287_vm0, %v523_v37  ;;  %v554_v37 = vld [vmem:[#allocation2 + $0x2c1] sm:$0xff]  ;;  %v561_v50 = vld [vmem:[#allocation2 + $0x319] sm:$0xff]  ;;  %v10528_v59 = vld [vmem:[#allocation2 + $0x1ca] sm:$0xff] }
  0x5a   :  { %v434_v54 = vld [vmem:[#allocation2] sm:$0xff]  ;;  %v436_v58 = vld [vmem:[#allocation2 + $0x18] sm:$0xff]  ;;  %v10543_v63 = vld [vmem:[#allocation2 + $0x30] sm:$0xff] }
  0x5b   :  { %v10540_v62 = vld [vmem:[%s12094_s1 + $0x18] sm:$0xff] }
  0x5c   :  { %8353 = vmatmul.mubr.msk.f32.gmra.mrb[24].mxu1 %vm287_vm0, %v524_v38  ;;  %8742 = vmatmul.mubr.msk.f32.gmra.mrb[22].mxu0 %vm287_vm0, %v524_v38  ;;  %v10481_v38 = vld [vmem:[#allocation2 + $0x112] sm:$0xff] }
  0x5d   :  { %8355 = vmatprep.mubr.msk.f32.mxu1 %vm287_vm0, %v525_v39  ;;  %8744 = vmatprep.mubr.msk.f32.mxu0 %vm287_vm0, %v525_v39  ;;  %v555_v39 = vld [vmem:[#allocation2 + $0x2d1] sm:$0xff] }
  0x60   :  { %8356 = vmatmul.mubr.msk.f32.gmra.mrb[26].mxu1 %vm287_vm0, %v526_v40  ;;  %8745 = vmatmul.mubr.msk.f32.gmra.mrb[24].mxu0 %vm287_vm0, %v526_v40  ;;  %v10483_v40 = vld [vmem:[#allocation2 + $0x122] sm:$0xff] }
  0x61   :  { %8358 = vmatprep.mubr.msk.f32.mxu1 %vm287_vm0, %v527_v8  ;;  %8747 = vmatprep.mubr.msk.f32.mxu0 %vm287_vm0, %v527_v8  ;;  %v556_v8 = vld [vmem:[#allocation2 + $0x2d9] sm:$0xff] }
  0x64   :  { %8359 = vmatmul.mubr.msk.f32.gmra.mrb[28].mxu1 %vm287_vm0, %v528_v41  ;;  %8748 = vmatmul.mubr.msk.f32.gmra.mrb[26].mxu0 %vm287_vm0, %v528_v41  ;;  %v10491_v41 = vld [vmem:[#allocation2 + $0x12a] sm:$0xff] }
  0x65   :  { %8361 = vmatprep.mubr.msk.f32.mxu1 %vm287_vm0, %v529_v42  ;;  %8750 = vmatprep.mubr.msk.f32.mxu0 %vm287_vm0, %v529_v42  ;;  %v557_v42 = vld [vmem:[#allocation2 + $0x2e9] sm:$0xff] }
  0x68   :  { %8362 = vmatmul.mubr.msk.f32.gmra.mrb[30].mxu1 %vm287_vm0, %v530_v43  ;;  %8751 = vmatmul.mubr.msk.f32.gmra.mrb[28].mxu0 %vm287_vm0, %v530_v43  ;;  %v10493_v43 = vld [vmem:[#allocation2 + $0x13a] sm:$0xff] }
  0x69   :  { %8364 = vmatprep.mubr.msk.f32.mxu1 %vm287_vm0, %v531_v44  ;;  %8753 = vmatprep.mubr.msk.f32.mxu0 %vm287_vm0, %v3163_v45  ;;  %v558_v44 = vld [vmem:[#allocation2 + $0x2f1] sm:$0xff]  ;;  %v10501_v45 = vld [vmem:[#allocation2 + $0x142] sm:$0xff] }
  0x6c   :  { %8365 = vmatmul.mubr.msk.f32.gmra.mrb[32].mxu1 %vm287_vm0, %v532_v46  ;;  %8754 = vmatmul.mubr.msk.f32.gmra.mrb[30].mxu0 %vm287_vm0, %v3164_v47  ;;  %v559_v46 = vld [vmem:[#allocation2 + $0x301] sm:$0xff]  ;;  %v10503_v47 = vld [vmem:[#allocation2 + $0x152] sm:$0xff] }
  0x6d   :  { %8367 = vmatprep.mubr.msk.f32.mxu1 %vm287_vm0, %v533_v48  ;;  %8806 = vmatprep.mubr.msk.f32.mxu0 %vm287_vm0, %v3840_v49  ;;  %v560_v48 = vld [vmem:[#allocation2 + $0x309] sm:$0xff]  ;;  %v10511_v49 = vld [vmem:[#allocation2 + $0x15a] sm:$0xff] }
  0x70   :  { %8368 = vmatmul.mubr.msk.f32.gmra.mrb[34].mxu1 %vm287_vm0, %v534_v52  ;;  %8807 = vmatmul.mubr.msk.f32.vlgmr.msra.gmra.mrb[0].mxu0 %vm287_vm0, %v3841_v53  ;;  %v562_v52 = vld [vmem:[#allocation2 + $0x321] sm:$0xff]  ;;  %v10521_v53 = vld [vmem:[#allocation2 + $0x172] sm:$0xff] }
  0x71   :  { %8903 = vmatpush3.msra.mxu0 %v10058_v29  ;;  %8370 = vmatprep.mubr.msk.f32.mxu1 %vm287_vm0, %v535_v56  ;;  %v538_v29 = vld [vmem:[#allocation2 + $0x201] sm:$0xff] }
  0x72   :  { %8809 = vmatprep.mubr.msk.f32.mxu0 %vm287_vm0, %v3842_v57  ;;  %9000 = vmatprep.subr.mxu0 %v10393_v60  ;;  %v435_v56 = vld [vmem:[#allocation2 + $0x8] sm:$0xff] }
  0x73   :  { %v3871_v57 = vld [vmem:[#allocation2 + $0x18a] sm:$0xff] }
  0x74   :  { %8371 = vmatmul.mubr.msk.f32.gmra.mrb[36].mxu1 %vm287_vm0, %v536_v4  ;;  %8810 = vmatmul.mubr.msk.f32.gmra.mrb[2].mxu0 %vm287_vm0, %v3843_v61  ;;  %v437_v4 = vld [vmem:[#allocation2 + $0x20] sm:$0xff]  ;;  %v10535_v61 = vld [vmem:[#allocation2 + $0x1d2] sm:$0xff] }
  0x75   :  { %8373 = vmatprep.mubr.msk.f32.mxu1 %vm287_vm0, %v537_v5  ;;  %8812 = vmatprep.mubr.msk.f32.mxu0 %vm287_vm0, %v3844_v0  ;;  %v10545_v5 = vld [vmem:[#allocation2 + $0x1e2] sm:$0xff]  ;;  %v10555_v0 = vld [vmem:[#allocation2 + $0x38] sm:$0xff] }
  0x78   :  { %8374 = vmatmul.mubr.msk.f32.gmra.mrb[38].mxu1 %vm287_vm0, %v538_v29  ;;  %8813 = vmatmul.mubr.msk.f32.gmra.mrb[4].mxu0 %vm287_vm0, %v3845_v1  ;;  %v10559_v29 = vld [vmem:[#allocation2 + $0x48] sm:$0xff]  ;;  %v10561_v1 = vld [vmem:[#allocation2 + $0x1fa] sm:$0xff] }
  0x79   :  { %8376 = vmatprep.mubr.msk.f32.mxu1 %vm287_vm0, %v539_v2  ;;  %8815 = vmatprep.mubr.msk.f32.mxu0 %vm287_vm0, %v3846_v3  ;;  %12135 = vst [vmem:[#allocation4_spill] sm:$0xff] %v10561_v1  ;;  %v10571_v2 = vld [vmem:[#allocation2 + $0x50] sm:$0xff]  ;;  %v10573_v3 = vld [vmem:[#allocation2 + $0x202] sm:$0xff] }
  0x7a   :  { %12136 = vst [vmem:[#allocation5_spill] sm:$0xff] %v10573_v3 }
  0x7c   :  { %8377 = vmatmul.mubr.msk.f32.gmra.mrb[40].mxu1 %vm287_vm0, %v540_v6  ;;  %8816 = vmatmul.mubr.msk.f32.gmra.mrb[6].mxu0 %vm287_vm0, %v10411_v7  ;;  %v10575_v6 = vld [vmem:[#allocation2 + $0x60] sm:$0xff] }
  0x7d   :  { %8379 = vmatprep.mubr.msk.f32.mxu1 %vm287_vm0, %v541_v9  ;;  %8818 = vmatprep.mubr.msk.f32.mxu0 %vm287_vm0, %v10413_v10  ;;  %v10577_v9 = vld [vmem:[#allocation2 + $0x212] sm:$0xff] }
  0x7e   :  { %12137 = vst [vmem:[#allocation6_spill] sm:$0xff] %v10577_v9 }
  0x80   :  { %8380 = vmatmul.mubr.msk.f32.gmra.mrb[42].mxu1 %vm287_vm0, %v542_v11  ;;  %8819 = vmatmul.mubr.msk.f32.gmra.mrb[8].mxu0 %vm287_vm0, %v10421_v12  ;;  %v10587_v11 = vld [vmem:[#allocation2 + $0x68] sm:$0xff] }
  0x81   :  { %8382 = vmatprep.mubr.msk.f32.mxu1 %vm287_vm0, %v543_v13  ;;  %8821 = vmatprep.mubr.msk.f32.mxu0 %vm287_vm0, %v10423_v14  ;;  %v10589_v13 = vld [vmem:[#allocation2 + $0x21a] sm:$0xff] }
  0x82   :  { %12138 = vst [vmem:[#allocation7_spill] sm:$0xff] %v10589_v13 }
  0x84   :  { %8383 = vmatmul.mubr.msk.f32.gmra.mrb[44].mxu1 %vm287_vm0, %v544_v15  ;;  %8822 = vmatmul.mubr.msk.f32.gmra.mrb[10].mxu0 %vm287_vm0, %v10431_v16  ;;  %v10591_v15 = vld [vmem:[#allocation2 + $0x78] sm:$0xff] }
  0x85   :  { %8385 = vmatprep.mubr.msk.f32.mxu1 %vm287_vm0, %v545_v17  ;;  %8824 = vmatprep.mubr.msk.f32.mxu0 %vm287_vm0, %v10433_v18  ;;  %v10593_v17 = vld [vmem:[#allocation2 + $0x22a] sm:$0xff] }
  0x86   :  { %12139 = vst [vmem:[#allocation8_spill] sm:$0xff] %v10593_v17 }
  0x88   :  { %8386 = vmatmul.mubr.msk.f32.gmra.mrb[46].mxu1 %vm287_vm0, %v546_v19  ;;  %8825 = vmatmul.mubr.msk.f32.gmra.mrb[12].mxu0 %vm287_vm0, %v10441_v20  ;;  %v10603_v19 = vld [vmem:[#allocation2 + $0x80] sm:$0xff] }
  0x89   :  { %8388 = vmatprep.mubr.msk.f32.mxu1 %vm287_vm0, %v547_v21  ;;  %8827 = vmatprep.mubr.msk.f32.mxu0 %vm287_vm0, %v10443_v22  ;;  %v10605_v21 = vld [vmem:[#allocation2 + $0x232] sm:$0xff] }
  0x8a   :  { %12140 = vst [vmem:[#allocation9_spill] sm:$0xff] %v10605_v21 }
  0x8c   :  { %8389 = vmatmul.mubr.msk.f32.gmra.mrb[48].mxu1 %vm287_vm0, %v548_v23  ;;  %8828 = vmatmul.mubr.msk.f32.gmra.mrb[14].mxu0 %vm287_vm0, %v10451_v24  ;;  %v10607_v23 = vld [vmem:[#allocation2 + $0x90] sm:$0xff] }
  0x8d   :  { %8391 = vmatprep.mubr.msk.f32.mxu1 %vm287_vm0, %v549_v25  ;;  %8830 = vmatprep.mubr.msk.f32.mxu0 %vm287_vm0, %v10453_v26  ;;  %v10609_v25 = vld [vmem:[#allocation2 + $0x242] sm:$0xff] }
  0x8e   :  { %12141 = vst [vmem:[#allocation10_spill] sm:$0xff] %v10609_v25 }
  0x90   :  { %8392 = vmatmul.mubr.msk.f32.gmra.mrb[50].mxu1 %vm287_vm0, %v550_v27  ;;  %8831 = vmatmul.mubr.msk.f32.gmra.mrb[16].mxu0 %vm287_vm0, %v10461_v28  ;;  %v10619_v27 = vld [vmem:[#allocation2 + $0x98] sm:$0xff] }
  0x91   :  { %8394 = vmatprep.mubr.msk.f32.mxu1 %vm287_vm0, %v551_v30  ;;  %8833 = vmatprep.mubr.msk.f32.mxu0 %vm287_vm0, %v10463_v31  ;;  %v10621_v30 = vld [vmem:[#allocation2 + $0x24a] sm:$0xff] }
  0x92   :  { %12142 = vst [vmem:[#allocation11_spill] sm:$0xff] %v10621_v30 }
  0x94   :  { %8395 = vmatmul.mubr.msk.f32.gmra.mrb[52].mxu1 %vm287_vm0, %v552_v32  ;;  %8834 = vmatmul.mubr.msk.f32.gmra.mrb[18].mxu0 %vm287_vm0, %v10471_v33  ;;  %v10623_v32 = vld [vmem:[#allocation2 + $0xa8] sm:$0xff] }
  0x95   :  { %8397 = vmatprep.mubr.msk.f32.mxu1 %vm287_vm0, %v553_v35  ;;  %8836 = vmatprep.mubr.msk.f32.mxu0 %vm287_vm0, %v10473_v36  ;;  %v10625_v35 = vld [vmem:[#allocation2 + $0x25a] sm:$0xff] }
  0x96   :  { %12143 = vst [vmem:[#allocation12_spill] sm:$0xff] %v10625_v35 }
  0x98   :  { %8398 = vmatmul.mubr.msk.f32.gmra.mrb[54].mxu1 %vm287_vm0, %v554_v37  ;;  %8837 = vmatmul.mubr.msk.f32.gmra.mrb[20].mxu0 %vm287_vm0, %v10481_v38  ;;  %v10635_v37 = vld [vmem:[#allocation2 + $0xb0] sm:$0xff] }
  0x99   :  { %8400 = vmatprep.mubr.msk.f32.mxu1 %vm287_vm0, %v555_v39  ;;  %8839 = vmatprep.mubr.msk.f32.mxu0 %vm287_vm0, %v10483_v40  ;;  %v10637_v39 = vld [vmem:[#allocation2 + $0x262] sm:$0xff] }
  0x9a   :  { %12144 = vst [vmem:[#allocation13_spill] sm:$0xff] %v10637_v39 }
  0x9c   :  { %8401 = vmatmul.mubr.msk.f32.gmra.mrb[56].mxu1 %vm287_vm0, %v556_v8  ;;  %8840 = vmatmul.mubr.msk.f32.gmra.mrb[22].mxu0 %vm287_vm0, %v10491_v41  ;;  %v10639_v8 = vld [vmem:[#allocation2 + $0xc0] sm:$0xff] }
  0x9d   :  { %8403 = vmatprep.mubr.msk.f32.mxu1 %vm287_vm0, %v557_v42  ;;  %8842 = vmatprep.mubr.msk.f32.mxu0 %vm287_vm0, %v10493_v43  ;;  %v10641_v42 = vld [vmem:[#allocation2 + $0x272] sm:$0xff] }
  0x9e   :  { %12145 = vst [vmem:[#allocation14_spill] sm:$0xff] %v10641_v42 }
  0xa0   :  { %8404 = vmatmul.mubr.msk.f32.gmra.mrb[58].mxu1 %vm287_vm0, %v558_v44  ;;  %8843 = vmatmul.mubr.msk.f32.gmra.mrb[24].mxu0 %vm287_vm0, %v10501_v45  ;;  %v10651_v44 = vld [vmem:[#allocation2 + $0xc8] sm:$0xff] }
  0xa1   :  { %8406 = vmatprep.mubr.msk.f32.mxu1 %vm287_vm0, %v559_v46  ;;  %8845 = vmatprep.mubr.msk.f32.mxu0 %vm287_vm0, %v10503_v47  ;;  %v10653_v46 = vld [vmem:[#allocation2 + $0x27a] sm:$0xff] }
  0xa2   :  { %12146 = vst [vmem:[#allocation15_spill] sm:$0xff] %v10653_v46 }
  0xa4   :  { %8407 = vmatmul.mubr.msk.f32.gmra.mrb[60].mxu1 %vm287_vm0, %v560_v48  ;;  %8846 = vmatmul.mubr.msk.f32.gmra.mrb[26].mxu0 %vm287_vm0, %v10511_v49  ;;  %v10655_v48 = vld [vmem:[#allocation2 + $0xd8] sm:$0xff] }
  0xa5   :  { %8409 = vmatprep.mubr.msk.f32.mxu1 %vm287_vm0, %v561_v50  ;;  %8848 = vmatprep.mubr.msk.f32.mxu0 %vm287_vm0, %v10513_v51  ;;  %v10657_v50 = vld [vmem:[#allocation2 + $0x28a] sm:$0xff] }
  0xa6   :  { %12147 = vst [vmem:[#allocation16_spill] sm:$0xff] %v10657_v50 }
  0xa8   :  { %8410 = vmatmul.mubr.msk.f32.gmra.mrb[62].mxu1 %vm287_vm0, %v562_v52  ;;  %8849 = vmatmul.mubr.msk.f32.gmra.mrb[28].mxu0 %vm287_vm0, %v10521_v53  ;;  %v10667_v52 = vld [vmem:[#allocation2 + $0xe0] sm:$0xff] }
  0xa9   :  { %8414 = vmatprep.mubr.msk.f32.mxu1 %vm287_vm0, %v434_v54  ;;  %8851 = vmatprep.mubr.msk.f32.mxu0 %vm287_vm0, %v3870_v55  ;;  %v10669_v54 = vld [vmem:[#allocation2 + $0x292] sm:$0xff] }
  0xaa   :  { %12148 = vst [vmem:[#allocation17_spill] sm:$0xff] %v10669_v54  ;;  %v10671_v55 = vld [vmem:[#allocation2 + $0xf0] sm:$0xff] }
  0xac   :  { %8415 = vmatmul.mubr.msk.f32.vlgmr.msra.gmra.mrb[0].mxu1 %vm287_vm0, %v435_v56  ;;  %8852 = vmatmul.mubr.msk.f32.gmra.mrb[30].mxu0 %vm287_vm0, %v3871_v57  ;;  %v10673_v56 = vld [vmem:[#allocation2 + $0x2a2] sm:$0xff]  ;;  %v10683_v57 = vld [vmem:[#allocation2 + $0xf8] sm:$0xff] }
  0xad   :  { %8417 = vmatprep.mubr.msk.f32.mxu1 %vm287_vm0, %v436_v58  ;;  %8854 = vmatprep.mubr.msk.f32.mxu0 %vm287_vm0, %v10528_v59  ;;  %12149 = vst [vmem:[#allocation18_spill] sm:$0xff] %v10673_v56  ;;  %v10685_v58 = vld [vmem:[#allocation2 + $0x2aa] sm:$0xff] }
  0xae   :  { %8511 = vmatpush3.msra.mxu1 %v10349_v34  ;;  %v10557_v34 = vld [vmem:[#allocation2 + $0x1ea] sm:$0xff]  ;;  %12150 = vst [vmem:[#allocation19_spill] sm:$0xff] %v10685_v58 }
  0xaf   :  { %8608 = vmatprep.subr.mxu1 %v10540_v62  ;;  %12134 = vst [vmem:[#allocation3_spill] sm:$0xff] %v10557_v34 }
  0xb0   :  { %8418 = vmatmul.mubr.msk.f32.gmra.mrb[2].mxu1 %vm287_vm0, %v437_v4  ;;  %8855 = vmatmul.mubr.msk.f32.gmra.mrb[32].mxu0 %vm287_vm0, %v10535_v61  ;;  %v10687_v4 = vld [vmem:[#allocation2 + $0x108] sm:$0xff] }
  0xb1   :  { %8420 = vmatprep.mubr.msk.f32.mxu1 %vm287_vm0, %v10543_v63  ;;  %8857 = vmatprep.mubr.msk.f32.mxu0 %vm287_vm0, %v10545_v5 }
  0xb4   :  { %8421 = vmatmul.mubr.msk.f32.gmra.mrb[4].mxu1 %vm287_vm0, %v10555_v0  ;;  %8858 = vmatmul.mubr.msk.f32.gmra.mrb[34].mxu0 %vm287_vm0, %v10557_v34  ;;  %v10778_v34 = vld [vmem:[#allocation2 + $0x1e0] sm:$0xff] }
  0xb5   :  { %8423 = vmatprep.mubr.msk.f32.mxu1 %vm287_vm0, %v10559_v29  ;;  %8860 = vmatprep.mubr.msk.f32.mxu0 %vm287_vm0, %v10561_v1  ;;  %v468_v1 = vld [vmem:[#allocation2 + $0x1c8] sm:$0xff] }
  0xb8   :  { %8424 = vmatmul.mubr.msk.f32.gmra.mrb[6].mxu1 %vm287_vm0, %v10571_v2  ;;  %8861 = vmatmul.mubr.msk.f32.gmra.mrb[36].mxu0 %vm287_vm0, %v10573_v3  ;;  %v3903_v3 = vld [vmem:[#allocation2 + $0x33a] sm:$0xff] }
  0xb9   :  { %8426 = vmatprep.mubr.msk.f32.mxu1 %vm287_vm0, %v10575_v6  ;;  %8863 = vmatprep.mubr.msk.f32.mxu0 %vm287_vm0, %v10577_v9  ;;  %v3902_v9 = vld [vmem:[#allocation2 + $0x332] sm:$0xff] }
  0xbc   :  { %8427 = vmatmul.mubr.msk.f32.gmra.mrb[8].mxu1 %vm287_vm0, %v10587_v11  ;;  %8864 = vmatmul.mubr.msk.f32.gmra.mrb[38].mxu0 %vm287_vm0, %v10589_v13  ;;  %v466_v13 = vld [vmem:[#allocation2 + $0x1b0] sm:$0xff] }
  0xbd   :  { %8429 = vmatprep.mubr.msk.f32.mxu1 %vm287_vm0, %v10591_v15  ;;  %8866 = vmatprep.mubr.msk.f32.mxu0 %vm287_vm0, %v10593_v17  ;;  %v10753_v17 = vld [vmem:[#allocation2 + $0x31a] sm:$0xff] }
  0xbe   :  { %12159 = vst [vmem:[#allocation28_spill] sm:$0xff] %v10753_v17 }
  0xc0   :  { %8430 = vmatmul.mubr.msk.f32.gmra.mrb[10].mxu1 %vm287_vm0, %v10603_v19  ;;  %8867 = vmatmul.mubr.msk.f32.gmra.mrb[40].mxu0 %vm287_vm0, %v10605_v21  ;;  %v10751_v21 = vld [vmem:[#allocation2 + $0x168] sm:$0xff] }
  0xc1   :  { %8432 = vmatprep.mubr.msk.f32.mxu1 %vm287_vm0, %v10607_v23  ;;  %8869 = vmatprep.mubr.msk.f32.mxu0 %vm287_vm0, %v10609_v25  ;;  %v10737_v25 = vld [vmem:[#allocation2 + $0x302] sm:$0xff] }
  0xc2   :  { %12157 = vst [vmem:[#allocation26_spill] sm:$0xff] %v10737_v25 }
  0xc4   :  { %8433 = vmatmul.mubr.msk.f32.gmra.mrb[12].mxu1 %vm287_vm0, %v10619_v27  ;;  %8870 = vmatmul.mubr.msk.f32.gmra.mrb[42].mxu0 %vm287_vm0, %v10621_v30  ;;  %v10735_v30 = vld [vmem:[#allocation2 + $0x150] sm:$0xff] }
  0xc5   :  { %8435 = vmatprep.mubr.msk.f32.mxu1 %vm287_vm0, %v10623_v32  ;;  %8872 = vmatprep.mubr.msk.f32.mxu0 %vm287_vm0, %v10625_v35  ;;  %v10721_v35 = vld [vmem:[#allocation2 + $0x2ea] sm:$0xff] }
  0xc6   :  { %12155 = vst [vmem:[#allocation24_spill] sm:$0xff] %v10721_v35 }
  0xc8   :  { %8436 = vmatmul.mubr.msk.f32.gmra.mrb[14].mxu1 %vm287_vm0, %v10635_v37  ;;  %8873 = vmatmul.mubr.msk.f32.gmra.mrb[44].mxu0 %vm287_vm0, %v10637_v39  ;;  %v10719_v39 = vld [vmem:[#allocation2 + $0x138] sm:$0xff] }
  0xc9   :  { %8438 = vmatprep.mubr.msk.f32.mxu1 %vm287_vm0, %v10639_v8  ;;  %8875 = vmatprep.mubr.msk.f32.mxu0 %vm287_vm0, %v10641_v42  ;;  %v10705_v42 = vld [vmem:[#allocation2 + $0x2d2] sm:$0xff] }
  0xca   :  { %12153 = vst [vmem:[#allocation22_spill] sm:$0xff] %v10705_v42 }
  0xcc   :  { %8439 = vmatmul.mubr.msk.f32.gmra.mrb[16].mxu1 %vm287_vm0, %v10651_v44  ;;  %8876 = vmatmul.mubr.msk.f32.gmra.mrb[46].mxu0 %vm287_vm0, %v10653_v46  ;;  %v10703_v46 = vld [vmem:[#allocation2 + $0x120] sm:$0xff] }
  0xcd   :  { %8441 = vmatprep.mubr.msk.f32.mxu1 %vm287_vm0, %v10655_v48  ;;  %8878 = vmatprep.mubr.msk.f32.mxu0 %vm287_vm0, %v10657_v50  ;;  %v10689_v50 = vld [vmem:[#allocation2 + $0x2ba] sm:$0xff] }
  0xce   :  { %12151 = vst [vmem:[#allocation20_spill] sm:$0xff] %v10689_v50 }
  0xd0   :  { %8442 = vmatmul.mubr.msk.f32.gmra.mrb[18].mxu1 %vm287_vm0, %v10667_v52  ;;  %8879 = vmatmul.mubr.msk.f32.gmra.mrb[48].mxu0 %vm287_vm0, %v10669_v54  ;;  %v10701_v54 = vld [vmem:[#allocation2 + $0x2c2] sm:$0xff] }
  0xd1   :  { %8444 = vmatprep.mubr.msk.f32.mxu1 %vm287_vm0, %v10671_v55  ;;  %8881 = vmatprep.mubr.msk.f32.mxu0 %vm287_vm0, %v10673_v56  ;;  %v10699_v56 = vld [vmem:[#allocation2 + $0x110] sm:$0xff]  ;;  %12152 = vst [vmem:[#allocation21_spill] sm:$0xff] %v10701_v54 }
  0xd4   :  { %8445 = vmatmul.mubr.msk.f32.gmra.mrb[20].mxu1 %vm287_vm0, %v10683_v57  ;;  %8882 = vmatmul.mubr.msk.f32.gmra.mrb[50].mxu0 %vm287_vm0, %v10685_v58  ;;  %v10717_v58 = vld [vmem:[#allocation2 + $0x2da] sm:$0xff] }
  0xd5   :  { %8447 = vmatprep.mubr.msk.f32.mxu1 %vm287_vm0, %v10687_v4  ;;  %8884 = vmatprep.mubr.msk.f32.mxu0 %vm287_vm0, %v10689_v50  ;;  %v10715_v50 = vld [vmem:[#allocation2 + $0x128] sm:$0xff]  ;;  %12154 = vst [vmem:[#allocation23_spill] sm:$0xff] %v10717_v58 }
  0xd8   :  { %8448 = vmatmul.mubr.msk.f32.gmra.mrb[22].mxu1 %vm287_vm0, %v10699_v56  ;;  %8885 = vmatmul.mubr.msk.f32.gmra.mrb[52].mxu0 %vm287_vm0, %v10701_v54  ;;  %v10733_v54 = vld [vmem:[#allocation2 + $0x2f2] sm:$0xff] }
  0xd9   :  { %8450 = vmatprep.mubr.msk.f32.mxu1 %vm287_vm0, %v10703_v46  ;;  %8887 = vmatprep.mubr.msk.f32.mxu0 %vm287_vm0, %v10705_v42  ;;  %v10731_v42 = vld [vmem:[#allocation2 + $0x140] sm:$0xff]  ;;  %12156 = vst [vmem:[#allocation25_spill] sm:$0xff] %v10733_v54 }
  0xdc   :  { %8451 = vmatmul.mubr.msk.f32.gmra.mrb[24].mxu1 %vm287_vm0, %v10715_v50  ;;  %8888 = vmatmul.mubr.msk.f32.gmra.mrb[54].mxu0 %vm287_vm0, %v10717_v58  ;;  %v10749_v58 = vld [vmem:[#allocation2 + $0x30a] sm:$0xff] }
  0xdd   :  { %8453 = vmatprep.mubr.msk.f32.mxu1 %vm287_vm0, %v10719_v39  ;;  %8890 = vmatprep.mubr.msk.f32.mxu0 %vm287_vm0, %v10721_v35  ;;  %v10747_v35 = vld [vmem:[#allocation2 + $0x158] sm:$0xff]  ;;  %12158 = vst [vmem:[#allocation27_spill] sm:$0xff] %v10749_v58 }
  0xe0   :  { %8454 = vmatmul.mubr.msk.f32.gmra.mrb[26].mxu1 %vm287_vm0, %v10731_v42  ;;  %8891 = vmatmul.mubr.msk.f32.gmra.mrb[56].mxu0 %vm287_vm0, %v10733_v54  ;;  %v10765_v54 = vld [vmem:[#allocation2 + $0x322] sm:$0xff] }
  0xe1   :  { %8456 = vmatprep.mubr.msk.f32.mxu1 %vm287_vm0, %v10735_v30  ;;  %8893 = vmatprep.mubr.msk.f32.mxu0 %vm287_vm0, %v10737_v25  ;;  %v10763_v25 = vld [vmem:[#allocation2 + $0x170] sm:$0xff] }
  0xe4   :  { %8457 = vmatmul.mubr.msk.f32.gmra.mrb[28].mxu1 %vm287_vm0, %v10747_v35  ;;  %8894 = vmatmul.mubr.msk.f32.gmra.mrb[58].mxu0 %vm287_vm0, %v10749_v58  ;;  %v467_v58 = vld [vmem:[#allocation2 + $0x1b8] sm:$0xff] }
  0xe5   :  { %8459 = vmatprep.mubr.msk.f32.mxu1 %vm287_vm0, %v10751_v21  ;;  %8896 = vmatprep.mubr.msk.f32.mxu0 %vm287_vm0, %v10753_v17  ;;  %v469_v17 = vld [vmem:[#allocation2 + $0x1d0] sm:$0xff] }
  0xe8   :  { %8460 = vmatmul.mubr.msk.f32.gmra.mrb[30].mxu1 %vm287_vm0, %v10763_v25  ;;  %8897 = vmatmul.mubr.msk.f32.gmra.mrb[60].mxu0 %vm287_vm0, %v10765_v54 }
  0xe9   :  { %8462 = vmatprep.mubr.msk.f32.mxu1 %vm287_vm0, %v466_v13  ;;  %8899 = vmatprep.mubr.msk.f32.mxu0 %vm287_vm0, %v3902_v9  ;;  %v10783_v13 = vld [vmem:[%s12094_s1 + $0x40] sm:$0xff]  ;;  %v10842_v9 = vld [vmem:[#allocation2 + $0x248] sm:$0xff] }
  0xec   :  { %8463 = vmatmul.mubr.msk.f32.gmra.mrb[32].mxu1 %vm287_vm0, %v467_v58  ;;  %8900 = vmatmul.mubr.msk.f32.gmra.mrb[62].mxu0 %vm287_vm0, %v3903_v3  ;;  %v10830_v3 = vld [vmem:[#allocation2 + $0x230] sm:$0xff]  ;;  %v4579_v58 = vld [vmem:[#allocation2 + $0x1a0] sm:$0xff] }
  0xed   :  { %8465 = vmatprep.mubr.msk.f32.mxu1 %vm287_vm0, %v468_v1  ;;  %8904 = vmatprep.mubr.msk.f32.mxu0 %vm287_vm0, %v10543_v63  ;;  %v10791_v1 = vld [vmem:[#allocation2 + $0x1e8] sm:$0xff]  ;;  %v10795_v63 = vld [vmem:[#allocation2 + $0x1f8] sm:$0xff] }
  0xf0   :  { %8466 = vmatmul.mubr.msk.f32.gmra.mrb[34].mxu1 %vm287_vm0, %v469_v17  ;;  %8905 = vmatmul.mubr.msk.f32.vlgmr.msra.gmra.mrb[0].mxu0 %vm287_vm0, %v10555_v0  ;;  %v10808_v0 = vld [vmem:[#allocation2 + $0x210] sm:$0xff] }
  0xf1   :  { %9001 = vmatpush3.msra.mxu0 %v10393_v60  ;;  %8468 = vmatprep.mubr.msk.f32.mxu1 %vm287_vm0, %v10778_v34  ;;  %v10806_v60 = vld [vmem:[#allocation2 + $0x200] sm:$0xff]  ;;  %v10856_v17 = vld [vmem:[#allocation2 + $0x270] sm:$0xff] }
  0xf2   :  { %8907 = vmatprep.mubr.msk.f32.mxu0 %vm287_vm0, %v10559_v29  ;;  %9098 = vmatprep.subr.mxu0 %v10783_v13  ;;  %v10818_v29 = vld [vmem:[#allocation2 + $0x218] sm:$0xff] }
  0xf4   :  { %8469 = vmatmul.mubr.msk.f32.gmra.mrb[36].mxu1 %vm287_vm0, %v10791_v1  ;;  %8908 = vmatmul.mubr.msk.f32.gmra.mrb[2].mxu0 %vm287_vm0, %v10571_v2  ;;  %v10820_v2 = vld [vmem:[#allocation2 + $0x228] sm:$0xff] }
  0xf5   :  { %8471 = vmatprep.mubr.msk.f32.mxu1 %vm287_vm0, %v10795_v63  ;;  %8910 = vmatprep.mubr.msk.f32.mxu0 %vm287_vm0, %v10575_v6  ;;  %v10832_v6 = vld [vmem:[#allocation2 + $0x240] sm:$0xff] }
  0xf8   :  { %8472 = vmatmul.mubr.msk.f32.gmra.mrb[38].mxu1 %vm287_vm0, %v10806_v60  ;;  %8911 = vmatmul.mubr.msk.f32.gmra.mrb[4].mxu0 %vm287_vm0, %v10587_v11  ;;  %v10844_v11 = vld [vmem:[#allocation2 + $0x258] sm:$0xff] }
  0xf9   :  { %8474 = vmatprep.mubr.msk.f32.mxu1 %vm287_vm0, %v10808_v0  ;;  %8913 = vmatprep.mubr.msk.f32.mxu0 %vm287_vm0, %v10591_v15  ;;  %v10854_v15 = vld [vmem:[#allocation2 + $0x260] sm:$0xff] }
  0xfc   :  { %8475 = vmatmul.mubr.msk.f32.gmra.mrb[40].mxu1 %vm287_vm0, %v10818_v29  ;;  %8914 = vmatmul.mubr.msk.f32.gmra.mrb[6].mxu0 %vm287_vm0, %v10603_v19  ;;  %v10866_v19 = vld [vmem:[#allocation2 + $0x278] sm:$0xff] }
  0xfd   :  { %8477 = vmatprep.mubr.msk.f32.mxu1 %vm287_vm0, %v10820_v2  ;;  %8916 = vmatprep.mubr.msk.f32.mxu0 %vm287_vm0, %v10607_v23  ;;  %v10868_v23 = vld [vmem:[#allocation2 + $0x288] sm:$0xff] }
 0x100   :  { %8478 = vmatmul.mubr.msk.f32.gmra.mrb[42].mxu1 %vm287_vm0, %v10830_v3  ;;  %8917 = vmatmul.mubr.msk.f32.gmra.mrb[8].mxu0 %vm287_vm0, %v10619_v27  ;;  %v10878_v27 = vld [vmem:[#allocation2 + $0x290] sm:$0xff] }
 0x101   :  { %8480 = vmatprep.mubr.msk.f32.mxu1 %vm287_vm0, %v10832_v6  ;;  %8919 = vmatprep.mubr.msk.f32.mxu0 %vm287_vm0, %v10623_v32  ;;  %v10880_v32 = vld [vmem:[#allocation2 + $0x2a0] sm:$0xff] }
 0x104   :  { %8481 = vmatmul.mubr.msk.f32.gmra.mrb[44].mxu1 %vm287_vm0, %v10842_v9  ;;  %8920 = vmatmul.mubr.msk.f32.gmra.mrb[10].mxu0 %vm287_vm0, %v10635_v37  ;;  %v10890_v37 = vld [vmem:[#allocation2 + $0x2a8] sm:$0xff] }
 0x105   :  { %8483 = vmatprep.mubr.msk.f32.mxu1 %vm287_vm0, %v10844_v11  ;;  %8922 = vmatprep.mubr.msk.f32.mxu0 %vm287_vm0, %v10639_v8  ;;  %v10892_v8 = vld [vmem:[#allocation2 + $0x2b8] sm:$0xff] }
 0x108   :  { %8484 = vmatmul.mubr.msk.f32.gmra.mrb[46].mxu1 %vm287_vm0, %v10854_v15  ;;  %8923 = vmatmul.mubr.msk.f32.gmra.mrb[12].mxu0 %vm287_vm0, %v10651_v44  ;;  %v10902_v44 = vld [vmem:[#allocation2 + $0x2c0] sm:$0xff] }
 0x109   :  { %8486 = vmatprep.mubr.msk.f32.mxu1 %vm287_vm0, %v10856_v17  ;;  %8925 = vmatprep.mubr.msk.f32.mxu0 %vm287_vm0, %v10655_v48  ;;  %v10904_v48 = vld [vmem:[#allocation2 + $0x2d0] sm:$0xff] }
 0x10c   :  { %8487 = vmatmul.mubr.msk.f32.gmra.mrb[48].mxu1 %vm287_vm0, %v10866_v19  ;;  %8926 = vmatmul.mubr.msk.f32.gmra.mrb[14].mxu0 %vm287_vm0, %v10667_v52  ;;  %v10914_v52 = vld [vmem:[#allocation2 + $0x2d8] sm:$0xff] }
 0x10d   :  { %8489 = vmatprep.mubr.msk.f32.mxu1 %vm287_vm0, %v10868_v23  ;;  %8928 = vmatprep.mubr.msk.f32.mxu0 %vm287_vm0, %v10671_v55  ;;  %v10916_v55 = vld [vmem:[#allocation2 + $0x2e8] sm:$0xff] }
 0x110   :  { %8490 = vmatmul.mubr.msk.f32.gmra.mrb[50].mxu1 %vm287_vm0, %v10878_v27  ;;  %8929 = vmatmul.mubr.msk.f32.gmra.mrb[16].mxu0 %vm287_vm0, %v10683_v57  ;;  %v4578_v57 = vld [vmem:[#allocation2 + $0x198] sm:$0xff] }
 0x111   :  { %8492 = vmatprep.mubr.msk.f32.mxu1 %vm287_vm0, %v10880_v32  ;;  %8931 = vmatprep.mubr.msk.f32.mxu0 %vm287_vm0, %v10687_v4  ;;  %v1721_v4 = vld [vmem:[#allocation2 + $0x1a] sm:$0xff] }
 0x114   :  { %8493 = vmatmul.mubr.msk.f32.gmra.mrb[52].mxu1 %vm287_vm0, %v10890_v37  ;;  %8932 = vmatmul.mubr.msk.f32.gmra.mrb[18].mxu0 %vm287_vm0, %v10699_v56  ;;  %v1719_v56 = vld [vmem:[#allocation2 + $0x2] sm:$0xff] }
 0x115   :  { %8495 = vmatprep.mubr.msk.f32.mxu1 %vm287_vm0, %v10892_v8  ;;  %8934 = vmatprep.mubr.msk.f32.mxu0 %vm287_vm0, %v10703_v46  ;;  %v10926_v46 = vld [vmem:[#allocation2 + $0x2f0] sm:$0xff] }
 0x118   :  { %8496 = vmatmul.mubr.msk.f32.gmra.mrb[54].mxu1 %vm287_vm0, %v10902_v44  ;;  %8935 = vmatmul.mubr.msk.f32.gmra.mrb[20].mxu0 %vm287_vm0, %v10715_v50  ;;  %v10928_v50 = vld [vmem:[#allocation2 + $0x300] sm:$0xff] }
 0x119   :  { %8498 = vmatprep.mubr.msk.f32.mxu1 %vm287_vm0, %v10904_v48  ;;  %8937 = vmatprep.mubr.msk.f32.mxu0 %vm287_vm0, %v10719_v39  ;;  %v10938_v39 = vld [vmem:[#allocation2 + $0x308] sm:$0xff] }
 0x11c   :  { %8499 = vmatmul.mubr.msk.f32.gmra.mrb[56].mxu1 %vm287_vm0, %v10914_v52  ;;  %8938 = vmatmul.mubr.msk.f32.gmra.mrb[22].mxu0 %vm287_vm0, %v10731_v42  ;;  %v10940_v42 = vld [vmem:[#allocation2 + $0x318] sm:$0xff] }
 0x11d   :  { %8501 = vmatprep.mubr.msk.f32.mxu1 %vm287_vm0, %v10916_v55  ;;  %8940 = vmatprep.mubr.msk.f32.mxu0 %vm287_vm0, %v10735_v30  ;;  %v10942_v30 = vld [vmem:[#allocation2 + $0x180] sm:$0xff] }
 0x11e   :  { %12160 = vst [vmem:[#allocation29_spill] sm:$0xff] %v10942_v30 }
 0x120   :  { %8502 = vmatmul.mubr.msk.f32.gmra.mrb[58].mxu1 %vm287_vm0, %v10926_v46  ;;  %8941 = vmatmul.mubr.msk.f32.gmra.mrb[24].mxu0 %vm287_vm0, %v10747_v35  ;;  %v10952_v35 = vld [vmem:[#allocation2 + $0x320] sm:$0xff] }
 0x121   :  { %8504 = vmatprep.mubr.msk.f32.mxu1 %vm287_vm0, %v10928_v50  ;;  %8943 = vmatprep.mubr.msk.f32.mxu0 %vm287_vm0, %v10751_v21  ;;  %v10954_v21 = vld [vmem:[#allocation2 + $0x188] sm:$0xff] }
 0x122   :  { %12161 = vst [vmem:[#allocation30_spill] sm:$0xff] %v10954_v21 }
 0x124   :  { %8505 = vmatmul.mubr.msk.f32.gmra.mrb[60].mxu1 %vm287_vm0, %v10938_v39  ;;  %8944 = vmatmul.mubr.msk.f32.gmra.mrb[26].mxu0 %vm287_vm0, %v10763_v25  ;;  %v1720_v25 = vld [vmem:[#allocation2 + $0xa] sm:$0xff] }
 0x125   :  { %8507 = vmatprep.mubr.msk.f32.mxu1 %vm287_vm0, %v10940_v42  ;;  %8946 = vmatprep.mubr.msk.f32.mxu0 %vm287_vm0, %v10942_v30  ;;  %v1722_v30 = vld [vmem:[#allocation2 + $0x22] sm:$0xff] }
 0x128   :  { %8508 = vmatmul.mubr.msk.f32.gmra.mrb[62].mxu1 %vm287_vm0, %v10952_v35  ;;  %8947 = vmatmul.mubr.msk.f32.gmra.mrb[28].mxu0 %vm287_vm0, %v10954_v21  ;;  %v10968_v21 = vld [vmem:[#allocation2 + $0x32] sm:$0xff] }
 0x129   :  { %8512 = vmatprep.mubr.msk.f32.mxu1 %vm287_vm0, %v1719_v56  ;;  %8949 = vmatprep.mubr.msk.f32.mxu0 %vm287_vm0, %v4578_v57  ;;  %v10973_v56 = vld [vmem:[%s12094_s1 + $0x20] sm:$0xff]  ;;  %v10985_v57 = vld [vmem:[#allocation2 + $0x4a] sm:$0xff] }
 0x12c   :  { %8513 = vmatmul.mubr.msk.f32.vlgmr.msra.gmra.mrb[0].mxu1 %vm287_vm0, %v1720_v25  ;;  %8950 = vmatmul.mubr.msk.f32.gmra.mrb[30].mxu0 %vm287_vm0, %v4579_v58  ;;  %v10997_v25 = vld [vmem:[#allocation2 + $0x62] sm:$0xff] }
 0x12d   :  { %8515 = vmatprep.mubr.msk.f32.mxu1 %vm287_vm0, %v1721_v4  ;;  %8952 = vmatprep.mubr.msk.f32.mxu0 %vm287_vm0, %v10778_v34  ;;  %v12170_v58 = vld [vmem:[#allocation11_spill] sm:$0xff]  ;;  %v12171_v4 = vld [vmem:[#allocation12_spill] sm:$0xff] }
 0x12e   :  { %8609 = vmatpush3.msra.mxu1 %v10540_v62  ;;  %v10983_v62 = vld [vmem:[#allocation2 + $0x3a] sm:$0xff] }
 0x12f   :  { %9196 = vmatprep.subr.mxu1 %v10973_v56 }
 0x130   :  { %8516 = vmatmul.mubr.msk.f32.gmra.mrb[2].mxu1 %vm287_vm0, %v1722_v30  ;;  %8953 = vmatmul.mubr.msk.f32.gmra.mrb[32].mxu0 %vm287_vm0, %v10791_v1  ;;  %v10995_v30 = vld [vmem:[#allocation2 + $0x52] sm:$0xff] }
 0x131   :  { %8518 = vmatprep.mubr.msk.f32.mxu1 %vm287_vm0, %v10968_v21  ;;  %8955 = vmatprep.mubr.msk.f32.mxu0 %vm287_vm0, %v10795_v63 }
 0x134   :  { %8519 = vmatmul.mubr.msk.f32.gmra.mrb[4].mxu1 %vm287_vm0, %v10983_v62  ;;  %8956 = vmatmul.mubr.msk.f32.gmra.mrb[34].mxu0 %vm287_vm0, %v10806_v60 }
 0x135   :  { %8521 = vmatprep.mubr.msk.f32.mxu1 %vm287_vm0, %v10985_v57  ;;  %8958 = vmatprep.mubr.msk.f32.mxu0 %vm287_vm0, %v10808_v0 }
 0x138   :  { %8522 = vmatmul.mubr.msk.f32.gmra.mrb[6].mxu1 %vm287_vm0, %v10995_v30  ;;  %8959 = vmatmul.mubr.msk.f32.gmra.mrb[36].mxu0 %vm287_vm0, %v10818_v29 }
 0x139   :  { %8524 = vmatprep.mubr.msk.f32.mxu1 %vm287_vm0, %v10997_v25  ;;  %8961 = vmatprep.mubr.msk.f32.mxu0 %vm287_vm0, %v10820_v2 }
 0x13c   :  { %8525 = vmatmul.mubr.msk.f32.gmra.mrb[8].mxu1 %vm287_vm0, %v10411_v7  ;;  %8962 = vmatmul.mubr.msk.f32.gmra.mrb[38].mxu0 %vm287_vm0, %v10830_v3  ;;  %v11087_v7 = vld [vmem:[#allocation2 + $0x330] sm:$0xff] }
 0x13d   :  { %8527 = vmatprep.mubr.msk.f32.mxu1 %vm287_vm0, %v10413_v10  ;;  %8964 = vmatprep.mubr.msk.f32.mxu0 %vm287_vm0, %v10832_v6  ;;  %v11097_v10 = vld [vmem:[#allocation2 + $0x338] sm:$0xff] }
 0x140   :  { %8528 = vmatmul.mubr.msk.f32.gmra.mrb[10].mxu1 %vm287_vm0, %v10421_v12  ;;  %8965 = vmatmul.mubr.msk.f32.gmra.mrb[40].mxu0 %vm287_vm0, %v10842_v9  ;;  %v1751_v12 = vld [vmem:[#allocation2 + $0x1b2] sm:$0xff] }
 0x141   :  { %8530 = vmatprep.mubr.msk.f32.mxu1 %vm287_vm0, %v10423_v14  ;;  %8967 = vmatprep.mubr.msk.f32.mxu0 %vm287_vm0, %v10844_v11  ;;  %v4610_v14 = vld [vmem:[#allocation2 + $0x348] sm:$0xff] }
 0x144   :  { %8531 = vmatmul.mubr.msk.f32.gmra.mrb[12].mxu1 %vm287_vm0, %v10431_v16  ;;  %8968 = vmatmul.mubr.msk.f32.gmra.mrb[42].mxu0 %vm287_vm0, %v10854_v15  ;;  %v1752_v16 = vld [vmem:[#allocation2 + $0x1ba] sm:$0xff] }
 0x145   :  { %8533 = vmatprep.mubr.msk.f32.mxu1 %vm287_vm0, %v10433_v18  ;;  %8970 = vmatprep.mubr.msk.f32.mxu0 %vm287_vm0, %v10856_v17  ;;  %v4611_v18 = vld [vmem:[#allocation2 + $0x350] sm:$0xff] }
 0x148   :  { %8534 = vmatmul.mubr.msk.f32.gmra.mrb[14].mxu1 %vm287_vm0, %v10441_v20  ;;  %8971 = vmatmul.mubr.msk.f32.gmra.mrb[44].mxu0 %vm287_vm0, %v10866_v19  ;;  %v5255_v20 = vld [vmem:[#allocation2 + $0x31] sm:$0xff] }
 0x149   :  { %8536 = vmatprep.mubr.msk.f32.mxu1 %vm287_vm0, %v10443_v22  ;;  %8973 = vmatprep.mubr.msk.f32.mxu0 %vm287_vm0, %v10868_v23  ;;  %v5256_v22 = vld [vmem:[#allocation2 + $0x39] sm:$0xff] }
 0x14c   :  { %8537 = vmatmul.mubr.msk.f32.gmra.mrb[16].mxu1 %vm287_vm0, %v10451_v24  ;;  %8974 = vmatmul.mubr.msk.f32.gmra.mrb[46].mxu0 %vm287_vm0, %v10878_v27  ;;  %v5257_v24 = vld [vmem:[#allocation2 + $0x49] sm:$0xff] }
 0x14d   :  { %8539 = vmatprep.mubr.msk.f32.mxu1 %vm287_vm0, %v10453_v26  ;;  %8976 = vmatprep.mubr.msk.f32.mxu0 %vm287_vm0, %v10880_v32  ;;  %v5258_v26 = vld [vmem:[#allocation2 + $0x51] sm:$0xff] }
 0x150   :  { %8540 = vmatmul.mubr.msk.f32.gmra.mrb[18].mxu1 %vm287_vm0, %v10461_v28  ;;  %8977 = vmatmul.mubr.msk.f32.gmra.mrb[48].mxu0 %vm287_vm0, %v10890_v37  ;;  %v5259_v28 = vld [vmem:[#allocation2 + $0x61] sm:$0xff] }
 0x151   :  { %8542 = vmatprep.mubr.msk.f32.mxu1 %vm287_vm0, %v10463_v31  ;;  %8979 = vmatprep.mubr.msk.f32.mxu0 %vm287_vm0, %v10892_v8  ;;  %v12162_v31 = vld [vmem:[#allocation3_spill] sm:$0xff] }
 0x154   :  { %8543 = vmatmul.mubr.msk.f32.gmra.mrb[20].mxu1 %vm287_vm0, %v10471_v33  ;;  %8980 = vmatmul.mubr.msk.f32.gmra.mrb[50].mxu0 %vm287_vm0, %v10902_v44  ;;  %v12163_v33 = vld [vmem:[#allocation4_spill] sm:$0xff] }
 0x155   :  { %8545 = vmatprep.mubr.msk.f32.mxu1 %vm287_vm0, %v10473_v36  ;;  %8982 = vmatprep.mubr.msk.f32.mxu0 %vm287_vm0, %v10904_v48  ;;  %v5260_v36 = vld [vmem:[#allocation2 + $0x69] sm:$0xff] }
 0x158   :  { %8546 = vmatmul.mubr.msk.f32.gmra.mrb[22].mxu1 %vm287_vm0, %v10481_v38  ;;  %8983 = vmatmul.mubr.msk.f32.gmra.mrb[52].mxu0 %vm287_vm0, %v10914_v52  ;;  %v5261_v38 = vld [vmem:[#allocation2 + $0x79] sm:$0xff] }
 0x159   :  { %8548 = vmatprep.mubr.msk.f32.mxu1 %vm287_vm0, %v10483_v40  ;;  %8985 = vmatprep.mubr.msk.f32.mxu0 %vm287_vm0, %v10916_v55  ;;  %v12164_v40 = vld [vmem:[#allocation5_spill] sm:$0xff] }
 0x15c   :  { %8549 = vmatmul.mubr.msk.f32.gmra.mrb[24].mxu1 %vm287_vm0, %v10491_v41  ;;  %8986 = vmatmul.mubr.msk.f32.gmra.mrb[54].mxu0 %vm287_vm0, %v10926_v46  ;;  %v12165_v41 = vld [vmem:[#allocation6_spill] sm:$0xff] }
 0x15d   :  { %8551 = vmatprep.mubr.msk.f32.mxu1 %vm287_vm0, %v10493_v43  ;;  %8988 = vmatprep.mubr.msk.f32.mxu0 %vm287_vm0, %v10928_v50  ;;  %v5262_v43 = vld [vmem:[#allocation2 + $0x81] sm:$0xff] }
 0x160   :  { %8552 = vmatmul.mubr.msk.f32.gmra.mrb[26].mxu1 %vm287_vm0, %v10501_v45  ;;  %8989 = vmatmul.mubr.msk.f32.gmra.mrb[56].mxu0 %vm287_vm0, %v10938_v39  ;;  %v5263_v45 = vld [vmem:[#allocation2 + $0x91] sm:$0xff] }
 0x161   :  { %8554 = vmatprep.mubr.msk.f32.mxu1 %vm287_vm0, %v10503_v47  ;;  %8991 = vmatprep.mubr.msk.f32.mxu0 %vm287_vm0, %v10940_v42  ;;  %v12166_v47 = vld [vmem:[#allocation7_spill] sm:$0xff] }
 0x164   :  { %8555 = vmatmul.mubr.msk.f32.gmra.mrb[28].mxu1 %vm287_vm0, %v10511_v49  ;;  %8992 = vmatmul.mubr.msk.f32.gmra.mrb[58].mxu0 %vm287_vm0, %v10952_v35  ;;  %v12167_v49 = vld [vmem:[#allocation8_spill] sm:$0xff] }
 0x165   :  { %8557 = vmatprep.mubr.msk.f32.mxu1 %vm287_vm0, %v10513_v51  ;;  %8994 = vmatprep.mubr.msk.f32.mxu0 %vm287_vm0, %v11087_v7  ;;  %v5264_v51 = vld [vmem:[#allocation2 + $0x99] sm:$0xff] }
 0x168   :  { %8558 = vmatmul.mubr.msk.f32.gmra.mrb[30].mxu1 %vm287_vm0, %v10521_v53  ;;  %8995 = vmatmul.mubr.msk.f32.gmra.mrb[60].mxu0 %vm287_vm0, %v11097_v10  ;;  %v5265_v53 = vld [vmem:[#allocation2 + $0xa9] sm:$0xff] }
 0x169   :  { %8560 = vmatprep.mubr.msk.f32.mxu1 %vm287_vm0, %v1751_v12  ;;  %8997 = vmatprep.mubr.msk.f32.mxu0 %vm287_vm0, %v4610_v14  ;;  %v5268_v12 = vld [vmem:[#allocation2 + $0xc9] sm:$0xff]  ;;  %v5269_v14 = vld [vmem:[#allocation2 + $0xd9] sm:$0xff] }
 0x16c   :  { %8561 = vmatmul.mubr.msk.f32.gmra.mrb[32].mxu1 %vm287_vm0, %v1752_v16  ;;  %8998 = vmatmul.mubr.msk.f32.gmra.mrb[62].mxu0 %vm287_vm0, %v4611_v18  ;;  %v12172_v16 = vld [vmem:[#allocation13_spill] sm:$0xff]  ;;  %v12173_v18 = vld [vmem:[#allocation14_spill] sm:$0xff] }
 0x16d   :  { %8563 = vmatprep.mubr.msk.f32.mxu1 %vm287_vm0, %v10528_v59  ;;  %9002 = vmatprep.mubr.msk.f32.mxu0 %vm287_vm0, %v5255_v20  ;;  %v12168_v59 = vld [vmem:[#allocation9_spill] sm:$0xff]  ;;  %v5270_v20 = vld [vmem:[#allocation2 + $0xe1] sm:$0xff] }
 0x170   :  { %8564 = vmatmul.mubr.msk.f32.gmra.mrb[34].mxu1 %vm287_vm0, %v10535_v61  ;;  %9003 = vmatmul.mubr.msk.f32.vlgmr.msra.gmra.mrb[0].mxu0 %vm287_vm0, %v5256_v22  ;;  %v12169_v61 = vld [vmem:[#allocation10_spill] sm:$0xff] }
 0x171   :  { %9099 = vmatpush3.msra.mxu0 %v10783_v13  ;;  %8566 = vmatprep.mubr.msk.f32.mxu1 %vm287_vm0, %v10545_v5  ;;  %v5266_v5 = vld [vmem:[#allocation2 + $0xb1] sm:$0xff]  ;;  %v5267_v13 = vld [vmem:[#allocation2 + $0xc1] sm:$0xff] }
 0x172   :  { %9005 = vmatprep.mubr.msk.f32.mxu0 %vm287_vm0, %v5257_v24  ;;  %v5271_v22 = vld [vmem:[#allocation2 + $0xf1] sm:$0xff]  ;;  %v12174_v24 = vld [vmem:[#allocation15_spill] sm:$0xff] }
 0x174   :  { %8567 = vmatmul.mubr.msk.f32.gmra.mrb[36].mxu1 %vm287_vm0, %v12162_v31  ;;  %9006 = vmatmul.mubr.msk.f32.gmra.mrb[2].mxu0 %vm287_vm0, %v5258_v26  ;;  %v12175_v26 = vld [vmem:[#allocation16_spill] sm:$0xff] }
 0x175   :  { %8569 = vmatprep.mubr.msk.f32.mxu1 %vm287_vm0, %v12163_v33  ;;  %9008 = vmatprep.mubr.msk.f32.mxu0 %vm287_vm0, %v5259_v28  ;;  %v5272_v28 = vld [vmem:[#allocation2 + $0xf9] sm:$0xff]  ;;  %v5273_v31 = vld [vmem:[#allocation2 + $0x109] sm:$0xff] }
 0x176   :  { %v12176_v33 = vld [vmem:[#allocation17_spill] sm:$0xff] }
 0x178   :  { %8570 = vmatmul.mubr.msk.f32.gmra.mrb[38].mxu1 %vm287_vm0, %v12164_v40  ;;  %9009 = vmatmul.mubr.msk.f32.gmra.mrb[4].mxu0 %vm287_vm0, %v5260_v36  ;;  %v12177_v36 = vld [vmem:[#allocation18_spill] sm:$0xff]  ;;  %v5275_v40 = vld [vmem:[#allocation2 + $0x121] sm:$0xff] }
 0x179   :  { %8572 = vmatprep.mubr.msk.f32.mxu1 %vm287_vm0, %v12165_v41  ;;  %9011 = vmatprep.mubr.msk.f32.mxu0 %vm287_vm0, %v5261_v38  ;;  %v5274_v38 = vld [vmem:[#allocation2 + $0x111] sm:$0xff]  ;;  %v12178_v41 = vld [vmem:[#allocation19_spill] sm:$0xff] }
 0x17c   :  { %8573 = vmatmul.mubr.msk.f32.gmra.mrb[40].mxu1 %vm287_vm0, %v12166_v47  ;;  %9012 = vmatmul.mubr.msk.f32.gmra.mrb[6].mxu0 %vm287_vm0, %v5262_v43  ;;  %v12179_v43 = vld [vmem:[#allocation20_spill] sm:$0xff]  ;;  %v5277_v47 = vld [vmem:[#allocation2 + $0x139] sm:$0xff] }
 0x17d   :  { %8575 = vmatprep.mubr.msk.f32.mxu1 %vm287_vm0, %v12167_v49  ;;  %9014 = vmatprep.mubr.msk.f32.mxu0 %vm287_vm0, %v5263_v45  ;;  %v5276_v45 = vld [vmem:[#allocation2 + $0x129] sm:$0xff] }
 0x17e   :  { %v12180_v49 = vld [vmem:[#allocation21_spill] sm:$0xff] }
 0x180   :  { %8576 = vmatmul.mubr.msk.f32.gmra.mrb[42].mxu1 %vm287_vm0, %v12168_v59  ;;  %9015 = vmatmul.mubr.msk.f32.gmra.mrb[8].mxu0 %vm287_vm0, %v5264_v51  ;;  %v12181_v51 = vld [vmem:[#allocation22_spill] sm:$0xff] }
 0x181   :  { %8578 = vmatprep.mubr.msk.f32.mxu1 %vm287_vm0, %v12169_v61  ;;  %9017 = vmatprep.mubr.msk.f32.mxu0 %vm287_vm0, %v5265_v53  ;;  %v5278_v53 = vld [vmem:[#allocation2 + $0x141] sm:$0xff]  ;;  %v5279_v59 = vld [vmem:[#allocation2 + $0x151] sm:$0xff] }
 0x182   :  { %v12182_v61 = vld [vmem:[#allocation23_spill] sm:$0xff] }
 0x184   :  { %8579 = vmatmul.mubr.msk.f32.gmra.mrb[44].mxu1 %vm287_vm0, %v12170_v58  ;;  %9018 = vmatmul.mubr.msk.f32.gmra.mrb[10].mxu0 %vm287_vm0, %v5266_v5  ;;  %v12183_v5 = vld [vmem:[#allocation24_spill] sm:$0xff] }
 0x185   :  { %8581 = vmatprep.mubr.msk.f32.mxu1 %vm287_vm0, %v12171_v4  ;;  %9020 = vmatprep.mubr.msk.f32.mxu0 %vm287_vm0, %v5267_v13  ;;  %v5280_v13 = vld [vmem:[#allocation2 + $0x159] sm:$0xff]  ;;  %v5281_v58 = vld [vmem:[#allocation2 + $0x169] sm:$0xff] }
 0x186   :  { %v12184_v4 = vld [vmem:[#allocation25_spill] sm:$0xff] }
 0x188   :  { %8582 = vmatmul.mubr.msk.f32.gmra.mrb[46].mxu1 %vm287_vm0, %v12172_v16  ;;  %9021 = vmatmul.mubr.msk.f32.gmra.mrb[12].mxu0 %vm287_vm0, %v5268_v12  ;;  %v12185_v12 = vld [vmem:[#allocation26_spill] sm:$0xff]  ;;  %v5283_v16 = vld [vmem:[#allocation2 + $0x181] sm:$0xff] }
 0x189   :  { %8584 = vmatprep.mubr.msk.f32.mxu1 %vm287_vm0, %v12173_v18  ;;  %9023 = vmatprep.mubr.msk.f32.mxu0 %vm287_vm0, %v5269_v14  ;;  %v5282_v14 = vld [vmem:[#allocation2 + $0x171] sm:$0xff]  ;;  %v12186_v18 = vld [vmem:[#allocation27_spill] sm:$0xff] }
 0x18c   :  { %8585 = vmatmul.mubr.msk.f32.gmra.mrb[48].mxu1 %vm287_vm0, %v12174_v24  ;;  %9024 = vmatmul.mubr.msk.f32.gmra.mrb[14].mxu0 %vm287_vm0, %v5270_v20  ;;  %v12187_v20 = vld [vmem:[#allocation28_spill] sm:$0xff]  ;;  %v2426_v24 = vld [vmem:[#allocation2 + $0x18] sm:$0xff] }
 0x18d   :  { %8587 = vmatprep.mubr.msk.f32.mxu1 %vm287_vm0, %v12175_v26  ;;  %9026 = vmatprep.mubr.msk.f32.mxu0 %vm287_vm0, %v5271_v22  ;;  %v5284_v22 = vld [vmem:[#allocation2 + $0x189] sm:$0xff]  ;;  %v5285_v26 = vld [vmem:[#allocation2 + $0x199] sm:$0xff] }
 0x190   :  { %8588 = vmatmul.mubr.msk.f32.gmra.mrb[50].mxu1 %vm287_vm0, %v12176_v33  ;;  %9027 = vmatmul.mubr.msk.f32.gmra.mrb[16].mxu0 %vm287_vm0, %v5272_v28  ;;  %v2427_v28 = vld [vmem:[#allocation2 + $0x20] sm:$0xff]  ;;  %v2428_v33 = vld [vmem:[#allocation2 + $0x30] sm:$0xff] }
 0x191   :  { %8590 = vmatprep.mubr.msk.f32.mxu1 %vm287_vm0, %v12177_v36  ;;  %9029 = vmatprep.mubr.msk.f32.mxu0 %vm287_vm0, %v5273_v31  ;;  %v5286_v31 = vld [vmem:[#allocation2 + $0x1a1] sm:$0xff] }
 0x192   :  { %v11200_v36 = vld [vmem:[#allocation2 + $0x1e1] sm:$0xff] }
 0x194   :  { %8591 = vmatmul.mubr.msk.f32.gmra.mrb[52].mxu1 %vm287_vm0, %v12178_v41  ;;  %9030 = vmatmul.mubr.msk.f32.gmra.mrb[18].mxu0 %vm287_vm0, %v5274_v38  ;;  %v11207_v38 = vld [vmem:[#allocation2 + $0x1e9] sm:$0xff]  ;;  %v11210_v41 = vld [vmem:[#allocation2 + $0x1f9] sm:$0xff] }
 0x195   :  { %8593 = vmatprep.mubr.msk.f32.mxu1 %vm287_vm0, %v12179_v43  ;;  %9032 = vmatprep.mubr.msk.f32.mxu0 %vm287_vm0, %v5275_v40  ;;  %v2430_v40 = vld [vmem:[#allocation2 + $0x48] sm:$0xff]  ;;  %v2431_v43 = vld [vmem:[#allocation2 + $0x50] sm:$0xff] }
 0x198   :  { %8594 = vmatmul.mubr.msk.f32.gmra.mrb[54].mxu1 %vm287_vm0, %v12180_v49  ;;  %9033 = vmatmul.mubr.msk.f32.gmra.mrb[20].mxu0 %vm287_vm0, %v5276_v45  ;;  %v11218_v45 = vld [vmem:[#allocation2 + $0x201] sm:$0xff]  ;;  %v11220_v49 = vld [vmem:[#allocation2 + $0x211] sm:$0xff] }
 0x199   :  { %8596 = vmatprep.mubr.msk.f32.mxu1 %vm287_vm0, %v12181_v51  ;;  %9035 = vmatprep.mubr.msk.f32.mxu0 %vm287_vm0, %v5277_v47  ;;  %v2432_v47 = vld [vmem:[#allocation2 + $0x60] sm:$0xff] }
 0x19a   :  { %v11228_v51 = vld [vmem:[#allocation2 + $0x219] sm:$0xff] }
 0x19c   :  { %8597 = vmatmul.mubr.msk.f32.gmra.mrb[56].mxu1 %vm287_vm0, %v12182_v61  ;;  %9036 = vmatmul.mubr.msk.f32.gmra.mrb[22].mxu0 %vm287_vm0, %v5278_v53  ;;  %v2434_v53 = vld [vmem:[#allocation2 + $0x78] sm:$0xff]  ;;  %v2435_v61 = vld [vmem:[#allocation2 + $0x80] sm:$0xff] }
 0x19d   :  { %8599 = vmatprep.mubr.msk.f32.mxu1 %vm287_vm0, %v12183_v5  ;;  %9038 = vmatprep.mubr.msk.f32.mxu0 %vm287_vm0, %v5279_v59  ;;  %v11230_v59 = vld [vmem:[#allocation2 + $0x229] sm:$0xff]  ;;  %v11238_v5 = vld [vmem:[#allocation2 + $0x231] sm:$0xff] }
 0x1a0   :  { %8600 = vmatmul.mubr.msk.f32.gmra.mrb[58].mxu1 %vm287_vm0, %v12184_v4  ;;  %9039 = vmatmul.mubr.msk.f32.gmra.mrb[24].mxu0 %vm287_vm0, %v5280_v13  ;;  %v2436_v13 = vld [vmem:[#allocation2 + $0x90] sm:$0xff]  ;;  %v2437_v4 = vld [vmem:[#allocation2 + $0x98] sm:$0xff] }
 0x1a1   :  { %8602 = vmatprep.mubr.msk.f32.mxu1 %vm287_vm0, %v12185_v12  ;;  %9041 = vmatprep.mubr.msk.f32.mxu0 %vm287_vm0, %v5281_v58  ;;  %v11240_v58 = vld [vmem:[#allocation2 + $0x241] sm:$0xff]  ;;  %v11248_v12 = vld [vmem:[#allocation2 + $0x249] sm:$0xff] }
 0x1a4   :  { %8603 = vmatmul.mubr.msk.f32.gmra.mrb[60].mxu1 %vm287_vm0, %v12186_v18  ;;  %9042 = vmatmul.mubr.msk.f32.gmra.mrb[26].mxu0 %vm287_vm0, %v5282_v14  ;;  %v2438_v14 = vld [vmem:[#allocation2 + $0xa8] sm:$0xff]  ;;  %v2439_v18 = vld [vmem:[#allocation2 + $0xb0] sm:$0xff] }
 0x1a5   :  { %8605 = vmatprep.mubr.msk.f32.mxu1 %vm287_vm0, %v12187_v20  ;;  %9044 = vmatprep.mubr.msk.f32.mxu0 %vm287_vm0, %v5283_v16  ;;  %v11250_v16 = vld [vmem:[#allocation2 + $0x259] sm:$0xff]  ;;  %v11258_v20 = vld [vmem:[#allocation2 + $0x261] sm:$0xff] }
 0x1a8   :  { %8606 = vmatmul.mubr.msk.f32.gmra.mrb[62].mxu1 %vm287_vm0, %v10765_v54  ;;  %9045 = vmatmul.mubr.msk.f32.gmra.mrb[28].mxu0 %vm287_vm0, %v5284_v22  ;;  %v2429_v54 = vld [vmem:[#allocation2 + $0x38] sm:$0xff]  ;;  %v2440_v22 = vld [vmem:[#allocation2 + $0xc0] sm:$0xff] }
 0x1a9   :  { %8610 = vmatprep.mubr.msk.f32.mxu1 %vm287_vm0, %v2426_v24  ;;  %9047 = vmatprep.mubr.msk.f32.mxu0 %vm287_vm0, %v5285_v26  ;;  %v11260_v24 = vld [vmem:[#allocation2 + $0x271] sm:$0xff]  ;;  %v2441_v26 = vld [vmem:[#allocation2 + $0xc8] sm:$0xff] }
 0x1ac   :  { %8611 = vmatmul.mubr.msk.f32.vlgmr.msra.gmra.mrb[0].mxu1 %vm287_vm0, %v2427_v28  ;;  %9048 = vmatmul.mubr.msk.f32.gmra.mrb[30].mxu0 %vm287_vm0, %v5286_v31  ;;  %v11268_v28 = vld [vmem:[#allocation2 + $0x279] sm:$0xff] }
 0x1ad   :  { %8613 = vmatprep.mubr.msk.f32.mxu1 %vm287_vm0, %v2428_v33  ;;  %9050 = vmatprep.mubr.msk.f32.mxu0 %vm287_vm0, %v11200_v36  ;;  %v2442_v31 = vld [vmem:[#allocation2 + $0xd8] sm:$0xff]  ;;  %v11270_v33 = vld [vmem:[#allocation2 + $0x289] sm:$0xff] }
 0x1ae   :  { %9197 = vmatpush3.msra.mxu1 %v10973_v56  ;;  %v2433_v56 = vld [vmem:[#allocation2 + $0x68] sm:$0xff] }
 0x1b0   :  { %8614 = vmatmul.mubr.msk.f32.gmra.mrb[2].mxu1 %vm287_vm0, %v2429_v54  ;;  %9051 = vmatmul.mubr.msk.f32.gmra.mrb[32].mxu0 %vm287_vm0, %v11207_v38  ;;  %v2443_v54 = vld [vmem:[#allocation2 + $0xe0] sm:$0xff] }
 0x1b1   :  { %8616 = vmatprep.mubr.msk.f32.mxu1 %vm287_vm0, %v2430_v40  ;;  %9053 = vmatprep.mubr.msk.f32.mxu0 %vm287_vm0, %v11210_v41  ;;  %v11278_v40 = vld [vmem:[#allocation2 + $0x291] sm:$0xff] }
 0x1b4   :  { %8617 = vmatmul.mubr.msk.f32.gmra.mrb[4].mxu1 %vm287_vm0, %v2431_v43  ;;  %9054 = vmatmul.mubr.msk.f32.gmra.mrb[34].mxu0 %vm287_vm0, %v11218_v45  ;;  %v2444_v43 = vld [vmem:[#allocation2 + $0xf0] sm:$0xff] }
 0x1b5   :  { %8619 = vmatprep.mubr.msk.f32.mxu1 %vm287_vm0, %v2432_v47  ;;  %9056 = vmatprep.mubr.msk.f32.mxu0 %vm287_vm0, %v11220_v49  ;;  %v11280_v47 = vld [vmem:[#allocation2 + $0x2a1] sm:$0xff] }
 0x1b8   :  { %8620 = vmatmul.mubr.msk.f32.gmra.mrb[6].mxu1 %vm287_vm0, %v2433_v56  ;;  %9057 = vmatmul.mubr.msk.f32.gmra.mrb[36].mxu0 %vm287_vm0, %v11228_v51  ;;  %v2445_v56 = vld [vmem:[#allocation2 + $0xf8] sm:$0xff] }
 0x1b9   :  { %8622 = vmatprep.mubr.msk.f32.mxu1 %vm287_vm0, %v2434_v53  ;;  %9059 = vmatprep.mubr.msk.f32.mxu0 %vm287_vm0, %v11230_v59  ;;  %v11288_v53 = vld [vmem:[#allocation2 + $0x2a9] sm:$0xff] }
 0x1bc   :  { %8623 = vmatmul.mubr.msk.f32.gmra.mrb[8].mxu1 %vm287_vm0, %v2435_v61  ;;  %9060 = vmatmul.mubr.msk.f32.gmra.mrb[38].mxu0 %vm287_vm0, %v11238_v5  ;;  %v2446_v61 = vld [vmem:[#allocation2 + $0x108] sm:$0xff] }
 0x1bd   :  { %8625 = vmatprep.mubr.msk.f32.mxu1 %vm287_vm0, %v2436_v13  ;;  %9062 = vmatprep.mubr.msk.f32.mxu0 %vm287_vm0, %v11240_v58  ;;  %v11290_v13 = vld [vmem:[#allocation2 + $0x2b9] sm:$0xff] }
 0x1c0   :  { %8626 = vmatmul.mubr.msk.f32.gmra.mrb[10].mxu1 %vm287_vm0, %v2437_v4  ;;  %9063 = vmatmul.mubr.msk.f32.gmra.mrb[40].mxu0 %vm287_vm0, %v11248_v12  ;;  %v2447_v4 = vld [vmem:[#allocation2 + $0x110] sm:$0xff] }
 0x1c1   :  { %8628 = vmatprep.mubr.msk.f32.mxu1 %vm287_vm0, %v2438_v14  ;;  %9065 = vmatprep.mubr.msk.f32.mxu0 %vm287_vm0, %v11250_v16  ;;  %v11298_v14 = vld [vmem:[#allocation2 + $0x2c1] sm:$0xff] }
 0x1c4   :  { %8629 = vmatmul.mubr.msk.f32.gmra.mrb[12].mxu1 %vm287_vm0, %v2439_v18  ;;  %9066 = vmatmul.mubr.msk.f32.gmra.mrb[42].mxu0 %vm287_vm0, %v11258_v20  ;;  %v2448_v18 = vld [vmem:[#allocation2 + $0x120] sm:$0xff] }
 0x1c5   :  { %8631 = vmatprep.mubr.msk.f32.mxu1 %vm287_vm0, %v2440_v22  ;;  %9068 = vmatprep.mubr.msk.f32.mxu0 %vm287_vm0, %v11260_v24  ;;  %v11300_v22 = vld [vmem:[#allocation2 + $0x2d1] sm:$0xff] }
 0x1c8   :  { %8632 = vmatmul.mubr.msk.f32.gmra.mrb[14].mxu1 %vm287_vm0, %v2441_v26  ;;  %9069 = vmatmul.mubr.msk.f32.gmra.mrb[44].mxu0 %vm287_vm0, %v11268_v28  ;;  %v2449_v26 = vld [vmem:[#allocation2 + $0x128] sm:$0xff] }
 0x1c9   :  { %8634 = vmatprep.mubr.msk.f32.mxu1 %vm287_vm0, %v2442_v31  ;;  %9071 = vmatprep.mubr.msk.f32.mxu0 %vm287_vm0, %v11270_v33  ;;  %v11308_v31 = vld [vmem:[#allocation2 + $0x2d9] sm:$0xff] }
 0x1ca   :  { %12188 = vst [vmem:[#allocation3_spill] sm:$0xff] %v11308_v31 }
 0x1cc   :  { %8635 = vmatmul.mubr.msk.f32.gmra.mrb[16].mxu1 %vm287_vm0, %v2443_v54  ;;  %9072 = vmatmul.mubr.msk.f32.gmra.mrb[46].mxu0 %vm287_vm0, %v11278_v40  ;;  %v2450_v54 = vld [vmem:[#allocation2 + $0x138] sm:$0xff] }
 0x1cd   :  { %8637 = vmatprep.mubr.msk.f32.mxu1 %vm287_vm0, %v2444_v43  ;;  %9074 = vmatprep.mubr.msk.f32.mxu0 %vm287_vm0, %v11280_v47  ;;  %v11310_v43 = vld [vmem:[#allocation2 + $0x2e9] sm:$0xff] }
 0x1ce   :  { %12189 = vst [vmem:[#allocation4_spill] sm:$0xff] %v11310_v43 }
 0x1d0   :  { %8638 = vmatmul.mubr.msk.f32.gmra.mrb[18].mxu1 %vm287_vm0, %v2445_v56  ;;  %9075 = vmatmul.mubr.msk.f32.gmra.mrb[48].mxu0 %vm287_vm0, %v11288_v53  ;;  %v2451_v56 = vld [vmem:[#allocation2 + $0x140] sm:$0xff] }
 0x1d1   :  { %8640 = vmatprep.mubr.msk.f32.mxu1 %vm287_vm0, %v2446_v61  ;;  %9077 = vmatprep.mubr.msk.f32.mxu0 %vm287_vm0, %v11290_v13  ;;  %v11318_v61 = vld [vmem:[#allocation2 + $0x2f1] sm:$0xff] }
 0x1d2   :  { %12190 = vst [vmem:[#allocation5_spill] sm:$0xff] %v11318_v61 }
 0x1d4   :  { %8641 = vmatmul.mubr.msk.f32.gmra.mrb[20].mxu1 %vm287_vm0, %v2447_v4  ;;  %9078 = vmatmul.mubr.msk.f32.gmra.mrb[50].mxu0 %vm287_vm0, %v11298_v14  ;;  %v2452_v4 = vld [vmem:[#allocation2 + $0x150] sm:$0xff] }
 0x1d5   :  { %8643 = vmatprep.mubr.msk.f32.mxu1 %vm287_vm0, %v2448_v18  ;;  %9080 = vmatprep.mubr.msk.f32.mxu0 %vm287_vm0, %v11300_v22  ;;  %v11320_v18 = vld [vmem:[#allocation2 + $0x301] sm:$0xff] }
 0x1d6   :  { %12191 = vst [vmem:[#allocation6_spill] sm:$0xff] %v11320_v18 }
 0x1d8   :  { %8644 = vmatmul.mubr.msk.f32.gmra.mrb[22].mxu1 %vm287_vm0, %v2449_v26  ;;  %9081 = vmatmul.mubr.msk.f32.gmra.mrb[52].mxu0 %vm287_vm0, %v11308_v31  ;;  %v2453_v26 = vld [vmem:[#allocation2 + $0x158] sm:$0xff] }
 0x1d9   :  { %8646 = vmatprep.mubr.msk.f32.mxu1 %vm287_vm0, %v2450_v54  ;;  %9083 = vmatprep.mubr.msk.f32.mxu0 %vm287_vm0, %v11310_v43  ;;  %v11328_v54 = vld [vmem:[#allocation2 + $0x309] sm:$0xff]  ;;  %v11330_v31 = vld [vmem:[#allocation2 + $0x319] sm:$0xff] }
 0x1da   :  { %12192 = vst [vmem:[#allocation7_spill] sm:$0xff] %v11328_v54  ;;  %v2454_v43 = vld [vmem:[#allocation2 + $0x168] sm:$0xff]  ;;  %12193 = vst [vmem:[#allocation8_spill] sm:$0xff] %v11330_v31 }
 0x1dc   :  { %8647 = vmatmul.mubr.msk.f32.gmra.mrb[24].mxu1 %vm287_vm0, %v2451_v56  ;;  %9084 = vmatmul.mubr.msk.f32.gmra.mrb[54].mxu0 %vm287_vm0, %v11318_v61  ;;  %v2455_v56 = vld [vmem:[#allocation2 + $0x170] sm:$0xff] }
 0x1dd   :  { %8649 = vmatprep.mubr.msk.f32.mxu1 %vm287_vm0, %v2452_v4  ;;  %9086 = vmatprep.mubr.msk.f32.mxu0 %vm287_vm0, %v11320_v18  ;;  %v11338_v4 = vld [vmem:[#allocation2 + $0x321] sm:$0xff]  ;;  %v11340_v18 = vld [vmem:[#allocation2 + $0x331] sm:$0xff] }
 0x1de   :  { %12194 = vst [vmem:[#allocation9_spill] sm:$0xff] %v11338_v4  ;;  %v12195_v61 = vld [vmem:[#allocation29_spill] sm:$0xff] }
 0x1e0   :  { %8650 = vmatmul.mubr.msk.f32.gmra.mrb[26].mxu1 %vm287_vm0, %v2453_v26  ;;  %9087 = vmatmul.mubr.msk.f32.gmra.mrb[56].mxu0 %vm287_vm0, %v11328_v54  ;;  %v2458_v26 = vld [vmem:[#allocation2 + $0x1c8] sm:$0xff]  ;;  %v12196_v54 = vld [vmem:[#allocation30_spill] sm:$0xff] }
 0x1e1   :  { %8652 = vmatprep.mubr.msk.f32.mxu1 %vm287_vm0, %v2454_v43  ;;  %9089 = vmatprep.mubr.msk.f32.mxu0 %vm287_vm0, %v11330_v31  ;;  %v11349_v43 = vld [vmem:[#allocation2 + $0x339] sm:$0xff]  ;;  %v5317_v31 = vld [vmem:[#allocation2 + $0x349] sm:$0xff] }
 0x1e4   :  { %8653 = vmatmul.mubr.msk.f32.gmra.mrb[28].mxu1 %vm287_vm0, %v2455_v56  ;;  %9090 = vmatmul.mubr.msk.f32.gmra.mrb[58].mxu0 %vm287_vm0, %v11338_v4  ;;  %v2459_v56 = vld [vmem:[#allocation2 + $0x1d0] sm:$0xff] }
 0x1e5   :  { %8655 = vmatprep.mubr.msk.f32.mxu1 %vm287_vm0, %v12195_v61  ;;  %9092 = vmatprep.mubr.msk.f32.mxu0 %vm287_vm0, %v11340_v18  ;;  %v5318_v4 = vld [vmem:[#allocation2 + $0x351] sm:$0xff] }
 0x1e6   :  { %v12199_v61 = vld [vmem:[#allocation5_spill] sm:$0xff] }
 0x1e8   :  { %8656 = vmatmul.mubr.msk.f32.gmra.mrb[30].mxu1 %vm287_vm0, %v12196_v54  ;;  %9093 = vmatmul.mubr.msk.f32.gmra.mrb[60].mxu0 %vm287_vm0, %v11349_v43  ;;  %v6019_v54 = vld [vmem:[#allocation2 + $0x30a] sm:$0xff] }
 0x1e9   :  { %8658 = vmatprep.mubr.msk.f32.mxu1 %vm287_vm0, %v2458_v26  ;;  %9095 = vmatprep.mubr.msk.f32.mxu0 %vm287_vm0, %v5317_v31  ;;  %v6018_v31 = vld [vmem:[#allocation2 + $0x302] sm:$0xff] }
 0x1ea   :  { %v12201_v26 = vld [vmem:[#allocation7_spill] sm:$0xff] }
 0x1ec   :  { %8659 = vmatmul.mubr.msk.f32.gmra.mrb[32].mxu1 %vm287_vm0, %v2459_v56  ;;  %9096 = vmatmul.mubr.msk.f32.gmra.mrb[62].mxu0 %vm287_vm0, %v5318_v4  ;;  %v6020_v4 = vld [vmem:[#allocation2 + $0x31a] sm:$0xff]  ;;  %v12202_v56 = vld [vmem:[#allocation8_spill] sm:$0xff] }
 0x1ed   :  { %8661 = vmatprep.mubr.msk.f32.mxu1 %vm287_vm0, %v10778_v34  ;;  %9100 = vmatprep.mubr.msk.f32.mxu0 %vm287_vm0, %v10968_v21  ;;  %v5967_v34 = vld [vmem:[#allocation2 + $0x6a] sm:$0xff]  ;;  %v5992_v21 = vld [vmem:[#allocation2 + $0x19a] sm:$0xff] }
 0x1f0   :  { %8662 = vmatmul.mubr.msk.f32.gmra.mrb[34].mxu1 %vm287_vm0, %v10791_v1  ;;  %9101 = vmatmul.mubr.msk.f32.vlgmr.msra.gmra.mrb[0].mxu0 %vm287_vm0, %v10983_v62  ;;  %v5968_v1 = vld [vmem:[#allocation2 + $0x7a] sm:$0xff]  ;;  %v5994_v62 = vld [vmem:[#allocation2 + $0x1e2] sm:$0xff] }
 0x1f1   :  { %8664 = vmatprep.mubr.msk.f32.mxu1 %vm287_vm0, %v10795_v63  ;;  %9103 = vmatprep.mubr.msk.f32.mxu0 %vm287_vm0, %v10985_v57  ;;  %v5969_v63 = vld [vmem:[#allocation2 + $0x82] sm:$0xff]  ;;  %v5995_v57 = vld [vmem:[#allocation2 + $0x1ea] sm:$0xff] }
 0x1f4   :  { %8665 = vmatmul.mubr.msk.f32.gmra.mrb[36].mxu1 %vm287_vm0, %v10806_v60  ;;  %9104 = vmatmul.mubr.msk.f32.gmra.mrb[2].mxu0 %vm287_vm0, %v10995_v30  ;;  %v5970_v60 = vld [vmem:[#allocation2 + $0x92] sm:$0xff]  ;;  %v5996_v30 = vld [vmem:[#allocation2 + $0x1fa] sm:$0xff] }
 0x1f5   :  { %8667 = vmatprep.mubr.msk.f32.mxu1 %vm287_vm0, %v10808_v0  ;;  %9106 = vmatprep.mubr.msk.f32.mxu0 %vm287_vm0, %v10997_v25  ;;  %v5971_v0 = vld [vmem:[#allocation2 + $0x9a] sm:$0xff]  ;;  %v5997_v25 = vld [vmem:[#allocation2 + $0x202] sm:$0xff] }
 0x1f8   :  { %8668 = vmatmul.mubr.msk.f32.gmra.mrb[38].mxu1 %vm287_vm0, %v10818_v29  ;;  %9107 = vmatmul.mubr.msk.f32.gmra.mrb[4].mxu0 %vm287_vm0, %v5967_v34  ;;  %v5972_v29 = vld [vmem:[#allocation2 + $0xaa] sm:$0xff]  ;;  %v6021_v34 = vld [vmem:[#allocation2 + $0x322] sm:$0xff] }
 0x1f9   :  { %8670 = vmatprep.mubr.msk.f32.mxu1 %vm287_vm0, %v10820_v2  ;;  %9109 = vmatprep.mubr.msk.f32.mxu0 %vm287_vm0, %v5968_v1  ;;  %v5973_v2 = vld [vmem:[#allocation2 + $0xb2] sm:$0xff] }
 0x1fa   :  { %v6022_v1 = vld [vmem:[#allocation2 + $0x332] sm:$0xff] }
 0x1fc   :  { %8671 = vmatmul.mubr.msk.f32.gmra.mrb[40].mxu1 %vm287_vm0, %v10830_v3  ;;  %9110 = vmatmul.mubr.msk.f32.gmra.mrb[6].mxu0 %vm287_vm0, %v5969_v63  ;;  %v5974_v3 = vld [vmem:[#allocation2 + $0xc2] sm:$0xff]  ;;  %v12203_v63 = vld [vmem:[#allocation9_spill] sm:$0xff] }
 0x1fd   :  { %8673 = vmatprep.mubr.msk.f32.mxu1 %vm287_vm0, %v10832_v6  ;;  %9112 = vmatprep.mubr.msk.f32.mxu0 %vm287_vm0, %v5970_v60  ;;  %v5975_v6 = vld [vmem:[#allocation2 + $0xca] sm:$0xff]  ;;  %v6023_v60 = vld [vmem:[#allocation2 + $0x33a] sm:$0xff] }
 0x200   :  { %8674 = vmatmul.mubr.msk.f32.gmra.mrb[42].mxu1 %vm287_vm0, %v10842_v9  ;;  %9113 = vmatmul.mubr.msk.f32.gmra.mrb[8].mxu0 %vm287_vm0, %v5971_v0  ;;  %v5976_v9 = vld [vmem:[#allocation2 + $0xda] sm:$0xff]  ;;  %v6024_v0 = vld [vmem:[#allocation2 + $0x34a] sm:$0xff] }
 0x201   :  { %8676 = vmatprep.mubr.msk.f32.mxu1 %vm287_vm0, %v10844_v11  ;;  %9115 = vmatprep.mubr.msk.f32.mxu0 %vm287_vm0, %v5972_v29  ;;  %v5977_v11 = vld [vmem:[#allocation2 + $0xe2] sm:$0xff]  ;;  %v6025_v29 = vld [vmem:[#allocation2 + $0x352] sm:$0xff] }
 0x204   :  { %8677 = vmatmul.mubr.msk.f32.gmra.mrb[44].mxu1 %vm287_vm0, %v10854_v15  ;;  %9116 = vmatmul.mubr.msk.f32.gmra.mrb[10].mxu0 %vm287_vm0, %v5973_v2  ;;  %v5978_v15 = vld [vmem:[#allocation2 + $0xf2] sm:$0xff] }
 0x205   :  { %8679 = vmatprep.mubr.msk.f32.mxu1 %vm287_vm0, %v10856_v17  ;;  %9118 = vmatprep.mubr.msk.f32.mxu0 %vm287_vm0, %v5974_v3  ;;  %v5979_v17 = vld [vmem:[#allocation2 + $0xfa] sm:$0xff] }
 0x208   :  { %8680 = vmatmul.mubr.msk.f32.gmra.mrb[46].mxu1 %vm287_vm0, %v10866_v19  ;;  %9119 = vmatmul.mubr.msk.f32.gmra.mrb[12].mxu0 %vm287_vm0, %v5975_v6  ;;  %v5980_v19 = vld [vmem:[#allocation2 + $0x10a] sm:$0xff] }
 0x209   :  { %8682 = vmatprep.mubr.msk.f32.mxu1 %vm287_vm0, %v10868_v23  ;;  %9121 = vmatprep.mubr.msk.f32.mxu0 %vm287_vm0, %v5976_v9  ;;  %v5981_v23 = vld [vmem:[#allocation2 + $0x112] sm:$0xff] }
 0x20c   :  { %8683 = vmatmul.mubr.msk.f32.gmra.mrb[48].mxu1 %vm287_vm0, %v10878_v27  ;;  %9122 = vmatmul.mubr.msk.f32.gmra.mrb[14].mxu0 %vm287_vm0, %v5977_v11  ;;  %v5982_v27 = vld [vmem:[#allocation2 + $0x122] sm:$0xff] }
 0x20d   :  { %8685 = vmatprep.mubr.msk.f32.mxu1 %vm287_vm0, %v10880_v32  ;;  %9124 = vmatprep.mubr.msk.f32.mxu0 %vm287_vm0, %v5978_v15  ;;  %v5983_v32 = vld [vmem:[#allocation2 + $0x12a] sm:$0xff] }
 0x210   :  { %8686 = vmatmul.mubr.msk.f32.gmra.mrb[50].mxu1 %vm287_vm0, %v10890_v37  ;;  %9125 = vmatmul.mubr.msk.f32.gmra.mrb[16].mxu0 %vm287_vm0, %v5979_v17  ;;  %v5984_v37 = vld [vmem:[#allocation2 + $0x13a] sm:$0xff] }
 0x211   :  { %8688 = vmatprep.mubr.msk.f32.mxu1 %vm287_vm0, %v10892_v8  ;;  %9127 = vmatprep.mubr.msk.f32.mxu0 %vm287_vm0, %v5980_v19  ;;  %v5985_v8 = vld [vmem:[#allocation2 + $0x142] sm:$0xff] }
 0x214   :  { %8689 = vmatmul.mubr.msk.f32.gmra.mrb[52].mxu1 %vm287_vm0, %v10902_v44  ;;  %9128 = vmatmul.mubr.msk.f32.gmra.mrb[18].mxu0 %vm287_vm0, %v5981_v23  ;;  %v5986_v44 = vld [vmem:[#allocation2 + $0x152] sm:$0xff] }
 0x215   :  { %8691 = vmatprep.mubr.msk.f32.mxu1 %vm287_vm0, %v10904_v48  ;;  %9130 = vmatprep.mubr.msk.f32.mxu0 %vm287_vm0, %v5982_v27  ;;  %v5987_v48 = vld [vmem:[#allocation2 + $0x15a] sm:$0xff] }
 0x218   :  { %8692 = vmatmul.mubr.msk.f32.gmra.mrb[54].mxu1 %vm287_vm0, %v10914_v52  ;;  %9131 = vmatmul.mubr.msk.f32.gmra.mrb[20].mxu0 %vm287_vm0, %v5983_v32  ;;  %v5988_v52 = vld [vmem:[#allocation2 + $0x16a] sm:$0xff] }
 0x219   :  { %8694 = vmatprep.mubr.msk.f32.mxu1 %vm287_vm0, %v10916_v55  ;;  %9133 = vmatprep.mubr.msk.f32.mxu0 %vm287_vm0, %v5984_v37  ;;  %v5989_v55 = vld [vmem:[#allocation2 + $0x172] sm:$0xff] }
 0x21c   :  { %8695 = vmatmul.mubr.msk.f32.gmra.mrb[56].mxu1 %vm287_vm0, %v10926_v46  ;;  %9134 = vmatmul.mubr.msk.f32.gmra.mrb[22].mxu0 %vm287_vm0, %v5985_v8  ;;  %v5990_v46 = vld [vmem:[#allocation2 + $0x182] sm:$0xff] }
 0x21d   :  { %8697 = vmatprep.mubr.msk.f32.mxu1 %vm287_vm0, %v10928_v50  ;;  %9136 = vmatprep.mubr.msk.f32.mxu0 %vm287_vm0, %v5986_v44  ;;  %v5991_v50 = vld [vmem:[#allocation2 + $0x18a] sm:$0xff] }
 0x220   :  { %8698 = vmatmul.mubr.msk.f32.gmra.mrb[58].mxu1 %vm287_vm0, %v10938_v39  ;;  %9137 = vmatmul.mubr.msk.f32.gmra.mrb[24].mxu0 %vm287_vm0, %v5987_v48  ;;  %v3165_v39 = vld [vmem:[#allocation2 + $0x1c9] sm:$0xff] }
 0x221   :  { %8700 = vmatprep.mubr.msk.f32.mxu1 %vm287_vm0, %v10940_v42  ;;  %9139 = vmatprep.mubr.msk.f32.mxu0 %vm287_vm0, %v5988_v52  ;;  %v3166_v42 = vld [vmem:[#allocation2 + $0x1d1] sm:$0xff] }
 0x224   :  { %8701 = vmatmul.mubr.msk.f32.gmra.mrb[60].mxu1 %vm287_vm0, %v10952_v35  ;;  %9140 = vmatmul.mubr.msk.f32.gmra.mrb[26].mxu0 %vm287_vm0, %v5989_v55  ;;  %v5993_v35 = vld [vmem:[#allocation2 + $0x1a2] sm:$0xff] }
 0x225   :  { %8703 = vmatprep.mubr.msk.f32.mxu1 %vm287_vm0, %v11087_v7  ;;  %9142 = vmatprep.mubr.msk.f32.mxu0 %vm287_vm0, %v5990_v46  ;;  %v5998_v7 = vld [vmem:[#allocation2 + $0x212] sm:$0xff] }
 0x228   :  { %8704 = vmatmul.mubr.msk.f32.gmra.mrb[62].mxu1 %vm287_vm0, %v11097_v10  ;;  %9143 = vmatmul.mubr.msk.f32.gmra.mrb[28].mxu0 %vm287_vm0, %v5991_v50  ;;  %v5999_v10 = vld [vmem:[#allocation2 + $0x21a] sm:$0xff] }
 0x229   :  { %8756 = vmatprep.mubr.msk.f32.mxu1 %vm287_vm0, %v3165_v39  ;;  %9145 = vmatprep.mubr.msk.f32.mxu0 %vm287_vm0, %v5992_v21 }
 0x22c   :  { %8757 = vmatmul.mubr.msk.f32.vlgmr.msra.gmra.mrb[32].mxu1 %vm287_vm0, %v3166_v42  ;;  %9146 = vmatmul.mubr.msk.f32.gmra.mrb[30].mxu0 %vm287_vm0, %v5993_v35 }
 0x22d   :  { %8759 = vmatprep.mubr.msk.f32.mxu1 %vm287_vm0, %v11200_v36  ;;  %9148 = vmatprep.mubr.msk.f32.mxu0 %vm287_vm0, %v5994_v62  ;;  %v6000_v36 = vld [vmem:[#allocation2 + $0x22a] sm:$0xff] }
 0x230   :  { %8760 = vmatmul.mubr.msk.f32.gmra.mrb[34].mxu1 %vm287_vm0, %v11207_v38  ;;  %9149 = vmatmul.mubr.msk.f32.gmra.mrb[32].mxu0 %vm287_vm0, %v5995_v57  ;;  %v6001_v38 = vld [vmem:[#allocation2 + $0x232] sm:$0xff] }
 0x231   :  { %8762 = vmatprep.mubr.msk.f32.mxu1 %vm287_vm0, %v11210_v41  ;;  %9151 = vmatprep.mubr.msk.f32.mxu0 %vm287_vm0, %v5996_v30  ;;  %v6002_v41 = vld [vmem:[#allocation2 + $0x242] sm:$0xff] }
 0x234   :  { %8763 = vmatmul.mubr.msk.f32.gmra.mrb[36].mxu1 %vm287_vm0, %v11218_v45  ;;  %9152 = vmatmul.mubr.msk.f32.gmra.mrb[34].mxu0 %vm287_vm0, %v5997_v25  ;;  %v6003_v45 = vld [vmem:[#allocation2 + $0x24a] sm:$0xff] }
 0x235   :  { %8765 = vmatprep.mubr.msk.f32.mxu1 %vm287_vm0, %v11220_v49  ;;  %9154 = vmatprep.mubr.msk.f32.mxu0 %vm287_vm0, %v5998_v7  ;;  %v6004_v49 = vld [vmem:[#allocation2 + $0x25a] sm:$0xff] }
 0x238   :  { %8766 = vmatmul.mubr.msk.f32.gmra.mrb[38].mxu1 %vm287_vm0, %v11228_v51  ;;  %9155 = vmatmul.mubr.msk.f32.gmra.mrb[36].mxu0 %vm287_vm0, %v5999_v10  ;;  %v6005_v51 = vld [vmem:[#allocation2 + $0x262] sm:$0xff] }
 0x239   :  { %8768 = vmatprep.mubr.msk.f32.mxu1 %vm287_vm0, %v11230_v59  ;;  %9157 = vmatprep.mubr.msk.f32.mxu0 %vm287_vm0, %v6000_v36  ;;  %v6006_v59 = vld [vmem:[#allocation2 + $0x272] sm:$0xff] }
 0x23c   :  { %8769 = vmatmul.mubr.msk.f32.gmra.mrb[40].mxu1 %vm287_vm0, %v11238_v5  ;;  %9158 = vmatmul.mubr.msk.f32.gmra.mrb[38].mxu0 %vm287_vm0, %v6001_v38  ;;  %v6007_v5 = vld [vmem:[#allocation2 + $0x27a] sm:$0xff]  ;;  %v11605_v38 = vld [vmem:[%s12096_s2 + $0x2] ss:$0 sm:$0xff] }
 0x23d   :  { %8771 = vmatprep.mubr.msk.f32.mxu1 %vm287_vm0, %v11240_v58  ;;  %9160 = vmatprep.mubr.msk.f32.mxu0 %vm287_vm0, %v6002_v41  ;;  %v6008_v58 = vld [vmem:[#allocation2 + $0x28a] sm:$0xff] }
 0x240   :  { %8772 = vmatmul.mubr.msk.f32.gmra.mrb[42].mxu1 %vm287_vm0, %v11248_v12  ;;  %9161 = vmatmul.mubr.msk.f32.gmra.mrb[40].mxu0 %vm287_vm0, %v6003_v45  ;;  %v6009_v12 = vld [vmem:[#allocation2 + $0x292] sm:$0xff] }
 0x241   :  { %8774 = vmatprep.mubr.msk.f32.mxu1 %vm287_vm0, %v11250_v16  ;;  %9163 = vmatprep.mubr.msk.f32.mxu0 %vm287_vm0, %v6004_v49  ;;  %v6010_v16 = vld [vmem:[#allocation2 + $0x2a2] sm:$0xff] }
 0x244   :  { %8775 = vmatmul.mubr.msk.f32.gmra.mrb[44].mxu1 %vm287_vm0, %v11258_v20  ;;  %9164 = vmatmul.mubr.msk.f32.gmra.mrb[42].mxu0 %vm287_vm0, %v6005_v51  ;;  %v6011_v20 = vld [vmem:[#allocation2 + $0x2aa] sm:$0xff] }
 0x245   :  { %8777 = vmatprep.mubr.msk.f32.mxu1 %vm287_vm0, %v11260_v24  ;;  %9166 = vmatprep.mubr.msk.f32.mxu0 %vm287_vm0, %v6006_v59  ;;  %v6012_v24 = vld [vmem:[#allocation2 + $0x2ba] sm:$0xff] }
 0x248   :  { %8778 = vmatmul.mubr.msk.f32.gmra.mrb[46].mxu1 %vm287_vm0, %v11268_v28  ;;  %9167 = vmatmul.mubr.msk.f32.gmra.mrb[44].mxu0 %vm287_vm0, %v6007_v5  ;;  %v6013_v28 = vld [vmem:[#allocation2 + $0x2c2] sm:$0xff] }
 0x249   :  { %8780 = vmatprep.mubr.msk.f32.mxu1 %vm287_vm0, %v11270_v33  ;;  %9169 = vmatprep.mubr.msk.f32.mxu0 %vm287_vm0, %v6008_v58  ;;  %v6014_v33 = vld [vmem:[#allocation2 + $0x2d2] sm:$0xff] }
 0x24c   :  { %8781 = vmatmul.mubr.msk.f32.gmra.mrb[48].mxu1 %vm287_vm0, %v11278_v40  ;;  %9170 = vmatmul.mubr.msk.f32.gmra.mrb[46].mxu0 %vm287_vm0, %v6009_v12  ;;  %v6015_v40 = vld [vmem:[#allocation2 + $0x2da] sm:$0xff] }
 0x24d   :  { %8783 = vmatprep.mubr.msk.f32.mxu1 %vm287_vm0, %v11280_v47  ;;  %9172 = vmatprep.mubr.msk.f32.mxu0 %vm287_vm0, %v6010_v16  ;;  %v6016_v47 = vld [vmem:[#allocation2 + $0x2ea] sm:$0xff] }
 0x250   :  { %8784 = vmatmul.mubr.msk.f32.gmra.mrb[50].mxu1 %vm287_vm0, %v11288_v53  ;;  %9173 = vmatmul.mubr.msk.f32.gmra.mrb[48].mxu0 %vm287_vm0, %v6011_v20  ;;  %v12197_v53 = vld [vmem:[#allocation3_spill] sm:$0xff] }
 0x251   :  { %8786 = vmatprep.mubr.msk.f32.mxu1 %vm287_vm0, %v11290_v13  ;;  %9175 = vmatprep.mubr.msk.f32.mxu0 %vm287_vm0, %v6012_v24  ;;  %v12198_v13 = vld [vmem:[#allocation4_spill] sm:$0xff] }
 0x254   :  { %8787 = vmatmul.mubr.msk.f32.gmra.mrb[52].mxu1 %vm287_vm0, %v11298_v14  ;;  %9176 = vmatmul.mubr.msk.f32.gmra.mrb[50].mxu0 %vm287_vm0, %v6013_v28  ;;  %v6017_v14 = vld [vmem:[#allocation2 + $0x2f2] sm:$0xff] }
 0x255   :  { %8789 = vmatprep.mubr.msk.f32.mxu1 %vm287_vm0, %v11300_v22  ;;  %9178 = vmatprep.mubr.msk.f32.mxu0 %vm287_vm0, %v6014_v33  ;;  %v12200_v22 = vld [vmem:[#allocation6_spill] sm:$0xff] }
 0x258   :  { %8790 = vmatmul.mubr.msk.f32.gmra.mrb[54].mxu1 %vm287_vm0, %v12197_v53  ;;  %9179 = vmatmul.mubr.msk.f32.gmra.mrb[52].mxu0 %vm287_vm0, %v6015_v40 }
 0x259   :  { %8792 = vmatprep.mubr.msk.f32.mxu1 %vm287_vm0, %v12198_v13  ;;  %9181 = vmatprep.mubr.msk.f32.mxu0 %vm287_vm0, %v6016_v47 }
 0x25c   :  { %8793 = vmatmul.mubr.msk.f32.gmra.mrb[56].mxu1 %vm287_vm0, %v12199_v61  ;;  %9182 = vmatmul.mubr.msk.f32.gmra.mrb[54].mxu0 %vm287_vm0, %v6017_v14 }
 0x25d   :  { %8795 = vmatprep.mubr.msk.f32.mxu1 %vm287_vm0, %v12200_v22  ;;  %9184 = vmatprep.mubr.msk.f32.mxu0 %vm287_vm0, %v6018_v31 }
 0x260   :  { %8796 = vmatmul.mubr.msk.f32.gmra.mrb[58].mxu1 %vm287_vm0, %v12201_v26  ;;  %9185 = vmatmul.mubr.msk.f32.gmra.mrb[56].mxu0 %vm287_vm0, %v6019_v54 }
 0x261   :  { %8798 = vmatprep.mubr.msk.f32.mxu1 %vm287_vm0, %v12202_v56  ;;  %9187 = vmatprep.mubr.msk.f32.mxu0 %vm287_vm0, %v6020_v4 }
 0x264   :  { %8799 = vmatmul.mubr.msk.f32.gmra.mrb[60].mxu1 %vm287_vm0, %v12203_v63  ;;  %9188 = vmatmul.mubr.msk.f32.gmra.mrb[58].mxu0 %vm287_vm0, %v6021_v34 }
 0x265   :  { %8801 = vmatprep.mubr.msk.f32.mxu1 %vm287_vm0, %v11340_v18  ;;  %9190 = vmatprep.mubr.msk.f32.mxu0 %vm287_vm0, %v6022_v1 }
 0x268   :  { %8802 = vmatmul.mubr.msk.f32.gmra.mrb[62].mxu1 %vm287_vm0, %v11349_v43  ;;  %9191 = vmatmul.mubr.msk.f32.gmra.mrb[60].mxu0 %vm287_vm0, %v6023_v60 }
 0x269   :  { %9193 = vmatprep.mubr.msk.f32.mxu0 %vm287_vm0, %v6024_v0 }
 0x26c   :  { %9194 = vmatmul.mubr.msk.f32.gmra.mrb[62].mxu0 %vm287_vm0, %v6025_v29 }
 0x27f   :  { %v8612_v2 = vpop.f32.mrb[0].mxu1 }
 0x280   :  { %v2750_v3 = vpop.f32.mrb[1].mxu1 }
 0x283   :  { %v8615_v6 = vpop.f32.mrb[2].mxu1 }
 0x284   :  { %v2760_v9 = vpop.f32.mrb[3].mxu1 }
 0x287   :  { %v8618_v11 = vpop.f32.mrb[4].mxu1 }
 0x288   :  { %v2770_v18 = vpop.f32.mrb[5].mxu1 }
 0x28b   :  { %v11550_v15 = vpop.f32.mrb[6].mxu1 }
 0x28c   :  { %v11552_v17 = vpop.f32.mrb[7].mxu1 }
 0x28f   :  { %v11554_v19 = vpop.f32.mrb[8].mxu1 }
 0x290   :  { %v11556_v43 = vpop.f32.mrb[9].mxu1 }
 0x293   :  { %v11558_v23 = vpop.f32.mrb[10].mxu1 }
 0x294   :  { %v11560_v27 = vpop.f32.mrb[11].mxu1 }
 0x297   :  { %v11562_v32 = vpop.f32.mrb[12].mxu1 }
 0x298   :  { %v11564_v37 = vpop.f32.mrb[13].mxu1 }
 0x29b   :  { %v11566_v8 = vpop.f32.mrb[14].mxu1 }
 0x29c   :  { %v11568_v44 = vpop.f32.mrb[15].mxu1 }
 0x29f   :  { %v11570_v48 = vpop.f32.mrb[16].mxu1 }
 0x2a0   :  { %v11572_v52 = vpop.f32.mrb[17].mxu1 }
 0x2a3   :  { %v11574_v55 = vpop.f32.mrb[18].mxu1 }
 0x2a4   :  { %v11576_v46 = vpop.f32.mrb[19].mxu1 }
 0x2a7   :  { %v11578_v50 = vpop.f32.mrb[20].mxu1 }
 0x2a8   :  { %v11580_v39 = vpop.f32.mrb[21].mxu1 }
 0x2ab   :  { %v11582_v21 = vpop.f32.mrb[22].mxu1 }
 0x2ac   :  { %v11584_v42 = vpop.f32.mrb[23].mxu1 }
 0x2af   :  { %v11586_v35 = vpop.f32.mrb[24].mxu1 }
 0x2b0   :  { %v11588_v62 = vpop.f32.mrb[25].mxu1 }
 0x2b3   :  { %v11590_v57 = vpop.f32.mrb[26].mxu1 }
 0x2b4   :  { %v11592_v30 = vpop.f32.mrb[27].mxu1 }
 0x2b7   :  { %v11594_v25 = vpop.f32.mrb[28].mxu1 }
 0x2b8   :  { %v11596_v7 = vpop.f32.mrb[29].mxu1 }
 0x2bb   :  { %v11598_v10 = vpop.f32.mrb[30].mxu1 }
 0x2bc   :  { %v11600_v36 = vpop.f32.mrb[31].mxu1 }
 0x2c3   :  { %v9102_v41 = vpop.f32.mrb[0].mxu0 }
 0x2c4   :  { %v9198_v45 = vadd.f32 %v9102_v41, %v8612_v2  ;;  %v6286_v49 = vpop.f32.mrb[1].mxu0 }
 0x2c5   :  { %v9199_v51 = vadd.f32 %v6286_v49, %v2750_v3 }
 0x2c6   :  { %v6674_v59 = vadd.f32 %v9198_v45, %v11605_v38 }
 0x2c7   :  { %v6673_v5 = vadd.f32 %v9199_v51, %v11605_v38  ;;  %v9105_v58 = vpop.f32.mrb[2].mxu0 }
 0x2c8   :  { %6738 = vst.msk [vmem:[%s12097_s3 + $0x8] sm:$0xff] %vm287_vm0, %v6674_v59  ;;  %v6802_v12 = vsel %vm287_vm0, %v6674_v59, 0.0  ;;  %v6937_v16 = vmul.f32 %v6674_v59, %v6674_v59  ;;  %v9200_v20 = vadd.f32 %v9105_v58, %v8615_v6  ;;  %v6296_v24 = vpop.f32.mrb[3].mxu0 }
 0x2c9   :  { %6737 = vst.msk [vmem:[%s12097_s3] sm:$0xff] %vm287_vm0, %v6673_v5  ;;  %v6801_v28 = vsel %vm287_vm0, %v6673_v5, 0.0  ;;  %v6936_v33 = vmul.f32 %v6673_v5, %v6673_v5  ;;  %v9201_v40 = vadd.f32 %v6296_v24, %v2760_v9 }
 0x2ca   :  { %v7001_v47 = vsel %vm287_vm0, %v6937_v16, 0.0  ;;  %v6803_v53 = vadd.f32 %v6802_v12, %v6801_v28  ;;  %v6676_v13 = vadd.f32 %v9200_v20, %v11605_v38 }
 0x2cb   :  { %v7000_v14 = vsel %vm287_vm0, %v6936_v33, 0.0  ;;  %v6675_v31 = vadd.f32 %v9201_v40, %v11605_v38  ;;  %v9108_v61 = vpop.f32.mrb[4].mxu0 }
 0x2cc   :  { %v7002_v22 = vadd.f32 %v7001_v47, %v7000_v14  ;;  %6740 = vst.msk [vmem:[%s12097_s3 + $0x18] sm:$0xff] %vm287_vm0, %v6676_v13  ;;  %v6939_v54 = vmul.f32 %v6676_v13, %v6676_v13  ;;  %v9202_v4 = vadd.f32 %v9108_v61, %v8618_v11  ;;  %v6306_v26 = vpop.f32.mrb[5].mxu0  ;;  %v6806_v0 = vsel %vm287_vm0, %v6676_v13, 0.0 }
 0x2cd   :  { %6739 = vst.msk [vmem:[%s12097_s3 + $0x10] sm:$0xff] %vm287_vm0, %v6675_v31  ;;  %v6804_v56 = vsel %vm287_vm0, %v6675_v31, 0.0  ;;  %v6938_v34 = vmul.f32 %v6675_v31, %v6675_v31  ;;  %v9203_v1 = vadd.f32 %v6306_v26, %v2770_v18 }
 0x2ce   :  { %v6805_v63 = vadd.f32 %v6804_v56, %v6803_v53  ;;  %v6678_v60 = vadd.f32 %v9202_v4, %v11605_v38  ;;  %v7005_v6 = vsel %vm287_vm0, %v6939_v54, 0.0 }
 0x2cf   :  { %v7003_v29 = vsel %vm287_vm0, %v6938_v34, 0.0  ;;  %v6677_v2 = vadd.f32 %v9203_v1, %v11605_v38  ;;  %v9111_v3 = vpop.f32.mrb[6].mxu0 }
 0x2d0   :  { %v7004_v9 = vadd.f32 %v7003_v29, %v7002_v22  ;;  %6742 = vst.msk [vmem:[%s12097_s3 + $0x28] sm:$0xff] %vm287_vm0, %v6678_v60  ;;  %v6941_v11 = vmul.f32 %v6678_v60, %v6678_v60  ;;  %v6807_v18 = vadd.f32 %v6806_v0, %v6805_v63  ;;  %v6316_v41 = vpop.f32.mrb[7].mxu0  ;;  %v9204_v51 = vadd.f32 %v9111_v3, %v11550_v15 }
 0x2d1   :  { %6741 = vst.msk [vmem:[%s12097_s3 + $0x20] sm:$0xff] %vm287_vm0, %v6677_v2  ;;  %v6808_v45 = vsel %vm287_vm0, %v6677_v2, 0.0  ;;  %v6940_v49 = vmul.f32 %v6677_v2, %v6677_v2  ;;  %v9205_v59 = vadd.f32 %v6316_v41, %v11552_v17  ;;  %v6810_v12 = vsel %vm287_vm0, %v6678_v60, 0.0 }
 0x2d2   :  { %v6809_v5 = vadd.f32 %v6808_v45, %v6807_v18  ;;  %v7006_v58 = vadd.f32 %v7005_v6, %v7004_v9  ;;  %v6680_v20 = vadd.f32 %v9204_v51, %v11605_v38  ;;  %v7009_v15 = vsel %vm287_vm0, %v6941_v11, 0.0 }
 0x2d3   :  { %v7007_v16 = vsel %vm287_vm0, %v6940_v49, 0.0  ;;  %v6679_v24 = vadd.f32 %v9205_v59, %v11605_v38  ;;  %v9114_v28 = vpop.f32.mrb[8].mxu0 }
 0x2d4   :  { %v7008_v33 = vadd.f32 %v7007_v16, %v7006_v58  ;;  %v6811_v40 = vadd.f32 %v6810_v12, %v6809_v5  ;;  %v9206_v47 = vadd.f32 %v9114_v28, %v11554_v19  ;;  %v6326_v53 = vpop.f32.mrb[9].mxu0  ;;  %6744 = vst.msk [vmem:[%s12097_s3 + $0x38] sm:$0xff] %vm287_vm0, %v6680_v20  ;;  %v6943_v17 = vmul.f32 %v6680_v20, %v6680_v20 }
 0x2d5   :  { %6743 = vst.msk [vmem:[%s12097_s3 + $0x30] sm:$0xff] %vm287_vm0, %v6679_v24  ;;  %v6812_v13 = vsel %vm287_vm0, %v6679_v24, 0.0  ;;  %v6942_v14 = vmul.f32 %v6679_v24, %v6679_v24  ;;  %v9207_v22 = vadd.f32 %v6326_v53, %v11556_v43  ;;  %v6814_v26 = vsel %vm287_vm0, %v6680_v20, 0.0 }
 0x2d6   :  { %v6813_v31 = vadd.f32 %v6812_v13, %v6811_v40  ;;  %v7010_v61 = vadd.f32 %v7009_v15, %v7008_v33  ;;  %v6682_v19 = vadd.f32 %v9206_v47, %v11605_v38  ;;  %v7013_v56 = vsel %vm287_vm0, %v6943_v17, 0.0 }
 0x2d7   :  { %v7011_v54 = vsel %vm287_vm0, %v6942_v14, 0.0  ;;  %v9117_v4 = vpop.f32.mrb[10].mxu0  ;;  %v6681_v1 = vadd.f32 %v9207_v22, %v11605_v38 }
 0x2d8   :  { %v7012_v34 = vadd.f32 %v7011_v54, %v7010_v61  ;;  %6746 = vst.msk [vmem:[%s12097_s3 + $0x48] sm:$0xff] %vm287_vm0, %v6682_v19  ;;  %v6336_v63 = vpop.f32.mrb[11].mxu0  ;;  %v6945_v60 = vmul.f32 %v6682_v19, %v6682_v19  ;;  %v6815_v0 = vadd.f32 %v6814_v26, %v6813_v31  ;;  %v9208_v43 = vadd.f32 %v9117_v4, %v11558_v23 }
 0x2d9   :  { %v9209_v29 = vadd.f32 %v6336_v63, %v11560_v27  ;;  %6745 = vst.msk [vmem:[%s12097_s3 + $0x40] sm:$0xff] %vm287_vm0, %v6681_v1  ;;  %v6816_v2 = vsel %vm287_vm0, %v6681_v1, 0.0  ;;  %v6944_v3 = vmul.f32 %v6681_v1, %v6681_v1  ;;  %v6818_v45 = vsel %vm287_vm0, %v6682_v19, 0.0 }
 0x2da   :  { %v7014_v6 = vadd.f32 %v7013_v56, %v7012_v34  ;;  %v6817_v9 = vadd.f32 %v6816_v2, %v6815_v0  ;;  %v6684_v11 = vadd.f32 %v9208_v43, %v11605_v38  ;;  %v7017_v51 = vsel %vm287_vm0, %v6945_v60, 0.0 }
 0x2db   :  { %v6683_v18 = vadd.f32 %v9209_v29, %v11605_v38  ;;  %v9120_v41 = vpop.f32.mrb[12].mxu0  ;;  %v7015_v23 = vsel %vm287_vm0, %v6944_v3, 0.0 }
 0x2dc   :  { %v9210_v27 = vadd.f32 %v9120_v41, %v11562_v32  ;;  %v6346_v49 = vpop.f32.mrb[13].mxu0  ;;  %v7016_v59 = vadd.f32 %v7015_v23, %v7014_v6  ;;  %6748 = vst.msk [vmem:[%s12097_s3 + $0x58] sm:$0xff] %vm287_vm0, %v6684_v11  ;;  %v6947_v5 = vmul.f32 %v6684_v11, %v6684_v11  ;;  %v6819_v58 = vadd.f32 %v6818_v45, %v6817_v9 }
 0x2dd   :  { %6747 = vst.msk [vmem:[%s12097_s3 + $0x50] sm:$0xff] %vm287_vm0, %v6683_v18  ;;  %v6820_v12 = vsel %vm287_vm0, %v6683_v18, 0.0  ;;  %v6946_v16 = vmul.f32 %v6683_v18, %v6683_v18  ;;  %v9211_v20 = vadd.f32 %v6346_v49, %v11564_v37  ;;  %v6822_v40 = vsel %vm287_vm0, %v6684_v11, 0.0 }
 0x2de   :  { %v6686_v32 = vadd.f32 %v9210_v27, %v11605_v38  ;;  %v6821_v24 = vadd.f32 %v6820_v12, %v6819_v58  ;;  %v7018_v28 = vadd.f32 %v7017_v51, %v7016_v59  ;;  %v7021_v61 = vsel %vm287_vm0, %v6947_v5, 0.0 }
 0x2df   :  { %v9123_v33 = vpop.f32.mrb[14].mxu0  ;;  %v7019_v47 = vsel %vm287_vm0, %v6946_v16, 0.0  ;;  %v6685_v15 = vadd.f32 %v9211_v20, %v11605_v38 }
 0x2e0   :  { %6750 = vst.msk [vmem:[%s12097_s3 + $0x68] sm:$0xff] %vm287_vm0, %v6686_v32  ;;  %v6949_v53 = vmul.f32 %v6686_v32, %v6686_v32  ;;  %v6356_v17 = vpop.f32.mrb[15].mxu0  ;;  %v7020_v13 = vadd.f32 %v7019_v47, %v7018_v28  ;;  %v6823_v14 = vadd.f32 %v6822_v40, %v6821_v24  ;;  %v9212_v37 = vadd.f32 %v9123_v33, %v11566_v8 }
 0x2e1   :  { %v9213_v31 = vadd.f32 %v6356_v17, %v11568_v44  ;;  %6749 = vst.msk [vmem:[%s12097_s3 + $0x60] sm:$0xff] %vm287_vm0, %v6685_v15  ;;  %v6824_v19 = vsel %vm287_vm0, %v6685_v15, 0.0  ;;  %v6948_v22 = vmul.f32 %v6685_v15, %v6685_v15  ;;  %v6826_v8 = vsel %vm287_vm0, %v6686_v32, 0.0 }
 0x2e2   :  { %v6825_v54 = vadd.f32 %v6824_v19, %v6823_v14  ;;  %v7022_v4 = vadd.f32 %v7021_v61, %v7020_v13  ;;  %v6688_v26 = vadd.f32 %v9212_v37, %v11605_v38  ;;  %v7025_v60 = vsel %vm287_vm0, %v6949_v53, 0.0 }
 0x2e3   :  { %v6687_v56 = vadd.f32 %v9213_v31, %v11605_v38  ;;  %v9126_v34 = vpop.f32.mrb[16].mxu0  ;;  %v7023_v44 = vsel %vm287_vm0, %v6948_v22, 0.0 }
 0x2e4   :  { %v9214_v1 = vadd.f32 %v9126_v34, %v11570_v48  ;;  %v6366_v63 = vpop.f32.mrb[17].mxu0  ;;  %v7024_v0 = vadd.f32 %v7023_v44, %v7022_v4  ;;  %6752 = vst.msk [vmem:[%s12097_s3 + $0x78] sm:$0xff] %vm287_vm0, %v6688_v26  ;;  %v6951_v43 = vmul.f32 %v6688_v26, %v6688_v26  ;;  %v6827_v29 = vadd.f32 %v6826_v8, %v6825_v54 }
 0x2e5   :  { %6751 = vst.msk [vmem:[%s12097_s3 + $0x70] sm:$0xff] %vm287_vm0, %v6687_v56  ;;  %v6828_v2 = vsel %vm287_vm0, %v6687_v56, 0.0  ;;  %v6950_v3 = vmul.f32 %v6687_v56, %v6687_v56  ;;  %v9215_v6 = vadd.f32 %v6366_v63, %v11572_v52  ;;  %v6830_v41 = vsel %vm287_vm0, %v6688_v26, 0.0 }
 0x2e6   :  { %v6690_v48 = vadd.f32 %v9214_v1, %v11605_v38  ;;  %v6829_v9 = vadd.f32 %v6828_v2, %v6827_v29  ;;  %v7026_v11 = vadd.f32 %v7025_v60, %v7024_v0  ;;  %v7029_v58 = vsel %vm287_vm0, %v6951_v43, 0.0 }
 0x2e7   :  { %v9129_v18 = vpop.f32.mrb[18].mxu0  ;;  %v7027_v45 = vsel %vm287_vm0, %v6950_v3, 0.0  ;;  %v6689_v27 = vadd.f32 %v9215_v6, %v11605_v38 }
 0x2e8   :  { %6754 = vst.msk [vmem:[%s12097_s3 + $0x88] sm:$0xff] %vm287_vm0, %v6690_v48  ;;  %v6953_v23 = vmul.f32 %v6690_v48, %v6690_v48  ;;  %v6376_v49 = vpop.f32.mrb[19].mxu0  ;;  %v7028_v51 = vadd.f32 %v7027_v45, %v7026_v11  ;;  %v6831_v59 = vadd.f32 %v6830_v41, %v6829_v9  ;;  %v9216_v52 = vadd.f32 %v9129_v18, %v11574_v55 }
 0x2e9   :  { %v9217_v5 = vadd.f32 %v6376_v49, %v11576_v46  ;;  %6753 = vst.msk [vmem:[%s12097_s3 + $0x80] sm:$0xff] %vm287_vm0, %v6689_v27  ;;  %v6832_v12 = vsel %vm287_vm0, %v6689_v27, 0.0  ;;  %v6952_v16 = vmul.f32 %v6689_v27, %v6689_v27  ;;  %v6834_v55 = vsel %vm287_vm0, %v6690_v48, 0.0 }
 0x2ea   :  { %v6833_v32 = vadd.f32 %v6832_v12, %v6831_v59  ;;  %v7030_v20 = vadd.f32 %v7029_v58, %v7028_v51  ;;  %v6692_v24 = vadd.f32 %v9216_v52, %v11605_v38  ;;  %v7033_v53 = vsel %vm287_vm0, %v6953_v23, 0.0 }
 0x2eb   :  { %v6691_v28 = vadd.f32 %v9217_v5, %v11605_v38  ;;  %v9132_v33 = vpop.f32.mrb[20].mxu0  ;;  %v7031_v46 = vsel %vm287_vm0, %v6952_v16, 0.0 }
 0x2ec   :  { %v9218_v40 = vadd.f32 %v9132_v33, %v11578_v50  ;;  %v6386_v47 = vpop.f32.mrb[21].mxu0  ;;  %v7032_v15 = vadd.f32 %v7031_v46, %v7030_v20  ;;  %6756 = vst.msk [vmem:[%s12097_s3 + $0x98] sm:$0xff] %vm287_vm0, %v6692_v24  ;;  %v6955_v17 = vmul.f32 %v6692_v24, %v6692_v24  ;;  %v6835_v13 = vadd.f32 %v6834_v55, %v6833_v32 }
 0x2ed   :  { %6755 = vst.msk [vmem:[%s12097_s3 + $0x90] sm:$0xff] %vm287_vm0, %v6691_v28  ;;  %v6836_v14 = vsel %vm287_vm0, %v6691_v28, 0.0  ;;  %v6954_v37 = vmul.f32 %v6691_v28, %v6691_v28  ;;  %v9219_v31 = vadd.f32 %v6386_v47, %v11580_v39  ;;  %v6838_v54 = vsel %vm287_vm0, %v6692_v24, 0.0 }
 0x2ee   :  { %v6694_v50 = vadd.f32 %v9218_v40, %v11605_v38  ;;  %v6837_v61 = vadd.f32 %v6836_v14, %v6835_v13  ;;  %v7034_v19 = vadd.f32 %v7033_v53, %v7032_v15  ;;  %v7037_v63 = vsel %vm287_vm0, %v6955_v17, 0.0 }
 0x2ef   :  { %v9135_v22 = vpop.f32.mrb[22].mxu0  ;;  %v7035_v4 = vsel %vm287_vm0, %v6954_v37, 0.0  ;;  %v6693_v56 = vadd.f32 %v9219_v31, %v11605_v38 }
 0x2f0   :  { %6758 = vst.msk [vmem:[%s12097_s3 + $0xa8] sm:$0xff] %vm287_vm0, %v6694_v50  ;;  %v6957_v26 = vmul.f32 %v6694_v50, %v6694_v50  ;;  %v6396_v34 = vpop.f32.mrb[23].mxu0  ;;  %v7036_v8 = vadd.f32 %v7035_v4, %v7034_v19  ;;  %v6839_v44 = vadd.f32 %v6838_v54, %v6837_v61  ;;  %v9220_v39 = vadd.f32 %v9135_v22, %v11582_v21 }
 0x2f1   :  { %v9221_v1 = vadd.f32 %v6396_v34, %v11584_v42  ;;  %6757 = vst.msk [vmem:[%s12097_s3 + $0xa0] sm:$0xff] %vm287_vm0, %v6693_v56  ;;  %v6840_v60 = vsel %vm287_vm0, %v6693_v56, 0.0  ;;  %v6956_v0 = vmul.f32 %v6693_v56, %v6693_v56  ;;  %v6842_v21 = vsel %vm287_vm0, %v6694_v50, 0.0 }
 0x2f2   :  { %v6841_v43 = vadd.f32 %v6840_v60, %v6839_v44  ;;  %v7038_v29 = vadd.f32 %v7037_v63, %v7036_v8  ;;  %v6696_v2 = vadd.f32 %v9220_v39, %v11605_v38  ;;  %v7041_v11 = vsel %vm287_vm0, %v6957_v26, 0.0 }
 0x2f3   :  { %v6695_v3 = vadd.f32 %v9221_v1, %v11605_v38  ;;  %v9138_v48 = vpop.f32.mrb[24].mxu0  ;;  %v7039_v42 = vsel %vm287_vm0, %v6956_v0, 0.0 }
 0x2f4   :  { %v9222_v6 = vadd.f32 %v9138_v48, %v11586_v35  ;;  %v6406_v9 = vpop.f32.mrb[25].mxu0  ;;  %v7040_v18 = vadd.f32 %v7039_v42, %v7038_v29  ;;  %6760 = vst.msk [vmem:[%s12097_s3 + $0xb8] sm:$0xff] %vm287_vm0, %v6696_v2  ;;  %v6959_v41 = vmul.f32 %v6696_v2, %v6696_v2  ;;  %v6843_v45 = vadd.f32 %v6842_v21, %v6841_v43 }
 0x2f5   :  { %6759 = vst.msk [vmem:[%s12097_s3 + $0xb0] sm:$0xff] %vm287_vm0, %v6695_v3  ;;  %v6844_v23 = vsel %vm287_vm0, %v6695_v3, 0.0  ;;  %v6958_v27 = vmul.f32 %v6695_v3, %v6695_v3  ;;  %v9223_v49 = vadd.f32 %v6406_v9, %v11588_v62  ;;  %v6846_v5 = vsel %vm287_vm0, %v6696_v2, 0.0 }
 0x2f6   :  { %v6698_v35 = vadd.f32 %v9222_v6, %v11605_v38  ;;  %v6845_v51 = vadd.f32 %v6844_v23, %v6843_v45  ;;  %v7042_v59 = vadd.f32 %v7041_v11, %v7040_v18  ;;  %v7045_v33 = vsel %vm287_vm0, %v6959_v41, 0.0 }
 0x2f7   :  { %v9141_v52 = vpop.f32.mrb[26].mxu0  ;;  %v7043_v58 = vsel %vm287_vm0, %v6958_v27, 0.0  ;;  %v6697_v16 = vadd.f32 %v9223_v49, %v11605_v38 }
 0x2f8   :  { %6762 = vst.msk [vmem:[%s12097_s3 + $0xc8] sm:$0xff] %vm287_vm0, %v6698_v35  ;;  %v6961_v12 = vmul.f32 %v6698_v35, %v6698_v35  ;;  %v6416_v32 = vpop.f32.mrb[27].mxu0  ;;  %v7044_v20 = vadd.f32 %v7043_v58, %v7042_v59  ;;  %v6847_v24 = vadd.f32 %v6846_v5, %v6845_v51  ;;  %v9224_v62 = vadd.f32 %v9141_v52, %v11590_v57 }
 0x2f9   :  { %v9225_v28 = vadd.f32 %v6416_v32, %v11592_v30  ;;  %6761 = vst.msk [vmem:[%s12097_s3 + $0xc0] sm:$0xff] %vm287_vm0, %v6697_v16  ;;  %v6848_v55 = vsel %vm287_vm0, %v6697_v16, 0.0  ;;  %v6960_v46 = vmul.f32 %v6697_v16, %v6697_v16  ;;  %v6850_v57 = vsel %vm287_vm0, %v6698_v35, 0.0 }
 0x2fa   :  { %v6849_v40 = vadd.f32 %v6848_v55, %v6847_v24  ;;  %v7046_v47 = vadd.f32 %v7045_v33, %v7044_v20  ;;  %v6700_v53 = vadd.f32 %v9224_v62, %v11605_v38  ;;  %v7049_v37 = vsel %vm287_vm0, %v6961_v12, 0.0 }
 0x2fb   :  { %v6699_v15 = vadd.f32 %v9225_v28, %v11605_v38  ;;  %v9144_v17 = vpop.f32.mrb[28].mxu0  ;;  %v7047_v30 = vsel %vm287_vm0, %v6960_v46, 0.0 }
 0x2fc   :  { %v9226_v13 = vadd.f32 %v9144_v17, %v11594_v25  ;;  %v6426_v14 = vpop.f32.mrb[29].mxu0  ;;  %v7048_v50 = vadd.f32 %v7047_v30, %v7046_v47  ;;  %6764 = vst.msk [vmem:[%s12097_s3 + $0xd8] sm:$0xff] %vm287_vm0, %v6700_v53  ;;  %v6963_v31 = vmul.f32 %v6700_v53, %v6700_v53  ;;  %v6851_v61 = vadd.f32 %v6850_v57, %v6849_v40 }
 0x2fd   :  { %6763 = vst.msk [vmem:[%s12097_s3 + $0xd0] sm:$0xff] %vm287_vm0, %v6699_v15  ;;  %v6852_v19 = vsel %vm287_vm0, %v6699_v15, 0.0  ;;  %v6962_v22 = vmul.f32 %v6699_v15, %v6699_v15  ;;  %v9227_v54 = vadd.f32 %v6426_v14, %v11596_v7  ;;  %v6854_v8 = vsel %vm287_vm0, %v6700_v53, 0.0 }
 0x2fe   :  { %v6702_v25 = vadd.f32 %v9226_v13, %v11605_v38  ;;  %v6853_v4 = vadd.f32 %v6852_v19, %v6851_v61  ;;  %v7050_v26 = vadd.f32 %v7049_v37, %v7048_v50  ;;  %v7053_v2 = vsel %vm287_vm0, %v6963_v31, 0.0 }
 0x2ff   :  { %v8758_v56 = vpop.f32.mrb[32].mxu1  ;;  %v9147_v34 = vpop.f32.mrb[30].mxu0  ;;  %v7051_v44 = vsel %vm287_vm0, %v6962_v22, 0.0  ;;  %v6701_v1 = vadd.f32 %v9227_v54, %v11605_v38 }
 0x300   :  { %6766 = vst.msk [vmem:[%s12097_s3 + $0xe8] sm:$0xff] %vm287_vm0, %v6702_v25  ;;  %v6965_v39 = vmul.f32 %v6702_v25, %v6702_v25  ;;  %v3617_v63 = vpop.f32.mrb[33].mxu1  ;;  %v6436_v60 = vpop.f32.mrb[31].mxu0  ;;  %v7052_v0 = vadd.f32 %v7051_v44, %v7050_v26  ;;  %v6855_v7 = vadd.f32 %v6854_v8, %v6853_v4  ;;  %v9228_v43 = vadd.f32 %v9147_v34, %v11598_v10 }
 0x301   :  { %v9229_v29 = vadd.f32 %v6436_v60, %v11600_v36  ;;  %6765 = vst.msk [vmem:[%s12097_s3 + $0xe0] sm:$0xff] %vm287_vm0, %v6701_v1  ;;  %v6856_v3 = vsel %vm287_vm0, %v6701_v1, 0.0  ;;  %v6964_v48 = vmul.f32 %v6701_v1, %v6701_v1  ;;  %v6858_v36 = vsel %vm287_vm0, %v6702_v25, 0.0 }
 0x302   :  { %v6857_v21 = vadd.f32 %v6856_v3, %v6855_v7  ;;  %v7054_v42 = vadd.f32 %v7053_v2, %v7052_v0  ;;  %v6704_v6 = vadd.f32 %v9228_v43, %v11605_v38  ;;  %v7057_v27 = vsel %vm287_vm0, %v6965_v39, 0.0 }
 0x303   :  { %v6703_v9 = vadd.f32 %v9229_v29, %v11605_v38  ;;  %v8761_v11 = vpop.f32.mrb[34].mxu1  ;;  %v9150_v10 = vpop.f32.mrb[32].mxu0  ;;  %v7055_v18 = vsel %vm287_vm0, %v6964_v48, 0.0 }
 0x304   :  { %v9230_v41 = vadd.f32 %v9150_v10, %v8758_v56  ;;  %v3627_v45 = vpop.f32.mrb[35].mxu1  ;;  %v6446_v23 = vpop.f32.mrb[33].mxu0  ;;  %v7056_v35 = vadd.f32 %v7055_v18, %v7054_v42  ;;  %6768 = vst.msk [vmem:[%s12097_s3 + $0xf8] sm:$0xff] %vm287_vm0, %v6704_v6  ;;  %v6967_v49 = vmul.f32 %v6704_v6, %v6704_v6  ;;  %v6859_v51 = vadd.f32 %v6858_v36, %v6857_v21 }
 0x305   :  { %6767 = vst.msk [vmem:[%s12097_s3 + $0xf0] sm:$0xff] %vm287_vm0, %v6703_v9  ;;  %v6860_v59 = vsel %vm287_vm0, %v6703_v9, 0.0  ;;  %v6966_v52 = vmul.f32 %v6703_v9, %v6703_v9  ;;  %v9231_v58 = vadd.f32 %v6446_v23, %v3617_v63  ;;  %v6862_v24 = vsel %vm287_vm0, %v6704_v6, 0.0 }
 0x306   :  { %v6706_v5 = vadd.f32 %v9230_v41, %v11605_v38  ;;  %v6861_v12 = vadd.f32 %v6860_v59, %v6859_v51  ;;  %v7058_v16 = vadd.f32 %v7057_v27, %v7056_v35  ;;  %v7061_v17 = vsel %vm287_vm0, %v6967_v49, 0.0 }
 0x307   :  { %v8764_v32 = vpop.f32.mrb[36].mxu1  ;;  %v9153_v20 = vpop.f32.mrb[34].mxu0  ;;  %v7059_v62 = vsel %vm287_vm0, %v6966_v52, 0.0  ;;  %v6705_v33 = vadd.f32 %v9231_v58, %v11605_v38 }
 0x308   :  { %6770 = vst.msk [vmem:[%s12097_s3 + $0x108] sm:$0xff] %vm287_vm0, %v6706_v5  ;;  %v6969_v28 = vmul.f32 %v6706_v5, %v6706_v5  ;;  %v3637_v55 = vpop.f32.mrb[37].mxu1  ;;  %v6456_v46 = vpop.f32.mrb[35].mxu0  ;;  %v7060_v40 = vadd.f32 %v7059_v62, %v7058_v16  ;;  %v6863_v47 = vadd.f32 %v6862_v24, %v6861_v12  ;;  %v9232_v53 = vadd.f32 %v9153_v20, %v8761_v11 }
 0x309   :  { %v9233_v15 = vadd.f32 %v6456_v46, %v3627_v45  ;;  %6769 = vst.msk [vmem:[%s12097_s3 + $0x100] sm:$0xff] %vm287_vm0, %v6705_v33  ;;  %v6864_v57 = vsel %vm287_vm0, %v6705_v33, 0.0  ;;  %v6968_v30 = vmul.f32 %v6705_v33, %v6705_v33  ;;  %v6866_v19 = vsel %vm287_vm0, %v6706_v5, 0.0 }
 0x30a   :  { %v6865_v13 = vadd.f32 %v6864_v57, %v6863_v47  ;;  %v7062_v14 = vadd.f32 %v7061_v17, %v7060_v40  ;;  %v6708_v37 = vadd.f32 %v9232_v53, %v11605_v38  ;;  %v7065_v26 = vsel %vm287_vm0, %v6969_v28, 0.0 }
 0x30b   :  { %v6707_v50 = vadd.f32 %v9233_v15, %v11605_v38  ;;  %v8767_v31 = vpop.f32.mrb[38].mxu1  ;;  %v9156_v61 = vpop.f32.mrb[36].mxu0  ;;  %v7063_v22 = vsel %vm287_vm0, %v6968_v30, 0.0 }
 0x30c   :  { %v9234_v25 = vadd.f32 %v9156_v61, %v8764_v32  ;;  %v3647_v54 = vpop.f32.mrb[39].mxu1  ;;  %v6466_v4 = vpop.f32.mrb[37].mxu0  ;;  %v7064_v56 = vadd.f32 %v7063_v22, %v7062_v14  ;;  %6772 = vst.msk [vmem:[%s12097_s3 + $0x118] sm:$0xff] %vm287_vm0, %v6708_v37  ;;  %v6971_v34 = vmul.f32 %v6708_v37, %v6708_v37  ;;  %v6867_v8 = vadd.f32 %v6866_v19, %v6865_v13 }
 0x30d   :  { %6771 = vst.msk [vmem:[%s12097_s3 + $0x110] sm:$0xff] %vm287_vm0, %v6707_v50  ;;  %v6868_v44 = vsel %vm287_vm0, %v6707_v50, 0.0  ;;  %v6970_v39 = vmul.f32 %v6707_v50, %v6707_v50  ;;  %v9235_v63 = vadd.f32 %v6466_v4, %v3637_v55  ;;  %v6870_v29 = vsel %vm287_vm0, %v6708_v37, 0.0 }
 0x30e   :  { %v6710_v1 = vadd.f32 %v9234_v25, %v11605_v38  ;;  %v6869_v60 = vadd.f32 %v6868_v44, %v6867_v8  ;;  %v7066_v0 = vadd.f32 %v7065_v26, %v7064_v56  ;;  %v7069_v36 = vsel %vm287_vm0, %v6971_v34, 0.0 }
 0x30f   :  { %v8770_v7 = vpop.f32.mrb[40].mxu1  ;;  %v9159_v43 = vpop.f32.mrb[38].mxu0  ;;  %v7067_v2 = vsel %vm287_vm0, %v6970_v39, 0.0  ;;  %v6709_v48 = vadd.f32 %v9235_v63, %v11605_v38 }
 0x310   :  { %6774 = vst.msk [vmem:[%s12097_s3 + $0x128] sm:$0xff] %vm287_vm0, %v6710_v1  ;;  %v6973_v3 = vmul.f32 %v6710_v1, %v6710_v1  ;;  %v3657_v21 = vpop.f32.mrb[41].mxu1  ;;  %v6476_v42 = vpop.f32.mrb[39].mxu0  ;;  %v7068_v6 = vadd.f32 %v7067_v2, %v7066_v0  ;;  %v6871_v9 = vadd.f32 %v6870_v29, %v6869_v60  ;;  %v9236_v11 = vadd.f32 %v9159_v43, %v8767_v31 }
 0x311   :  { %v9237_v10 = vadd.f32 %v6476_v42, %v3647_v54  ;;  %6773 = vst.msk [vmem:[%s12097_s3 + $0x120] sm:$0xff] %vm287_vm0, %v6709_v48  ;;  %v6872_v18 = vsel %vm287_vm0, %v6709_v48, 0.0  ;;  %v6972_v41 = vmul.f32 %v6709_v48, %v6709_v48  ;;  %v6874_v59 = vsel %vm287_vm0, %v6710_v1, 0.0 }
 0x312   :  { %v6873_v45 = vadd.f32 %v6872_v18, %v6871_v9  ;;  %v7070_v23 = vadd.f32 %v7069_v36, %v7068_v6  ;;  %v6712_v27 = vadd.f32 %v9236_v11, %v11605_v38  ;;  %v7073_v16 = vsel %vm287_vm0, %v6973_v3, 0.0 }
 0x313   :  { %v6711_v35 = vadd.f32 %v9237_v10, %v11605_v38  ;;  %v8773_v49 = vpop.f32.mrb[42].mxu1  ;;  %v9162_v51 = vpop.f32.mrb[40].mxu0  ;;  %v7071_v52 = vsel %vm287_vm0, %v6972_v41, 0.0 }
 0x314   :  { %v9238_v5 = vadd.f32 %v9162_v51, %v8770_v7  ;;  %v3667_v58 = vpop.f32.mrb[43].mxu1  ;;  %v6486_v12 = vpop.f32.mrb[41].mxu0  ;;  %v7072_v32 = vadd.f32 %v7071_v52, %v7070_v23  ;;  %6776 = vst.msk [vmem:[%s12097_s3 + $0x138] sm:$0xff] %vm287_vm0, %v6712_v27  ;;  %v6975_v20 = vmul.f32 %v6712_v27, %v6712_v27  ;;  %v6875_v24 = vadd.f32 %v6874_v59, %v6873_v45 }
 0x315   :  { %6775 = vst.msk [vmem:[%s12097_s3 + $0x130] sm:$0xff] %vm287_vm0, %v6711_v35  ;;  %v6876_v62 = vsel %vm287_vm0, %v6711_v35, 0.0  ;;  %v6974_v28 = vmul.f32 %v6711_v35, %v6711_v35  ;;  %v9239_v55 = vadd.f32 %v6486_v12, %v3657_v21  ;;  %v6878_v15 = vsel %vm287_vm0, %v6712_v27, 0.0 }
 0x316   :  { %v6714_v33 = vadd.f32 %v9238_v5, %v11605_v38  ;;  %v6877_v46 = vadd.f32 %v6876_v62, %v6875_v24  ;;  %v7074_v40 = vadd.f32 %v7073_v16, %v7072_v32  ;;  %v7077_v19 = vsel %vm287_vm0, %v6975_v20, 0.0 }
 0x317   :  { %v8776_v47 = vpop.f32.mrb[44].mxu1  ;;  %v9165_v53 = vpop.f32.mrb[42].mxu0  ;;  %v7075_v17 = vsel %vm287_vm0, %v6974_v28, 0.0  ;;  %v6713_v30 = vadd.f32 %v9239_v55, %v11605_v38 }
 0x318   :  { %6778 = vst.msk [vmem:[%s12097_s3 + $0x148] sm:$0xff] %vm287_vm0, %v6714_v33  ;;  %v6977_v57 = vmul.f32 %v6714_v33, %v6714_v33  ;;  %v3677_v13 = vpop.f32.mrb[45].mxu1  ;;  %v6496_v14 = vpop.f32.mrb[43].mxu0  ;;  %v7076_v37 = vadd.f32 %v7075_v17, %v7074_v40  ;;  %v6879_v50 = vadd.f32 %v6878_v15, %v6877_v46  ;;  %v9240_v31 = vadd.f32 %v9165_v53, %v8773_v49 }
 0x319   :  { %v9241_v61 = vadd.f32 %v6496_v14, %v3667_v58  ;;  %6777 = vst.msk [vmem:[%s12097_s3 + $0x140] sm:$0xff] %vm287_vm0, %v6713_v30  ;;  %v6880_v22 = vsel %vm287_vm0, %v6713_v30, 0.0  ;;  %v6976_v25 = vmul.f32 %v6713_v30, %v6713_v30  ;;  %v6882_v44 = vsel %vm287_vm0, %v6714_v33, 0.0 }
 0x31a   :  { %v6881_v54 = vadd.f32 %v6880_v22, %v6879_v50  ;;  %v7078_v4 = vadd.f32 %v7077_v19, %v7076_v37  ;;  %v6716_v26 = vadd.f32 %v9240_v31, %v11605_v38  ;;  %v7081_v0 = vsel %vm287_vm0, %v6977_v57, 0.0 }
 0x31b   :  { %v6715_v56 = vadd.f32 %v9241_v61, %v11605_v38  ;;  %v8779_v34 = vpop.f32.mrb[46].mxu1  ;;  %v9168_v8 = vpop.f32.mrb[44].mxu0  ;;  %v7079_v39 = vsel %vm287_vm0, %v6976_v25, 0.0 }
 0x31c   :  { %v9242_v1 = vadd.f32 %v9168_v8, %v8776_v47  ;;  %v3687_v63 = vpop.f32.mrb[47].mxu1  ;;  %v6506_v60 = vpop.f32.mrb[45].mxu0  ;;  %v7080_v7 = vadd.f32 %v7079_v39, %v7078_v4  ;;  %6780 = vst.msk [vmem:[%s12097_s3 + $0x158] sm:$0xff] %vm287_vm0, %v6716_v26  ;;  %v6979_v43 = vmul.f32 %v6716_v26, %v6716_v26  ;;  %v6883_v29 = vadd.f32 %v6882_v44, %v6881_v54 }
 0x31d   :  { %6779 = vst.msk [vmem:[%s12097_s3 + $0x150] sm:$0xff] %vm287_vm0, %v6715_v56  ;;  %v6884_v2 = vsel %vm287_vm0, %v6715_v56, 0.0  ;;  %v6978_v3 = vmul.f32 %v6715_v56, %v6715_v56  ;;  %v9243_v21 = vadd.f32 %v6506_v60, %v3677_v13  ;;  %v6886_v10 = vsel %vm287_vm0, %v6716_v26, 0.0 }
 0x31e   :  { %v6718_v48 = vadd.f32 %v9242_v1, %v11605_v38  ;;  %v6885_v42 = vadd.f32 %v6884_v2, %v6883_v29  ;;  %v7082_v6 = vadd.f32 %v7081_v0, %v7080_v7  ;;  %v7085_v59 = vsel %vm287_vm0, %v6979_v43, 0.0 }
 0x31f   :  { %v8782_v9 = vpop.f32.mrb[48].mxu1  ;;  %v9171_v11 = vpop.f32.mrb[46].mxu0  ;;  %v7083_v36 = vsel %vm287_vm0, %v6978_v3, 0.0  ;;  %v6717_v41 = vadd.f32 %v9243_v21, %v11605_v38 }
 0x320   :  { %6782 = vst.msk [vmem:[%s12097_s3 + $0x168] sm:$0xff] %vm287_vm0, %v6718_v48  ;;  %v6981_v18 = vmul.f32 %v6718_v48, %v6718_v48  ;;  %v3697_v45 = vpop.f32.mrb[49].mxu1  ;;  %v6516_v23 = vpop.f32.mrb[47].mxu0  ;;  %v7084_v27 = vadd.f32 %v7083_v36, %v7082_v6  ;;  %v6887_v35 = vadd.f32 %v6886_v10, %v6885_v42  ;;  %v9244_v49 = vadd.f32 %v9171_v11, %v8779_v34 }
 0x321   :  { %v9245_v51 = vadd.f32 %v6516_v23, %v3687_v63  ;;  %6781 = vst.msk [vmem:[%s12097_s3 + $0x160] sm:$0xff] %vm287_vm0, %v6717_v41  ;;  %v6888_v52 = vsel %vm287_vm0, %v6717_v41, 0.0  ;;  %v6980_v5 = vmul.f32 %v6717_v41, %v6717_v41  ;;  %v6890_v62 = vsel %vm287_vm0, %v6718_v48, 0.0 }
 0x322   :  { %v6889_v58 = vadd.f32 %v6888_v52, %v6887_v35  ;;  %v7086_v12 = vadd.f32 %v7085_v59, %v7084_v27  ;;  %v6720_v16 = vadd.f32 %v9244_v49, %v11605_v38  ;;  %v7089_v40 = vsel %vm287_vm0, %v6981_v18, 0.0 }
 0x323   :  { %v6719_v32 = vadd.f32 %v9245_v51, %v11605_v38  ;;  %v8785_v20 = vpop.f32.mrb[50].mxu1  ;;  %v9174_v24 = vpop.f32.mrb[48].mxu0  ;;  %v7087_v28 = vsel %vm287_vm0, %v6980_v5, 0.0 }
 0x324   :  { %v9246_v33 = vadd.f32 %v9174_v24, %v8782_v9  ;;  %v3707_v55 = vpop.f32.mrb[51].mxu1  ;;  %v6526_v46 = vpop.f32.mrb[49].mxu0  ;;  %v7088_v47 = vadd.f32 %v7087_v28, %v7086_v12  ;;  %6784 = vst.msk [vmem:[%s12097_s3 + $0x178] sm:$0xff] %vm287_vm0, %v6720_v16  ;;  %v6983_v53 = vmul.f32 %v6720_v16, %v6720_v16  ;;  %v6891_v15 = vadd.f32 %v6890_v62, %v6889_v58 }
 0x325   :  { %6783 = vst.msk [vmem:[%s12097_s3 + $0x170] sm:$0xff] %vm287_vm0, %v6719_v32  ;;  %v6892_v17 = vsel %vm287_vm0, %v6719_v32, 0.0  ;;  %v6982_v57 = vmul.f32 %v6719_v32, %v6719_v32  ;;  %v9247_v13 = vadd.f32 %v6526_v46, %v3697_v45  ;;  %v6894_v61 = vsel %vm287_vm0, %v6720_v16, 0.0 }
 0x326   :  { %v6722_v30 = vadd.f32 %v9246_v33, %v11605_v38  ;;  %v6893_v14 = vadd.f32 %v6892_v17, %v6891_v15  ;;  %v7090_v37 = vadd.f32 %v7089_v40, %v7088_v47  ;;  %v7093_v44 = vsel %vm287_vm0, %v6983_v53, 0.0 }
 0x327   :  { %v8788_v50 = vpop.f32.mrb[52].mxu1  ;;  %v9177_v31 = vpop.f32.mrb[50].mxu0  ;;  %v7091_v19 = vsel %vm287_vm0, %v6982_v57, 0.0  ;;  %v6721_v25 = vadd.f32 %v9247_v13, %v11605_v38 }
 0x328   :  { %6786 = vst.msk [vmem:[%s12097_s3 + $0x188] sm:$0xff] %vm287_vm0, %v6722_v30  ;;  %v6985_v22 = vmul.f32 %v6722_v30, %v6722_v30  ;;  %v3717_v54 = vpop.f32.mrb[53].mxu1  ;;  %v6536_v4 = vpop.f32.mrb[51].mxu0  ;;  %v7092_v26 = vadd.f32 %v7091_v19, %v7090_v37  ;;  %v6895_v56 = vadd.f32 %v6894_v61, %v6893_v14  ;;  %v9248_v34 = vadd.f32 %v9177_v31, %v8785_v20 }
 0x329   :  { %v9249_v8 = vadd.f32 %v6536_v4, %v3707_v55  ;;  %6785 = vst.msk [vmem:[%s12097_s3 + $0x180] sm:$0xff] %vm287_vm0, %v6721_v25  ;;  %v6896_v39 = vsel %vm287_vm0, %v6721_v25, 0.0  ;;  %v6984_v1 = vmul.f32 %v6721_v25, %v6721_v25  ;;  %v6898_v2 = vsel %vm287_vm0, %v6722_v30, 0.0 }
 0x32a   :  { %v6897_v63 = vadd.f32 %v6896_v39, %v6895_v56  ;;  %v7094_v60 = vadd.f32 %v7093_v44, %v7092_v26  ;;  %v6724_v0 = vadd.f32 %v9248_v34, %v11605_v38  ;;  %v7097_v6 = vsel %vm287_vm0, %v6985_v22, 0.0  ;;  %v12025_v22 = vld [vmem:[%s12096_s2 + $0x2] ss:$0 sm:$0xff] }
 0x32b   :  { %v6723_v7 = vadd.f32 %v9249_v8, %v11605_v38  ;;  %v8791_v43 = vpop.f32.mrb[54].mxu1  ;;  %v9180_v29 = vpop.f32.mrb[52].mxu0  ;;  %v7095_v3 = vsel %vm287_vm0, %v6984_v1, 0.0 }
 0x32c   :  { %v9250_v48 = vadd.f32 %v9180_v29, %v8788_v50  ;;  %v3727_v21 = vpop.f32.mrb[55].mxu1  ;;  %v6546_v42 = vpop.f32.mrb[53].mxu0  ;;  %v7096_v9 = vadd.f32 %v7095_v3, %v7094_v60  ;;  %6788 = vst.msk [vmem:[%s12097_s3 + $0x198] sm:$0xff] %vm287_vm0, %v6724_v0  ;;  %v6987_v11 = vmul.f32 %v6724_v0, %v6724_v0  ;;  %v6899_v10 = vadd.f32 %v6898_v2, %v6897_v63 }
 0x32d   :  { %6787 = vst.msk [vmem:[%s12097_s3 + $0x190] sm:$0xff] %vm287_vm0, %v6723_v7  ;;  %v6900_v36 = vsel %vm287_vm0, %v6723_v7, 0.0  ;;  %v6986_v18 = vmul.f32 %v6723_v7, %v6723_v7  ;;  %v9251_v45 = vadd.f32 %v6546_v42, %v3717_v54  ;;  %v6902_v51 = vsel %vm287_vm0, %v6724_v0, 0.0 }
 0x32e   :  { %v6726_v41 = vadd.f32 %v9250_v48, %v11605_v38  ;;  %v6901_v23 = vadd.f32 %v6900_v36, %v6899_v10  ;;  %v7098_v27 = vadd.f32 %v7097_v6, %v7096_v9  ;;  %v7101_v62 = vsel %vm287_vm0, %v6987_v11, 0.0 }
 0x32f   :  { %v8794_v35 = vpop.f32.mrb[56].mxu1  ;;  %v9183_v49 = vpop.f32.mrb[54].mxu0  ;;  %v7099_v59 = vsel %vm287_vm0, %v6986_v18, 0.0  ;;  %v6725_v5 = vadd.f32 %v9251_v45, %v11605_v38 }
 0x330   :  { %6790 = vst.msk [vmem:[%s12097_s3 + $0x1a8] sm:$0xff] %vm287_vm0, %v6726_v41  ;;  %v6989_v52 = vmul.f32 %v6726_v41, %v6726_v41  ;;  %v3737_v58 = vpop.f32.mrb[57].mxu1  ;;  %v6556_v12 = vpop.f32.mrb[55].mxu0  ;;  %v7100_v16 = vadd.f32 %v7099_v59, %v7098_v27  ;;  %v6903_v32 = vadd.f32 %v6902_v51, %v6901_v23  ;;  %v9252_v20 = vadd.f32 %v9183_v49, %v8791_v43 }
 0x331   :  { %v9253_v24 = vadd.f32 %v6556_v12, %v3727_v21  ;;  %6789 = vst.msk [vmem:[%s12097_s3 + $0x1a0] sm:$0xff] %vm287_vm0, %v6725_v5  ;;  %v6904_v28 = vsel %vm287_vm0, %v6725_v5, 0.0  ;;  %v6988_v33 = vmul.f32 %v6725_v5, %v6725_v5  ;;  %v6906_v17 = vsel %vm287_vm0, %v6726_v41, 0.0 }
 0x332   :  { %v6905_v55 = vadd.f32 %v6904_v28, %v6903_v32  ;;  %v7102_v46 = vadd.f32 %v7101_v62, %v7100_v16  ;;  %v6728_v40 = vadd.f32 %v9252_v20, %v11605_v38  ;;  %v7105_v37 = vsel %vm287_vm0, %v6989_v52, 0.0 }
 0x333   :  { %v6727_v47 = vadd.f32 %v9253_v24, %v11605_v38  ;;  %v8797_v53 = vpop.f32.mrb[58].mxu1  ;;  %v9186_v15 = vpop.f32.mrb[56].mxu0  ;;  %v7103_v57 = vsel %vm287_vm0, %v6988_v33, 0.0 }
 0x334   :  { %v9254_v30 = vadd.f32 %v9186_v15, %v8794_v35  ;;  %v3747_v13 = vpop.f32.mrb[59].mxu1  ;;  %v6566_v14 = vpop.f32.mrb[57].mxu0  ;;  %v7104_v50 = vadd.f32 %v7103_v57, %v7102_v46  ;;  %6792 = vst.msk [vmem:[%s12097_s3 + $0x1b8] sm:$0xff] %vm287_vm0, %v6728_v40  ;;  %v6991_v31 = vmul.f32 %v6728_v40, %v6728_v40  ;;  %v6907_v38 = vadd.f32 %v6906_v17, %v6905_v55 }
 0x335   :  { %6791 = vst.msk [vmem:[%s12097_s3 + $0x1b0] sm:$0xff] %vm287_vm0, %v6727_v47  ;;  %v6908_v61 = vsel %vm287_vm0, %v6727_v47, 0.0  ;;  %v6990_v19 = vmul.f32 %v6727_v47, %v6727_v47  ;;  %v9255_v54 = vadd.f32 %v6566_v14, %v3737_v58  ;;  %v6910_v8 = vsel %vm287_vm0, %v6728_v40, 0.0 }
 0x336   :  { %v6730_v25 = vadd.f32 %v12025_v22, %v9254_v30  ;;  %v6909_v4 = vadd.f32 %v6908_v61, %v6907_v38  ;;  %v7106_v26 = vadd.f32 %v7105_v37, %v7104_v50  ;;  %v7109_v2 = vsel %vm287_vm0, %v6991_v31, 0.0 }
 0x337   :  { %v8800_v56 = vpop.f32.mrb[60].mxu1  ;;  %v9189_v34 = vpop.f32.mrb[58].mxu0  ;;  %v7107_v44 = vsel %vm287_vm0, %v6990_v19, 0.0  ;;  %v6729_v1 = vadd.f32 %v12025_v22, %v9255_v54 }
 0x338   :  { %6794 = vst.msk [vmem:[%s12097_s3 + $0x1c8] sm:$0xff] %vm287_vm0, %v6730_v25  ;;  %v6993_v39 = vmul.f32 %v6730_v25, %v6730_v25  ;;  %v3757_v63 = vpop.f32.mrb[61].mxu1  ;;  %v6576_v60 = vpop.f32.mrb[59].mxu0  ;;  %v7108_v0 = vadd.f32 %v7107_v44, %v7106_v26  ;;  %v6911_v7 = vadd.f32 %v6910_v8, %v6909_v4  ;;  %v9256_v43 = vadd.f32 %v9189_v34, %v8797_v53 }
 0x339   :  { %v9257_v29 = vadd.f32 %v6576_v60, %v3747_v13  ;;  %6793 = vst.msk [vmem:[%s12097_s3 + $0x1c0] sm:$0xff] %vm287_vm0, %v6729_v1  ;;  %v6912_v3 = vsel %vm287_vm0, %v6729_v1, 0.0  ;;  %v6992_v48 = vmul.f32 %v6729_v1, %v6729_v1  ;;  %v6914_v36 = vsel %vm287_vm0, %v6730_v25, 0.0 }
 0x33a   :  { %v6913_v21 = vadd.f32 %v6912_v3, %v6911_v7  ;;  %v7110_v42 = vadd.f32 %v7109_v2, %v7108_v0  ;;  %v6732_v6 = vadd.f32 %v12025_v22, %v9256_v43  ;;  %v7113_v27 = vsel %vm287_vm0, %v6993_v39, 0.0 }
 0x33b   :  { %v6731_v9 = vadd.f32 %v12025_v22, %v9257_v29  ;;  %v8803_v11 = vpop.f32.mrb[62].mxu1  ;;  %v9192_v10 = vpop.f32.mrb[60].mxu0  ;;  %v7111_v18 = vsel %vm287_vm0, %v6992_v48, 0.0 }
 0x33c   :  { %v9258_v41 = vadd.f32 %v9192_v10, %v8800_v56  ;;  %v3767_v45 = vpop.f32.mrb[63].mxu1  ;;  %v6586_v23 = vpop.f32.mrb[61].mxu0  ;;  %v7112_v35 = vadd.f32 %v7111_v18, %v7110_v42  ;;  %6796 = vst.msk [vmem:[%s12097_s3 + $0x1d8] sm:$0xff] %vm287_vm0, %v6732_v6  ;;  %v6995_v49 = vmul.f32 %v6732_v6, %v6732_v6  ;;  %v6915_v51 = vadd.f32 %v6914_v36, %v6913_v21 }
 0x33d   :  { %6795 = vst.msk [vmem:[%s12097_s3 + $0x1d0] sm:$0xff] %vm287_vm0, %v6731_v9  ;;  %v6916_v59 = vsel %vm287_vm0, %v6731_v9, 0.0  ;;  %v6994_v52 = vmul.f32 %v6731_v9, %v6731_v9  ;;  %v9259_v58 = vadd.f32 %v6586_v23, %v3757_v63  ;;  %v6918_v20 = vsel %vm287_vm0, %v6732_v6, 0.0 }
 0x33e   :  { %v6734_v5 = vadd.f32 %v12025_v22, %v9258_v41  ;;  %v6917_v12 = vadd.f32 %v6916_v59, %v6915_v51  ;;  %v7114_v16 = vadd.f32 %v7113_v27, %v7112_v35  ;;  %v7117_v47 = vsel %vm287_vm0, %v6995_v49, 0.0 }
 0x33f   :  { %v9195_v32 = vpop.f32.mrb[62].mxu0  ;;  %v7115_v24 = vsel %vm287_vm0, %v6994_v52, 0.0  ;;  %v6733_v62 = vadd.f32 %v12025_v22, %v9259_v58 }
 0x340   :  { %6798 = vst.msk [vmem:[%s12097_s3 + $0x1e8] sm:$0xff] %vm287_vm0, %v6734_v5  ;;  %v6596_v28 = vpop.f32.mrb[63].mxu0  ;;  %v7116_v33 = vadd.f32 %v7115_v24, %v7114_v16  ;;  %v6919_v55 = vadd.f32 %v6918_v20, %v6917_v12  ;;  %v9260_v46 = vadd.f32 %v9195_v32, %v8803_v11  ;;  %v6997_v53 = vmul.f32 %v6734_v5, %v6734_v5 }
 0x341   :  { %v9261_v40 = vadd.f32 %v6596_v28, %v3767_v45  ;;  %6797 = vst.msk [vmem:[%s12097_s3 + $0x1e0] sm:$0xff] %vm287_vm0, %v6733_v62  ;;  %v6920_v15 = vsel %vm287_vm0, %v6733_v62, 0.0  ;;  %v6996_v17 = vmul.f32 %v6733_v62, %v6733_v62  ;;  %v6922_v37 = vsel %vm287_vm0, %v6734_v5, 0.0 }
 0x342   :  { %v6921_v57 = vadd.f32 %v6920_v15, %v6919_v55  ;;  %v7118_v30 = vadd.f32 %v7117_v47, %v7116_v33  ;;  %v6736_v13 = vadd.f32 %v12025_v22, %v9260_v46  ;;  %v7121_v61 = vsel %vm287_vm0, %v6997_v53, 0.0 }
 0x343   :  { %v6735_v14 = vadd.f32 %v12025_v22, %v9261_v40  ;;  %v7119_v50 = vsel %vm287_vm0, %v6996_v17, 0.0 }
 0x344   :  { %v7120_v31 = vadd.f32 %v7119_v50, %v7118_v30  ;;  %6800 = vst.msk [vmem:[%s12097_s3 + $0x1f8] sm:$0xff] %vm287_vm0, %v6736_v13  ;;  %v6923_v38 = vadd.f32 %v6922_v37, %v6921_v57  ;;  %v6999_v19 = vmul.f32 %v6736_v13, %v6736_v13  ;;  %v6926_v26 = vsel %vm287_vm0, %v6736_v13, 0.0 }
 0x345   :  { %6799 = vst.msk [vmem:[%s12097_s3 + $0x1f0] sm:$0xff] %vm287_vm0, %v6735_v14  ;;  %v6924_v22 = vsel %vm287_vm0, %v6735_v14, 0.0  ;;  %v6998_v25 = vmul.f32 %v6735_v14, %v6735_v14 }
 0x346   :  { %v6925_v54 = vadd.f32 %v6924_v22, %v6923_v38  ;;  %v7122_v4 = vadd.f32 %v7121_v61, %v7120_v31  ;;  %v7125_v44 = vsel %vm287_vm0, %v6999_v19, 0.0 }
 0x347   :  { %v7123_v56 = vsel %vm287_vm0, %v6998_v25, 0.0 }
 0x348   :  { %v6927_v34 = vadd.f32 %v6926_v26, %v6925_v54  ;;  %v7124_v8 = vadd.f32 %v7123_v56, %v7122_v4 }
 0x34a   :  { %v6928_v39 = vrot.slane %v6927_v34, 4  ;;  %v7126_v1 = vadd.f32 %v7125_v44, %v7124_v8 }
 0x34c   :  { %v6929_v63 = vadd.f32 %v6928_v39, %v6927_v34  ;;  %v7127_v60 = vrot.slane %v7126_v1, 4 }
 0x34e   :  { %v6930_v0 = vrot.slane %v6929_v63, 2  ;;  %v7128_v7 = vadd.f32 %v7127_v60, %v7126_v1 }
 0x350   :  { %v6931_v43 = vadd.f32 %v6930_v0, %v6929_v63  ;;  %v7129_v29 = vrot.slane %v7128_v7, 2 }
 0x352   :  { %v6932_v2 = vrot.slane %v6931_v43, 1  ;;  %v7130_v3 = vadd.f32 %v7129_v29, %v7128_v7 }
 0x354   :  { %v6933_v48 = vadd.f32 %v6932_v2, %v6931_v43  ;;  %v7131_v21 = vrot.slane %v7130_v3, 1 }
 0x356   :  { %6935 = vst.msk [vmem:[%s12098_s4] sm:$0x1] %vm303_vm2, %v6933_v48  ;;  %v7132_v42 = vadd.f32 %v7131_v21, %v7130_v3 }
 0x358   :  { %7133 = vst.msk [vmem:[%s12098_s4 + $0x1] sm:$0x1] %vm303_vm2, %v7132_v42 }

</bundles_post_ra>
